<compile_context>
chip_gen: v7x
topology: tpu7x:2x2x1
jax: 0.10.0
libtpu: 0.0.40
codegen_flags: <defaults>
</compile_context>

<pallas_src>
import functools
import math

import jax
import jax.numpy as jnp
from jax import lax
from jax.experimental import pallas as pl
from jax.experimental.pallas import tpu as pltpu  # noqa: F401  (TPU backend)


# ----------------------------------------------------------------------------
# In-kernel helpers (operate on values, not refs)
# ----------------------------------------------------------------------------
def _layernorm(x, g, b, eps):
    """LayerNorm over last dim. x: (M, D); g, b: (1, D)."""
    mu = jnp.mean(x, axis=-1, keepdims=True)
    xc = x - mu
    var = jnp.mean(xc * xc, axis=-1, keepdims=True)
    return xc * lax.rsqrt(var + eps) * g + b


# ----------------------------------------------------------------------------
# Single fused kernel: embeddings + encoder stack + decoder stack + fc_out
# ----------------------------------------------------------------------------
def _tiny_transformer_kernel(
        src_ids_ref, tgt_ids_ref,            # (B*Ss, 1), (B*St, 1) int32
        src_emb_ref, tgt_emb_ref,            # (Vs_pad, D), (Vt_pad, D)
        e_in_w_ref, e_in_b_ref, e_out_w_ref, e_vec_ref,
        e_w1_ref, e_b1_ref, e_w2_ref, e_norm_ref,
        d_in_w_ref, d_in_b_ref, d_out_w_ref,
        c_in_w_ref, c_in_b_ref, c_out_w_ref,
        d_vec_ref, d_w1_ref, d_b1_ref, d_w2_ref, d_norm_ref,
        fc_w_ref, fc_b_ref,
        logits_ref,                          # out: (B*St, Vpad)
        *, B, Ss, St, D, F, L, nhead, eps, emb_scale):
    del F  # implied by weight shapes
    Dh = D // nhead
    scale = 1.0 / math.sqrt(Dh)
    f32 = jnp.float32

    # ---- embedding: one-hot matmul against the VMEM-resident table --------
    def embed(ids_ref, table_ref, n):
        vocab = table_ref.shape[0]
        ids = ids_ref[...]                                       # (n, 1) int32
        iota = lax.broadcasted_iota(jnp.int32, (n, vocab), 1)
        onehot = (iota == ids).astype(f32)                       # (n, vocab)
        return jnp.dot(onehot, table_ref[...],
                       preferred_element_type=f32) * emb_scale   # (n, D)

    # ---- multi-head attention with per-head (lane-aligned) weights --------
    def attention(xq, xkv, in_w_ref, in_b_ref, out_w_ref, bo, l, Sq, Sk):
        """xq: (B*Sq, D) queries; xkv: (B*Sk, D) keys/values.  Weights were
        pre-split per head at init: in_w (L, 3*H, D, Dh) [q_h..,k_h..,v_h..],
        out_w (L, H, Dh, D).  No lane slicing inside the kernel."""
        in_b = in_b_ref[l]                                       # (3*H, Dh)
        acc = jnp.zeros((B * Sq, D), f32) + bo                   # bo: (1, D)
        for h in range(nhead):
            q = (jnp.dot(xq, in_w_ref[l, h], preferred_element_type=f32)
                 + in_b[h:h + 1, :])                             # (B*Sq, Dh)
            k = (jnp.dot(xkv, in_w_ref[l, nhead + h],
                         preferred_element_type=f32)
                 + in_b[nhead + h:nhead + h + 1, :])             # (B*Sk, Dh)
            v = (jnp.dot(xkv, in_w_ref[l, 2 * nhead + h],
                         preferred_element_type=f32)
                 + in_b[2 * nhead + h:2 * nhead + h + 1, :])     # (B*Sk, Dh)
            q3 = q.reshape(B, Sq, Dh)
            k3 = k.reshape(B, Sk, Dh)
            v3 = v.reshape(B, Sk, Dh)
            s = jnp.einsum('bqd,bkd->bqk', q3, k3,
                           preferred_element_type=f32) * scale   # (B,Sq,Sk)
            s = s - jnp.max(s, axis=-1, keepdims=True)
            p = jnp.exp(s)
            p = p / jnp.sum(p, axis=-1, keepdims=True)           # exact softmax
            oh = jnp.einsum('bqk,bkd->bqd', p, v3,
                            preferred_element_type=f32)          # (B,Sq,Dh)
            # Folded output projection: o @ Wo == sum_h o_h @ Wo_h
            acc = acc + jnp.dot(oh.reshape(B * Sq, Dh), out_w_ref[l, h],
                                preferred_element_type=f32)
        return acc

    def ffn(h, w1_ref, b1_ref, w2_ref, b2, l):
        f = jnp.dot(h, w1_ref[l], preferred_element_type=f32) + b1_ref[l]
        f = jnp.maximum(f, 0.0)                                  # ReLU
        return jnp.dot(f, w2_ref[l], preferred_element_type=f32) + b2

    # ------------------------------ encoder --------------------------------
    x = embed(src_ids_ref, src_emb_ref, B * Ss)                  # (B*Ss, D)
    for l in range(L):
        # vec rows: [bo, ln1_g, ln1_b, ln2_g, ln2_b, ffn_b2]
        vec = e_vec_ref[l]                                       # (6, D)
        a = attention(x, x, e_in_w_ref, e_in_b_ref, e_out_w_ref,
                      vec[0:1, :], l, Ss, Ss)
        h = _layernorm(x + a, vec[1:2, :], vec[2:3, :], eps)
        f = ffn(h, e_w1_ref, e_b1_ref, e_w2_ref, vec[5:6, :], l)
        x = _layernorm(h + f, vec[3:4, :], vec[4:5, :], eps)
    en = e_norm_ref[...]                                         # (2, D)
    mem = _layernorm(x, en[0:1, :], en[1:2, :], eps)             # stays in VMEM

    # ------------------------------ decoder --------------------------------
    y = embed(tgt_ids_ref, tgt_emb_ref, B * St)                  # (B*St, D)
    for l in range(L):
        # vec rows: [self_bo, cross_bo, ln1_g, ln1_b, ln2_g, ln2_b,
        #            ln3_g, ln3_b, ffn_b2]
        vec = d_vec_ref[l]                                       # (9, D)
        a = attention(y, y, d_in_w_ref, d_in_b_ref, d_out_w_ref,
                      vec[0:1, :], l, St, St)
        h = _layernorm(y + a, vec[2:3, :], vec[3:4, :], eps)
        c = attention(h, mem, c_in_w_ref, c_in_b_ref, c_out_w_ref,
                      vec[1:2, :], l, St, Ss)
        h = _layernorm(h + c, vec[4:5, :], vec[5:6, :], eps)
        f = ffn(h, d_w1_ref, d_b1_ref, d_w2_ref, vec[8:9, :], l)
        y = _layernorm(h + f, vec[6:7, :], vec[7:8, :], eps)
    dn = d_norm_ref[...]                                         # (2, D)
    y = _layernorm(y, dn[0:1, :], dn[1:2, :], eps)

    # fc_out (zero-padded to 128 lanes -> unmasked, lane-dense store)
    logits_ref[...] = (jnp.dot(y, fc_w_ref[...], preferred_element_type=f32)
                       + fc_b_ref[...])


# ----------------------------------------------------------------------------
# Wrapper: one pallas_call per forward (no grid; everything VMEM-resident)
# ----------------------------------------------------------------------------
def tiny_transformer_forward(params, src, tgt, *, cfg, output_vocab):
    d = cfg["word_vec_size"]
    nhead = cfg["heads"]
    ff = cfg["transformer_ff"]
    L = cfg["layers"]
    B, Ss = src.shape
    _, St = tgt.shape
    Vpad = params["fc_w"].shape[1]
    enc, dec = params["encoder"], params["decoder"]

    kernel = functools.partial(
        _tiny_transformer_kernel, B=B, Ss=Ss, St=St, D=d, F=ff, L=L,
        nhead=nhead, eps=1e-5, emb_scale=math.sqrt(d))

    logits_pad = pl.pallas_call(
        kernel,
        out_shape=jax.ShapeDtypeStruct((B * St, Vpad), jnp.float32),
        # No grid / BlockSpecs: every operand is a full-array block resident
        # in VMEM (total footprint is a few hundred KB).
    )(src.reshape(B * Ss, 1).astype(jnp.int32),
      tgt.reshape(B * St, 1).astype(jnp.int32),
      params["src_emb"], params["tgt_emb"],
      enc["in_w"], enc["in_b"], enc["out_w"], enc["vec"],
      enc["w1"], enc["b1"], enc["w2"], enc["norm"],
      dec["self_in_w"], dec["self_in_b"], dec["self_out_w"],
      dec["cross_in_w"], dec["cross_in_b"], dec["cross_out_w"],
      dec["vec"], dec["w1"], dec["b1"], dec["w2"], dec["norm"],
      params["fc_w"], params["fc_b"])

    return logits_pad[:, :output_vocab].reshape(B, St, output_vocab)


# ----------------------------------------------------------------------------
# Deterministic parameter init.  Weights are stored PRE-TRANSPOSED (x @ W)
# and pre-split per attention head so the kernel never lane-slices.  Xavier
# bounds match the PyTorch _init_weights semantics (symmetric under
# transpose); biases zero, LayerNorm weight=1 / bias=0.
# ----------------------------------------------------------------------------
def init_params(key, input_vocab, output_vocab, cfg):
    d = cfg["word_vec_size"]
    ff = cfg["transformer_ff"]
    L = cfg["layers"]
    nhead = cfg["heads"]
    Dh = d // nhead
    Vpad = ((output_vocab + 127) // 128) * 128
    keys = iter(jax.random.split(key, 4096))

    def xav(fan_in, fan_out, shape):
        bound = math.sqrt(6.0 / (fan_in + fan_out))
        return jax.random.uniform(next(keys), shape, jnp.float32, -bound, bound)

    zeros = lambda *s: jnp.zeros(s, jnp.float32)
    ones = lambda *s: jnp.ones(s, jnp.float32)

    def attn_block():
        # Single in_proj like PyTorch MHA: (d, 3d) pre-transposed, then split
        # per head on the host -> kernel sees lane-aligned (D, Dh) matrices.
        w_in = xav(d, 3 * d, (d, 3 * d))
        w_in_h = jnp.transpose(w_in.reshape(d, 3, nhead, Dh),
                               (1, 2, 0, 3)).reshape(3 * nhead, d, Dh)
        b_in_h = zeros(3 * nhead, Dh)
        w_out = xav(d, d, (d, d))
        w_out_h = w_out.reshape(nhead, Dh, d)   # rows h*Dh:(h+1)*Dh -> head h
        return w_in_h, b_in_h, w_out_h

    def enc_layer():
        in_w, in_b, out_w = attn_block()
        vec = jnp.concatenate([zeros(1, d),              # attn out bias
                               ones(1, d), zeros(1, d),  # ln1 g, b
                               ones(1, d), zeros(1, d),  # ln2 g, b
                               zeros(1, d)], axis=0)     # ffn b2
        return dict(in_w=in_w, in_b=in_b, out_w=out_w, vec=vec,
                    w1=xav(d, ff, (d, ff)), b1=zeros(1, ff),
                    w2=xav(ff, d, (ff, d)))

    def dec_layer():
        s_in_w, s_in_b, s_out_w = attn_block()
        c_in_w, c_in_b, c_out_w = attn_block()
        vec = jnp.concatenate([zeros(1, d), zeros(1, d),  # self bo, cross bo
                               ones(1, d), zeros(1, d),   # ln1 g, b
                               ones(1, d), zeros(1, d),   # ln2 g, b
                               ones(1, d), zeros(1, d),   # ln3 g, b
                               zeros(1, d)], axis=0)      # ffn b2
        return dict(self_in_w=s_in_w, self_in_b=s_in_b, self_out_w=s_out_w,
                    cross_in_w=c_in_w, cross_in_b=c_in_b, cross_out_w=c_out_w,
                    vec=vec, w1=xav(d, ff, (d, ff)), b1=zeros(1, ff),
                    w2=xav(ff, d, (ff, d)))

    def stack(layer_fn):
        layers = [layer_fn() for _ in range(L)]
        return {k: jnp.stack([lp[k] for lp in layers], axis=0)
                for k in layers[0]}

    enc = stack(enc_layer)
    enc["norm"] = jnp.concatenate([ones(1, d), zeros(1, d)], axis=0)
    dec = stack(dec_layer)
    dec["norm"] = jnp.concatenate([ones(1, d), zeros(1, d)], axis=0)

    def emb_table(vocab):
        t = xav(vocab, d, (vocab, d))
        vpad = ((vocab + 7) // 8) * 8          # sublane-aligned table rows
        if vpad != vocab:
            t = jnp.concatenate([t, zeros(vpad - vocab, d)], axis=0)
        return t

    fc_w = jnp.zeros((d, Vpad), jnp.float32).at[:, :output_vocab].set(
        xav(d, output_vocab, (d, output_vocab)))
    fc_b = zeros(1, Vpad)

    return dict(src_emb=emb_table(input_vocab),
                tgt_emb=emb_table(output_vocab),
                encoder=enc, decoder=dec,
                fc_w=fc_w, fc_b=fc_b)


# ----------------------------------------------------------------------------
if __name__ == "__main__":
    cfg = dict(word_vec_size=32, heads=4, layers=2, transformer_ff=64,
               dropout=0.0, param_init_glorot="true")
    input_vocab, output_vocab = 50, 40
    B, S_src, S_tgt = 2, 8, 8

    root = jax.random.PRNGKey(0)
    pkey, skey, tkey = jax.random.split(root, 3)
    params = init_params(pkey, input_vocab, output_vocab, cfg)

    src = jax.random.randint(skey, (B, S_src), 0, input_vocab, dtype=jnp.int32)
    tgt = jax.random.randint(tkey, (B, S_tgt), 0, output_vocab, dtype=jnp.int32)

    fwd = jax.jit(functools.partial(tiny_transformer_forward, cfg=cfg,
                                    output_vocab=output_vocab))
    logits = fwd(params, src, tgt)
    logits = jax.block_until_ready(logits)

    assert logits.shape == (B, S_tgt, output_vocab), logits.shape
    assert bool(jnp.all(jnp.isfinite(logits)))
    print("KERNEL_OK")
</pallas_src>

<mosaic_0001>
module attributes {stable_mosaic.version = 11 : i64} {
  func.func @_tiny_transformer_kernel(%arg0: memref<16x1xi32, #tpu.memory_space<vmem>>, %arg1: memref<16x1xi32, #tpu.memory_space<vmem>>, %arg2: memref<56x32xf32, #tpu.memory_space<vmem>>, %arg3: memref<40x32xf32, #tpu.memory_space<vmem>>, %arg4: memref<2x12x32x8xf32, #tpu.memory_space<vmem>>, %arg5: memref<2x12x8xf32, #tpu.memory_space<vmem>>, %arg6: memref<2x4x8x32xf32, #tpu.memory_space<vmem>>, %arg7: memref<2x6x32xf32, #tpu.memory_space<vmem>>, %arg8: memref<2x32x64xf32, #tpu.memory_space<vmem>>, %arg9: memref<2x1x64xf32, #tpu.memory_space<vmem>>, %arg10: memref<2x64x32xf32, #tpu.memory_space<vmem>>, %arg11: memref<2x32xf32, #tpu.memory_space<vmem>>, %arg12: memref<2x12x32x8xf32, #tpu.memory_space<vmem>>, %arg13: memref<2x12x8xf32, #tpu.memory_space<vmem>>, %arg14: memref<2x4x8x32xf32, #tpu.memory_space<vmem>>, %arg15: memref<2x12x32x8xf32, #tpu.memory_space<vmem>>, %arg16: memref<2x12x8xf32, #tpu.memory_space<vmem>>, %arg17: memref<2x4x8x32xf32, #tpu.memory_space<vmem>>, %arg18: memref<2x9x32xf32, #tpu.memory_space<vmem>>, %arg19: memref<2x32x64xf32, #tpu.memory_space<vmem>>, %arg20: memref<2x1x64xf32, #tpu.memory_space<vmem>>, %arg21: memref<2x64x32xf32, #tpu.memory_space<vmem>>, %arg22: memref<2x32xf32, #tpu.memory_space<vmem>>, %arg23: memref<32x128xf32, #tpu.memory_space<vmem>>, %arg24: memref<1x128xf32, #tpu.memory_space<vmem>>, %arg25: memref<16x128xf32, #tpu.memory_space<vmem>>) attributes {dimension_semantics = [], scalar_prefetch = 0 : i64, scratch_operands = 0 : i64, tpu.core_type = #tpu.core_type<tc>} {
    %c0 = arith.constant 0 : index
    %c0_0 = arith.constant 0 : index
    %0 = vector.load %arg0[%c0, %c0_0] : memref<16x1xi32, #tpu.memory_space<vmem>>, vector<16x1xi32>
    %1 = tpu.iota {dimensions = array<i32: 1>} : vector<16x56xi32>
    %2 = vector.broadcast %0 : vector<16x1xi32> to vector<16x56xi32>
    %3 = arith.cmpi eq, %1, %2 : vector<16x56xi32>
    %4 = arith.extui %3 : vector<16x56xi1> to vector<16x56xi32>
    %5 = arith.sitofp %4 : vector<16x56xi32> to vector<16x56xf32>
    %c0_1 = arith.constant 0 : index
    %c0_2 = arith.constant 0 : index
    %6 = vector.load %arg2[%c0_1, %c0_2] : memref<56x32xf32, #tpu.memory_space<vmem>>, vector<56x32xf32>
    %cst = arith.constant dense<0.000000e+00> : vector<16x32xf32>
    %7 = tpu.matmul %5, %6, %cst {dimension_numbers = #tpu.dot_dimension_numbers<[1], [0], [0], [1], [0, 0, 1, 1], [], []>} : vector<16x56xf32>, vector<56x32xf32>, vector<16x32xf32> -> vector<16x32xf32>
    %cst_3 = arith.constant 5.65685415 : f32
    %8 = vector.broadcast %cst_3 : f32 to vector<16x32xf32>
    %9 = arith.mulf %7, %8 : vector<16x32xf32>
    %c0_4 = arith.constant 0 : index
    %c0_5 = arith.constant 0 : index
    %c0_6 = arith.constant 0 : index
    %10 = vector.load %arg7[%c0_4, %c0_5, %c0_6] : memref<2x6x32xf32, #tpu.memory_space<vmem>>, vector<1x6x32xf32>
    %11 = vector.shape_cast %10 : vector<1x6x32xf32> to vector<6x32xf32>
    %12 = vector.extract_strided_slice %11 {offsets = [0, 0], sizes = [1, 32], strides = [1, 1]} : vector<6x32xf32> to vector<1x32xf32>
    %c0_7 = arith.constant 0 : index
    %c0_8 = arith.constant 0 : index
    %c0_9 = arith.constant 0 : index
    %13 = vector.load %arg5[%c0_7, %c0_8, %c0_9] : memref<2x12x8xf32, #tpu.memory_space<vmem>>, vector<1x12x8xf32>
    %14 = vector.shape_cast %13 : vector<1x12x8xf32> to vector<12x8xf32>
    %cst_10 = arith.constant 0.000000e+00 : f32
    %15 = vector.broadcast %cst_10 : f32 to vector<16x32xf32>
    %16 = vector.broadcast %12 : vector<1x32xf32> to vector<16x32xf32>
    %17 = arith.addf %15, %16 : vector<16x32xf32>
    %c0_11 = arith.constant 0 : index
    %c0_12 = arith.constant 0 : index
    %c0_13 = arith.constant 0 : index
    %c0_14 = arith.constant 0 : index
    %18 = vector.load %arg4[%c0_11, %c0_12, %c0_13, %c0_14] : memref<2x12x32x8xf32, #tpu.memory_space<vmem>>, vector<1x1x32x8xf32>
    %19 = vector.shape_cast %18 : vector<1x1x32x8xf32> to vector<32x8xf32>
    %cst_15 = arith.constant dense<0.000000e+00> : vector<16x8xf32>
    %20 = tpu.matmul %9, %19, %cst_15 {dimension_numbers = #tpu.dot_dimension_numbers<[1], [0], [0], [1], [0, 0, 1, 1], [], []>} : vector<16x32xf32>, vector<32x8xf32>, vector<16x8xf32> -> vector<16x8xf32>
    %21 = vector.extract_strided_slice %14 {offsets = [0, 0], sizes = [1, 8], strides = [1, 1]} : vector<12x8xf32> to vector<1x8xf32>
    %22 = vector.broadcast %21 : vector<1x8xf32> to vector<16x8xf32>
    %23 = arith.addf %20, %22 : vector<16x8xf32>
    %c0_16 = arith.constant 0 : index
    %c4 = arith.constant 4 : index
    %c0_17 = arith.constant 0 : index
    %c0_18 = arith.constant 0 : index
    %24 = vector.load %arg4[%c0_16, %c4, %c0_17, %c0_18] : memref<2x12x32x8xf32, #tpu.memory_space<vmem>>, vector<1x1x32x8xf32>
    %25 = vector.shape_cast %24 : vector<1x1x32x8xf32> to vector<32x8xf32>
    %cst_19 = arith.constant dense<0.000000e+00> : vector<16x8xf32>
    %26 = tpu.matmul %9, %25, %cst_19 {dimension_numbers = #tpu.dot_dimension_numbers<[1], [0], [0], [1], [0, 0, 1, 1], [], []>} : vector<16x32xf32>, vector<32x8xf32>, vector<16x8xf32> -> vector<16x8xf32>
    %27 = vector.extract_strided_slice %14 {offsets = [4, 0], sizes = [1, 8], strides = [1, 1]} : vector<12x8xf32> to vector<1x8xf32>
    %28 = vector.broadcast %27 : vector<1x8xf32> to vector<16x8xf32>
    %29 = arith.addf %26, %28 : vector<16x8xf32>
    %c0_20 = arith.constant 0 : index
    %c8 = arith.constant 8 : index
    %c0_21 = arith.constant 0 : index
    %c0_22 = arith.constant 0 : index
    %30 = vector.load %arg4[%c0_20, %c8, %c0_21, %c0_22] : memref<2x12x32x8xf32, #tpu.memory_space<vmem>>, vector<1x1x32x8xf32>
    %31 = vector.shape_cast %30 : vector<1x1x32x8xf32> to vector<32x8xf32>
    %cst_23 = arith.constant dense<0.000000e+00> : vector<16x8xf32>
    %32 = tpu.matmul %9, %31, %cst_23 {dimension_numbers = #tpu.dot_dimension_numbers<[1], [0], [0], [1], [0, 0, 1, 1], [], []>} : vector<16x32xf32>, vector<32x8xf32>, vector<16x8xf32> -> vector<16x8xf32>
    %33 = vector.extract_strided_slice %14 {offsets = [8, 0], sizes = [1, 8], strides = [1, 1]} : vector<12x8xf32> to vector<1x8xf32>
    %34 = vector.broadcast %33 : vector<1x8xf32> to vector<16x8xf32>
    %35 = arith.addf %32, %34 : vector<16x8xf32>
    %36 = vector.shape_cast %23 : vector<16x8xf32> to vector<2x8x8xf32>
    %37 = vector.shape_cast %29 : vector<16x8xf32> to vector<2x8x8xf32>
    %38 = vector.shape_cast %35 : vector<16x8xf32> to vector<2x8x8xf32>
    "tpu.trace_start"() <{level = 10 : i32, message = "bqd,bkd->bqk"}> : () -> ()
    %cst_24 = arith.constant dense<0.000000e+00> : vector<2x8x8xf32>
    %39 = tpu.matmul %36, %37, %cst_24 {dimension_numbers = #tpu.dot_dimension_numbers<[2], [2], [1], [1], [0, 0, 0, 1, 1, 1], [0], [0]>} : vector<2x8x8xf32>, vector<2x8x8xf32>, vector<2x8x8xf32> -> vector<2x8x8xf32>
    "tpu.trace_stop"() : () -> ()
    %cst_25 = arith.constant 0.353553385 : f32
    %40 = vector.broadcast %cst_25 : f32 to vector<2x8x8xf32>
    %41 = arith.mulf %39, %40 : vector<2x8x8xf32>
    %cst_26 = arith.constant dense<0xFF800000> : vector<2x8xf32>
    %42 = vector.multi_reduction <maximumf>, %41, %cst_26 [2] : vector<2x8x8xf32> to vector<2x8xf32>
    %43 = vector.shape_cast %42 : vector<2x8xf32> to vector<2x8x1xf32>
    %44 = vector.broadcast %43 : vector<2x8x1xf32> to vector<2x8x8xf32>
    %45 = arith.subf %41, %44 : vector<2x8x8xf32>
    %46 = math.exp %45 : vector<2x8x8xf32>
    %cst_27 = arith.constant dense<0.000000e+00> : vector<2x8xf32>
    %47 = vector.multi_reduction <add>, %46, %cst_27 [2] : vector<2x8x8xf32> to vector<2x8xf32>
    %48 = vector.shape_cast %47 : vector<2x8xf32> to vector<2x8x1xf32>
    %49 = vector.broadcast %48 : vector<2x8x1xf32> to vector<2x8x8xf32>
    %50 = arith.divf %46, %49 : vector<2x8x8xf32>
    "tpu.trace_start"() <{level = 10 : i32, message = "bqk,bkd->bqd"}> : () -> ()
    %cst_28 = arith.constant dense<0.000000e+00> : vector<2x8x8xf32>
    %51 = tpu.matmul %50, %38, %cst_28 {dimension_numbers = #tpu.dot_dimension_numbers<[2], [1], [1], [2], [0, 0, 0, 1, 1, 2], [0], [0]>} : vector<2x8x8xf32>, vector<2x8x8xf32>, vector<2x8x8xf32> -> vector<2x8x8xf32>
    "tpu.trace_stop"() : () -> ()
    %52 = vector.shape_cast %51 : vector<2x8x8xf32> to vector<16x8xf32>
    %c0_29 = arith.constant 0 : index
    %c0_30 = arith.constant 0 : index
    %c0_31 = arith.constant 0 : index
    %c0_32 = arith.constant 0 : index
    %53 = vector.load %arg6[%c0_29, %c0_30, %c0_31, %c0_32] : memref<2x4x8x32xf32, #tpu.memory_space<vmem>>, vector<1x1x8x32xf32>
    %54 = vector.shape_cast %53 : vector<1x1x8x32xf32> to vector<8x32xf32>
    %cst_33 = arith.constant dense<0.000000e+00> : vector<16x32xf32>
    %55 = tpu.matmul %52, %54, %cst_33 {dimension_numbers = #tpu.dot_dimension_numbers<[1], [0], [0], [1], [0, 0, 1, 1], [], []>} : vector<16x8xf32>, vector<8x32xf32>, vector<16x32xf32> -> vector<16x32xf32>
    %56 = arith.addf %17, %55 : vector<16x32xf32>
    %c0_34 = arith.constant 0 : index
    %c1 = arith.constant 1 : index
    %c0_35 = arith.constant 0 : index
    %c0_36 = arith.constant 0 : index
    %57 = vector.load %arg4[%c0_34, %c1, %c0_35, %c0_36] : memref<2x12x32x8xf32, #tpu.memory_space<vmem>>, vector<1x1x32x8xf32>
    %58 = vector.shape_cast %57 : vector<1x1x32x8xf32> to vector<32x8xf32>
    %cst_37 = arith.constant dense<0.000000e+00> : vector<16x8xf32>
    %59 = tpu.matmul %9, %58, %cst_37 {dimension_numbers = #tpu.dot_dimension_numbers<[1], [0], [0], [1], [0, 0, 1, 1], [], []>} : vector<16x32xf32>, vector<32x8xf32>, vector<16x8xf32> -> vector<16x8xf32>
    %60 = vector.extract_strided_slice %14 {offsets = [1, 0], sizes = [1, 8], strides = [1, 1]} : vector<12x8xf32> to vector<1x8xf32>
    %61 = vector.broadcast %60 : vector<1x8xf32> to vector<16x8xf32>
    %62 = arith.addf %59, %61 : vector<16x8xf32>
    %c0_38 = arith.constant 0 : index
    %c5 = arith.constant 5 : index
    %c0_39 = arith.constant 0 : index
    %c0_40 = arith.constant 0 : index
    %63 = vector.load %arg4[%c0_38, %c5, %c0_39, %c0_40] : memref<2x12x32x8xf32, #tpu.memory_space<vmem>>, vector<1x1x32x8xf32>
    %64 = vector.shape_cast %63 : vector<1x1x32x8xf32> to vector<32x8xf32>
    %cst_41 = arith.constant dense<0.000000e+00> : vector<16x8xf32>
    %65 = tpu.matmul %9, %64, %cst_41 {dimension_numbers = #tpu.dot_dimension_numbers<[1], [0], [0], [1], [0, 0, 1, 1], [], []>} : vector<16x32xf32>, vector<32x8xf32>, vector<16x8xf32> -> vector<16x8xf32>
    %66 = vector.extract_strided_slice %14 {offsets = [5, 0], sizes = [1, 8], strides = [1, 1]} : vector<12x8xf32> to vector<1x8xf32>
    %67 = vector.broadcast %66 : vector<1x8xf32> to vector<16x8xf32>
    %68 = arith.addf %65, %67 : vector<16x8xf32>
    %c0_42 = arith.constant 0 : index
    %c9 = arith.constant 9 : index
    %c0_43 = arith.constant 0 : index
    %c0_44 = arith.constant 0 : index
    %69 = vector.load %arg4[%c0_42, %c9, %c0_43, %c0_44] : memref<2x12x32x8xf32, #tpu.memory_space<vmem>>, vector<1x1x32x8xf32>
    %70 = vector.shape_cast %69 : vector<1x1x32x8xf32> to vector<32x8xf32>
    %cst_45 = arith.constant dense<0.000000e+00> : vector<16x8xf32>
    %71 = tpu.matmul %9, %70, %cst_45 {dimension_numbers = #tpu.dot_dimension_numbers<[1], [0], [0], [1], [0, 0, 1, 1], [], []>} : vector<16x32xf32>, vector<32x8xf32>, vector<16x8xf32> -> vector<16x8xf32>
    %72 = vector.extract_strided_slice %14 {offsets = [9, 0], sizes = [1, 8], strides = [1, 1]} : vector<12x8xf32> to vector<1x8xf32>
    %73 = vector.broadcast %72 : vector<1x8xf32> to vector<16x8xf32>
    %74 = arith.addf %71, %73 : vector<16x8xf32>
    %75 = vector.shape_cast %62 : vector<16x8xf32> to vector<2x8x8xf32>
    %76 = vector.shape_cast %68 : vector<16x8xf32> to vector<2x8x8xf32>
    %77 = vector.shape_cast %74 : vector<16x8xf32> to vector<2x8x8xf32>
    "tpu.trace_start"() <{level = 10 : i32, message = "bqd,bkd->bqk"}> : () -> ()
    %cst_46 = arith.constant dense<0.000000e+00> : vector<2x8x8xf32>
    %78 = tpu.matmul %75, %76, %cst_46 {dimension_numbers = #tpu.dot_dimension_numbers<[2], [2], [1], [1], [0, 0, 0, 1, 1, 1], [0], [0]>} : vector<2x8x8xf32>, vector<2x8x8xf32>, vector<2x8x8xf32> -> vector<2x8x8xf32>
    "tpu.trace_stop"() : () -> ()
    %cst_47 = arith.constant 0.353553385 : f32
    %79 = vector.broadcast %cst_47 : f32 to vector<2x8x8xf32>
    %80 = arith.mulf %78, %79 : vector<2x8x8xf32>
    %cst_48 = arith.constant dense<0xFF800000> : vector<2x8xf32>
    %81 = vector.multi_reduction <maximumf>, %80, %cst_48 [2] : vector<2x8x8xf32> to vector<2x8xf32>
    %82 = vector.shape_cast %81 : vector<2x8xf32> to vector<2x8x1xf32>
    %83 = vector.broadcast %82 : vector<2x8x1xf32> to vector<2x8x8xf32>
    %84 = arith.subf %80, %83 : vector<2x8x8xf32>
    %85 = math.exp %84 : vector<2x8x8xf32>
    %cst_49 = arith.constant dense<0.000000e+00> : vector<2x8xf32>
    %86 = vector.multi_reduction <add>, %85, %cst_49 [2] : vector<2x8x8xf32> to vector<2x8xf32>
    %87 = vector.shape_cast %86 : vector<2x8xf32> to vector<2x8x1xf32>
    %88 = vector.broadcast %87 : vector<2x8x1xf32> to vector<2x8x8xf32>
    %89 = arith.divf %85, %88 : vector<2x8x8xf32>
    "tpu.trace_start"() <{level = 10 : i32, message = "bqk,bkd->bqd"}> : () -> ()
    %cst_50 = arith.constant dense<0.000000e+00> : vector<2x8x8xf32>
    %90 = tpu.matmul %89, %77, %cst_50 {dimension_numbers = #tpu.dot_dimension_numbers<[2], [1], [1], [2], [0, 0, 0, 1, 1, 2], [0], [0]>} : vector<2x8x8xf32>, vector<2x8x8xf32>, vector<2x8x8xf32> -> vector<2x8x8xf32>
    "tpu.trace_stop"() : () -> ()
    %91 = vector.shape_cast %90 : vector<2x8x8xf32> to vector<16x8xf32>
    %c0_51 = arith.constant 0 : index
    %c1_52 = arith.constant 1 : index
    %c0_53 = arith.constant 0 : index
    %c0_54 = arith.constant 0 : index
    %92 = vector.load %arg6[%c0_51, %c1_52, %c0_53, %c0_54] : memref<2x4x8x32xf32, #tpu.memory_space<vmem>>, vector<1x1x8x32xf32>
    %93 = vector.shape_cast %92 : vector<1x1x8x32xf32> to vector<8x32xf32>
    %cst_55 = arith.constant dense<0.000000e+00> : vector<16x32xf32>
    %94 = tpu.matmul %91, %93, %cst_55 {dimension_numbers = #tpu.dot_dimension_numbers<[1], [0], [0], [1], [0, 0, 1, 1], [], []>} : vector<16x8xf32>, vector<8x32xf32>, vector<16x32xf32> -> vector<16x32xf32>
    %95 = arith.addf %56, %94 : vector<16x32xf32>
    %c0_56 = arith.constant 0 : index
    %c2 = arith.constant 2 : index
    %c0_57 = arith.constant 0 : index
    %c0_58 = arith.constant 0 : index
    %96 = vector.load %arg4[%c0_56, %c2, %c0_57, %c0_58] : memref<2x12x32x8xf32, #tpu.memory_space<vmem>>, vector<1x1x32x8xf32>
    %97 = vector.shape_cast %96 : vector<1x1x32x8xf32> to vector<32x8xf32>
    %cst_59 = arith.constant dense<0.000000e+00> : vector<16x8xf32>
    %98 = tpu.matmul %9, %97, %cst_59 {dimension_numbers = #tpu.dot_dimension_numbers<[1], [0], [0], [1], [0, 0, 1, 1], [], []>} : vector<16x32xf32>, vector<32x8xf32>, vector<16x8xf32> -> vector<16x8xf32>
    %99 = vector.extract_strided_slice %14 {offsets = [2, 0], sizes = [1, 8], strides = [1, 1]} : vector<12x8xf32> to vector<1x8xf32>
    %100 = vector.broadcast %99 : vector<1x8xf32> to vector<16x8xf32>
    %101 = arith.addf %98, %100 : vector<16x8xf32>
    %c0_60 = arith.constant 0 : index
    %c6 = arith.constant 6 : index
    %c0_61 = arith.constant 0 : index
    %c0_62 = arith.constant 0 : index
    %102 = vector.load %arg4[%c0_60, %c6, %c0_61, %c0_62] : memref<2x12x32x8xf32, #tpu.memory_space<vmem>>, vector<1x1x32x8xf32>
    %103 = vector.shape_cast %102 : vector<1x1x32x8xf32> to vector<32x8xf32>
    %cst_63 = arith.constant dense<0.000000e+00> : vector<16x8xf32>
    %104 = tpu.matmul %9, %103, %cst_63 {dimension_numbers = #tpu.dot_dimension_numbers<[1], [0], [0], [1], [0, 0, 1, 1], [], []>} : vector<16x32xf32>, vector<32x8xf32>, vector<16x8xf32> -> vector<16x8xf32>
    %105 = vector.extract_strided_slice %14 {offsets = [6, 0], sizes = [1, 8], strides = [1, 1]} : vector<12x8xf32> to vector<1x8xf32>
    %106 = vector.broadcast %105 : vector<1x8xf32> to vector<16x8xf32>
    %107 = arith.addf %104, %106 : vector<16x8xf32>
    %c0_64 = arith.constant 0 : index
    %c10 = arith.constant 10 : index
    %c0_65 = arith.constant 0 : index
    %c0_66 = arith.constant 0 : index
    %108 = vector.load %arg4[%c0_64, %c10, %c0_65, %c0_66] : memref<2x12x32x8xf32, #tpu.memory_space<vmem>>, vector<1x1x32x8xf32>
    %109 = vector.shape_cast %108 : vector<1x1x32x8xf32> to vector<32x8xf32>
    %cst_67 = arith.constant dense<0.000000e+00> : vector<16x8xf32>
    %110 = tpu.matmul %9, %109, %cst_67 {dimension_numbers = #tpu.dot_dimension_numbers<[1], [0], [0], [1], [0, 0, 1, 1], [], []>} : vector<16x32xf32>, vector<32x8xf32>, vector<16x8xf32> -> vector<16x8xf32>
    %111 = vector.extract_strided_slice %14 {offsets = [10, 0], sizes = [1, 8], strides = [1, 1]} : vector<12x8xf32> to vector<1x8xf32>
    %112 = vector.broadcast %111 : vector<1x8xf32> to vector<16x8xf32>
    %113 = arith.addf %110, %112 : vector<16x8xf32>
    %114 = vector.shape_cast %101 : vector<16x8xf32> to vector<2x8x8xf32>
    %115 = vector.shape_cast %107 : vector<16x8xf32> to vector<2x8x8xf32>
    %116 = vector.shape_cast %113 : vector<16x8xf32> to vector<2x8x8xf32>
    "tpu.trace_start"() <{level = 10 : i32, message = "bqd,bkd->bqk"}> : () -> ()
    %cst_68 = arith.constant dense<0.000000e+00> : vector<2x8x8xf32>
    %117 = tpu.matmul %114, %115, %cst_68 {dimension_numbers = #tpu.dot_dimension_numbers<[2], [2], [1], [1], [0, 0, 0, 1, 1, 1], [0], [0]>} : vector<2x8x8xf32>, vector<2x8x8xf32>, vector<2x8x8xf32> -> vector<2x8x8xf32>
    "tpu.trace_stop"() : () -> ()
    %cst_69 = arith.constant 0.353553385 : f32
    %118 = vector.broadcast %cst_69 : f32 to vector<2x8x8xf32>
    %119 = arith.mulf %117, %118 : vector<2x8x8xf32>
    %cst_70 = arith.constant dense<0xFF800000> : vector<2x8xf32>
    %120 = vector.multi_reduction <maximumf>, %119, %cst_70 [2] : vector<2x8x8xf32> to vector<2x8xf32>
    %121 = vector.shape_cast %120 : vector<2x8xf32> to vector<2x8x1xf32>
    %122 = vector.broadcast %121 : vector<2x8x1xf32> to vector<2x8x8xf32>
    %123 = arith.subf %119, %122 : vector<2x8x8xf32>
    %124 = math.exp %123 : vector<2x8x8xf32>
    %cst_71 = arith.constant dense<0.000000e+00> : vector<2x8xf32>
    %125 = vector.multi_reduction <add>, %124, %cst_71 [2] : vector<2x8x8xf32> to vector<2x8xf32>
    %126 = vector.shape_cast %125 : vector<2x8xf32> to vector<2x8x1xf32>
    %127 = vector.broadcast %126 : vector<2x8x1xf32> to vector<2x8x8xf32>
    %128 = arith.divf %124, %127 : vector<2x8x8xf32>
    "tpu.trace_start"() <{level = 10 : i32, message = "bqk,bkd->bqd"}> : () -> ()
    %cst_72 = arith.constant dense<0.000000e+00> : vector<2x8x8xf32>
    %129 = tpu.matmul %128, %116, %cst_72 {dimension_numbers = #tpu.dot_dimension_numbers<[2], [1], [1], [2], [0, 0, 0, 1, 1, 2], [0], [0]>} : vector<2x8x8xf32>, vector<2x8x8xf32>, vector<2x8x8xf32> -> vector<2x8x8xf32>
    "tpu.trace_stop"() : () -> ()
    %130 = vector.shape_cast %129 : vector<2x8x8xf32> to vector<16x8xf32>
    %c0_73 = arith.constant 0 : index
    %c2_74 = arith.constant 2 : index
    %c0_75 = arith.constant 0 : index
    %c0_76 = arith.constant 0 : index
    %131 = vector.load %arg6[%c0_73, %c2_74, %c0_75, %c0_76] : memref<2x4x8x32xf32, #tpu.memory_space<vmem>>, vector<1x1x8x32xf32>
    %132 = vector.shape_cast %131 : vector<1x1x8x32xf32> to vector<8x32xf32>
    %cst_77 = arith.constant dense<0.000000e+00> : vector<16x32xf32>
    %133 = tpu.matmul %130, %132, %cst_77 {dimension_numbers = #tpu.dot_dimension_numbers<[1], [0], [0], [1], [0, 0, 1, 1], [], []>} : vector<16x8xf32>, vector<8x32xf32>, vector<16x32xf32> -> vector<16x32xf32>
    %134 = arith.addf %95, %133 : vector<16x32xf32>
    %c0_78 = arith.constant 0 : index
    %c3 = arith.constant 3 : index
    %c0_79 = arith.constant 0 : index
    %c0_80 = arith.constant 0 : index
    %135 = vector.load %arg4[%c0_78, %c3, %c0_79, %c0_80] : memref<2x12x32x8xf32, #tpu.memory_space<vmem>>, vector<1x1x32x8xf32>
    %136 = vector.shape_cast %135 : vector<1x1x32x8xf32> to vector<32x8xf32>
    %cst_81 = arith.constant dense<0.000000e+00> : vector<16x8xf32>
    %137 = tpu.matmul %9, %136, %cst_81 {dimension_numbers = #tpu.dot_dimension_numbers<[1], [0], [0], [1], [0, 0, 1, 1], [], []>} : vector<16x32xf32>, vector<32x8xf32>, vector<16x8xf32> -> vector<16x8xf32>
    %138 = vector.extract_strided_slice %14 {offsets = [3, 0], sizes = [1, 8], strides = [1, 1]} : vector<12x8xf32> to vector<1x8xf32>
    %139 = vector.broadcast %138 : vector<1x8xf32> to vector<16x8xf32>
    %140 = arith.addf %137, %139 : vector<16x8xf32>
    %c0_82 = arith.constant 0 : index
    %c7 = arith.constant 7 : index
    %c0_83 = arith.constant 0 : index
    %c0_84 = arith.constant 0 : index
    %141 = vector.load %arg4[%c0_82, %c7, %c0_83, %c0_84] : memref<2x12x32x8xf32, #tpu.memory_space<vmem>>, vector<1x1x32x8xf32>
    %142 = vector.shape_cast %141 : vector<1x1x32x8xf32> to vector<32x8xf32>
    %cst_85 = arith.constant dense<0.000000e+00> : vector<16x8xf32>
    %143 = tpu.matmul %9, %142, %cst_85 {dimension_numbers = #tpu.dot_dimension_numbers<[1], [0], [0], [1], [0, 0, 1, 1], [], []>} : vector<16x32xf32>, vector<32x8xf32>, vector<16x8xf32> -> vector<16x8xf32>
    %144 = vector.extract_strided_slice %14 {offsets = [7, 0], sizes = [1, 8], strides = [1, 1]} : vector<12x8xf32> to vector<1x8xf32>
    %145 = vector.broadcast %144 : vector<1x8xf32> to vector<16x8xf32>
    %146 = arith.addf %143, %145 : vector<16x8xf32>
    %c0_86 = arith.constant 0 : index
    %c11 = arith.constant 11 : index
    %c0_87 = arith.constant 0 : index
    %c0_88 = arith.constant 0 : index
    %147 = vector.load %arg4[%c0_86, %c11, %c0_87, %c0_88] : memref<2x12x32x8xf32, #tpu.memory_space<vmem>>, vector<1x1x32x8xf32>
    %148 = vector.shape_cast %147 : vector<1x1x32x8xf32> to vector<32x8xf32>
    %cst_89 = arith.constant dense<0.000000e+00> : vector<16x8xf32>
    %149 = tpu.matmul %9, %148, %cst_89 {dimension_numbers = #tpu.dot_dimension_numbers<[1], [0], [0], [1], [0, 0, 1, 1], [], []>} : vector<16x32xf32>, vector<32x8xf32>, vector<16x8xf32> -> vector<16x8xf32>
    %150 = vector.extract_strided_slice %14 {offsets = [11, 0], sizes = [1, 8], strides = [1, 1]} : vector<12x8xf32> to vector<1x8xf32>
    %151 = vector.broadcast %150 : vector<1x8xf32> to vector<16x8xf32>
    %152 = arith.addf %149, %151 : vector<16x8xf32>
    %153 = vector.shape_cast %140 : vector<16x8xf32> to vector<2x8x8xf32>
    %154 = vector.shape_cast %146 : vector<16x8xf32> to vector<2x8x8xf32>
    %155 = vector.shape_cast %152 : vector<16x8xf32> to vector<2x8x8xf32>
    "tpu.trace_start"() <{level = 10 : i32, message = "bqd,bkd->bqk"}> : () -> ()
    %cst_90 = arith.constant dense<0.000000e+00> : vector<2x8x8xf32>
    %156 = tpu.matmul %153, %154, %cst_90 {dimension_numbers = #tpu.dot_dimension_numbers<[2], [2], [1], [1], [0, 0, 0, 1, 1, 1], [0], [0]>} : vector<2x8x8xf32>, vector<2x8x8xf32>, vector<2x8x8xf32> -> vector<2x8x8xf32>
    "tpu.trace_stop"() : () -> ()
    %cst_91 = arith.constant 0.353553385 : f32
    %157 = vector.broadcast %cst_91 : f32 to vector<2x8x8xf32>
    %158 = arith.mulf %156, %157 : vector<2x8x8xf32>
    %cst_92 = arith.constant dense<0xFF800000> : vector<2x8xf32>
    %159 = vector.multi_reduction <maximumf>, %158, %cst_92 [2] : vector<2x8x8xf32> to vector<2x8xf32>
    %160 = vector.shape_cast %159 : vector<2x8xf32> to vector<2x8x1xf32>
    %161 = vector.broadcast %160 : vector<2x8x1xf32> to vector<2x8x8xf32>
    %162 = arith.subf %158, %161 : vector<2x8x8xf32>
    %163 = math.exp %162 : vector<2x8x8xf32>
    %cst_93 = arith.constant dense<0.000000e+00> : vector<2x8xf32>
    %164 = vector.multi_reduction <add>, %163, %cst_93 [2] : vector<2x8x8xf32> to vector<2x8xf32>
    %165 = vector.shape_cast %164 : vector<2x8xf32> to vector<2x8x1xf32>
    %166 = vector.broadcast %165 : vector<2x8x1xf32> to vector<2x8x8xf32>
    %167 = arith.divf %163, %166 : vector<2x8x8xf32>
    "tpu.trace_start"() <{level = 10 : i32, message = "bqk,bkd->bqd"}> : () -> ()
    %cst_94 = arith.constant dense<0.000000e+00> : vector<2x8x8xf32>
    %168 = tpu.matmul %167, %155, %cst_94 {dimension_numbers = #tpu.dot_dimension_numbers<[2], [1], [1], [2], [0, 0, 0, 1, 1, 2], [0], [0]>} : vector<2x8x8xf32>, vector<2x8x8xf32>, vector<2x8x8xf32> -> vector<2x8x8xf32>
    "tpu.trace_stop"() : () -> ()
    %169 = vector.shape_cast %168 : vector<2x8x8xf32> to vector<16x8xf32>
    %c0_95 = arith.constant 0 : index
    %c3_96 = arith.constant 3 : index
    %c0_97 = arith.constant 0 : index
    %c0_98 = arith.constant 0 : index
    %170 = vector.load %arg6[%c0_95, %c3_96, %c0_97, %c0_98] : memref<2x4x8x32xf32, #tpu.memory_space<vmem>>, vector<1x1x8x32xf32>
    %171 = vector.shape_cast %170 : vector<1x1x8x32xf32> to vector<8x32xf32>
    %cst_99 = arith.constant dense<0.000000e+00> : vector<16x32xf32>
    %172 = tpu.matmul %169, %171, %cst_99 {dimension_numbers = #tpu.dot_dimension_numbers<[1], [0], [0], [1], [0, 0, 1, 1], [], []>} : vector<16x8xf32>, vector<8x32xf32>, vector<16x32xf32> -> vector<16x32xf32>
    %173 = arith.addf %134, %172 : vector<16x32xf32>
    %174 = arith.addf %9, %173 : vector<16x32xf32>
    %175 = vector.extract_strided_slice %11 {offsets = [1, 0], sizes = [1, 32], strides = [1, 1]} : vector<6x32xf32> to vector<1x32xf32>
    %176 = vector.extract_strided_slice %11 {offsets = [2, 0], sizes = [1, 32], strides = [1, 1]} : vector<6x32xf32> to vector<1x32xf32>
    %cst_100 = arith.constant dense<0.000000e+00> : vector<16xf32>
    %177 = vector.multi_reduction <add>, %174, %cst_100 [1] : vector<16x32xf32> to vector<16xf32>
    %178 = vector.shape_cast %177 : vector<16xf32> to vector<16x1xf32>
    %cst_101 = arith.constant 3.200000e+01 : f32
    %179 = vector.broadcast %cst_101 : f32 to vector<16x1xf32>
    %180 = arith.divf %178, %179 : vector<16x1xf32>
    %181 = vector.broadcast %180 : vector<16x1xf32> to vector<16x32xf32>
    %182 = arith.subf %174, %181 : vector<16x32xf32>
    %183 = arith.mulf %182, %182 : vector<16x32xf32>
    %cst_102 = arith.constant dense<0.000000e+00> : vector<16xf32>
    %184 = vector.multi_reduction <add>, %183, %cst_102 [1] : vector<16x32xf32> to vector<16xf32>
    %185 = vector.shape_cast %184 : vector<16xf32> to vector<16x1xf32>
    %cst_103 = arith.constant 3.200000e+01 : f32
    %186 = vector.broadcast %cst_103 : f32 to vector<16x1xf32>
    %187 = arith.divf %185, %186 : vector<16x1xf32>
    %cst_104 = arith.constant 9.99999974E-6 : f32
    %188 = vector.broadcast %cst_104 : f32 to vector<16x1xf32>
    %189 = arith.addf %187, %188 : vector<16x1xf32>
    %190 = math.rsqrt %189 : vector<16x1xf32>
    %191 = vector.broadcast %190 : vector<16x1xf32> to vector<16x32xf32>
    %192 = arith.mulf %182, %191 : vector<16x32xf32>
    %193 = vector.broadcast %175 : vector<1x32xf32> to vector<16x32xf32>
    %194 = arith.mulf %192, %193 : vector<16x32xf32>
    %195 = vector.broadcast %176 : vector<1x32xf32> to vector<16x32xf32>
    %196 = arith.addf %194, %195 : vector<16x32xf32>
    %197 = vector.extract_strided_slice %11 {offsets = [5, 0], sizes = [1, 32], strides = [1, 1]} : vector<6x32xf32> to vector<1x32xf32>
    %c0_105 = arith.constant 0 : index
    %c0_106 = arith.constant 0 : index
    %c0_107 = arith.constant 0 : index
    %198 = vector.load %arg8[%c0_105, %c0_106, %c0_107] : memref<2x32x64xf32, #tpu.memory_space<vmem>>, vector<1x32x64xf32>
    %199 = vector.shape_cast %198 : vector<1x32x64xf32> to vector<32x64xf32>
    %cst_108 = arith.constant dense<0.000000e+00> : vector<16x64xf32>
    %200 = tpu.matmul %196, %199, %cst_108 {dimension_numbers = #tpu.dot_dimension_numbers<[1], [0], [0], [1], [0, 0, 1, 1], [], []>} : vector<16x32xf32>, vector<32x64xf32>, vector<16x64xf32> -> vector<16x64xf32>
    %c0_109 = arith.constant 0 : index
    %c0_110 = arith.constant 0 : index
    %c0_111 = arith.constant 0 : index
    %201 = vector.load %arg9[%c0_109, %c0_110, %c0_111] : memref<2x1x64xf32, #tpu.memory_space<vmem>>, vector<1x1x64xf32>
    %202 = vector.shape_cast %201 : vector<1x1x64xf32> to vector<1x64xf32>
    %203 = vector.broadcast %202 : vector<1x64xf32> to vector<16x64xf32>
    %204 = arith.addf %200, %203 : vector<16x64xf32>
    %cst_112 = arith.constant 0.000000e+00 : f32
    %205 = vector.broadcast %cst_112 : f32 to vector<16x64xf32>
    %206 = arith.maximumf %204, %205 : vector<16x64xf32>
    %c0_113 = arith.constant 0 : index
    %c0_114 = arith.constant 0 : index
    %c0_115 = arith.constant 0 : index
    %207 = vector.load %arg10[%c0_113, %c0_114, %c0_115] : memref<2x64x32xf32, #tpu.memory_space<vmem>>, vector<1x64x32xf32>
    %208 = vector.shape_cast %207 : vector<1x64x32xf32> to vector<64x32xf32>
    %cst_116 = arith.constant dense<0.000000e+00> : vector<16x32xf32>
    %209 = tpu.matmul %206, %208, %cst_116 {dimension_numbers = #tpu.dot_dimension_numbers<[1], [0], [0], [1], [0, 0, 1, 1], [], []>} : vector<16x64xf32>, vector<64x32xf32>, vector<16x32xf32> -> vector<16x32xf32>
    %210 = vector.broadcast %197 : vector<1x32xf32> to vector<16x32xf32>
    %211 = arith.addf %209, %210 : vector<16x32xf32>
    %212 = arith.addf %196, %211 : vector<16x32xf32>
    %213 = vector.extract_strided_slice %11 {offsets = [3, 0], sizes = [1, 32], strides = [1, 1]} : vector<6x32xf32> to vector<1x32xf32>
    %214 = vector.extract_strided_slice %11 {offsets = [4, 0], sizes = [1, 32], strides = [1, 1]} : vector<6x32xf32> to vector<1x32xf32>
    %cst_117 = arith.constant dense<0.000000e+00> : vector<16xf32>
    %215 = vector.multi_reduction <add>, %212, %cst_117 [1] : vector<16x32xf32> to vector<16xf32>
    %216 = vector.shape_cast %215 : vector<16xf32> to vector<16x1xf32>
    %cst_118 = arith.constant 3.200000e+01 : f32
    %217 = vector.broadcast %cst_118 : f32 to vector<16x1xf32>
    %218 = arith.divf %216, %217 : vector<16x1xf32>
    %219 = vector.broadcast %218 : vector<16x1xf32> to vector<16x32xf32>
    %220 = arith.subf %212, %219 : vector<16x32xf32>
    %221 = arith.mulf %220, %220 : vector<16x32xf32>
    %cst_119 = arith.constant dense<0.000000e+00> : vector<16xf32>
    %222 = vector.multi_reduction <add>, %221, %cst_119 [1] : vector<16x32xf32> to vector<16xf32>
    %223 = vector.shape_cast %222 : vector<16xf32> to vector<16x1xf32>
    %cst_120 = arith.constant 3.200000e+01 : f32
    %224 = vector.broadcast %cst_120 : f32 to vector<16x1xf32>
    %225 = arith.divf %223, %224 : vector<16x1xf32>
    %cst_121 = arith.constant 9.99999974E-6 : f32
    %226 = vector.broadcast %cst_121 : f32 to vector<16x1xf32>
    %227 = arith.addf %225, %226 : vector<16x1xf32>
    %228 = math.rsqrt %227 : vector<16x1xf32>
    %229 = vector.broadcast %228 : vector<16x1xf32> to vector<16x32xf32>
    %230 = arith.mulf %220, %229 : vector<16x32xf32>
    %231 = vector.broadcast %213 : vector<1x32xf32> to vector<16x32xf32>
    %232 = arith.mulf %230, %231 : vector<16x32xf32>
    %233 = vector.broadcast %214 : vector<1x32xf32> to vector<16x32xf32>
    %234 = arith.addf %232, %233 : vector<16x32xf32>
    %c1_122 = arith.constant 1 : index
    %c0_123 = arith.constant 0 : index
    %c0_124 = arith.constant 0 : index
    %235 = vector.load %arg7[%c1_122, %c0_123, %c0_124] : memref<2x6x32xf32, #tpu.memory_space<vmem>>, vector<1x6x32xf32>
    %236 = vector.shape_cast %235 : vector<1x6x32xf32> to vector<6x32xf32>
    %237 = vector.extract_strided_slice %236 {offsets = [0, 0], sizes = [1, 32], strides = [1, 1]} : vector<6x32xf32> to vector<1x32xf32>
    %c1_125 = arith.constant 1 : index
    %c0_126 = arith.constant 0 : index
    %c0_127 = arith.constant 0 : index
    %238 = vector.load %arg5[%c1_125, %c0_126, %c0_127] : memref<2x12x8xf32, #tpu.memory_space<vmem>>, vector<1x12x8xf32>
    %239 = vector.shape_cast %238 : vector<1x12x8xf32> to vector<12x8xf32>
    %cst_128 = arith.constant 0.000000e+00 : f32
    %240 = vector.broadcast %cst_128 : f32 to vector<16x32xf32>
    %241 = vector.broadcast %237 : vector<1x32xf32> to vector<16x32xf32>
    %242 = arith.addf %240, %241 : vector<16x32xf32>
    %c1_129 = arith.constant 1 : index
    %c0_130 = arith.constant 0 : index
    %c0_131 = arith.constant 0 : index
    %c0_132 = arith.constant 0 : index
    %243 = vector.load %arg4[%c1_129, %c0_130, %c0_131, %c0_132] : memref<2x12x32x8xf32, #tpu.memory_space<vmem>>, vector<1x1x32x8xf32>
    %244 = vector.shape_cast %243 : vector<1x1x32x8xf32> to vector<32x8xf32>
    %cst_133 = arith.constant dense<0.000000e+00> : vector<16x8xf32>
    %245 = tpu.matmul %234, %244, %cst_133 {dimension_numbers = #tpu.dot_dimension_numbers<[1], [0], [0], [1], [0, 0, 1, 1], [], []>} : vector<16x32xf32>, vector<32x8xf32>, vector<16x8xf32> -> vector<16x8xf32>
    %246 = vector.extract_strided_slice %239 {offsets = [0, 0], sizes = [1, 8], strides = [1, 1]} : vector<12x8xf32> to vector<1x8xf32>
    %247 = vector.broadcast %246 : vector<1x8xf32> to vector<16x8xf32>
    %248 = arith.addf %245, %247 : vector<16x8xf32>
    %c1_134 = arith.constant 1 : index
    %c4_135 = arith.constant 4 : index
    %c0_136 = arith.constant 0 : index
    %c0_137 = arith.constant 0 : index
    %249 = vector.load %arg4[%c1_134, %c4_135, %c0_136, %c0_137] : memref<2x12x32x8xf32, #tpu.memory_space<vmem>>, vector<1x1x32x8xf32>
    %250 = vector.shape_cast %249 : vector<1x1x32x8xf32> to vector<32x8xf32>
    %cst_138 = arith.constant dense<0.000000e+00> : vector<16x8xf32>
    %251 = tpu.matmul %234, %250, %cst_138 {dimension_numbers = #tpu.dot_dimension_numbers<[1], [0], [0], [1], [0, 0, 1, 1], [], []>} : vector<16x32xf32>, vector<32x8xf32>, vector<16x8xf32> -> vector<16x8xf32>
    %252 = vector.extract_strided_slice %239 {offsets = [4, 0], sizes = [1, 8], strides = [1, 1]} : vector<12x8xf32> to vector<1x8xf32>
    %253 = vector.broadcast %252 : vector<1x8xf32> to vector<16x8xf32>
    %254 = arith.addf %251, %253 : vector<16x8xf32>
    %c1_139 = arith.constant 1 : index
    %c8_140 = arith.constant 8 : index
    %c0_141 = arith.constant 0 : index
    %c0_142 = arith.constant 0 : index
    %255 = vector.load %arg4[%c1_139, %c8_140, %c0_141, %c0_142] : memref<2x12x32x8xf32, #tpu.memory_space<vmem>>, vector<1x1x32x8xf32>
    %256 = vector.shape_cast %255 : vector<1x1x32x8xf32> to vector<32x8xf32>
    %cst_143 = arith.constant dense<0.000000e+00> : vector<16x8xf32>
    %257 = tpu.matmul %234, %256, %cst_143 {dimension_numbers = #tpu.dot_dimension_numbers<[1], [0], [0], [1], [0, 0, 1, 1], [], []>} : vector<16x32xf32>, vector<32x8xf32>, vector<16x8xf32> -> vector<16x8xf32>
    %258 = vector.extract_strided_slice %239 {offsets = [8, 0], sizes = [1, 8], strides = [1, 1]} : vector<12x8xf32> to vector<1x8xf32>
    %259 = vector.broadcast %258 : vector<1x8xf32> to vector<16x8xf32>
    %260 = arith.addf %257, %259 : vector<16x8xf32>
    %261 = vector.shape_cast %248 : vector<16x8xf32> to vector<2x8x8xf32>
    %262 = vector.shape_cast %254 : vector<16x8xf32> to vector<2x8x8xf32>
    %263 = vector.shape_cast %260 : vector<16x8xf32> to vector<2x8x8xf32>
    "tpu.trace_start"() <{level = 10 : i32, message = "bqd,bkd->bqk"}> : () -> ()
    %cst_144 = arith.constant dense<0.000000e+00> : vector<2x8x8xf32>
    %264 = tpu.matmul %261, %262, %cst_144 {dimension_numbers = #tpu.dot_dimension_numbers<[2], [2], [1], [1], [0, 0, 0, 1, 1, 1], [0], [0]>} : vector<2x8x8xf32>, vector<2x8x8xf32>, vector<2x8x8xf32> -> vector<2x8x8xf32>
    "tpu.trace_stop"() : () -> ()
    %cst_145 = arith.constant 0.353553385 : f32
    %265 = vector.broadcast %cst_145 : f32 to vector<2x8x8xf32>
    %266 = arith.mulf %264, %265 : vector<2x8x8xf32>
    %cst_146 = arith.constant dense<0xFF800000> : vector<2x8xf32>
    %267 = vector.multi_reduction <maximumf>, %266, %cst_146 [2] : vector<2x8x8xf32> to vector<2x8xf32>
    %268 = vector.shape_cast %267 : vector<2x8xf32> to vector<2x8x1xf32>
    %269 = vector.broadcast %268 : vector<2x8x1xf32> to vector<2x8x8xf32>
    %270 = arith.subf %266, %269 : vector<2x8x8xf32>
    %271 = math.exp %270 : vector<2x8x8xf32>
    %cst_147 = arith.constant dense<0.000000e+00> : vector<2x8xf32>
    %272 = vector.multi_reduction <add>, %271, %cst_147 [2] : vector<2x8x8xf32> to vector<2x8xf32>
    %273 = vector.shape_cast %272 : vector<2x8xf32> to vector<2x8x1xf32>
    %274 = vector.broadcast %273 : vector<2x8x1xf32> to vector<2x8x8xf32>
    %275 = arith.divf %271, %274 : vector<2x8x8xf32>
    "tpu.trace_start"() <{level = 10 : i32, message = "bqk,bkd->bqd"}> : () -> ()
    %cst_148 = arith.constant dense<0.000000e+00> : vector<2x8x8xf32>
    %276 = tpu.matmul %275, %263, %cst_148 {dimension_numbers = #tpu.dot_dimension_numbers<[2], [1], [1], [2], [0, 0, 0, 1, 1, 2], [0], [0]>} : vector<2x8x8xf32>, vector<2x8x8xf32>, vector<2x8x8xf32> -> vector<2x8x8xf32>
    "tpu.trace_stop"() : () -> ()
    %277 = vector.shape_cast %276 : vector<2x8x8xf32> to vector<16x8xf32>
    %c1_149 = arith.constant 1 : index
    %c0_150 = arith.constant 0 : index
    %c0_151 = arith.constant 0 : index
    %c0_152 = arith.constant 0 : index
    %278 = vector.load %arg6[%c1_149, %c0_150, %c0_151, %c0_152] : memref<2x4x8x32xf32, #tpu.memory_space<vmem>>, vector<1x1x8x32xf32>
    %279 = vector.shape_cast %278 : vector<1x1x8x32xf32> to vector<8x32xf32>
    %cst_153 = arith.constant dense<0.000000e+00> : vector<16x32xf32>
    %280 = tpu.matmul %277, %279, %cst_153 {dimension_numbers = #tpu.dot_dimension_numbers<[1], [0], [0], [1], [0, 0, 1, 1], [], []>} : vector<16x8xf32>, vector<8x32xf32>, vector<16x32xf32> -> vector<16x32xf32>
    %281 = arith.addf %242, %280 : vector<16x32xf32>
    %c1_154 = arith.constant 1 : index
    %c1_155 = arith.constant 1 : index
    %c0_156 = arith.constant 0 : index
    %c0_157 = arith.constant 0 : index
    %282 = vector.load %arg4[%c1_154, %c1_155, %c0_156, %c0_157] : memref<2x12x32x8xf32, #tpu.memory_space<vmem>>, vector<1x1x32x8xf32>
    %283 = vector.shape_cast %282 : vector<1x1x32x8xf32> to vector<32x8xf32>
    %cst_158 = arith.constant dense<0.000000e+00> : vector<16x8xf32>
    %284 = tpu.matmul %234, %283, %cst_158 {dimension_numbers = #tpu.dot_dimension_numbers<[1], [0], [0], [1], [0, 0, 1, 1], [], []>} : vector<16x32xf32>, vector<32x8xf32>, vector<16x8xf32> -> vector<16x8xf32>
    %285 = vector.extract_strided_slice %239 {offsets = [1, 0], sizes = [1, 8], strides = [1, 1]} : vector<12x8xf32> to vector<1x8xf32>
    %286 = vector.broadcast %285 : vector<1x8xf32> to vector<16x8xf32>
    %287 = arith.addf %284, %286 : vector<16x8xf32>
    %c1_159 = arith.constant 1 : index
    %c5_160 = arith.constant 5 : index
    %c0_161 = arith.constant 0 : index
    %c0_162 = arith.constant 0 : index
    %288 = vector.load %arg4[%c1_159, %c5_160, %c0_161, %c0_162] : memref<2x12x32x8xf32, #tpu.memory_space<vmem>>, vector<1x1x32x8xf32>
    %289 = vector.shape_cast %288 : vector<1x1x32x8xf32> to vector<32x8xf32>
    %cst_163 = arith.constant dense<0.000000e+00> : vector<16x8xf32>
    %290 = tpu.matmul %234, %289, %cst_163 {dimension_numbers = #tpu.dot_dimension_numbers<[1], [0], [0], [1], [0, 0, 1, 1], [], []>} : vector<16x32xf32>, vector<32x8xf32>, vector<16x8xf32> -> vector<16x8xf32>
    %291 = vector.extract_strided_slice %239 {offsets = [5, 0], sizes = [1, 8], strides = [1, 1]} : vector<12x8xf32> to vector<1x8xf32>
    %292 = vector.broadcast %291 : vector<1x8xf32> to vector<16x8xf32>
    %293 = arith.addf %290, %292 : vector<16x8xf32>
    %c1_164 = arith.constant 1 : index
    %c9_165 = arith.constant 9 : index
    %c0_166 = arith.constant 0 : index
    %c0_167 = arith.constant 0 : index
    %294 = vector.load %arg4[%c1_164, %c9_165, %c0_166, %c0_167] : memref<2x12x32x8xf32, #tpu.memory_space<vmem>>, vector<1x1x32x8xf32>
    %295 = vector.shape_cast %294 : vector<1x1x32x8xf32> to vector<32x8xf32>
    %cst_168 = arith.constant dense<0.000000e+00> : vector<16x8xf32>
    %296 = tpu.matmul %234, %295, %cst_168 {dimension_numbers = #tpu.dot_dimension_numbers<[1], [0], [0], [1], [0, 0, 1, 1], [], []>} : vector<16x32xf32>, vector<32x8xf32>, vector<16x8xf32> -> vector<16x8xf32>
    %297 = vector.extract_strided_slice %239 {offsets = [9, 0], sizes = [1, 8], strides = [1, 1]} : vector<12x8xf32> to vector<1x8xf32>
    %298 = vector.broadcast %297 : vector<1x8xf32> to vector<16x8xf32>
    %299 = arith.addf %296, %298 : vector<16x8xf32>
    %300 = vector.shape_cast %287 : vector<16x8xf32> to vector<2x8x8xf32>
    %301 = vector.shape_cast %293 : vector<16x8xf32> to vector<2x8x8xf32>
    %302 = vector.shape_cast %299 : vector<16x8xf32> to vector<2x8x8xf32>
    "tpu.trace_start"() <{level = 10 : i32, message = "bqd,bkd->bqk"}> : () -> ()
    %cst_169 = arith.constant dense<0.000000e+00> : vector<2x8x8xf32>
    %303 = tpu.matmul %300, %301, %cst_169 {dimension_numbers = #tpu.dot_dimension_numbers<[2], [2], [1], [1], [0, 0, 0, 1, 1, 1], [0], [0]>} : vector<2x8x8xf32>, vector<2x8x8xf32>, vector<2x8x8xf32> -> vector<2x8x8xf32>
    "tpu.trace_stop"() : () -> ()
    %cst_170 = arith.constant 0.353553385 : f32
    %304 = vector.broadcast %cst_170 : f32 to vector<2x8x8xf32>
    %305 = arith.mulf %303, %304 : vector<2x8x8xf32>
    %cst_171 = arith.constant dense<0xFF800000> : vector<2x8xf32>
    %306 = vector.multi_reduction <maximumf>, %305, %cst_171 [2] : vector<2x8x8xf32> to vector<2x8xf32>
    %307 = vector.shape_cast %306 : vector<2x8xf32> to vector<2x8x1xf32>
    %308 = vector.broadcast %307 : vector<2x8x1xf32> to vector<2x8x8xf32>
    %309 = arith.subf %305, %308 : vector<2x8x8xf32>
    %310 = math.exp %309 : vector<2x8x8xf32>
    %cst_172 = arith.constant dense<0.000000e+00> : vector<2x8xf32>
    %311 = vector.multi_reduction <add>, %310, %cst_172 [2] : vector<2x8x8xf32> to vector<2x8xf32>
    %312 = vector.shape_cast %311 : vector<2x8xf32> to vector<2x8x1xf32>
    %313 = vector.broadcast %312 : vector<2x8x1xf32> to vector<2x8x8xf32>
    %314 = arith.divf %310, %313 : vector<2x8x8xf32>
    "tpu.trace_start"() <{level = 10 : i32, message = "bqk,bkd->bqd"}> : () -> ()
    %cst_173 = arith.constant dense<0.000000e+00> : vector<2x8x8xf32>
    %315 = tpu.matmul %314, %302, %cst_173 {dimension_numbers = #tpu.dot_dimension_numbers<[2], [1], [1], [2], [0, 0, 0, 1, 1, 2], [0], [0]>} : vector<2x8x8xf32>, vector<2x8x8xf32>, vector<2x8x8xf32> -> vector<2x8x8xf32>
    "tpu.trace_stop"() : () -> ()
    %316 = vector.shape_cast %315 : vector<2x8x8xf32> to vector<16x8xf32>
    %c1_174 = arith.constant 1 : index
    %c1_175 = arith.constant 1 : index
    %c0_176 = arith.constant 0 : index
    %c0_177 = arith.constant 0 : index
    %317 = vector.load %arg6[%c1_174, %c1_175, %c0_176, %c0_177] : memref<2x4x8x32xf32, #tpu.memory_space<vmem>>, vector<1x1x8x32xf32>
    %318 = vector.shape_cast %317 : vector<1x1x8x32xf32> to vector<8x32xf32>
    %cst_178 = arith.constant dense<0.000000e+00> : vector<16x32xf32>
    %319 = tpu.matmul %316, %318, %cst_178 {dimension_numbers = #tpu.dot_dimension_numbers<[1], [0], [0], [1], [0, 0, 1, 1], [], []>} : vector<16x8xf32>, vector<8x32xf32>, vector<16x32xf32> -> vector<16x32xf32>
    %320 = arith.addf %281, %319 : vector<16x32xf32>
    %c1_179 = arith.constant 1 : index
    %c2_180 = arith.constant 2 : index
    %c0_181 = arith.constant 0 : index
    %c0_182 = arith.constant 0 : index
    %321 = vector.load %arg4[%c1_179, %c2_180, %c0_181, %c0_182] : memref<2x12x32x8xf32, #tpu.memory_space<vmem>>, vector<1x1x32x8xf32>
    %322 = vector.shape_cast %321 : vector<1x1x32x8xf32> to vector<32x8xf32>
    %cst_183 = arith.constant dense<0.000000e+00> : vector<16x8xf32>
    %323 = tpu.matmul %234, %322, %cst_183 {dimension_numbers = #tpu.dot_dimension_numbers<[1], [0], [0], [1], [0, 0, 1, 1], [], []>} : vector<16x32xf32>, vector<32x8xf32>, vector<16x8xf32> -> vector<16x8xf32>
    %324 = vector.extract_strided_slice %239 {offsets = [2, 0], sizes = [1, 8], strides = [1, 1]} : vector<12x8xf32> to vector<1x8xf32>
    %325 = vector.broadcast %324 : vector<1x8xf32> to vector<16x8xf32>
    %326 = arith.addf %323, %325 : vector<16x8xf32>
    %c1_184 = arith.constant 1 : index
    %c6_185 = arith.constant 6 : index
    %c0_186 = arith.constant 0 : index
    %c0_187 = arith.constant 0 : index
    %327 = vector.load %arg4[%c1_184, %c6_185, %c0_186, %c0_187] : memref<2x12x32x8xf32, #tpu.memory_space<vmem>>, vector<1x1x32x8xf32>
    %328 = vector.shape_cast %327 : vector<1x1x32x8xf32> to vector<32x8xf32>
    %cst_188 = arith.constant dense<0.000000e+00> : vector<16x8xf32>
    %329 = tpu.matmul %234, %328, %cst_188 {dimension_numbers = #tpu.dot_dimension_numbers<[1], [0], [0], [1], [0, 0, 1, 1], [], []>} : vector<16x32xf32>, vector<32x8xf32>, vector<16x8xf32> -> vector<16x8xf32>
    %330 = vector.extract_strided_slice %239 {offsets = [6, 0], sizes = [1, 8], strides = [1, 1]} : vector<12x8xf32> to vector<1x8xf32>
    %331 = vector.broadcast %330 : vector<1x8xf32> to vector<16x8xf32>
    %332 = arith.addf %329, %331 : vector<16x8xf32>
    %c1_189 = arith.constant 1 : index
    %c10_190 = arith.constant 10 : index
    %c0_191 = arith.constant 0 : index
    %c0_192 = arith.constant 0 : index
    %333 = vector.load %arg4[%c1_189, %c10_190, %c0_191, %c0_192] : memref<2x12x32x8xf32, #tpu.memory_space<vmem>>, vector<1x1x32x8xf32>
    %334 = vector.shape_cast %333 : vector<1x1x32x8xf32> to vector<32x8xf32>
    %cst_193 = arith.constant dense<0.000000e+00> : vector<16x8xf32>
    %335 = tpu.matmul %234, %334, %cst_193 {dimension_numbers = #tpu.dot_dimension_numbers<[1], [0], [0], [1], [0, 0, 1, 1], [], []>} : vector<16x32xf32>, vector<32x8xf32>, vector<16x8xf32> -> vector<16x8xf32>
    %336 = vector.extract_strided_slice %239 {offsets = [10, 0], sizes = [1, 8], strides = [1, 1]} : vector<12x8xf32> to vector<1x8xf32>
    %337 = vector.broadcast %336 : vector<1x8xf32> to vector<16x8xf32>
    %338 = arith.addf %335, %337 : vector<16x8xf32>
    %339 = vector.shape_cast %326 : vector<16x8xf32> to vector<2x8x8xf32>
    %340 = vector.shape_cast %332 : vector<16x8xf32> to vector<2x8x8xf32>
    %341 = vector.shape_cast %338 : vector<16x8xf32> to vector<2x8x8xf32>
    "tpu.trace_start"() <{level = 10 : i32, message = "bqd,bkd->bqk"}> : () -> ()
    %cst_194 = arith.constant dense<0.000000e+00> : vector<2x8x8xf32>
    %342 = tpu.matmul %339, %340, %cst_194 {dimension_numbers = #tpu.dot_dimension_numbers<[2], [2], [1], [1], [0, 0, 0, 1, 1, 1], [0], [0]>} : vector<2x8x8xf32>, vector<2x8x8xf32>, vector<2x8x8xf32> -> vector<2x8x8xf32>
    "tpu.trace_stop"() : () -> ()
    %cst_195 = arith.constant 0.353553385 : f32
    %343 = vector.broadcast %cst_195 : f32 to vector<2x8x8xf32>
    %344 = arith.mulf %342, %343 : vector<2x8x8xf32>
    %cst_196 = arith.constant dense<0xFF800000> : vector<2x8xf32>
    %345 = vector.multi_reduction <maximumf>, %344, %cst_196 [2] : vector<2x8x8xf32> to vector<2x8xf32>
    %346 = vector.shape_cast %345 : vector<2x8xf32> to vector<2x8x1xf32>
    %347 = vector.broadcast %346 : vector<2x8x1xf32> to vector<2x8x8xf32>
    %348 = arith.subf %344, %347 : vector<2x8x8xf32>
    %349 = math.exp %348 : vector<2x8x8xf32>
    %cst_197 = arith.constant dense<0.000000e+00> : vector<2x8xf32>
    %350 = vector.multi_reduction <add>, %349, %cst_197 [2] : vector<2x8x8xf32> to vector<2x8xf32>
    %351 = vector.shape_cast %350 : vector<2x8xf32> to vector<2x8x1xf32>
    %352 = vector.broadcast %351 : vector<2x8x1xf32> to vector<2x8x8xf32>
    %353 = arith.divf %349, %352 : vector<2x8x8xf32>
    "tpu.trace_start"() <{level = 10 : i32, message = "bqk,bkd->bqd"}> : () -> ()
    %cst_198 = arith.constant dense<0.000000e+00> : vector<2x8x8xf32>
    %354 = tpu.matmul %353, %341, %cst_198 {dimension_numbers = #tpu.dot_dimension_numbers<[2], [1], [1], [2], [0, 0, 0, 1, 1, 2], [0], [0]>} : vector<2x8x8xf32>, vector<2x8x8xf32>, vector<2x8x8xf32> -> vector<2x8x8xf32>
    "tpu.trace_stop"() : () -> ()
    %355 = vector.shape_cast %354 : vector<2x8x8xf32> to vector<16x8xf32>
    %c1_199 = arith.constant 1 : index
    %c2_200 = arith.constant 2 : index
    %c0_201 = arith.constant 0 : index
    %c0_202 = arith.constant 0 : index
    %356 = vector.load %arg6[%c1_199, %c2_200, %c0_201, %c0_202] : memref<2x4x8x32xf32, #tpu.memory_space<vmem>>, vector<1x1x8x32xf32>
    %357 = vector.shape_cast %356 : vector<1x1x8x32xf32> to vector<8x32xf32>
    %cst_203 = arith.constant dense<0.000000e+00> : vector<16x32xf32>
    %358 = tpu.matmul %355, %357, %cst_203 {dimension_numbers = #tpu.dot_dimension_numbers<[1], [0], [0], [1], [0, 0, 1, 1], [], []>} : vector<16x8xf32>, vector<8x32xf32>, vector<16x32xf32> -> vector<16x32xf32>
    %359 = arith.addf %320, %358 : vector<16x32xf32>
    %c1_204 = arith.constant 1 : index
    %c3_205 = arith.constant 3 : index
    %c0_206 = arith.constant 0 : index
    %c0_207 = arith.constant 0 : index
    %360 = vector.load %arg4[%c1_204, %c3_205, %c0_206, %c0_207] : memref<2x12x32x8xf32, #tpu.memory_space<vmem>>, vector<1x1x32x8xf32>
    %361 = vector.shape_cast %360 : vector<1x1x32x8xf32> to vector<32x8xf32>
    %cst_208 = arith.constant dense<0.000000e+00> : vector<16x8xf32>
    %362 = tpu.matmul %234, %361, %cst_208 {dimension_numbers = #tpu.dot_dimension_numbers<[1], [0], [0], [1], [0, 0, 1, 1], [], []>} : vector<16x32xf32>, vector<32x8xf32>, vector<16x8xf32> -> vector<16x8xf32>
    %363 = vector.extract_strided_slice %239 {offsets = [3, 0], sizes = [1, 8], strides = [1, 1]} : vector<12x8xf32> to vector<1x8xf32>
    %364 = vector.broadcast %363 : vector<1x8xf32> to vector<16x8xf32>
    %365 = arith.addf %362, %364 : vector<16x8xf32>
    %c1_209 = arith.constant 1 : index
    %c7_210 = arith.constant 7 : index
    %c0_211 = arith.constant 0 : index
    %c0_212 = arith.constant 0 : index
    %366 = vector.load %arg4[%c1_209, %c7_210, %c0_211, %c0_212] : memref<2x12x32x8xf32, #tpu.memory_space<vmem>>, vector<1x1x32x8xf32>
    %367 = vector.shape_cast %366 : vector<1x1x32x8xf32> to vector<32x8xf32>
    %cst_213 = arith.constant dense<0.000000e+00> : vector<16x8xf32>
    %368 = tpu.matmul %234, %367, %cst_213 {dimension_numbers = #tpu.dot_dimension_numbers<[1], [0], [0], [1], [0, 0, 1, 1], [], []>} : vector<16x32xf32>, vector<32x8xf32>, vector<16x8xf32> -> vector<16x8xf32>
    %369 = vector.extract_strided_slice %239 {offsets = [7, 0], sizes = [1, 8], strides = [1, 1]} : vector<12x8xf32> to vector<1x8xf32>
    %370 = vector.broadcast %369 : vector<1x8xf32> to vector<16x8xf32>
    %371 = arith.addf %368, %370 : vector<16x8xf32>
    %c1_214 = arith.constant 1 : index
    %c11_215 = arith.constant 11 : index
    %c0_216 = arith.constant 0 : index
    %c0_217 = arith.constant 0 : index
    %372 = vector.load %arg4[%c1_214, %c11_215, %c0_216, %c0_217] : memref<2x12x32x8xf32, #tpu.memory_space<vmem>>, vector<1x1x32x8xf32>
    %373 = vector.shape_cast %372 : vector<1x1x32x8xf32> to vector<32x8xf32>
    %cst_218 = arith.constant dense<0.000000e+00> : vector<16x8xf32>
    %374 = tpu.matmul %234, %373, %cst_218 {dimension_numbers = #tpu.dot_dimension_numbers<[1], [0], [0], [1], [0, 0, 1, 1], [], []>} : vector<16x32xf32>, vector<32x8xf32>, vector<16x8xf32> -> vector<16x8xf32>
    %375 = vector.extract_strided_slice %239 {offsets = [11, 0], sizes = [1, 8], strides = [1, 1]} : vector<12x8xf32> to vector<1x8xf32>
    %376 = vector.broadcast %375 : vector<1x8xf32> to vector<16x8xf32>
    %377 = arith.addf %374, %376 : vector<16x8xf32>
    %378 = vector.shape_cast %365 : vector<16x8xf32> to vector<2x8x8xf32>
    %379 = vector.shape_cast %371 : vector<16x8xf32> to vector<2x8x8xf32>
    %380 = vector.shape_cast %377 : vector<16x8xf32> to vector<2x8x8xf32>
    "tpu.trace_start"() <{level = 10 : i32, message = "bqd,bkd->bqk"}> : () -> ()
    %cst_219 = arith.constant dense<0.000000e+00> : vector<2x8x8xf32>
    %381 = tpu.matmul %378, %379, %cst_219 {dimension_numbers = #tpu.dot_dimension_numbers<[2], [2], [1], [1], [0, 0, 0, 1, 1, 1], [0], [0]>} : vector<2x8x8xf32>, vector<2x8x8xf32>, vector<2x8x8xf32> -> vector<2x8x8xf32>
    "tpu.trace_stop"() : () -> ()
    %cst_220 = arith.constant 0.353553385 : f32
    %382 = vector.broadcast %cst_220 : f32 to vector<2x8x8xf32>
    %383 = arith.mulf %381, %382 : vector<2x8x8xf32>
    %cst_221 = arith.constant dense<0xFF800000> : vector<2x8xf32>
    %384 = vector.multi_reduction <maximumf>, %383, %cst_221 [2] : vector<2x8x8xf32> to vector<2x8xf32>
    %385 = vector.shape_cast %384 : vector<2x8xf32> to vector<2x8x1xf32>
    %386 = vector.broadcast %385 : vector<2x8x1xf32> to vector<2x8x8xf32>
    %387 = arith.subf %383, %386 : vector<2x8x8xf32>
    %388 = math.exp %387 : vector<2x8x8xf32>
    %cst_222 = arith.constant dense<0.000000e+00> : vector<2x8xf32>
    %389 = vector.multi_reduction <add>, %388, %cst_222 [2] : vector<2x8x8xf32> to vector<2x8xf32>
    %390 = vector.shape_cast %389 : vector<2x8xf32> to vector<2x8x1xf32>
    %391 = vector.broadcast %390 : vector<2x8x1xf32> to vector<2x8x8xf32>
    %392 = arith.divf %388, %391 : vector<2x8x8xf32>
    "tpu.trace_start"() <{level = 10 : i32, message = "bqk,bkd->bqd"}> : () -> ()
    %cst_223 = arith.constant dense<0.000000e+00> : vector<2x8x8xf32>
    %393 = tpu.matmul %392, %380, %cst_223 {dimension_numbers = #tpu.dot_dimension_numbers<[2], [1], [1], [2], [0, 0, 0, 1, 1, 2], [0], [0]>} : vector<2x8x8xf32>, vector<2x8x8xf32>, vector<2x8x8xf32> -> vector<2x8x8xf32>
    "tpu.trace_stop"() : () -> ()
    %394 = vector.shape_cast %393 : vector<2x8x8xf32> to vector<16x8xf32>
    %c1_224 = arith.constant 1 : index
    %c3_225 = arith.constant 3 : index
    %c0_226 = arith.constant 0 : index
    %c0_227 = arith.constant 0 : index
    %395 = vector.load %arg6[%c1_224, %c3_225, %c0_226, %c0_227] : memref<2x4x8x32xf32, #tpu.memory_space<vmem>>, vector<1x1x8x32xf32>
    %396 = vector.shape_cast %395 : vector<1x1x8x32xf32> to vector<8x32xf32>
    %cst_228 = arith.constant dense<0.000000e+00> : vector<16x32xf32>
    %397 = tpu.matmul %394, %396, %cst_228 {dimension_numbers = #tpu.dot_dimension_numbers<[1], [0], [0], [1], [0, 0, 1, 1], [], []>} : vector<16x8xf32>, vector<8x32xf32>, vector<16x32xf32> -> vector<16x32xf32>
    %398 = arith.addf %359, %397 : vector<16x32xf32>
    %399 = arith.addf %234, %398 : vector<16x32xf32>
    %400 = vector.extract_strided_slice %236 {offsets = [1, 0], sizes = [1, 32], strides = [1, 1]} : vector<6x32xf32> to vector<1x32xf32>
    %401 = vector.extract_strided_slice %236 {offsets = [2, 0], sizes = [1, 32], strides = [1, 1]} : vector<6x32xf32> to vector<1x32xf32>
    %cst_229 = arith.constant dense<0.000000e+00> : vector<16xf32>
    %402 = vector.multi_reduction <add>, %399, %cst_229 [1] : vector<16x32xf32> to vector<16xf32>
    %403 = vector.shape_cast %402 : vector<16xf32> to vector<16x1xf32>
    %cst_230 = arith.constant 3.200000e+01 : f32
    %404 = vector.broadcast %cst_230 : f32 to vector<16x1xf32>
    %405 = arith.divf %403, %404 : vector<16x1xf32>
    %406 = vector.broadcast %405 : vector<16x1xf32> to vector<16x32xf32>
    %407 = arith.subf %399, %406 : vector<16x32xf32>
    %408 = arith.mulf %407, %407 : vector<16x32xf32>
    %cst_231 = arith.constant dense<0.000000e+00> : vector<16xf32>
    %409 = vector.multi_reduction <add>, %408, %cst_231 [1] : vector<16x32xf32> to vector<16xf32>
    %410 = vector.shape_cast %409 : vector<16xf32> to vector<16x1xf32>
    %cst_232 = arith.constant 3.200000e+01 : f32
    %411 = vector.broadcast %cst_232 : f32 to vector<16x1xf32>
    %412 = arith.divf %410, %411 : vector<16x1xf32>
    %cst_233 = arith.constant 9.99999974E-6 : f32
    %413 = vector.broadcast %cst_233 : f32 to vector<16x1xf32>
    %414 = arith.addf %412, %413 : vector<16x1xf32>
    %415 = math.rsqrt %414 : vector<16x1xf32>
    %416 = vector.broadcast %415 : vector<16x1xf32> to vector<16x32xf32>
    %417 = arith.mulf %407, %416 : vector<16x32xf32>
    %418 = vector.broadcast %400 : vector<1x32xf32> to vector<16x32xf32>
    %419 = arith.mulf %417, %418 : vector<16x32xf32>
    %420 = vector.broadcast %401 : vector<1x32xf32> to vector<16x32xf32>
    %421 = arith.addf %419, %420 : vector<16x32xf32>
    %422 = vector.extract_strided_slice %236 {offsets = [5, 0], sizes = [1, 32], strides = [1, 1]} : vector<6x32xf32> to vector<1x32xf32>
    %c1_234 = arith.constant 1 : index
    %c0_235 = arith.constant 0 : index
    %c0_236 = arith.constant 0 : index
    %423 = vector.load %arg8[%c1_234, %c0_235, %c0_236] : memref<2x32x64xf32, #tpu.memory_space<vmem>>, vector<1x32x64xf32>
    %424 = vector.shape_cast %423 : vector<1x32x64xf32> to vector<32x64xf32>
    %cst_237 = arith.constant dense<0.000000e+00> : vector<16x64xf32>
    %425 = tpu.matmul %421, %424, %cst_237 {dimension_numbers = #tpu.dot_dimension_numbers<[1], [0], [0], [1], [0, 0, 1, 1], [], []>} : vector<16x32xf32>, vector<32x64xf32>, vector<16x64xf32> -> vector<16x64xf32>
    %c1_238 = arith.constant 1 : index
    %c0_239 = arith.constant 0 : index
    %c0_240 = arith.constant 0 : index
    %426 = vector.load %arg9[%c1_238, %c0_239, %c0_240] : memref<2x1x64xf32, #tpu.memory_space<vmem>>, vector<1x1x64xf32>
    %427 = vector.shape_cast %426 : vector<1x1x64xf32> to vector<1x64xf32>
    %428 = vector.broadcast %427 : vector<1x64xf32> to vector<16x64xf32>
    %429 = arith.addf %425, %428 : vector<16x64xf32>
    %cst_241 = arith.constant 0.000000e+00 : f32
    %430 = vector.broadcast %cst_241 : f32 to vector<16x64xf32>
    %431 = arith.maximumf %429, %430 : vector<16x64xf32>
    %c1_242 = arith.constant 1 : index
    %c0_243 = arith.constant 0 : index
    %c0_244 = arith.constant 0 : index
    %432 = vector.load %arg10[%c1_242, %c0_243, %c0_244] : memref<2x64x32xf32, #tpu.memory_space<vmem>>, vector<1x64x32xf32>
    %433 = vector.shape_cast %432 : vector<1x64x32xf32> to vector<64x32xf32>
    %cst_245 = arith.constant dense<0.000000e+00> : vector<16x32xf32>
    %434 = tpu.matmul %431, %433, %cst_245 {dimension_numbers = #tpu.dot_dimension_numbers<[1], [0], [0], [1], [0, 0, 1, 1], [], []>} : vector<16x64xf32>, vector<64x32xf32>, vector<16x32xf32> -> vector<16x32xf32>
    %435 = vector.broadcast %422 : vector<1x32xf32> to vector<16x32xf32>
    %436 = arith.addf %434, %435 : vector<16x32xf32>
    %437 = arith.addf %421, %436 : vector<16x32xf32>
    %438 = vector.extract_strided_slice %236 {offsets = [3, 0], sizes = [1, 32], strides = [1, 1]} : vector<6x32xf32> to vector<1x32xf32>
    %439 = vector.extract_strided_slice %236 {offsets = [4, 0], sizes = [1, 32], strides = [1, 1]} : vector<6x32xf32> to vector<1x32xf32>
    %cst_246 = arith.constant dense<0.000000e+00> : vector<16xf32>
    %440 = vector.multi_reduction <add>, %437, %cst_246 [1] : vector<16x32xf32> to vector<16xf32>
    %441 = vector.shape_cast %440 : vector<16xf32> to vector<16x1xf32>
    %cst_247 = arith.constant 3.200000e+01 : f32
    %442 = vector.broadcast %cst_247 : f32 to vector<16x1xf32>
    %443 = arith.divf %441, %442 : vector<16x1xf32>
    %444 = vector.broadcast %443 : vector<16x1xf32> to vector<16x32xf32>
    %445 = arith.subf %437, %444 : vector<16x32xf32>
    %446 = arith.mulf %445, %445 : vector<16x32xf32>
    %cst_248 = arith.constant dense<0.000000e+00> : vector<16xf32>
    %447 = vector.multi_reduction <add>, %446, %cst_248 [1] : vector<16x32xf32> to vector<16xf32>
    %448 = vector.shape_cast %447 : vector<16xf32> to vector<16x1xf32>
    %cst_249 = arith.constant 3.200000e+01 : f32
    %449 = vector.broadcast %cst_249 : f32 to vector<16x1xf32>
    %450 = arith.divf %448, %449 : vector<16x1xf32>
    %cst_250 = arith.constant 9.99999974E-6 : f32
    %451 = vector.broadcast %cst_250 : f32 to vector<16x1xf32>
    %452 = arith.addf %450, %451 : vector<16x1xf32>
    %453 = math.rsqrt %452 : vector<16x1xf32>
    %454 = vector.broadcast %453 : vector<16x1xf32> to vector<16x32xf32>
    %455 = arith.mulf %445, %454 : vector<16x32xf32>
    %456 = vector.broadcast %438 : vector<1x32xf32> to vector<16x32xf32>
    %457 = arith.mulf %455, %456 : vector<16x32xf32>
    %458 = vector.broadcast %439 : vector<1x32xf32> to vector<16x32xf32>
    %459 = arith.addf %457, %458 : vector<16x32xf32>
    %c0_251 = arith.constant 0 : index
    %c0_252 = arith.constant 0 : index
    %460 = vector.load %arg11[%c0_251, %c0_252] : memref<2x32xf32, #tpu.memory_space<vmem>>, vector<2x32xf32>
    %461 = vector.extract_strided_slice %460 {offsets = [0, 0], sizes = [1, 32], strides = [1, 1]} : vector<2x32xf32> to vector<1x32xf32>
    %462 = vector.extract_strided_slice %460 {offsets = [1, 0], sizes = [1, 32], strides = [1, 1]} : vector<2x32xf32> to vector<1x32xf32>
    %cst_253 = arith.constant dense<0.000000e+00> : vector<16xf32>
    %463 = vector.multi_reduction <add>, %459, %cst_253 [1] : vector<16x32xf32> to vector<16xf32>
    %464 = vector.shape_cast %463 : vector<16xf32> to vector<16x1xf32>
    %cst_254 = arith.constant 3.200000e+01 : f32
    %465 = vector.broadcast %cst_254 : f32 to vector<16x1xf32>
    %466 = arith.divf %464, %465 : vector<16x1xf32>
    %467 = vector.broadcast %466 : vector<16x1xf32> to vector<16x32xf32>
    %468 = arith.subf %459, %467 : vector<16x32xf32>
    %469 = arith.mulf %468, %468 : vector<16x32xf32>
    %cst_255 = arith.constant dense<0.000000e+00> : vector<16xf32>
    %470 = vector.multi_reduction <add>, %469, %cst_255 [1] : vector<16x32xf32> to vector<16xf32>
    %471 = vector.shape_cast %470 : vector<16xf32> to vector<16x1xf32>
    %cst_256 = arith.constant 3.200000e+01 : f32
    %472 = vector.broadcast %cst_256 : f32 to vector<16x1xf32>
    %473 = arith.divf %471, %472 : vector<16x1xf32>
    %cst_257 = arith.constant 9.99999974E-6 : f32
    %474 = vector.broadcast %cst_257 : f32 to vector<16x1xf32>
    %475 = arith.addf %473, %474 : vector<16x1xf32>
    %476 = math.rsqrt %475 : vector<16x1xf32>
    %477 = vector.broadcast %476 : vector<16x1xf32> to vector<16x32xf32>
    %478 = arith.mulf %468, %477 : vector<16x32xf32>
    %479 = vector.broadcast %461 : vector<1x32xf32> to vector<16x32xf32>
    %480 = arith.mulf %478, %479 : vector<16x32xf32>
    %481 = vector.broadcast %462 : vector<1x32xf32> to vector<16x32xf32>
    %482 = arith.addf %480, %481 : vector<16x32xf32>
    %c0_258 = arith.constant 0 : index
    %c0_259 = arith.constant 0 : index
    %483 = vector.load %arg1[%c0_258, %c0_259] : memref<16x1xi32, #tpu.memory_space<vmem>>, vector<16x1xi32>
    %484 = tpu.iota {dimensions = array<i32: 1>} : vector<16x40xi32>
    %485 = vector.broadcast %483 : vector<16x1xi32> to vector<16x40xi32>
    %486 = arith.cmpi eq, %484, %485 : vector<16x40xi32>
    %487 = arith.extui %486 : vector<16x40xi1> to vector<16x40xi32>
    %488 = arith.sitofp %487 : vector<16x40xi32> to vector<16x40xf32>
    %c0_260 = arith.constant 0 : index
    %c0_261 = arith.constant 0 : index
    %489 = vector.load %arg3[%c0_260, %c0_261] : memref<40x32xf32, #tpu.memory_space<vmem>>, vector<40x32xf32>
    %cst_262 = arith.constant dense<0.000000e+00> : vector<16x32xf32>
    %490 = tpu.matmul %488, %489, %cst_262 {dimension_numbers = #tpu.dot_dimension_numbers<[1], [0], [0], [1], [0, 0, 1, 1], [], []>} : vector<16x40xf32>, vector<40x32xf32>, vector<16x32xf32> -> vector<16x32xf32>
    %cst_263 = arith.constant 5.65685415 : f32
    %491 = vector.broadcast %cst_263 : f32 to vector<16x32xf32>
    %492 = arith.mulf %490, %491 : vector<16x32xf32>
    %c0_264 = arith.constant 0 : index
    %c0_265 = arith.constant 0 : index
    %c0_266 = arith.constant 0 : index
    %493 = vector.load %arg18[%c0_264, %c0_265, %c0_266] : memref<2x9x32xf32, #tpu.memory_space<vmem>>, vector<1x9x32xf32>
    %494 = vector.shape_cast %493 : vector<1x9x32xf32> to vector<9x32xf32>
    %495 = vector.extract_strided_slice %494 {offsets = [0, 0], sizes = [1, 32], strides = [1, 1]} : vector<9x32xf32> to vector<1x32xf32>
    %c0_267 = arith.constant 0 : index
    %c0_268 = arith.constant 0 : index
    %c0_269 = arith.constant 0 : index
    %496 = vector.load %arg13[%c0_267, %c0_268, %c0_269] : memref<2x12x8xf32, #tpu.memory_space<vmem>>, vector<1x12x8xf32>
    %497 = vector.shape_cast %496 : vector<1x12x8xf32> to vector<12x8xf32>
    %cst_270 = arith.constant 0.000000e+00 : f32
    %498 = vector.broadcast %cst_270 : f32 to vector<16x32xf32>
    %499 = vector.broadcast %495 : vector<1x32xf32> to vector<16x32xf32>
    %500 = arith.addf %498, %499 : vector<16x32xf32>
    %c0_271 = arith.constant 0 : index
    %c0_272 = arith.constant 0 : index
    %c0_273 = arith.constant 0 : index
    %c0_274 = arith.constant 0 : index
    %501 = vector.load %arg12[%c0_271, %c0_272, %c0_273, %c0_274] : memref<2x12x32x8xf32, #tpu.memory_space<vmem>>, vector<1x1x32x8xf32>
    %502 = vector.shape_cast %501 : vector<1x1x32x8xf32> to vector<32x8xf32>
    %cst_275 = arith.constant dense<0.000000e+00> : vector<16x8xf32>
    %503 = tpu.matmul %492, %502, %cst_275 {dimension_numbers = #tpu.dot_dimension_numbers<[1], [0], [0], [1], [0, 0, 1, 1], [], []>} : vector<16x32xf32>, vector<32x8xf32>, vector<16x8xf32> -> vector<16x8xf32>
    %504 = vector.extract_strided_slice %497 {offsets = [0, 0], sizes = [1, 8], strides = [1, 1]} : vector<12x8xf32> to vector<1x8xf32>
    %505 = vector.broadcast %504 : vector<1x8xf32> to vector<16x8xf32>
    %506 = arith.addf %503, %505 : vector<16x8xf32>
    %c0_276 = arith.constant 0 : index
    %c4_277 = arith.constant 4 : index
    %c0_278 = arith.constant 0 : index
    %c0_279 = arith.constant 0 : index
    %507 = vector.load %arg12[%c0_276, %c4_277, %c0_278, %c0_279] : memref<2x12x32x8xf32, #tpu.memory_space<vmem>>, vector<1x1x32x8xf32>
    %508 = vector.shape_cast %507 : vector<1x1x32x8xf32> to vector<32x8xf32>
    %cst_280 = arith.constant dense<0.000000e+00> : vector<16x8xf32>
    %509 = tpu.matmul %492, %508, %cst_280 {dimension_numbers = #tpu.dot_dimension_numbers<[1], [0], [0], [1], [0, 0, 1, 1], [], []>} : vector<16x32xf32>, vector<32x8xf32>, vector<16x8xf32> -> vector<16x8xf32>
    %510 = vector.extract_strided_slice %497 {offsets = [4, 0], sizes = [1, 8], strides = [1, 1]} : vector<12x8xf32> to vector<1x8xf32>
    %511 = vector.broadcast %510 : vector<1x8xf32> to vector<16x8xf32>
    %512 = arith.addf %509, %511 : vector<16x8xf32>
    %c0_281 = arith.constant 0 : index
    %c8_282 = arith.constant 8 : index
    %c0_283 = arith.constant 0 : index
    %c0_284 = arith.constant 0 : index
    %513 = vector.load %arg12[%c0_281, %c8_282, %c0_283, %c0_284] : memref<2x12x32x8xf32, #tpu.memory_space<vmem>>, vector<1x1x32x8xf32>
    %514 = vector.shape_cast %513 : vector<1x1x32x8xf32> to vector<32x8xf32>
    %cst_285 = arith.constant dense<0.000000e+00> : vector<16x8xf32>
    %515 = tpu.matmul %492, %514, %cst_285 {dimension_numbers = #tpu.dot_dimension_numbers<[1], [0], [0], [1], [0, 0, 1, 1], [], []>} : vector<16x32xf32>, vector<32x8xf32>, vector<16x8xf32> -> vector<16x8xf32>
    %516 = vector.extract_strided_slice %497 {offsets = [8, 0], sizes = [1, 8], strides = [1, 1]} : vector<12x8xf32> to vector<1x8xf32>
    %517 = vector.broadcast %516 : vector<1x8xf32> to vector<16x8xf32>
    %518 = arith.addf %515, %517 : vector<16x8xf32>
    %519 = vector.shape_cast %506 : vector<16x8xf32> to vector<2x8x8xf32>
    %520 = vector.shape_cast %512 : vector<16x8xf32> to vector<2x8x8xf32>
    %521 = vector.shape_cast %518 : vector<16x8xf32> to vector<2x8x8xf32>
    "tpu.trace_start"() <{level = 10 : i32, message = "bqd,bkd->bqk"}> : () -> ()
    %cst_286 = arith.constant dense<0.000000e+00> : vector<2x8x8xf32>
    %522 = tpu.matmul %519, %520, %cst_286 {dimension_numbers = #tpu.dot_dimension_numbers<[2], [2], [1], [1], [0, 0, 0, 1, 1, 1], [0], [0]>} : vector<2x8x8xf32>, vector<2x8x8xf32>, vector<2x8x8xf32> -> vector<2x8x8xf32>
    "tpu.trace_stop"() : () -> ()
    %cst_287 = arith.constant 0.353553385 : f32
    %523 = vector.broadcast %cst_287 : f32 to vector<2x8x8xf32>
    %524 = arith.mulf %522, %523 : vector<2x8x8xf32>
    %cst_288 = arith.constant dense<0xFF800000> : vector<2x8xf32>
    %525 = vector.multi_reduction <maximumf>, %524, %cst_288 [2] : vector<2x8x8xf32> to vector<2x8xf32>
    %526 = vector.shape_cast %525 : vector<2x8xf32> to vector<2x8x1xf32>
    %527 = vector.broadcast %526 : vector<2x8x1xf32> to vector<2x8x8xf32>
    %528 = arith.subf %524, %527 : vector<2x8x8xf32>
    %529 = math.exp %528 : vector<2x8x8xf32>
    %cst_289 = arith.constant dense<0.000000e+00> : vector<2x8xf32>
    %530 = vector.multi_reduction <add>, %529, %cst_289 [2] : vector<2x8x8xf32> to vector<2x8xf32>
    %531 = vector.shape_cast %530 : vector<2x8xf32> to vector<2x8x1xf32>
    %532 = vector.broadcast %531 : vector<2x8x1xf32> to vector<2x8x8xf32>
    %533 = arith.divf %529, %532 : vector<2x8x8xf32>
    "tpu.trace_start"() <{level = 10 : i32, message = "bqk,bkd->bqd"}> : () -> ()
    %cst_290 = arith.constant dense<0.000000e+00> : vector<2x8x8xf32>
    %534 = tpu.matmul %533, %521, %cst_290 {dimension_numbers = #tpu.dot_dimension_numbers<[2], [1], [1], [2], [0, 0, 0, 1, 1, 2], [0], [0]>} : vector<2x8x8xf32>, vector<2x8x8xf32>, vector<2x8x8xf32> -> vector<2x8x8xf32>
    "tpu.trace_stop"() : () -> ()
    %535 = vector.shape_cast %534 : vector<2x8x8xf32> to vector<16x8xf32>
    %c0_291 = arith.constant 0 : index
    %c0_292 = arith.constant 0 : index
    %c0_293 = arith.constant 0 : index
    %c0_294 = arith.constant 0 : index
    %536 = vector.load %arg14[%c0_291, %c0_292, %c0_293, %c0_294] : memref<2x4x8x32xf32, #tpu.memory_space<vmem>>, vector<1x1x8x32xf32>
    %537 = vector.shape_cast %536 : vector<1x1x8x32xf32> to vector<8x32xf32>
    %cst_295 = arith.constant dense<0.000000e+00> : vector<16x32xf32>
    %538 = tpu.matmul %535, %537, %cst_295 {dimension_numbers = #tpu.dot_dimension_numbers<[1], [0], [0], [1], [0, 0, 1, 1], [], []>} : vector<16x8xf32>, vector<8x32xf32>, vector<16x32xf32> -> vector<16x32xf32>
    %539 = arith.addf %500, %538 : vector<16x32xf32>
    %c0_296 = arith.constant 0 : index
    %c1_297 = arith.constant 1 : index
    %c0_298 = arith.constant 0 : index
    %c0_299 = arith.constant 0 : index
    %540 = vector.load %arg12[%c0_296, %c1_297, %c0_298, %c0_299] : memref<2x12x32x8xf32, #tpu.memory_space<vmem>>, vector<1x1x32x8xf32>
    %541 = vector.shape_cast %540 : vector<1x1x32x8xf32> to vector<32x8xf32>
    %cst_300 = arith.constant dense<0.000000e+00> : vector<16x8xf32>
    %542 = tpu.matmul %492, %541, %cst_300 {dimension_numbers = #tpu.dot_dimension_numbers<[1], [0], [0], [1], [0, 0, 1, 1], [], []>} : vector<16x32xf32>, vector<32x8xf32>, vector<16x8xf32> -> vector<16x8xf32>
    %543 = vector.extract_strided_slice %497 {offsets = [1, 0], sizes = [1, 8], strides = [1, 1]} : vector<12x8xf32> to vector<1x8xf32>
    %544 = vector.broadcast %543 : vector<1x8xf32> to vector<16x8xf32>
    %545 = arith.addf %542, %544 : vector<16x8xf32>
    %c0_301 = arith.constant 0 : index
    %c5_302 = arith.constant 5 : index
    %c0_303 = arith.constant 0 : index
    %c0_304 = arith.constant 0 : index
    %546 = vector.load %arg12[%c0_301, %c5_302, %c0_303, %c0_304] : memref<2x12x32x8xf32, #tpu.memory_space<vmem>>, vector<1x1x32x8xf32>
    %547 = vector.shape_cast %546 : vector<1x1x32x8xf32> to vector<32x8xf32>
    %cst_305 = arith.constant dense<0.000000e+00> : vector<16x8xf32>
    %548 = tpu.matmul %492, %547, %cst_305 {dimension_numbers = #tpu.dot_dimension_numbers<[1], [0], [0], [1], [0, 0, 1, 1], [], []>} : vector<16x32xf32>, vector<32x8xf32>, vector<16x8xf32> -> vector<16x8xf32>
    %549 = vector.extract_strided_slice %497 {offsets = [5, 0], sizes = [1, 8], strides = [1, 1]} : vector<12x8xf32> to vector<1x8xf32>
    %550 = vector.broadcast %549 : vector<1x8xf32> to vector<16x8xf32>
    %551 = arith.addf %548, %550 : vector<16x8xf32>
    %c0_306 = arith.constant 0 : index
    %c9_307 = arith.constant 9 : index
    %c0_308 = arith.constant 0 : index
    %c0_309 = arith.constant 0 : index
    %552 = vector.load %arg12[%c0_306, %c9_307, %c0_308, %c0_309] : memref<2x12x32x8xf32, #tpu.memory_space<vmem>>, vector<1x1x32x8xf32>
    %553 = vector.shape_cast %552 : vector<1x1x32x8xf32> to vector<32x8xf32>
    %cst_310 = arith.constant dense<0.000000e+00> : vector<16x8xf32>
    %554 = tpu.matmul %492, %553, %cst_310 {dimension_numbers = #tpu.dot_dimension_numbers<[1], [0], [0], [1], [0, 0, 1, 1], [], []>} : vector<16x32xf32>, vector<32x8xf32>, vector<16x8xf32> -> vector<16x8xf32>
    %555 = vector.extract_strided_slice %497 {offsets = [9, 0], sizes = [1, 8], strides = [1, 1]} : vector<12x8xf32> to vector<1x8xf32>
    %556 = vector.broadcast %555 : vector<1x8xf32> to vector<16x8xf32>
    %557 = arith.addf %554, %556 : vector<16x8xf32>
    %558 = vector.shape_cast %545 : vector<16x8xf32> to vector<2x8x8xf32>
    %559 = vector.shape_cast %551 : vector<16x8xf32> to vector<2x8x8xf32>
    %560 = vector.shape_cast %557 : vector<16x8xf32> to vector<2x8x8xf32>
    "tpu.trace_start"() <{level = 10 : i32, message = "bqd,bkd->bqk"}> : () -> ()
    %cst_311 = arith.constant dense<0.000000e+00> : vector<2x8x8xf32>
    %561 = tpu.matmul %558, %559, %cst_311 {dimension_numbers = #tpu.dot_dimension_numbers<[2], [2], [1], [1], [0, 0, 0, 1, 1, 1], [0], [0]>} : vector<2x8x8xf32>, vector<2x8x8xf32>, vector<2x8x8xf32> -> vector<2x8x8xf32>
    "tpu.trace_stop"() : () -> ()
    %cst_312 = arith.constant 0.353553385 : f32
    %562 = vector.broadcast %cst_312 : f32 to vector<2x8x8xf32>
    %563 = arith.mulf %561, %562 : vector<2x8x8xf32>
    %cst_313 = arith.constant dense<0xFF800000> : vector<2x8xf32>
    %564 = vector.multi_reduction <maximumf>, %563, %cst_313 [2] : vector<2x8x8xf32> to vector<2x8xf32>
    %565 = vector.shape_cast %564 : vector<2x8xf32> to vector<2x8x1xf32>
    %566 = vector.broadcast %565 : vector<2x8x1xf32> to vector<2x8x8xf32>
    %567 = arith.subf %563, %566 : vector<2x8x8xf32>
    %568 = math.exp %567 : vector<2x8x8xf32>
    %cst_314 = arith.constant dense<0.000000e+00> : vector<2x8xf32>
    %569 = vector.multi_reduction <add>, %568, %cst_314 [2] : vector<2x8x8xf32> to vector<2x8xf32>
    %570 = vector.shape_cast %569 : vector<2x8xf32> to vector<2x8x1xf32>
    %571 = vector.broadcast %570 : vector<2x8x1xf32> to vector<2x8x8xf32>
    %572 = arith.divf %568, %571 : vector<2x8x8xf32>
    "tpu.trace_start"() <{level = 10 : i32, message = "bqk,bkd->bqd"}> : () -> ()
    %cst_315 = arith.constant dense<0.000000e+00> : vector<2x8x8xf32>
    %573 = tpu.matmul %572, %560, %cst_315 {dimension_numbers = #tpu.dot_dimension_numbers<[2], [1], [1], [2], [0, 0, 0, 1, 1, 2], [0], [0]>} : vector<2x8x8xf32>, vector<2x8x8xf32>, vector<2x8x8xf32> -> vector<2x8x8xf32>
    "tpu.trace_stop"() : () -> ()
    %574 = vector.shape_cast %573 : vector<2x8x8xf32> to vector<16x8xf32>
    %c0_316 = arith.constant 0 : index
    %c1_317 = arith.constant 1 : index
    %c0_318 = arith.constant 0 : index
    %c0_319 = arith.constant 0 : index
    %575 = vector.load %arg14[%c0_316, %c1_317, %c0_318, %c0_319] : memref<2x4x8x32xf32, #tpu.memory_space<vmem>>, vector<1x1x8x32xf32>
    %576 = vector.shape_cast %575 : vector<1x1x8x32xf32> to vector<8x32xf32>
    %cst_320 = arith.constant dense<0.000000e+00> : vector<16x32xf32>
    %577 = tpu.matmul %574, %576, %cst_320 {dimension_numbers = #tpu.dot_dimension_numbers<[1], [0], [0], [1], [0, 0, 1, 1], [], []>} : vector<16x8xf32>, vector<8x32xf32>, vector<16x32xf32> -> vector<16x32xf32>
    %578 = arith.addf %539, %577 : vector<16x32xf32>
    %c0_321 = arith.constant 0 : index
    %c2_322 = arith.constant 2 : index
    %c0_323 = arith.constant 0 : index
    %c0_324 = arith.constant 0 : index
    %579 = vector.load %arg12[%c0_321, %c2_322, %c0_323, %c0_324] : memref<2x12x32x8xf32, #tpu.memory_space<vmem>>, vector<1x1x32x8xf32>
    %580 = vector.shape_cast %579 : vector<1x1x32x8xf32> to vector<32x8xf32>
    %cst_325 = arith.constant dense<0.000000e+00> : vector<16x8xf32>
    %581 = tpu.matmul %492, %580, %cst_325 {dimension_numbers = #tpu.dot_dimension_numbers<[1], [0], [0], [1], [0, 0, 1, 1], [], []>} : vector<16x32xf32>, vector<32x8xf32>, vector<16x8xf32> -> vector<16x8xf32>
    %582 = vector.extract_strided_slice %497 {offsets = [2, 0], sizes = [1, 8], strides = [1, 1]} : vector<12x8xf32> to vector<1x8xf32>
    %583 = vector.broadcast %582 : vector<1x8xf32> to vector<16x8xf32>
    %584 = arith.addf %581, %583 : vector<16x8xf32>
    %c0_326 = arith.constant 0 : index
    %c6_327 = arith.constant 6 : index
    %c0_328 = arith.constant 0 : index
    %c0_329 = arith.constant 0 : index
    %585 = vector.load %arg12[%c0_326, %c6_327, %c0_328, %c0_329] : memref<2x12x32x8xf32, #tpu.memory_space<vmem>>, vector<1x1x32x8xf32>
    %586 = vector.shape_cast %585 : vector<1x1x32x8xf32> to vector<32x8xf32>
    %cst_330 = arith.constant dense<0.000000e+00> : vector<16x8xf32>
    %587 = tpu.matmul %492, %586, %cst_330 {dimension_numbers = #tpu.dot_dimension_numbers<[1], [0], [0], [1], [0, 0, 1, 1], [], []>} : vector<16x32xf32>, vector<32x8xf32>, vector<16x8xf32> -> vector<16x8xf32>
    %588 = vector.extract_strided_slice %497 {offsets = [6, 0], sizes = [1, 8], strides = [1, 1]} : vector<12x8xf32> to vector<1x8xf32>
    %589 = vector.broadcast %588 : vector<1x8xf32> to vector<16x8xf32>
    %590 = arith.addf %587, %589 : vector<16x8xf32>
    %c0_331 = arith.constant 0 : index
    %c10_332 = arith.constant 10 : index
    %c0_333 = arith.constant 0 : index
    %c0_334 = arith.constant 0 : index
    %591 = vector.load %arg12[%c0_331, %c10_332, %c0_333, %c0_334] : memref<2x12x32x8xf32, #tpu.memory_space<vmem>>, vector<1x1x32x8xf32>
    %592 = vector.shape_cast %591 : vector<1x1x32x8xf32> to vector<32x8xf32>
    %cst_335 = arith.constant dense<0.000000e+00> : vector<16x8xf32>
    %593 = tpu.matmul %492, %592, %cst_335 {dimension_numbers = #tpu.dot_dimension_numbers<[1], [0], [0], [1], [0, 0, 1, 1], [], []>} : vector<16x32xf32>, vector<32x8xf32>, vector<16x8xf32> -> vector<16x8xf32>
    %594 = vector.extract_strided_slice %497 {offsets = [10, 0], sizes = [1, 8], strides = [1, 1]} : vector<12x8xf32> to vector<1x8xf32>
    %595 = vector.broadcast %594 : vector<1x8xf32> to vector<16x8xf32>
    %596 = arith.addf %593, %595 : vector<16x8xf32>
    %597 = vector.shape_cast %584 : vector<16x8xf32> to vector<2x8x8xf32>
    %598 = vector.shape_cast %590 : vector<16x8xf32> to vector<2x8x8xf32>
    %599 = vector.shape_cast %596 : vector<16x8xf32> to vector<2x8x8xf32>
    "tpu.trace_start"() <{level = 10 : i32, message = "bqd,bkd->bqk"}> : () -> ()
    %cst_336 = arith.constant dense<0.000000e+00> : vector<2x8x8xf32>
    %600 = tpu.matmul %597, %598, %cst_336 {dimension_numbers = #tpu.dot_dimension_numbers<[2], [2], [1], [1], [0, 0, 0, 1, 1, 1], [0], [0]>} : vector<2x8x8xf32>, vector<2x8x8xf32>, vector<2x8x8xf32> -> vector<2x8x8xf32>
    "tpu.trace_stop"() : () -> ()
    %cst_337 = arith.constant 0.353553385 : f32
    %601 = vector.broadcast %cst_337 : f32 to vector<2x8x8xf32>
    %602 = arith.mulf %600, %601 : vector<2x8x8xf32>
    %cst_338 = arith.constant dense<0xFF800000> : vector<2x8xf32>
    %603 = vector.multi_reduction <maximumf>, %602, %cst_338 [2] : vector<2x8x8xf32> to vector<2x8xf32>
    %604 = vector.shape_cast %603 : vector<2x8xf32> to vector<2x8x1xf32>
    %605 = vector.broadcast %604 : vector<2x8x1xf32> to vector<2x8x8xf32>
    %606 = arith.subf %602, %605 : vector<2x8x8xf32>
    %607 = math.exp %606 : vector<2x8x8xf32>
    %cst_339 = arith.constant dense<0.000000e+00> : vector<2x8xf32>
    %608 = vector.multi_reduction <add>, %607, %cst_339 [2] : vector<2x8x8xf32> to vector<2x8xf32>
    %609 = vector.shape_cast %608 : vector<2x8xf32> to vector<2x8x1xf32>
    %610 = vector.broadcast %609 : vector<2x8x1xf32> to vector<2x8x8xf32>
    %611 = arith.divf %607, %610 : vector<2x8x8xf32>
    "tpu.trace_start"() <{level = 10 : i32, message = "bqk,bkd->bqd"}> : () -> ()
    %cst_340 = arith.constant dense<0.000000e+00> : vector<2x8x8xf32>
    %612 = tpu.matmul %611, %599, %cst_340 {dimension_numbers = #tpu.dot_dimension_numbers<[2], [1], [1], [2], [0, 0, 0, 1, 1, 2], [0], [0]>} : vector<2x8x8xf32>, vector<2x8x8xf32>, vector<2x8x8xf32> -> vector<2x8x8xf32>
    "tpu.trace_stop"() : () -> ()
    %613 = vector.shape_cast %612 : vector<2x8x8xf32> to vector<16x8xf32>
    %c0_341 = arith.constant 0 : index
    %c2_342 = arith.constant 2 : index
    %c0_343 = arith.constant 0 : index
    %c0_344 = arith.constant 0 : index
    %614 = vector.load %arg14[%c0_341, %c2_342, %c0_343, %c0_344] : memref<2x4x8x32xf32, #tpu.memory_space<vmem>>, vector<1x1x8x32xf32>
    %615 = vector.shape_cast %614 : vector<1x1x8x32xf32> to vector<8x32xf32>
    %cst_345 = arith.constant dense<0.000000e+00> : vector<16x32xf32>
    %616 = tpu.matmul %613, %615, %cst_345 {dimension_numbers = #tpu.dot_dimension_numbers<[1], [0], [0], [1], [0, 0, 1, 1], [], []>} : vector<16x8xf32>, vector<8x32xf32>, vector<16x32xf32> -> vector<16x32xf32>
    %617 = arith.addf %578, %616 : vector<16x32xf32>
    %c0_346 = arith.constant 0 : index
    %c3_347 = arith.constant 3 : index
    %c0_348 = arith.constant 0 : index
    %c0_349 = arith.constant 0 : index
    %618 = vector.load %arg12[%c0_346, %c3_347, %c0_348, %c0_349] : memref<2x12x32x8xf32, #tpu.memory_space<vmem>>, vector<1x1x32x8xf32>
    %619 = vector.shape_cast %618 : vector<1x1x32x8xf32> to vector<32x8xf32>
    %cst_350 = arith.constant dense<0.000000e+00> : vector<16x8xf32>
    %620 = tpu.matmul %492, %619, %cst_350 {dimension_numbers = #tpu.dot_dimension_numbers<[1], [0], [0], [1], [0, 0, 1, 1], [], []>} : vector<16x32xf32>, vector<32x8xf32>, vector<16x8xf32> -> vector<16x8xf32>
    %621 = vector.extract_strided_slice %497 {offsets = [3, 0], sizes = [1, 8], strides = [1, 1]} : vector<12x8xf32> to vector<1x8xf32>
    %622 = vector.broadcast %621 : vector<1x8xf32> to vector<16x8xf32>
    %623 = arith.addf %620, %622 : vector<16x8xf32>
    %c0_351 = arith.constant 0 : index
    %c7_352 = arith.constant 7 : index
    %c0_353 = arith.constant 0 : index
    %c0_354 = arith.constant 0 : index
    %624 = vector.load %arg12[%c0_351, %c7_352, %c0_353, %c0_354] : memref<2x12x32x8xf32, #tpu.memory_space<vmem>>, vector<1x1x32x8xf32>
    %625 = vector.shape_cast %624 : vector<1x1x32x8xf32> to vector<32x8xf32>
    %cst_355 = arith.constant dense<0.000000e+00> : vector<16x8xf32>
    %626 = tpu.matmul %492, %625, %cst_355 {dimension_numbers = #tpu.dot_dimension_numbers<[1], [0], [0], [1], [0, 0, 1, 1], [], []>} : vector<16x32xf32>, vector<32x8xf32>, vector<16x8xf32> -> vector<16x8xf32>
    %627 = vector.extract_strided_slice %497 {offsets = [7, 0], sizes = [1, 8], strides = [1, 1]} : vector<12x8xf32> to vector<1x8xf32>
    %628 = vector.broadcast %627 : vector<1x8xf32> to vector<16x8xf32>
    %629 = arith.addf %626, %628 : vector<16x8xf32>
    %c0_356 = arith.constant 0 : index
    %c11_357 = arith.constant 11 : index
    %c0_358 = arith.constant 0 : index
    %c0_359 = arith.constant 0 : index
    %630 = vector.load %arg12[%c0_356, %c11_357, %c0_358, %c0_359] : memref<2x12x32x8xf32, #tpu.memory_space<vmem>>, vector<1x1x32x8xf32>
    %631 = vector.shape_cast %630 : vector<1x1x32x8xf32> to vector<32x8xf32>
    %cst_360 = arith.constant dense<0.000000e+00> : vector<16x8xf32>
    %632 = tpu.matmul %492, %631, %cst_360 {dimension_numbers = #tpu.dot_dimension_numbers<[1], [0], [0], [1], [0, 0, 1, 1], [], []>} : vector<16x32xf32>, vector<32x8xf32>, vector<16x8xf32> -> vector<16x8xf32>
    %633 = vector.extract_strided_slice %497 {offsets = [11, 0], sizes = [1, 8], strides = [1, 1]} : vector<12x8xf32> to vector<1x8xf32>
    %634 = vector.broadcast %633 : vector<1x8xf32> to vector<16x8xf32>
    %635 = arith.addf %632, %634 : vector<16x8xf32>
    %636 = vector.shape_cast %623 : vector<16x8xf32> to vector<2x8x8xf32>
    %637 = vector.shape_cast %629 : vector<16x8xf32> to vector<2x8x8xf32>
    %638 = vector.shape_cast %635 : vector<16x8xf32> to vector<2x8x8xf32>
    "tpu.trace_start"() <{level = 10 : i32, message = "bqd,bkd->bqk"}> : () -> ()
    %cst_361 = arith.constant dense<0.000000e+00> : vector<2x8x8xf32>
    %639 = tpu.matmul %636, %637, %cst_361 {dimension_numbers = #tpu.dot_dimension_numbers<[2], [2], [1], [1], [0, 0, 0, 1, 1, 1], [0], [0]>} : vector<2x8x8xf32>, vector<2x8x8xf32>, vector<2x8x8xf32> -> vector<2x8x8xf32>
    "tpu.trace_stop"() : () -> ()
    %cst_362 = arith.constant 0.353553385 : f32
    %640 = vector.broadcast %cst_362 : f32 to vector<2x8x8xf32>
    %641 = arith.mulf %639, %640 : vector<2x8x8xf32>
    %cst_363 = arith.constant dense<0xFF800000> : vector<2x8xf32>
    %642 = vector.multi_reduction <maximumf>, %641, %cst_363 [2] : vector<2x8x8xf32> to vector<2x8xf32>
    %643 = vector.shape_cast %642 : vector<2x8xf32> to vector<2x8x1xf32>
    %644 = vector.broadcast %643 : vector<2x8x1xf32> to vector<2x8x8xf32>
    %645 = arith.subf %641, %644 : vector<2x8x8xf32>
    %646 = math.exp %645 : vector<2x8x8xf32>
    %cst_364 = arith.constant dense<0.000000e+00> : vector<2x8xf32>
    %647 = vector.multi_reduction <add>, %646, %cst_364 [2] : vector<2x8x8xf32> to vector<2x8xf32>
    %648 = vector.shape_cast %647 : vector<2x8xf32> to vector<2x8x1xf32>
    %649 = vector.broadcast %648 : vector<2x8x1xf32> to vector<2x8x8xf32>
    %650 = arith.divf %646, %649 : vector<2x8x8xf32>
    "tpu.trace_start"() <{level = 10 : i32, message = "bqk,bkd->bqd"}> : () -> ()
    %cst_365 = arith.constant dense<0.000000e+00> : vector<2x8x8xf32>
    %651 = tpu.matmul %650, %638, %cst_365 {dimension_numbers = #tpu.dot_dimension_numbers<[2], [1], [1], [2], [0, 0, 0, 1, 1, 2], [0], [0]>} : vector<2x8x8xf32>, vector<2x8x8xf32>, vector<2x8x8xf32> -> vector<2x8x8xf32>
    "tpu.trace_stop"() : () -> ()
    %652 = vector.shape_cast %651 : vector<2x8x8xf32> to vector<16x8xf32>
    %c0_366 = arith.constant 0 : index
    %c3_367 = arith.constant 3 : index
    %c0_368 = arith.constant 0 : index
    %c0_369 = arith.constant 0 : index
    %653 = vector.load %arg14[%c0_366, %c3_367, %c0_368, %c0_369] : memref<2x4x8x32xf32, #tpu.memory_space<vmem>>, vector<1x1x8x32xf32>
    %654 = vector.shape_cast %653 : vector<1x1x8x32xf32> to vector<8x32xf32>
    %cst_370 = arith.constant dense<0.000000e+00> : vector<16x32xf32>
    %655 = tpu.matmul %652, %654, %cst_370 {dimension_numbers = #tpu.dot_dimension_numbers<[1], [0], [0], [1], [0, 0, 1, 1], [], []>} : vector<16x8xf32>, vector<8x32xf32>, vector<16x32xf32> -> vector<16x32xf32>
    %656 = arith.addf %617, %655 : vector<16x32xf32>
    %657 = arith.addf %492, %656 : vector<16x32xf32>
    %658 = vector.extract_strided_slice %494 {offsets = [2, 0], sizes = [1, 32], strides = [1, 1]} : vector<9x32xf32> to vector<1x32xf32>
    %659 = vector.extract_strided_slice %494 {offsets = [3, 0], sizes = [1, 32], strides = [1, 1]} : vector<9x32xf32> to vector<1x32xf32>
    %cst_371 = arith.constant dense<0.000000e+00> : vector<16xf32>
    %660 = vector.multi_reduction <add>, %657, %cst_371 [1] : vector<16x32xf32> to vector<16xf32>
    %661 = vector.shape_cast %660 : vector<16xf32> to vector<16x1xf32>
    %cst_372 = arith.constant 3.200000e+01 : f32
    %662 = vector.broadcast %cst_372 : f32 to vector<16x1xf32>
    %663 = arith.divf %661, %662 : vector<16x1xf32>
    %664 = vector.broadcast %663 : vector<16x1xf32> to vector<16x32xf32>
    %665 = arith.subf %657, %664 : vector<16x32xf32>
    %666 = arith.mulf %665, %665 : vector<16x32xf32>
    %cst_373 = arith.constant dense<0.000000e+00> : vector<16xf32>
    %667 = vector.multi_reduction <add>, %666, %cst_373 [1] : vector<16x32xf32> to vector<16xf32>
    %668 = vector.shape_cast %667 : vector<16xf32> to vector<16x1xf32>
    %cst_374 = arith.constant 3.200000e+01 : f32
    %669 = vector.broadcast %cst_374 : f32 to vector<16x1xf32>
    %670 = arith.divf %668, %669 : vector<16x1xf32>
    %cst_375 = arith.constant 9.99999974E-6 : f32
    %671 = vector.broadcast %cst_375 : f32 to vector<16x1xf32>
    %672 = arith.addf %670, %671 : vector<16x1xf32>
    %673 = math.rsqrt %672 : vector<16x1xf32>
    %674 = vector.broadcast %673 : vector<16x1xf32> to vector<16x32xf32>
    %675 = arith.mulf %665, %674 : vector<16x32xf32>
    %676 = vector.broadcast %658 : vector<1x32xf32> to vector<16x32xf32>
    %677 = arith.mulf %675, %676 : vector<16x32xf32>
    %678 = vector.broadcast %659 : vector<1x32xf32> to vector<16x32xf32>
    %679 = arith.addf %677, %678 : vector<16x32xf32>
    %680 = vector.extract_strided_slice %494 {offsets = [1, 0], sizes = [1, 32], strides = [1, 1]} : vector<9x32xf32> to vector<1x32xf32>
    %c0_376 = arith.constant 0 : index
    %c0_377 = arith.constant 0 : index
    %c0_378 = arith.constant 0 : index
    %681 = vector.load %arg16[%c0_376, %c0_377, %c0_378] : memref<2x12x8xf32, #tpu.memory_space<vmem>>, vector<1x12x8xf32>
    %682 = vector.shape_cast %681 : vector<1x12x8xf32> to vector<12x8xf32>
    %cst_379 = arith.constant 0.000000e+00 : f32
    %683 = vector.broadcast %cst_379 : f32 to vector<16x32xf32>
    %684 = vector.broadcast %680 : vector<1x32xf32> to vector<16x32xf32>
    %685 = arith.addf %683, %684 : vector<16x32xf32>
    %c0_380 = arith.constant 0 : index
    %c0_381 = arith.constant 0 : index
    %c0_382 = arith.constant 0 : index
    %c0_383 = arith.constant 0 : index
    %686 = vector.load %arg15[%c0_380, %c0_381, %c0_382, %c0_383] : memref<2x12x32x8xf32, #tpu.memory_space<vmem>>, vector<1x1x32x8xf32>
    %687 = vector.shape_cast %686 : vector<1x1x32x8xf32> to vector<32x8xf32>
    %cst_384 = arith.constant dense<0.000000e+00> : vector<16x8xf32>
    %688 = tpu.matmul %679, %687, %cst_384 {dimension_numbers = #tpu.dot_dimension_numbers<[1], [0], [0], [1], [0, 0, 1, 1], [], []>} : vector<16x32xf32>, vector<32x8xf32>, vector<16x8xf32> -> vector<16x8xf32>
    %689 = vector.extract_strided_slice %682 {offsets = [0, 0], sizes = [1, 8], strides = [1, 1]} : vector<12x8xf32> to vector<1x8xf32>
    %690 = vector.broadcast %689 : vector<1x8xf32> to vector<16x8xf32>
    %691 = arith.addf %688, %690 : vector<16x8xf32>
    %c0_385 = arith.constant 0 : index
    %c4_386 = arith.constant 4 : index
    %c0_387 = arith.constant 0 : index
    %c0_388 = arith.constant 0 : index
    %692 = vector.load %arg15[%c0_385, %c4_386, %c0_387, %c0_388] : memref<2x12x32x8xf32, #tpu.memory_space<vmem>>, vector<1x1x32x8xf32>
    %693 = vector.shape_cast %692 : vector<1x1x32x8xf32> to vector<32x8xf32>
    %cst_389 = arith.constant dense<0.000000e+00> : vector<16x8xf32>
    %694 = tpu.matmul %482, %693, %cst_389 {dimension_numbers = #tpu.dot_dimension_numbers<[1], [0], [0], [1], [0, 0, 1, 1], [], []>} : vector<16x32xf32>, vector<32x8xf32>, vector<16x8xf32> -> vector<16x8xf32>
    %695 = vector.extract_strided_slice %682 {offsets = [4, 0], sizes = [1, 8], strides = [1, 1]} : vector<12x8xf32> to vector<1x8xf32>
    %696 = vector.broadcast %695 : vector<1x8xf32> to vector<16x8xf32>
    %697 = arith.addf %694, %696 : vector<16x8xf32>
    %c0_390 = arith.constant 0 : index
    %c8_391 = arith.constant 8 : index
    %c0_392 = arith.constant 0 : index
    %c0_393 = arith.constant 0 : index
    %698 = vector.load %arg15[%c0_390, %c8_391, %c0_392, %c0_393] : memref<2x12x32x8xf32, #tpu.memory_space<vmem>>, vector<1x1x32x8xf32>
    %699 = vector.shape_cast %698 : vector<1x1x32x8xf32> to vector<32x8xf32>
    %cst_394 = arith.constant dense<0.000000e+00> : vector<16x8xf32>
    %700 = tpu.matmul %482, %699, %cst_394 {dimension_numbers = #tpu.dot_dimension_numbers<[1], [0], [0], [1], [0, 0, 1, 1], [], []>} : vector<16x32xf32>, vector<32x8xf32>, vector<16x8xf32> -> vector<16x8xf32>
    %701 = vector.extract_strided_slice %682 {offsets = [8, 0], sizes = [1, 8], strides = [1, 1]} : vector<12x8xf32> to vector<1x8xf32>
    %702 = vector.broadcast %701 : vector<1x8xf32> to vector<16x8xf32>
    %703 = arith.addf %700, %702 : vector<16x8xf32>
    %704 = vector.shape_cast %691 : vector<16x8xf32> to vector<2x8x8xf32>
    %705 = vector.shape_cast %697 : vector<16x8xf32> to vector<2x8x8xf32>
    %706 = vector.shape_cast %703 : vector<16x8xf32> to vector<2x8x8xf32>
    "tpu.trace_start"() <{level = 10 : i32, message = "bqd,bkd->bqk"}> : () -> ()
    %cst_395 = arith.constant dense<0.000000e+00> : vector<2x8x8xf32>
    %707 = tpu.matmul %704, %705, %cst_395 {dimension_numbers = #tpu.dot_dimension_numbers<[2], [2], [1], [1], [0, 0, 0, 1, 1, 1], [0], [0]>} : vector<2x8x8xf32>, vector<2x8x8xf32>, vector<2x8x8xf32> -> vector<2x8x8xf32>
    "tpu.trace_stop"() : () -> ()
    %cst_396 = arith.constant 0.353553385 : f32
    %708 = vector.broadcast %cst_396 : f32 to vector<2x8x8xf32>
    %709 = arith.mulf %707, %708 : vector<2x8x8xf32>
    %cst_397 = arith.constant dense<0xFF800000> : vector<2x8xf32>
    %710 = vector.multi_reduction <maximumf>, %709, %cst_397 [2] : vector<2x8x8xf32> to vector<2x8xf32>
    %711 = vector.shape_cast %710 : vector<2x8xf32> to vector<2x8x1xf32>
    %712 = vector.broadcast %711 : vector<2x8x1xf32> to vector<2x8x8xf32>
    %713 = arith.subf %709, %712 : vector<2x8x8xf32>
    %714 = math.exp %713 : vector<2x8x8xf32>
    %cst_398 = arith.constant dense<0.000000e+00> : vector<2x8xf32>
    %715 = vector.multi_reduction <add>, %714, %cst_398 [2] : vector<2x8x8xf32> to vector<2x8xf32>
    %716 = vector.shape_cast %715 : vector<2x8xf32> to vector<2x8x1xf32>
    %717 = vector.broadcast %716 : vector<2x8x1xf32> to vector<2x8x8xf32>
    %718 = arith.divf %714, %717 : vector<2x8x8xf32>
    "tpu.trace_start"() <{level = 10 : i32, message = "bqk,bkd->bqd"}> : () -> ()
    %cst_399 = arith.constant dense<0.000000e+00> : vector<2x8x8xf32>
    %719 = tpu.matmul %718, %706, %cst_399 {dimension_numbers = #tpu.dot_dimension_numbers<[2], [1], [1], [2], [0, 0, 0, 1, 1, 2], [0], [0]>} : vector<2x8x8xf32>, vector<2x8x8xf32>, vector<2x8x8xf32> -> vector<2x8x8xf32>
    "tpu.trace_stop"() : () -> ()
    %720 = vector.shape_cast %719 : vector<2x8x8xf32> to vector<16x8xf32>
    %c0_400 = arith.constant 0 : index
    %c0_401 = arith.constant 0 : index
    %c0_402 = arith.constant 0 : index
    %c0_403 = arith.constant 0 : index
    %721 = vector.load %arg17[%c0_400, %c0_401, %c0_402, %c0_403] : memref<2x4x8x32xf32, #tpu.memory_space<vmem>>, vector<1x1x8x32xf32>
    %722 = vector.shape_cast %721 : vector<1x1x8x32xf32> to vector<8x32xf32>
    %cst_404 = arith.constant dense<0.000000e+00> : vector<16x32xf32>
    %723 = tpu.matmul %720, %722, %cst_404 {dimension_numbers = #tpu.dot_dimension_numbers<[1], [0], [0], [1], [0, 0, 1, 1], [], []>} : vector<16x8xf32>, vector<8x32xf32>, vector<16x32xf32> -> vector<16x32xf32>
    %724 = arith.addf %685, %723 : vector<16x32xf32>
    %c0_405 = arith.constant 0 : index
    %c1_406 = arith.constant 1 : index
    %c0_407 = arith.constant 0 : index
    %c0_408 = arith.constant 0 : index
    %725 = vector.load %arg15[%c0_405, %c1_406, %c0_407, %c0_408] : memref<2x12x32x8xf32, #tpu.memory_space<vmem>>, vector<1x1x32x8xf32>
    %726 = vector.shape_cast %725 : vector<1x1x32x8xf32> to vector<32x8xf32>
    %cst_409 = arith.constant dense<0.000000e+00> : vector<16x8xf32>
    %727 = tpu.matmul %679, %726, %cst_409 {dimension_numbers = #tpu.dot_dimension_numbers<[1], [0], [0], [1], [0, 0, 1, 1], [], []>} : vector<16x32xf32>, vector<32x8xf32>, vector<16x8xf32> -> vector<16x8xf32>
    %728 = vector.extract_strided_slice %682 {offsets = [1, 0], sizes = [1, 8], strides = [1, 1]} : vector<12x8xf32> to vector<1x8xf32>
    %729 = vector.broadcast %728 : vector<1x8xf32> to vector<16x8xf32>
    %730 = arith.addf %727, %729 : vector<16x8xf32>
    %c0_410 = arith.constant 0 : index
    %c5_411 = arith.constant 5 : index
    %c0_412 = arith.constant 0 : index
    %c0_413 = arith.constant 0 : index
    %731 = vector.load %arg15[%c0_410, %c5_411, %c0_412, %c0_413] : memref<2x12x32x8xf32, #tpu.memory_space<vmem>>, vector<1x1x32x8xf32>
    %732 = vector.shape_cast %731 : vector<1x1x32x8xf32> to vector<32x8xf32>
    %cst_414 = arith.constant dense<0.000000e+00> : vector<16x8xf32>
    %733 = tpu.matmul %482, %732, %cst_414 {dimension_numbers = #tpu.dot_dimension_numbers<[1], [0], [0], [1], [0, 0, 1, 1], [], []>} : vector<16x32xf32>, vector<32x8xf32>, vector<16x8xf32> -> vector<16x8xf32>
    %734 = vector.extract_strided_slice %682 {offsets = [5, 0], sizes = [1, 8], strides = [1, 1]} : vector<12x8xf32> to vector<1x8xf32>
    %735 = vector.broadcast %734 : vector<1x8xf32> to vector<16x8xf32>
    %736 = arith.addf %733, %735 : vector<16x8xf32>
    %c0_415 = arith.constant 0 : index
    %c9_416 = arith.constant 9 : index
    %c0_417 = arith.constant 0 : index
    %c0_418 = arith.constant 0 : index
    %737 = vector.load %arg15[%c0_415, %c9_416, %c0_417, %c0_418] : memref<2x12x32x8xf32, #tpu.memory_space<vmem>>, vector<1x1x32x8xf32>
    %738 = vector.shape_cast %737 : vector<1x1x32x8xf32> to vector<32x8xf32>
    %cst_419 = arith.constant dense<0.000000e+00> : vector<16x8xf32>
    %739 = tpu.matmul %482, %738, %cst_419 {dimension_numbers = #tpu.dot_dimension_numbers<[1], [0], [0], [1], [0, 0, 1, 1], [], []>} : vector<16x32xf32>, vector<32x8xf32>, vector<16x8xf32> -> vector<16x8xf32>
    %740 = vector.extract_strided_slice %682 {offsets = [9, 0], sizes = [1, 8], strides = [1, 1]} : vector<12x8xf32> to vector<1x8xf32>
    %741 = vector.broadcast %740 : vector<1x8xf32> to vector<16x8xf32>
    %742 = arith.addf %739, %741 : vector<16x8xf32>
    %743 = vector.shape_cast %730 : vector<16x8xf32> to vector<2x8x8xf32>
    %744 = vector.shape_cast %736 : vector<16x8xf32> to vector<2x8x8xf32>
    %745 = vector.shape_cast %742 : vector<16x8xf32> to vector<2x8x8xf32>
    "tpu.trace_start"() <{level = 10 : i32, message = "bqd,bkd->bqk"}> : () -> ()
    %cst_420 = arith.constant dense<0.000000e+00> : vector<2x8x8xf32>
    %746 = tpu.matmul %743, %744, %cst_420 {dimension_numbers = #tpu.dot_dimension_numbers<[2], [2], [1], [1], [0, 0, 0, 1, 1, 1], [0], [0]>} : vector<2x8x8xf32>, vector<2x8x8xf32>, vector<2x8x8xf32> -> vector<2x8x8xf32>
    "tpu.trace_stop"() : () -> ()
    %cst_421 = arith.constant 0.353553385 : f32
    %747 = vector.broadcast %cst_421 : f32 to vector<2x8x8xf32>
    %748 = arith.mulf %746, %747 : vector<2x8x8xf32>
    %cst_422 = arith.constant dense<0xFF800000> : vector<2x8xf32>
    %749 = vector.multi_reduction <maximumf>, %748, %cst_422 [2] : vector<2x8x8xf32> to vector<2x8xf32>
    %750 = vector.shape_cast %749 : vector<2x8xf32> to vector<2x8x1xf32>
    %751 = vector.broadcast %750 : vector<2x8x1xf32> to vector<2x8x8xf32>
    %752 = arith.subf %748, %751 : vector<2x8x8xf32>
    %753 = math.exp %752 : vector<2x8x8xf32>
    %cst_423 = arith.constant dense<0.000000e+00> : vector<2x8xf32>
    %754 = vector.multi_reduction <add>, %753, %cst_423 [2] : vector<2x8x8xf32> to vector<2x8xf32>
    %755 = vector.shape_cast %754 : vector<2x8xf32> to vector<2x8x1xf32>
    %756 = vector.broadcast %755 : vector<2x8x1xf32> to vector<2x8x8xf32>
    %757 = arith.divf %753, %756 : vector<2x8x8xf32>
    "tpu.trace_start"() <{level = 10 : i32, message = "bqk,bkd->bqd"}> : () -> ()
    %cst_424 = arith.constant dense<0.000000e+00> : vector<2x8x8xf32>
    %758 = tpu.matmul %757, %745, %cst_424 {dimension_numbers = #tpu.dot_dimension_numbers<[2], [1], [1], [2], [0, 0, 0, 1, 1, 2], [0], [0]>} : vector<2x8x8xf32>, vector<2x8x8xf32>, vector<2x8x8xf32> -> vector<2x8x8xf32>
    "tpu.trace_stop"() : () -> ()
    %759 = vector.shape_cast %758 : vector<2x8x8xf32> to vector<16x8xf32>
    %c0_425 = arith.constant 0 : index
    %c1_426 = arith.constant 1 : index
    %c0_427 = arith.constant 0 : index
    %c0_428 = arith.constant 0 : index
    %760 = vector.load %arg17[%c0_425, %c1_426, %c0_427, %c0_428] : memref<2x4x8x32xf32, #tpu.memory_space<vmem>>, vector<1x1x8x32xf32>
    %761 = vector.shape_cast %760 : vector<1x1x8x32xf32> to vector<8x32xf32>
    %cst_429 = arith.constant dense<0.000000e+00> : vector<16x32xf32>
    %762 = tpu.matmul %759, %761, %cst_429 {dimension_numbers = #tpu.dot_dimension_numbers<[1], [0], [0], [1], [0, 0, 1, 1], [], []>} : vector<16x8xf32>, vector<8x32xf32>, vector<16x32xf32> -> vector<16x32xf32>
    %763 = arith.addf %724, %762 : vector<16x32xf32>
    %c0_430 = arith.constant 0 : index
    %c2_431 = arith.constant 2 : index
    %c0_432 = arith.constant 0 : index
    %c0_433 = arith.constant 0 : index
    %764 = vector.load %arg15[%c0_430, %c2_431, %c0_432, %c0_433] : memref<2x12x32x8xf32, #tpu.memory_space<vmem>>, vector<1x1x32x8xf32>
    %765 = vector.shape_cast %764 : vector<1x1x32x8xf32> to vector<32x8xf32>
    %cst_434 = arith.constant dense<0.000000e+00> : vector<16x8xf32>
    %766 = tpu.matmul %679, %765, %cst_434 {dimension_numbers = #tpu.dot_dimension_numbers<[1], [0], [0], [1], [0, 0, 1, 1], [], []>} : vector<16x32xf32>, vector<32x8xf32>, vector<16x8xf32> -> vector<16x8xf32>
    %767 = vector.extract_strided_slice %682 {offsets = [2, 0], sizes = [1, 8], strides = [1, 1]} : vector<12x8xf32> to vector<1x8xf32>
    %768 = vector.broadcast %767 : vector<1x8xf32> to vector<16x8xf32>
    %769 = arith.addf %766, %768 : vector<16x8xf32>
    %c0_435 = arith.constant 0 : index
    %c6_436 = arith.constant 6 : index
    %c0_437 = arith.constant 0 : index
    %c0_438 = arith.constant 0 : index
    %770 = vector.load %arg15[%c0_435, %c6_436, %c0_437, %c0_438] : memref<2x12x32x8xf32, #tpu.memory_space<vmem>>, vector<1x1x32x8xf32>
    %771 = vector.shape_cast %770 : vector<1x1x32x8xf32> to vector<32x8xf32>
    %cst_439 = arith.constant dense<0.000000e+00> : vector<16x8xf32>
    %772 = tpu.matmul %482, %771, %cst_439 {dimension_numbers = #tpu.dot_dimension_numbers<[1], [0], [0], [1], [0, 0, 1, 1], [], []>} : vector<16x32xf32>, vector<32x8xf32>, vector<16x8xf32> -> vector<16x8xf32>
    %773 = vector.extract_strided_slice %682 {offsets = [6, 0], sizes = [1, 8], strides = [1, 1]} : vector<12x8xf32> to vector<1x8xf32>
    %774 = vector.broadcast %773 : vector<1x8xf32> to vector<16x8xf32>
    %775 = arith.addf %772, %774 : vector<16x8xf32>
    %c0_440 = arith.constant 0 : index
    %c10_441 = arith.constant 10 : index
    %c0_442 = arith.constant 0 : index
    %c0_443 = arith.constant 0 : index
    %776 = vector.load %arg15[%c0_440, %c10_441, %c0_442, %c0_443] : memref<2x12x32x8xf32, #tpu.memory_space<vmem>>, vector<1x1x32x8xf32>
    %777 = vector.shape_cast %776 : vector<1x1x32x8xf32> to vector<32x8xf32>
    %cst_444 = arith.constant dense<0.000000e+00> : vector<16x8xf32>
    %778 = tpu.matmul %482, %777, %cst_444 {dimension_numbers = #tpu.dot_dimension_numbers<[1], [0], [0], [1], [0, 0, 1, 1], [], []>} : vector<16x32xf32>, vector<32x8xf32>, vector<16x8xf32> -> vector<16x8xf32>
    %779 = vector.extract_strided_slice %682 {offsets = [10, 0], sizes = [1, 8], strides = [1, 1]} : vector<12x8xf32> to vector<1x8xf32>
    %780 = vector.broadcast %779 : vector<1x8xf32> to vector<16x8xf32>
    %781 = arith.addf %778, %780 : vector<16x8xf32>
    %782 = vector.shape_cast %769 : vector<16x8xf32> to vector<2x8x8xf32>
    %783 = vector.shape_cast %775 : vector<16x8xf32> to vector<2x8x8xf32>
    %784 = vector.shape_cast %781 : vector<16x8xf32> to vector<2x8x8xf32>
    "tpu.trace_start"() <{level = 10 : i32, message = "bqd,bkd->bqk"}> : () -> ()
    %cst_445 = arith.constant dense<0.000000e+00> : vector<2x8x8xf32>
    %785 = tpu.matmul %782, %783, %cst_445 {dimension_numbers = #tpu.dot_dimension_numbers<[2], [2], [1], [1], [0, 0, 0, 1, 1, 1], [0], [0]>} : vector<2x8x8xf32>, vector<2x8x8xf32>, vector<2x8x8xf32> -> vector<2x8x8xf32>
    "tpu.trace_stop"() : () -> ()
    %cst_446 = arith.constant 0.353553385 : f32
    %786 = vector.broadcast %cst_446 : f32 to vector<2x8x8xf32>
    %787 = arith.mulf %785, %786 : vector<2x8x8xf32>
    %cst_447 = arith.constant dense<0xFF800000> : vector<2x8xf32>
    %788 = vector.multi_reduction <maximumf>, %787, %cst_447 [2] : vector<2x8x8xf32> to vector<2x8xf32>
    %789 = vector.shape_cast %788 : vector<2x8xf32> to vector<2x8x1xf32>
    %790 = vector.broadcast %789 : vector<2x8x1xf32> to vector<2x8x8xf32>
    %791 = arith.subf %787, %790 : vector<2x8x8xf32>
    %792 = math.exp %791 : vector<2x8x8xf32>
    %cst_448 = arith.constant dense<0.000000e+00> : vector<2x8xf32>
    %793 = vector.multi_reduction <add>, %792, %cst_448 [2] : vector<2x8x8xf32> to vector<2x8xf32>
    %794 = vector.shape_cast %793 : vector<2x8xf32> to vector<2x8x1xf32>
    %795 = vector.broadcast %794 : vector<2x8x1xf32> to vector<2x8x8xf32>
    %796 = arith.divf %792, %795 : vector<2x8x8xf32>
    "tpu.trace_start"() <{level = 10 : i32, message = "bqk,bkd->bqd"}> : () -> ()
    %cst_449 = arith.constant dense<0.000000e+00> : vector<2x8x8xf32>
    %797 = tpu.matmul %796, %784, %cst_449 {dimension_numbers = #tpu.dot_dimension_numbers<[2], [1], [1], [2], [0, 0, 0, 1, 1, 2], [0], [0]>} : vector<2x8x8xf32>, vector<2x8x8xf32>, vector<2x8x8xf32> -> vector<2x8x8xf32>
    "tpu.trace_stop"() : () -> ()
    %798 = vector.shape_cast %797 : vector<2x8x8xf32> to vector<16x8xf32>
    %c0_450 = arith.constant 0 : index
    %c2_451 = arith.constant 2 : index
    %c0_452 = arith.constant 0 : index
    %c0_453 = arith.constant 0 : index
    %799 = vector.load %arg17[%c0_450, %c2_451, %c0_452, %c0_453] : memref<2x4x8x32xf32, #tpu.memory_space<vmem>>, vector<1x1x8x32xf32>
    %800 = vector.shape_cast %799 : vector<1x1x8x32xf32> to vector<8x32xf32>
    %cst_454 = arith.constant dense<0.000000e+00> : vector<16x32xf32>
    %801 = tpu.matmul %798, %800, %cst_454 {dimension_numbers = #tpu.dot_dimension_numbers<[1], [0], [0], [1], [0, 0, 1, 1], [], []>} : vector<16x8xf32>, vector<8x32xf32>, vector<16x32xf32> -> vector<16x32xf32>
    %802 = arith.addf %763, %801 : vector<16x32xf32>
    %c0_455 = arith.constant 0 : index
    %c3_456 = arith.constant 3 : index
    %c0_457 = arith.constant 0 : index
    %c0_458 = arith.constant 0 : index
    %803 = vector.load %arg15[%c0_455, %c3_456, %c0_457, %c0_458] : memref<2x12x32x8xf32, #tpu.memory_space<vmem>>, vector<1x1x32x8xf32>
    %804 = vector.shape_cast %803 : vector<1x1x32x8xf32> to vector<32x8xf32>
    %cst_459 = arith.constant dense<0.000000e+00> : vector<16x8xf32>
    %805 = tpu.matmul %679, %804, %cst_459 {dimension_numbers = #tpu.dot_dimension_numbers<[1], [0], [0], [1], [0, 0, 1, 1], [], []>} : vector<16x32xf32>, vector<32x8xf32>, vector<16x8xf32> -> vector<16x8xf32>
    %806 = vector.extract_strided_slice %682 {offsets = [3, 0], sizes = [1, 8], strides = [1, 1]} : vector<12x8xf32> to vector<1x8xf32>
    %807 = vector.broadcast %806 : vector<1x8xf32> to vector<16x8xf32>
    %808 = arith.addf %805, %807 : vector<16x8xf32>
    %c0_460 = arith.constant 0 : index
    %c7_461 = arith.constant 7 : index
    %c0_462 = arith.constant 0 : index
    %c0_463 = arith.constant 0 : index
    %809 = vector.load %arg15[%c0_460, %c7_461, %c0_462, %c0_463] : memref<2x12x32x8xf32, #tpu.memory_space<vmem>>, vector<1x1x32x8xf32>
    %810 = vector.shape_cast %809 : vector<1x1x32x8xf32> to vector<32x8xf32>
    %cst_464 = arith.constant dense<0.000000e+00> : vector<16x8xf32>
    %811 = tpu.matmul %482, %810, %cst_464 {dimension_numbers = #tpu.dot_dimension_numbers<[1], [0], [0], [1], [0, 0, 1, 1], [], []>} : vector<16x32xf32>, vector<32x8xf32>, vector<16x8xf32> -> vector<16x8xf32>
    %812 = vector.extract_strided_slice %682 {offsets = [7, 0], sizes = [1, 8], strides = [1, 1]} : vector<12x8xf32> to vector<1x8xf32>
    %813 = vector.broadcast %812 : vector<1x8xf32> to vector<16x8xf32>
    %814 = arith.addf %811, %813 : vector<16x8xf32>
    %c0_465 = arith.constant 0 : index
    %c11_466 = arith.constant 11 : index
    %c0_467 = arith.constant 0 : index
    %c0_468 = arith.constant 0 : index
    %815 = vector.load %arg15[%c0_465, %c11_466, %c0_467, %c0_468] : memref<2x12x32x8xf32, #tpu.memory_space<vmem>>, vector<1x1x32x8xf32>
    %816 = vector.shape_cast %815 : vector<1x1x32x8xf32> to vector<32x8xf32>
    %cst_469 = arith.constant dense<0.000000e+00> : vector<16x8xf32>
    %817 = tpu.matmul %482, %816, %cst_469 {dimension_numbers = #tpu.dot_dimension_numbers<[1], [0], [0], [1], [0, 0, 1, 1], [], []>} : vector<16x32xf32>, vector<32x8xf32>, vector<16x8xf32> -> vector<16x8xf32>
    %818 = vector.extract_strided_slice %682 {offsets = [11, 0], sizes = [1, 8], strides = [1, 1]} : vector<12x8xf32> to vector<1x8xf32>
    %819 = vector.broadcast %818 : vector<1x8xf32> to vector<16x8xf32>
    %820 = arith.addf %817, %819 : vector<16x8xf32>
    %821 = vector.shape_cast %808 : vector<16x8xf32> to vector<2x8x8xf32>
    %822 = vector.shape_cast %814 : vector<16x8xf32> to vector<2x8x8xf32>
    %823 = vector.shape_cast %820 : vector<16x8xf32> to vector<2x8x8xf32>
    "tpu.trace_start"() <{level = 10 : i32, message = "bqd,bkd->bqk"}> : () -> ()
    %cst_470 = arith.constant dense<0.000000e+00> : vector<2x8x8xf32>
    %824 = tpu.matmul %821, %822, %cst_470 {dimension_numbers = #tpu.dot_dimension_numbers<[2], [2], [1], [1], [0, 0, 0, 1, 1, 1], [0], [0]>} : vector<2x8x8xf32>, vector<2x8x8xf32>, vector<2x8x8xf32> -> vector<2x8x8xf32>
    "tpu.trace_stop"() : () -> ()
    %cst_471 = arith.constant 0.353553385 : f32
    %825 = vector.broadcast %cst_471 : f32 to vector<2x8x8xf32>
    %826 = arith.mulf %824, %825 : vector<2x8x8xf32>
    %cst_472 = arith.constant dense<0xFF800000> : vector<2x8xf32>
    %827 = vector.multi_reduction <maximumf>, %826, %cst_472 [2] : vector<2x8x8xf32> to vector<2x8xf32>
    %828 = vector.shape_cast %827 : vector<2x8xf32> to vector<2x8x1xf32>
    %829 = vector.broadcast %828 : vector<2x8x1xf32> to vector<2x8x8xf32>
    %830 = arith.subf %826, %829 : vector<2x8x8xf32>
    %831 = math.exp %830 : vector<2x8x8xf32>
    %cst_473 = arith.constant dense<0.000000e+00> : vector<2x8xf32>
    %832 = vector.multi_reduction <add>, %831, %cst_473 [2] : vector<2x8x8xf32> to vector<2x8xf32>
    %833 = vector.shape_cast %832 : vector<2x8xf32> to vector<2x8x1xf32>
    %834 = vector.broadcast %833 : vector<2x8x1xf32> to vector<2x8x8xf32>
    %835 = arith.divf %831, %834 : vector<2x8x8xf32>
    "tpu.trace_start"() <{level = 10 : i32, message = "bqk,bkd->bqd"}> : () -> ()
    %cst_474 = arith.constant dense<0.000000e+00> : vector<2x8x8xf32>
    %836 = tpu.matmul %835, %823, %cst_474 {dimension_numbers = #tpu.dot_dimension_numbers<[2], [1], [1], [2], [0, 0, 0, 1, 1, 2], [0], [0]>} : vector<2x8x8xf32>, vector<2x8x8xf32>, vector<2x8x8xf32> -> vector<2x8x8xf32>
    "tpu.trace_stop"() : () -> ()
    %837 = vector.shape_cast %836 : vector<2x8x8xf32> to vector<16x8xf32>
    %c0_475 = arith.constant 0 : index
    %c3_476 = arith.constant 3 : index
    %c0_477 = arith.constant 0 : index
    %c0_478 = arith.constant 0 : index
    %838 = vector.load %arg17[%c0_475, %c3_476, %c0_477, %c0_478] : memref<2x4x8x32xf32, #tpu.memory_space<vmem>>, vector<1x1x8x32xf32>
    %839 = vector.shape_cast %838 : vector<1x1x8x32xf32> to vector<8x32xf32>
    %cst_479 = arith.constant dense<0.000000e+00> : vector<16x32xf32>
    %840 = tpu.matmul %837, %839, %cst_479 {dimension_numbers = #tpu.dot_dimension_numbers<[1], [0], [0], [1], [0, 0, 1, 1], [], []>} : vector<16x8xf32>, vector<8x32xf32>, vector<16x32xf32> -> vector<16x32xf32>
    %841 = arith.addf %802, %840 : vector<16x32xf32>
    %842 = arith.addf %679, %841 : vector<16x32xf32>
    %843 = vector.extract_strided_slice %494 {offsets = [4, 0], sizes = [1, 32], strides = [1, 1]} : vector<9x32xf32> to vector<1x32xf32>
    %844 = vector.extract_strided_slice %494 {offsets = [5, 0], sizes = [1, 32], strides = [1, 1]} : vector<9x32xf32> to vector<1x32xf32>
    %cst_480 = arith.constant dense<0.000000e+00> : vector<16xf32>
    %845 = vector.multi_reduction <add>, %842, %cst_480 [1] : vector<16x32xf32> to vector<16xf32>
    %846 = vector.shape_cast %845 : vector<16xf32> to vector<16x1xf32>
    %cst_481 = arith.constant 3.200000e+01 : f32
    %847 = vector.broadcast %cst_481 : f32 to vector<16x1xf32>
    %848 = arith.divf %846, %847 : vector<16x1xf32>
    %849 = vector.broadcast %848 : vector<16x1xf32> to vector<16x32xf32>
    %850 = arith.subf %842, %849 : vector<16x32xf32>
    %851 = arith.mulf %850, %850 : vector<16x32xf32>
    %cst_482 = arith.constant dense<0.000000e+00> : vector<16xf32>
    %852 = vector.multi_reduction <add>, %851, %cst_482 [1] : vector<16x32xf32> to vector<16xf32>
    %853 = vector.shape_cast %852 : vector<16xf32> to vector<16x1xf32>
    %cst_483 = arith.constant 3.200000e+01 : f32
    %854 = vector.broadcast %cst_483 : f32 to vector<16x1xf32>
    %855 = arith.divf %853, %854 : vector<16x1xf32>
    %cst_484 = arith.constant 9.99999974E-6 : f32
    %856 = vector.broadcast %cst_484 : f32 to vector<16x1xf32>
    %857 = arith.addf %855, %856 : vector<16x1xf32>
    %858 = math.rsqrt %857 : vector<16x1xf32>
    %859 = vector.broadcast %858 : vector<16x1xf32> to vector<16x32xf32>
    %860 = arith.mulf %850, %859 : vector<16x32xf32>
    %861 = vector.broadcast %843 : vector<1x32xf32> to vector<16x32xf32>
    %862 = arith.mulf %860, %861 : vector<16x32xf32>
    %863 = vector.broadcast %844 : vector<1x32xf32> to vector<16x32xf32>
    %864 = arith.addf %862, %863 : vector<16x32xf32>
    %865 = vector.extract_strided_slice %494 {offsets = [8, 0], sizes = [1, 32], strides = [1, 1]} : vector<9x32xf32> to vector<1x32xf32>
    %c0_485 = arith.constant 0 : index
    %c0_486 = arith.constant 0 : index
    %c0_487 = arith.constant 0 : index
    %866 = vector.load %arg19[%c0_485, %c0_486, %c0_487] : memref<2x32x64xf32, #tpu.memory_space<vmem>>, vector<1x32x64xf32>
    %867 = vector.shape_cast %866 : vector<1x32x64xf32> to vector<32x64xf32>
    %cst_488 = arith.constant dense<0.000000e+00> : vector<16x64xf32>
    %868 = tpu.matmul %864, %867, %cst_488 {dimension_numbers = #tpu.dot_dimension_numbers<[1], [0], [0], [1], [0, 0, 1, 1], [], []>} : vector<16x32xf32>, vector<32x64xf32>, vector<16x64xf32> -> vector<16x64xf32>
    %c0_489 = arith.constant 0 : index
    %c0_490 = arith.constant 0 : index
    %c0_491 = arith.constant 0 : index
    %869 = vector.load %arg20[%c0_489, %c0_490, %c0_491] : memref<2x1x64xf32, #tpu.memory_space<vmem>>, vector<1x1x64xf32>
    %870 = vector.shape_cast %869 : vector<1x1x64xf32> to vector<1x64xf32>
    %871 = vector.broadcast %870 : vector<1x64xf32> to vector<16x64xf32>
    %872 = arith.addf %868, %871 : vector<16x64xf32>
    %cst_492 = arith.constant 0.000000e+00 : f32
    %873 = vector.broadcast %cst_492 : f32 to vector<16x64xf32>
    %874 = arith.maximumf %872, %873 : vector<16x64xf32>
    %c0_493 = arith.constant 0 : index
    %c0_494 = arith.constant 0 : index
    %c0_495 = arith.constant 0 : index
    %875 = vector.load %arg21[%c0_493, %c0_494, %c0_495] : memref<2x64x32xf32, #tpu.memory_space<vmem>>, vector<1x64x32xf32>
    %876 = vector.shape_cast %875 : vector<1x64x32xf32> to vector<64x32xf32>
    %cst_496 = arith.constant dense<0.000000e+00> : vector<16x32xf32>
    %877 = tpu.matmul %874, %876, %cst_496 {dimension_numbers = #tpu.dot_dimension_numbers<[1], [0], [0], [1], [0, 0, 1, 1], [], []>} : vector<16x64xf32>, vector<64x32xf32>, vector<16x32xf32> -> vector<16x32xf32>
    %878 = vector.broadcast %865 : vector<1x32xf32> to vector<16x32xf32>
    %879 = arith.addf %877, %878 : vector<16x32xf32>
    %880 = arith.addf %864, %879 : vector<16x32xf32>
    %881 = vector.extract_strided_slice %494 {offsets = [6, 0], sizes = [1, 32], strides = [1, 1]} : vector<9x32xf32> to vector<1x32xf32>
    %882 = vector.extract_strided_slice %494 {offsets = [7, 0], sizes = [1, 32], strides = [1, 1]} : vector<9x32xf32> to vector<1x32xf32>
    %cst_497 = arith.constant dense<0.000000e+00> : vector<16xf32>
    %883 = vector.multi_reduction <add>, %880, %cst_497 [1] : vector<16x32xf32> to vector<16xf32>
    %884 = vector.shape_cast %883 : vector<16xf32> to vector<16x1xf32>
    %cst_498 = arith.constant 3.200000e+01 : f32
    %885 = vector.broadcast %cst_498 : f32 to vector<16x1xf32>
    %886 = arith.divf %884, %885 : vector<16x1xf32>
    %887 = vector.broadcast %886 : vector<16x1xf32> to vector<16x32xf32>
    %888 = arith.subf %880, %887 : vector<16x32xf32>
    %889 = arith.mulf %888, %888 : vector<16x32xf32>
    %cst_499 = arith.constant dense<0.000000e+00> : vector<16xf32>
    %890 = vector.multi_reduction <add>, %889, %cst_499 [1] : vector<16x32xf32> to vector<16xf32>
    %891 = vector.shape_cast %890 : vector<16xf32> to vector<16x1xf32>
    %cst_500 = arith.constant 3.200000e+01 : f32
    %892 = vector.broadcast %cst_500 : f32 to vector<16x1xf32>
    %893 = arith.divf %891, %892 : vector<16x1xf32>
    %cst_501 = arith.constant 9.99999974E-6 : f32
    %894 = vector.broadcast %cst_501 : f32 to vector<16x1xf32>
    %895 = arith.addf %893, %894 : vector<16x1xf32>
    %896 = math.rsqrt %895 : vector<16x1xf32>
    %897 = vector.broadcast %896 : vector<16x1xf32> to vector<16x32xf32>
    %898 = arith.mulf %888, %897 : vector<16x32xf32>
    %899 = vector.broadcast %881 : vector<1x32xf32> to vector<16x32xf32>
    %900 = arith.mulf %898, %899 : vector<16x32xf32>
    %901 = vector.broadcast %882 : vector<1x32xf32> to vector<16x32xf32>
    %902 = arith.addf %900, %901 : vector<16x32xf32>
    %c1_502 = arith.constant 1 : index
    %c0_503 = arith.constant 0 : index
    %c0_504 = arith.constant 0 : index
    %903 = vector.load %arg18[%c1_502, %c0_503, %c0_504] : memref<2x9x32xf32, #tpu.memory_space<vmem>>, vector<1x9x32xf32>
    %904 = vector.shape_cast %903 : vector<1x9x32xf32> to vector<9x32xf32>
    %905 = vector.extract_strided_slice %904 {offsets = [0, 0], sizes = [1, 32], strides = [1, 1]} : vector<9x32xf32> to vector<1x32xf32>
    %c1_505 = arith.constant 1 : index
    %c0_506 = arith.constant 0 : index
    %c0_507 = arith.constant 0 : index
    %906 = vector.load %arg13[%c1_505, %c0_506, %c0_507] : memref<2x12x8xf32, #tpu.memory_space<vmem>>, vector<1x12x8xf32>
    %907 = vector.shape_cast %906 : vector<1x12x8xf32> to vector<12x8xf32>
    %cst_508 = arith.constant 0.000000e+00 : f32
    %908 = vector.broadcast %cst_508 : f32 to vector<16x32xf32>
    %909 = vector.broadcast %905 : vector<1x32xf32> to vector<16x32xf32>
    %910 = arith.addf %908, %909 : vector<16x32xf32>
    %c1_509 = arith.constant 1 : index
    %c0_510 = arith.constant 0 : index
    %c0_511 = arith.constant 0 : index
    %c0_512 = arith.constant 0 : index
    %911 = vector.load %arg12[%c1_509, %c0_510, %c0_511, %c0_512] : memref<2x12x32x8xf32, #tpu.memory_space<vmem>>, vector<1x1x32x8xf32>
    %912 = vector.shape_cast %911 : vector<1x1x32x8xf32> to vector<32x8xf32>
    %cst_513 = arith.constant dense<0.000000e+00> : vector<16x8xf32>
    %913 = tpu.matmul %902, %912, %cst_513 {dimension_numbers = #tpu.dot_dimension_numbers<[1], [0], [0], [1], [0, 0, 1, 1], [], []>} : vector<16x32xf32>, vector<32x8xf32>, vector<16x8xf32> -> vector<16x8xf32>
    %914 = vector.extract_strided_slice %907 {offsets = [0, 0], sizes = [1, 8], strides = [1, 1]} : vector<12x8xf32> to vector<1x8xf32>
    %915 = vector.broadcast %914 : vector<1x8xf32> to vector<16x8xf32>
    %916 = arith.addf %913, %915 : vector<16x8xf32>
    %c1_514 = arith.constant 1 : index
    %c4_515 = arith.constant 4 : index
    %c0_516 = arith.constant 0 : index
    %c0_517 = arith.constant 0 : index
    %917 = vector.load %arg12[%c1_514, %c4_515, %c0_516, %c0_517] : memref<2x12x32x8xf32, #tpu.memory_space<vmem>>, vector<1x1x32x8xf32>
    %918 = vector.shape_cast %917 : vector<1x1x32x8xf32> to vector<32x8xf32>
    %cst_518 = arith.constant dense<0.000000e+00> : vector<16x8xf32>
    %919 = tpu.matmul %902, %918, %cst_518 {dimension_numbers = #tpu.dot_dimension_numbers<[1], [0], [0], [1], [0, 0, 1, 1], [], []>} : vector<16x32xf32>, vector<32x8xf32>, vector<16x8xf32> -> vector<16x8xf32>
    %920 = vector.extract_strided_slice %907 {offsets = [4, 0], sizes = [1, 8], strides = [1, 1]} : vector<12x8xf32> to vector<1x8xf32>
    %921 = vector.broadcast %920 : vector<1x8xf32> to vector<16x8xf32>
    %922 = arith.addf %919, %921 : vector<16x8xf32>
    %c1_519 = arith.constant 1 : index
    %c8_520 = arith.constant 8 : index
    %c0_521 = arith.constant 0 : index
    %c0_522 = arith.constant 0 : index
    %923 = vector.load %arg12[%c1_519, %c8_520, %c0_521, %c0_522] : memref<2x12x32x8xf32, #tpu.memory_space<vmem>>, vector<1x1x32x8xf32>
    %924 = vector.shape_cast %923 : vector<1x1x32x8xf32> to vector<32x8xf32>
    %cst_523 = arith.constant dense<0.000000e+00> : vector<16x8xf32>
    %925 = tpu.matmul %902, %924, %cst_523 {dimension_numbers = #tpu.dot_dimension_numbers<[1], [0], [0], [1], [0, 0, 1, 1], [], []>} : vector<16x32xf32>, vector<32x8xf32>, vector<16x8xf32> -> vector<16x8xf32>
    %926 = vector.extract_strided_slice %907 {offsets = [8, 0], sizes = [1, 8], strides = [1, 1]} : vector<12x8xf32> to vector<1x8xf32>
    %927 = vector.broadcast %926 : vector<1x8xf32> to vector<16x8xf32>
    %928 = arith.addf %925, %927 : vector<16x8xf32>
    %929 = vector.shape_cast %916 : vector<16x8xf32> to vector<2x8x8xf32>
    %930 = vector.shape_cast %922 : vector<16x8xf32> to vector<2x8x8xf32>
    %931 = vector.shape_cast %928 : vector<16x8xf32> to vector<2x8x8xf32>
    "tpu.trace_start"() <{level = 10 : i32, message = "bqd,bkd->bqk"}> : () -> ()
    %cst_524 = arith.constant dense<0.000000e+00> : vector<2x8x8xf32>
    %932 = tpu.matmul %929, %930, %cst_524 {dimension_numbers = #tpu.dot_dimension_numbers<[2], [2], [1], [1], [0, 0, 0, 1, 1, 1], [0], [0]>} : vector<2x8x8xf32>, vector<2x8x8xf32>, vector<2x8x8xf32> -> vector<2x8x8xf32>
    "tpu.trace_stop"() : () -> ()
    %cst_525 = arith.constant 0.353553385 : f32
    %933 = vector.broadcast %cst_525 : f32 to vector<2x8x8xf32>
    %934 = arith.mulf %932, %933 : vector<2x8x8xf32>
    %cst_526 = arith.constant dense<0xFF800000> : vector<2x8xf32>
    %935 = vector.multi_reduction <maximumf>, %934, %cst_526 [2] : vector<2x8x8xf32> to vector<2x8xf32>
    %936 = vector.shape_cast %935 : vector<2x8xf32> to vector<2x8x1xf32>
    %937 = vector.broadcast %936 : vector<2x8x1xf32> to vector<2x8x8xf32>
    %938 = arith.subf %934, %937 : vector<2x8x8xf32>
    %939 = math.exp %938 : vector<2x8x8xf32>
    %cst_527 = arith.constant dense<0.000000e+00> : vector<2x8xf32>
    %940 = vector.multi_reduction <add>, %939, %cst_527 [2] : vector<2x8x8xf32> to vector<2x8xf32>
    %941 = vector.shape_cast %940 : vector<2x8xf32> to vector<2x8x1xf32>
    %942 = vector.broadcast %941 : vector<2x8x1xf32> to vector<2x8x8xf32>
    %943 = arith.divf %939, %942 : vector<2x8x8xf32>
    "tpu.trace_start"() <{level = 10 : i32, message = "bqk,bkd->bqd"}> : () -> ()
    %cst_528 = arith.constant dense<0.000000e+00> : vector<2x8x8xf32>
    %944 = tpu.matmul %943, %931, %cst_528 {dimension_numbers = #tpu.dot_dimension_numbers<[2], [1], [1], [2], [0, 0, 0, 1, 1, 2], [0], [0]>} : vector<2x8x8xf32>, vector<2x8x8xf32>, vector<2x8x8xf32> -> vector<2x8x8xf32>
    "tpu.trace_stop"() : () -> ()
    %945 = vector.shape_cast %944 : vector<2x8x8xf32> to vector<16x8xf32>
    %c1_529 = arith.constant 1 : index
    %c0_530 = arith.constant 0 : index
    %c0_531 = arith.constant 0 : index
    %c0_532 = arith.constant 0 : index
    %946 = vector.load %arg14[%c1_529, %c0_530, %c0_531, %c0_532] : memref<2x4x8x32xf32, #tpu.memory_space<vmem>>, vector<1x1x8x32xf32>
    %947 = vector.shape_cast %946 : vector<1x1x8x32xf32> to vector<8x32xf32>
    %cst_533 = arith.constant dense<0.000000e+00> : vector<16x32xf32>
    %948 = tpu.matmul %945, %947, %cst_533 {dimension_numbers = #tpu.dot_dimension_numbers<[1], [0], [0], [1], [0, 0, 1, 1], [], []>} : vector<16x8xf32>, vector<8x32xf32>, vector<16x32xf32> -> vector<16x32xf32>
    %949 = arith.addf %910, %948 : vector<16x32xf32>
    %c1_534 = arith.constant 1 : index
    %c1_535 = arith.constant 1 : index
    %c0_536 = arith.constant 0 : index
    %c0_537 = arith.constant 0 : index
    %950 = vector.load %arg12[%c1_534, %c1_535, %c0_536, %c0_537] : memref<2x12x32x8xf32, #tpu.memory_space<vmem>>, vector<1x1x32x8xf32>
    %951 = vector.shape_cast %950 : vector<1x1x32x8xf32> to vector<32x8xf32>
    %cst_538 = arith.constant dense<0.000000e+00> : vector<16x8xf32>
    %952 = tpu.matmul %902, %951, %cst_538 {dimension_numbers = #tpu.dot_dimension_numbers<[1], [0], [0], [1], [0, 0, 1, 1], [], []>} : vector<16x32xf32>, vector<32x8xf32>, vector<16x8xf32> -> vector<16x8xf32>
    %953 = vector.extract_strided_slice %907 {offsets = [1, 0], sizes = [1, 8], strides = [1, 1]} : vector<12x8xf32> to vector<1x8xf32>
    %954 = vector.broadcast %953 : vector<1x8xf32> to vector<16x8xf32>
    %955 = arith.addf %952, %954 : vector<16x8xf32>
    %c1_539 = arith.constant 1 : index
    %c5_540 = arith.constant 5 : index
    %c0_541 = arith.constant 0 : index
    %c0_542 = arith.constant 0 : index
    %956 = vector.load %arg12[%c1_539, %c5_540, %c0_541, %c0_542] : memref<2x12x32x8xf32, #tpu.memory_space<vmem>>, vector<1x1x32x8xf32>
    %957 = vector.shape_cast %956 : vector<1x1x32x8xf32> to vector<32x8xf32>
    %cst_543 = arith.constant dense<0.000000e+00> : vector<16x8xf32>
    %958 = tpu.matmul %902, %957, %cst_543 {dimension_numbers = #tpu.dot_dimension_numbers<[1], [0], [0], [1], [0, 0, 1, 1], [], []>} : vector<16x32xf32>, vector<32x8xf32>, vector<16x8xf32> -> vector<16x8xf32>
    %959 = vector.extract_strided_slice %907 {offsets = [5, 0], sizes = [1, 8], strides = [1, 1]} : vector<12x8xf32> to vector<1x8xf32>
    %960 = vector.broadcast %959 : vector<1x8xf32> to vector<16x8xf32>
    %961 = arith.addf %958, %960 : vector<16x8xf32>
    %c1_544 = arith.constant 1 : index
    %c9_545 = arith.constant 9 : index
    %c0_546 = arith.constant 0 : index
    %c0_547 = arith.constant 0 : index
    %962 = vector.load %arg12[%c1_544, %c9_545, %c0_546, %c0_547] : memref<2x12x32x8xf32, #tpu.memory_space<vmem>>, vector<1x1x32x8xf32>
    %963 = vector.shape_cast %962 : vector<1x1x32x8xf32> to vector<32x8xf32>
    %cst_548 = arith.constant dense<0.000000e+00> : vector<16x8xf32>
    %964 = tpu.matmul %902, %963, %cst_548 {dimension_numbers = #tpu.dot_dimension_numbers<[1], [0], [0], [1], [0, 0, 1, 1], [], []>} : vector<16x32xf32>, vector<32x8xf32>, vector<16x8xf32> -> vector<16x8xf32>
    %965 = vector.extract_strided_slice %907 {offsets = [9, 0], sizes = [1, 8], strides = [1, 1]} : vector<12x8xf32> to vector<1x8xf32>
    %966 = vector.broadcast %965 : vector<1x8xf32> to vector<16x8xf32>
    %967 = arith.addf %964, %966 : vector<16x8xf32>
    %968 = vector.shape_cast %955 : vector<16x8xf32> to vector<2x8x8xf32>
    %969 = vector.shape_cast %961 : vector<16x8xf32> to vector<2x8x8xf32>
    %970 = vector.shape_cast %967 : vector<16x8xf32> to vector<2x8x8xf32>
    "tpu.trace_start"() <{level = 10 : i32, message = "bqd,bkd->bqk"}> : () -> ()
    %cst_549 = arith.constant dense<0.000000e+00> : vector<2x8x8xf32>
    %971 = tpu.matmul %968, %969, %cst_549 {dimension_numbers = #tpu.dot_dimension_numbers<[2], [2], [1], [1], [0, 0, 0, 1, 1, 1], [0], [0]>} : vector<2x8x8xf32>, vector<2x8x8xf32>, vector<2x8x8xf32> -> vector<2x8x8xf32>
    "tpu.trace_stop"() : () -> ()
    %cst_550 = arith.constant 0.353553385 : f32
    %972 = vector.broadcast %cst_550 : f32 to vector<2x8x8xf32>
    %973 = arith.mulf %971, %972 : vector<2x8x8xf32>
    %cst_551 = arith.constant dense<0xFF800000> : vector<2x8xf32>
    %974 = vector.multi_reduction <maximumf>, %973, %cst_551 [2] : vector<2x8x8xf32> to vector<2x8xf32>
    %975 = vector.shape_cast %974 : vector<2x8xf32> to vector<2x8x1xf32>
    %976 = vector.broadcast %975 : vector<2x8x1xf32> to vector<2x8x8xf32>
    %977 = arith.subf %973, %976 : vector<2x8x8xf32>
    %978 = math.exp %977 : vector<2x8x8xf32>
    %cst_552 = arith.constant dense<0.000000e+00> : vector<2x8xf32>
    %979 = vector.multi_reduction <add>, %978, %cst_552 [2] : vector<2x8x8xf32> to vector<2x8xf32>
    %980 = vector.shape_cast %979 : vector<2x8xf32> to vector<2x8x1xf32>
    %981 = vector.broadcast %980 : vector<2x8x1xf32> to vector<2x8x8xf32>
    %982 = arith.divf %978, %981 : vector<2x8x8xf32>
    "tpu.trace_start"() <{level = 10 : i32, message = "bqk,bkd->bqd"}> : () -> ()
    %cst_553 = arith.constant dense<0.000000e+00> : vector<2x8x8xf32>
    %983 = tpu.matmul %982, %970, %cst_553 {dimension_numbers = #tpu.dot_dimension_numbers<[2], [1], [1], [2], [0, 0, 0, 1, 1, 2], [0], [0]>} : vector<2x8x8xf32>, vector<2x8x8xf32>, vector<2x8x8xf32> -> vector<2x8x8xf32>
    "tpu.trace_stop"() : () -> ()
    %984 = vector.shape_cast %983 : vector<2x8x8xf32> to vector<16x8xf32>
    %c1_554 = arith.constant 1 : index
    %c1_555 = arith.constant 1 : index
    %c0_556 = arith.constant 0 : index
    %c0_557 = arith.constant 0 : index
    %985 = vector.load %arg14[%c1_554, %c1_555, %c0_556, %c0_557] : memref<2x4x8x32xf32, #tpu.memory_space<vmem>>, vector<1x1x8x32xf32>
    %986 = vector.shape_cast %985 : vector<1x1x8x32xf32> to vector<8x32xf32>
    %cst_558 = arith.constant dense<0.000000e+00> : vector<16x32xf32>
    %987 = tpu.matmul %984, %986, %cst_558 {dimension_numbers = #tpu.dot_dimension_numbers<[1], [0], [0], [1], [0, 0, 1, 1], [], []>} : vector<16x8xf32>, vector<8x32xf32>, vector<16x32xf32> -> vector<16x32xf32>
    %988 = arith.addf %949, %987 : vector<16x32xf32>
    %c1_559 = arith.constant 1 : index
    %c2_560 = arith.constant 2 : index
    %c0_561 = arith.constant 0 : index
    %c0_562 = arith.constant 0 : index
    %989 = vector.load %arg12[%c1_559, %c2_560, %c0_561, %c0_562] : memref<2x12x32x8xf32, #tpu.memory_space<vmem>>, vector<1x1x32x8xf32>
    %990 = vector.shape_cast %989 : vector<1x1x32x8xf32> to vector<32x8xf32>
    %cst_563 = arith.constant dense<0.000000e+00> : vector<16x8xf32>
    %991 = tpu.matmul %902, %990, %cst_563 {dimension_numbers = #tpu.dot_dimension_numbers<[1], [0], [0], [1], [0, 0, 1, 1], [], []>} : vector<16x32xf32>, vector<32x8xf32>, vector<16x8xf32> -> vector<16x8xf32>
    %992 = vector.extract_strided_slice %907 {offsets = [2, 0], sizes = [1, 8], strides = [1, 1]} : vector<12x8xf32> to vector<1x8xf32>
    %993 = vector.broadcast %992 : vector<1x8xf32> to vector<16x8xf32>
    %994 = arith.addf %991, %993 : vector<16x8xf32>
    %c1_564 = arith.constant 1 : index
    %c6_565 = arith.constant 6 : index
    %c0_566 = arith.constant 0 : index
    %c0_567 = arith.constant 0 : index
    %995 = vector.load %arg12[%c1_564, %c6_565, %c0_566, %c0_567] : memref<2x12x32x8xf32, #tpu.memory_space<vmem>>, vector<1x1x32x8xf32>
    %996 = vector.shape_cast %995 : vector<1x1x32x8xf32> to vector<32x8xf32>
    %cst_568 = arith.constant dense<0.000000e+00> : vector<16x8xf32>
    %997 = tpu.matmul %902, %996, %cst_568 {dimension_numbers = #tpu.dot_dimension_numbers<[1], [0], [0], [1], [0, 0, 1, 1], [], []>} : vector<16x32xf32>, vector<32x8xf32>, vector<16x8xf32> -> vector<16x8xf32>
    %998 = vector.extract_strided_slice %907 {offsets = [6, 0], sizes = [1, 8], strides = [1, 1]} : vector<12x8xf32> to vector<1x8xf32>
    %999 = vector.broadcast %998 : vector<1x8xf32> to vector<16x8xf32>
    %1000 = arith.addf %997, %999 : vector<16x8xf32>
    %c1_569 = arith.constant 1 : index
    %c10_570 = arith.constant 10 : index
    %c0_571 = arith.constant 0 : index
    %c0_572 = arith.constant 0 : index
    %1001 = vector.load %arg12[%c1_569, %c10_570, %c0_571, %c0_572] : memref<2x12x32x8xf32, #tpu.memory_space<vmem>>, vector<1x1x32x8xf32>
    %1002 = vector.shape_cast %1001 : vector<1x1x32x8xf32> to vector<32x8xf32>
    %cst_573 = arith.constant dense<0.000000e+00> : vector<16x8xf32>
    %1003 = tpu.matmul %902, %1002, %cst_573 {dimension_numbers = #tpu.dot_dimension_numbers<[1], [0], [0], [1], [0, 0, 1, 1], [], []>} : vector<16x32xf32>, vector<32x8xf32>, vector<16x8xf32> -> vector<16x8xf32>
    %1004 = vector.extract_strided_slice %907 {offsets = [10, 0], sizes = [1, 8], strides = [1, 1]} : vector<12x8xf32> to vector<1x8xf32>
    %1005 = vector.broadcast %1004 : vector<1x8xf32> to vector<16x8xf32>
    %1006 = arith.addf %1003, %1005 : vector<16x8xf32>
    %1007 = vector.shape_cast %994 : vector<16x8xf32> to vector<2x8x8xf32>
    %1008 = vector.shape_cast %1000 : vector<16x8xf32> to vector<2x8x8xf32>
    %1009 = vector.shape_cast %1006 : vector<16x8xf32> to vector<2x8x8xf32>
    "tpu.trace_start"() <{level = 10 : i32, message = "bqd,bkd->bqk"}> : () -> ()
    %cst_574 = arith.constant dense<0.000000e+00> : vector<2x8x8xf32>
    %1010 = tpu.matmul %1007, %1008, %cst_574 {dimension_numbers = #tpu.dot_dimension_numbers<[2], [2], [1], [1], [0, 0, 0, 1, 1, 1], [0], [0]>} : vector<2x8x8xf32>, vector<2x8x8xf32>, vector<2x8x8xf32> -> vector<2x8x8xf32>
    "tpu.trace_stop"() : () -> ()
    %cst_575 = arith.constant 0.353553385 : f32
    %1011 = vector.broadcast %cst_575 : f32 to vector<2x8x8xf32>
    %1012 = arith.mulf %1010, %1011 : vector<2x8x8xf32>
    %cst_576 = arith.constant dense<0xFF800000> : vector<2x8xf32>
    %1013 = vector.multi_reduction <maximumf>, %1012, %cst_576 [2] : vector<2x8x8xf32> to vector<2x8xf32>
    %1014 = vector.shape_cast %1013 : vector<2x8xf32> to vector<2x8x1xf32>
    %1015 = vector.broadcast %1014 : vector<2x8x1xf32> to vector<2x8x8xf32>
    %1016 = arith.subf %1012, %1015 : vector<2x8x8xf32>
    %1017 = math.exp %1016 : vector<2x8x8xf32>
    %cst_577 = arith.constant dense<0.000000e+00> : vector<2x8xf32>
    %1018 = vector.multi_reduction <add>, %1017, %cst_577 [2] : vector<2x8x8xf32> to vector<2x8xf32>
    %1019 = vector.shape_cast %1018 : vector<2x8xf32> to vector<2x8x1xf32>
    %1020 = vector.broadcast %1019 : vector<2x8x1xf32> to vector<2x8x8xf32>
    %1021 = arith.divf %1017, %1020 : vector<2x8x8xf32>
    "tpu.trace_start"() <{level = 10 : i32, message = "bqk,bkd->bqd"}> : () -> ()
    %cst_578 = arith.constant dense<0.000000e+00> : vector<2x8x8xf32>
    %1022 = tpu.matmul %1021, %1009, %cst_578 {dimension_numbers = #tpu.dot_dimension_numbers<[2], [1], [1], [2], [0, 0, 0, 1, 1, 2], [0], [0]>} : vector<2x8x8xf32>, vector<2x8x8xf32>, vector<2x8x8xf32> -> vector<2x8x8xf32>
    "tpu.trace_stop"() : () -> ()
    %1023 = vector.shape_cast %1022 : vector<2x8x8xf32> to vector<16x8xf32>
    %c1_579 = arith.constant 1 : index
    %c2_580 = arith.constant 2 : index
    %c0_581 = arith.constant 0 : index
    %c0_582 = arith.constant 0 : index
    %1024 = vector.load %arg14[%c1_579, %c2_580, %c0_581, %c0_582] : memref<2x4x8x32xf32, #tpu.memory_space<vmem>>, vector<1x1x8x32xf32>
    %1025 = vector.shape_cast %1024 : vector<1x1x8x32xf32> to vector<8x32xf32>
    %cst_583 = arith.constant dense<0.000000e+00> : vector<16x32xf32>
    %1026 = tpu.matmul %1023, %1025, %cst_583 {dimension_numbers = #tpu.dot_dimension_numbers<[1], [0], [0], [1], [0, 0, 1, 1], [], []>} : vector<16x8xf32>, vector<8x32xf32>, vector<16x32xf32> -> vector<16x32xf32>
    %1027 = arith.addf %988, %1026 : vector<16x32xf32>
    %c1_584 = arith.constant 1 : index
    %c3_585 = arith.constant 3 : index
    %c0_586 = arith.constant 0 : index
    %c0_587 = arith.constant 0 : index
    %1028 = vector.load %arg12[%c1_584, %c3_585, %c0_586, %c0_587] : memref<2x12x32x8xf32, #tpu.memory_space<vmem>>, vector<1x1x32x8xf32>
    %1029 = vector.shape_cast %1028 : vector<1x1x32x8xf32> to vector<32x8xf32>
    %cst_588 = arith.constant dense<0.000000e+00> : vector<16x8xf32>
    %1030 = tpu.matmul %902, %1029, %cst_588 {dimension_numbers = #tpu.dot_dimension_numbers<[1], [0], [0], [1], [0, 0, 1, 1], [], []>} : vector<16x32xf32>, vector<32x8xf32>, vector<16x8xf32> -> vector<16x8xf32>
    %1031 = vector.extract_strided_slice %907 {offsets = [3, 0], sizes = [1, 8], strides = [1, 1]} : vector<12x8xf32> to vector<1x8xf32>
    %1032 = vector.broadcast %1031 : vector<1x8xf32> to vector<16x8xf32>
    %1033 = arith.addf %1030, %1032 : vector<16x8xf32>
    %c1_589 = arith.constant 1 : index
    %c7_590 = arith.constant 7 : index
    %c0_591 = arith.constant 0 : index
    %c0_592 = arith.constant 0 : index
    %1034 = vector.load %arg12[%c1_589, %c7_590, %c0_591, %c0_592] : memref<2x12x32x8xf32, #tpu.memory_space<vmem>>, vector<1x1x32x8xf32>
    %1035 = vector.shape_cast %1034 : vector<1x1x32x8xf32> to vector<32x8xf32>
    %cst_593 = arith.constant dense<0.000000e+00> : vector<16x8xf32>
    %1036 = tpu.matmul %902, %1035, %cst_593 {dimension_numbers = #tpu.dot_dimension_numbers<[1], [0], [0], [1], [0, 0, 1, 1], [], []>} : vector<16x32xf32>, vector<32x8xf32>, vector<16x8xf32> -> vector<16x8xf32>
    %1037 = vector.extract_strided_slice %907 {offsets = [7, 0], sizes = [1, 8], strides = [1, 1]} : vector<12x8xf32> to vector<1x8xf32>
    %1038 = vector.broadcast %1037 : vector<1x8xf32> to vector<16x8xf32>
    %1039 = arith.addf %1036, %1038 : vector<16x8xf32>
    %c1_594 = arith.constant 1 : index
    %c11_595 = arith.constant 11 : index
    %c0_596 = arith.constant 0 : index
    %c0_597 = arith.constant 0 : index
    %1040 = vector.load %arg12[%c1_594, %c11_595, %c0_596, %c0_597] : memref<2x12x32x8xf32, #tpu.memory_space<vmem>>, vector<1x1x32x8xf32>
    %1041 = vector.shape_cast %1040 : vector<1x1x32x8xf32> to vector<32x8xf32>
    %cst_598 = arith.constant dense<0.000000e+00> : vector<16x8xf32>
    %1042 = tpu.matmul %902, %1041, %cst_598 {dimension_numbers = #tpu.dot_dimension_numbers<[1], [0], [0], [1], [0, 0, 1, 1], [], []>} : vector<16x32xf32>, vector<32x8xf32>, vector<16x8xf32> -> vector<16x8xf32>
    %1043 = vector.extract_strided_slice %907 {offsets = [11, 0], sizes = [1, 8], strides = [1, 1]} : vector<12x8xf32> to vector<1x8xf32>
    %1044 = vector.broadcast %1043 : vector<1x8xf32> to vector<16x8xf32>
    %1045 = arith.addf %1042, %1044 : vector<16x8xf32>
    %1046 = vector.shape_cast %1033 : vector<16x8xf32> to vector<2x8x8xf32>
    %1047 = vector.shape_cast %1039 : vector<16x8xf32> to vector<2x8x8xf32>
    %1048 = vector.shape_cast %1045 : vector<16x8xf32> to vector<2x8x8xf32>
    "tpu.trace_start"() <{level = 10 : i32, message = "bqd,bkd->bqk"}> : () -> ()
    %cst_599 = arith.constant dense<0.000000e+00> : vector<2x8x8xf32>
    %1049 = tpu.matmul %1046, %1047, %cst_599 {dimension_numbers = #tpu.dot_dimension_numbers<[2], [2], [1], [1], [0, 0, 0, 1, 1, 1], [0], [0]>} : vector<2x8x8xf32>, vector<2x8x8xf32>, vector<2x8x8xf32> -> vector<2x8x8xf32>
    "tpu.trace_stop"() : () -> ()
    %cst_600 = arith.constant 0.353553385 : f32
    %1050 = vector.broadcast %cst_600 : f32 to vector<2x8x8xf32>
    %1051 = arith.mulf %1049, %1050 : vector<2x8x8xf32>
    %cst_601 = arith.constant dense<0xFF800000> : vector<2x8xf32>
    %1052 = vector.multi_reduction <maximumf>, %1051, %cst_601 [2] : vector<2x8x8xf32> to vector<2x8xf32>
    %1053 = vector.shape_cast %1052 : vector<2x8xf32> to vector<2x8x1xf32>
    %1054 = vector.broadcast %1053 : vector<2x8x1xf32> to vector<2x8x8xf32>
    %1055 = arith.subf %1051, %1054 : vector<2x8x8xf32>
    %1056 = math.exp %1055 : vector<2x8x8xf32>
    %cst_602 = arith.constant dense<0.000000e+00> : vector<2x8xf32>
    %1057 = vector.multi_reduction <add>, %1056, %cst_602 [2] : vector<2x8x8xf32> to vector<2x8xf32>
    %1058 = vector.shape_cast %1057 : vector<2x8xf32> to vector<2x8x1xf32>
    %1059 = vector.broadcast %1058 : vector<2x8x1xf32> to vector<2x8x8xf32>
    %1060 = arith.divf %1056, %1059 : vector<2x8x8xf32>
    "tpu.trace_start"() <{level = 10 : i32, message = "bqk,bkd->bqd"}> : () -> ()
    %cst_603 = arith.constant dense<0.000000e+00> : vector<2x8x8xf32>
    %1061 = tpu.matmul %1060, %1048, %cst_603 {dimension_numbers = #tpu.dot_dimension_numbers<[2], [1], [1], [2], [0, 0, 0, 1, 1, 2], [0], [0]>} : vector<2x8x8xf32>, vector<2x8x8xf32>, vector<2x8x8xf32> -> vector<2x8x8xf32>
    "tpu.trace_stop"() : () -> ()
    %1062 = vector.shape_cast %1061 : vector<2x8x8xf32> to vector<16x8xf32>
    %c1_604 = arith.constant 1 : index
    %c3_605 = arith.constant 3 : index
    %c0_606 = arith.constant 0 : index
    %c0_607 = arith.constant 0 : index
    %1063 = vector.load %arg14[%c1_604, %c3_605, %c0_606, %c0_607] : memref<2x4x8x32xf32, #tpu.memory_space<vmem>>, vector<1x1x8x32xf32>
    %1064 = vector.shape_cast %1063 : vector<1x1x8x32xf32> to vector<8x32xf32>
    %cst_608 = arith.constant dense<0.000000e+00> : vector<16x32xf32>
    %1065 = tpu.matmul %1062, %1064, %cst_608 {dimension_numbers = #tpu.dot_dimension_numbers<[1], [0], [0], [1], [0, 0, 1, 1], [], []>} : vector<16x8xf32>, vector<8x32xf32>, vector<16x32xf32> -> vector<16x32xf32>
    %1066 = arith.addf %1027, %1065 : vector<16x32xf32>
    %1067 = arith.addf %902, %1066 : vector<16x32xf32>
    %1068 = vector.extract_strided_slice %904 {offsets = [2, 0], sizes = [1, 32], strides = [1, 1]} : vector<9x32xf32> to vector<1x32xf32>
    %1069 = vector.extract_strided_slice %904 {offsets = [3, 0], sizes = [1, 32], strides = [1, 1]} : vector<9x32xf32> to vector<1x32xf32>
    %cst_609 = arith.constant dense<0.000000e+00> : vector<16xf32>
    %1070 = vector.multi_reduction <add>, %1067, %cst_609 [1] : vector<16x32xf32> to vector<16xf32>
    %1071 = vector.shape_cast %1070 : vector<16xf32> to vector<16x1xf32>
    %cst_610 = arith.constant 3.200000e+01 : f32
    %1072 = vector.broadcast %cst_610 : f32 to vector<16x1xf32>
    %1073 = arith.divf %1071, %1072 : vector<16x1xf32>
    %1074 = vector.broadcast %1073 : vector<16x1xf32> to vector<16x32xf32>
    %1075 = arith.subf %1067, %1074 : vector<16x32xf32>
    %1076 = arith.mulf %1075, %1075 : vector<16x32xf32>
    %cst_611 = arith.constant dense<0.000000e+00> : vector<16xf32>
    %1077 = vector.multi_reduction <add>, %1076, %cst_611 [1] : vector<16x32xf32> to vector<16xf32>
    %1078 = vector.shape_cast %1077 : vector<16xf32> to vector<16x1xf32>
    %cst_612 = arith.constant 3.200000e+01 : f32
    %1079 = vector.broadcast %cst_612 : f32 to vector<16x1xf32>
    %1080 = arith.divf %1078, %1079 : vector<16x1xf32>
    %cst_613 = arith.constant 9.99999974E-6 : f32
    %1081 = vector.broadcast %cst_613 : f32 to vector<16x1xf32>
    %1082 = arith.addf %1080, %1081 : vector<16x1xf32>
    %1083 = math.rsqrt %1082 : vector<16x1xf32>
    %1084 = vector.broadcast %1083 : vector<16x1xf32> to vector<16x32xf32>
    %1085 = arith.mulf %1075, %1084 : vector<16x32xf32>
    %1086 = vector.broadcast %1068 : vector<1x32xf32> to vector<16x32xf32>
    %1087 = arith.mulf %1085, %1086 : vector<16x32xf32>
    %1088 = vector.broadcast %1069 : vector<1x32xf32> to vector<16x32xf32>
    %1089 = arith.addf %1087, %1088 : vector<16x32xf32>
    %1090 = vector.extract_strided_slice %904 {offsets = [1, 0], sizes = [1, 32], strides = [1, 1]} : vector<9x32xf32> to vector<1x32xf32>
    %c1_614 = arith.constant 1 : index
    %c0_615 = arith.constant 0 : index
    %c0_616 = arith.constant 0 : index
    %1091 = vector.load %arg16[%c1_614, %c0_615, %c0_616] : memref<2x12x8xf32, #tpu.memory_space<vmem>>, vector<1x12x8xf32>
    %1092 = vector.shape_cast %1091 : vector<1x12x8xf32> to vector<12x8xf32>
    %cst_617 = arith.constant 0.000000e+00 : f32
    %1093 = vector.broadcast %cst_617 : f32 to vector<16x32xf32>
    %1094 = vector.broadcast %1090 : vector<1x32xf32> to vector<16x32xf32>
    %1095 = arith.addf %1093, %1094 : vector<16x32xf32>
    %c1_618 = arith.constant 1 : index
    %c0_619 = arith.constant 0 : index
    %c0_620 = arith.constant 0 : index
    %c0_621 = arith.constant 0 : index
    %1096 = vector.load %arg15[%c1_618, %c0_619, %c0_620, %c0_621] : memref<2x12x32x8xf32, #tpu.memory_space<vmem>>, vector<1x1x32x8xf32>
    %1097 = vector.shape_cast %1096 : vector<1x1x32x8xf32> to vector<32x8xf32>
    %cst_622 = arith.constant dense<0.000000e+00> : vector<16x8xf32>
    %1098 = tpu.matmul %1089, %1097, %cst_622 {dimension_numbers = #tpu.dot_dimension_numbers<[1], [0], [0], [1], [0, 0, 1, 1], [], []>} : vector<16x32xf32>, vector<32x8xf32>, vector<16x8xf32> -> vector<16x8xf32>
    %1099 = vector.extract_strided_slice %1092 {offsets = [0, 0], sizes = [1, 8], strides = [1, 1]} : vector<12x8xf32> to vector<1x8xf32>
    %1100 = vector.broadcast %1099 : vector<1x8xf32> to vector<16x8xf32>
    %1101 = arith.addf %1098, %1100 : vector<16x8xf32>
    %c1_623 = arith.constant 1 : index
    %c4_624 = arith.constant 4 : index
    %c0_625 = arith.constant 0 : index
    %c0_626 = arith.constant 0 : index
    %1102 = vector.load %arg15[%c1_623, %c4_624, %c0_625, %c0_626] : memref<2x12x32x8xf32, #tpu.memory_space<vmem>>, vector<1x1x32x8xf32>
    %1103 = vector.shape_cast %1102 : vector<1x1x32x8xf32> to vector<32x8xf32>
    %cst_627 = arith.constant dense<0.000000e+00> : vector<16x8xf32>
    %1104 = tpu.matmul %482, %1103, %cst_627 {dimension_numbers = #tpu.dot_dimension_numbers<[1], [0], [0], [1], [0, 0, 1, 1], [], []>} : vector<16x32xf32>, vector<32x8xf32>, vector<16x8xf32> -> vector<16x8xf32>
    %1105 = vector.extract_strided_slice %1092 {offsets = [4, 0], sizes = [1, 8], strides = [1, 1]} : vector<12x8xf32> to vector<1x8xf32>
    %1106 = vector.broadcast %1105 : vector<1x8xf32> to vector<16x8xf32>
    %1107 = arith.addf %1104, %1106 : vector<16x8xf32>
    %c1_628 = arith.constant 1 : index
    %c8_629 = arith.constant 8 : index
    %c0_630 = arith.constant 0 : index
    %c0_631 = arith.constant 0 : index
    %1108 = vector.load %arg15[%c1_628, %c8_629, %c0_630, %c0_631] : memref<2x12x32x8xf32, #tpu.memory_space<vmem>>, vector<1x1x32x8xf32>
    %1109 = vector.shape_cast %1108 : vector<1x1x32x8xf32> to vector<32x8xf32>
    %cst_632 = arith.constant dense<0.000000e+00> : vector<16x8xf32>
    %1110 = tpu.matmul %482, %1109, %cst_632 {dimension_numbers = #tpu.dot_dimension_numbers<[1], [0], [0], [1], [0, 0, 1, 1], [], []>} : vector<16x32xf32>, vector<32x8xf32>, vector<16x8xf32> -> vector<16x8xf32>
    %1111 = vector.extract_strided_slice %1092 {offsets = [8, 0], sizes = [1, 8], strides = [1, 1]} : vector<12x8xf32> to vector<1x8xf32>
    %1112 = vector.broadcast %1111 : vector<1x8xf32> to vector<16x8xf32>
    %1113 = arith.addf %1110, %1112 : vector<16x8xf32>
    %1114 = vector.shape_cast %1101 : vector<16x8xf32> to vector<2x8x8xf32>
    %1115 = vector.shape_cast %1107 : vector<16x8xf32> to vector<2x8x8xf32>
    %1116 = vector.shape_cast %1113 : vector<16x8xf32> to vector<2x8x8xf32>
    "tpu.trace_start"() <{level = 10 : i32, message = "bqd,bkd->bqk"}> : () -> ()
    %cst_633 = arith.constant dense<0.000000e+00> : vector<2x8x8xf32>
    %1117 = tpu.matmul %1114, %1115, %cst_633 {dimension_numbers = #tpu.dot_dimension_numbers<[2], [2], [1], [1], [0, 0, 0, 1, 1, 1], [0], [0]>} : vector<2x8x8xf32>, vector<2x8x8xf32>, vector<2x8x8xf32> -> vector<2x8x8xf32>
    "tpu.trace_stop"() : () -> ()
    %cst_634 = arith.constant 0.353553385 : f32
    %1118 = vector.broadcast %cst_634 : f32 to vector<2x8x8xf32>
    %1119 = arith.mulf %1117, %1118 : vector<2x8x8xf32>
    %cst_635 = arith.constant dense<0xFF800000> : vector<2x8xf32>
    %1120 = vector.multi_reduction <maximumf>, %1119, %cst_635 [2] : vector<2x8x8xf32> to vector<2x8xf32>
    %1121 = vector.shape_cast %1120 : vector<2x8xf32> to vector<2x8x1xf32>
    %1122 = vector.broadcast %1121 : vector<2x8x1xf32> to vector<2x8x8xf32>
    %1123 = arith.subf %1119, %1122 : vector<2x8x8xf32>
    %1124 = math.exp %1123 : vector<2x8x8xf32>
    %cst_636 = arith.constant dense<0.000000e+00> : vector<2x8xf32>
    %1125 = vector.multi_reduction <add>, %1124, %cst_636 [2] : vector<2x8x8xf32> to vector<2x8xf32>
    %1126 = vector.shape_cast %1125 : vector<2x8xf32> to vector<2x8x1xf32>
    %1127 = vector.broadcast %1126 : vector<2x8x1xf32> to vector<2x8x8xf32>
    %1128 = arith.divf %1124, %1127 : vector<2x8x8xf32>
    "tpu.trace_start"() <{level = 10 : i32, message = "bqk,bkd->bqd"}> : () -> ()
    %cst_637 = arith.constant dense<0.000000e+00> : vector<2x8x8xf32>
    %1129 = tpu.matmul %1128, %1116, %cst_637 {dimension_numbers = #tpu.dot_dimension_numbers<[2], [1], [1], [2], [0, 0, 0, 1, 1, 2], [0], [0]>} : vector<2x8x8xf32>, vector<2x8x8xf32>, vector<2x8x8xf32> -> vector<2x8x8xf32>
    "tpu.trace_stop"() : () -> ()
    %1130 = vector.shape_cast %1129 : vector<2x8x8xf32> to vector<16x8xf32>
    %c1_638 = arith.constant 1 : index
    %c0_639 = arith.constant 0 : index
    %c0_640 = arith.constant 0 : index
    %c0_641 = arith.constant 0 : index
    %1131 = vector.load %arg17[%c1_638, %c0_639, %c0_640, %c0_641] : memref<2x4x8x32xf32, #tpu.memory_space<vmem>>, vector<1x1x8x32xf32>
    %1132 = vector.shape_cast %1131 : vector<1x1x8x32xf32> to vector<8x32xf32>
    %cst_642 = arith.constant dense<0.000000e+00> : vector<16x32xf32>
    %1133 = tpu.matmul %1130, %1132, %cst_642 {dimension_numbers = #tpu.dot_dimension_numbers<[1], [0], [0], [1], [0, 0, 1, 1], [], []>} : vector<16x8xf32>, vector<8x32xf32>, vector<16x32xf32> -> vector<16x32xf32>
    %1134 = arith.addf %1095, %1133 : vector<16x32xf32>
    %c1_643 = arith.constant 1 : index
    %c1_644 = arith.constant 1 : index
    %c0_645 = arith.constant 0 : index
    %c0_646 = arith.constant 0 : index
    %1135 = vector.load %arg15[%c1_643, %c1_644, %c0_645, %c0_646] : memref<2x12x32x8xf32, #tpu.memory_space<vmem>>, vector<1x1x32x8xf32>
    %1136 = vector.shape_cast %1135 : vector<1x1x32x8xf32> to vector<32x8xf32>
    %cst_647 = arith.constant dense<0.000000e+00> : vector<16x8xf32>
    %1137 = tpu.matmul %1089, %1136, %cst_647 {dimension_numbers = #tpu.dot_dimension_numbers<[1], [0], [0], [1], [0, 0, 1, 1], [], []>} : vector<16x32xf32>, vector<32x8xf32>, vector<16x8xf32> -> vector<16x8xf32>
    %1138 = vector.extract_strided_slice %1092 {offsets = [1, 0], sizes = [1, 8], strides = [1, 1]} : vector<12x8xf32> to vector<1x8xf32>
    %1139 = vector.broadcast %1138 : vector<1x8xf32> to vector<16x8xf32>
    %1140 = arith.addf %1137, %1139 : vector<16x8xf32>
    %c1_648 = arith.constant 1 : index
    %c5_649 = arith.constant 5 : index
    %c0_650 = arith.constant 0 : index
    %c0_651 = arith.constant 0 : index
    %1141 = vector.load %arg15[%c1_648, %c5_649, %c0_650, %c0_651] : memref<2x12x32x8xf32, #tpu.memory_space<vmem>>, vector<1x1x32x8xf32>
    %1142 = vector.shape_cast %1141 : vector<1x1x32x8xf32> to vector<32x8xf32>
    %cst_652 = arith.constant dense<0.000000e+00> : vector<16x8xf32>
    %1143 = tpu.matmul %482, %1142, %cst_652 {dimension_numbers = #tpu.dot_dimension_numbers<[1], [0], [0], [1], [0, 0, 1, 1], [], []>} : vector<16x32xf32>, vector<32x8xf32>, vector<16x8xf32> -> vector<16x8xf32>
    %1144 = vector.extract_strided_slice %1092 {offsets = [5, 0], sizes = [1, 8], strides = [1, 1]} : vector<12x8xf32> to vector<1x8xf32>
    %1145 = vector.broadcast %1144 : vector<1x8xf32> to vector<16x8xf32>
    %1146 = arith.addf %1143, %1145 : vector<16x8xf32>
    %c1_653 = arith.constant 1 : index
    %c9_654 = arith.constant 9 : index
    %c0_655 = arith.constant 0 : index
    %c0_656 = arith.constant 0 : index
    %1147 = vector.load %arg15[%c1_653, %c9_654, %c0_655, %c0_656] : memref<2x12x32x8xf32, #tpu.memory_space<vmem>>, vector<1x1x32x8xf32>
    %1148 = vector.shape_cast %1147 : vector<1x1x32x8xf32> to vector<32x8xf32>
    %cst_657 = arith.constant dense<0.000000e+00> : vector<16x8xf32>
    %1149 = tpu.matmul %482, %1148, %cst_657 {dimension_numbers = #tpu.dot_dimension_numbers<[1], [0], [0], [1], [0, 0, 1, 1], [], []>} : vector<16x32xf32>, vector<32x8xf32>, vector<16x8xf32> -> vector<16x8xf32>
    %1150 = vector.extract_strided_slice %1092 {offsets = [9, 0], sizes = [1, 8], strides = [1, 1]} : vector<12x8xf32> to vector<1x8xf32>
    %1151 = vector.broadcast %1150 : vector<1x8xf32> to vector<16x8xf32>
    %1152 = arith.addf %1149, %1151 : vector<16x8xf32>
    %1153 = vector.shape_cast %1140 : vector<16x8xf32> to vector<2x8x8xf32>
    %1154 = vector.shape_cast %1146 : vector<16x8xf32> to vector<2x8x8xf32>
    %1155 = vector.shape_cast %1152 : vector<16x8xf32> to vector<2x8x8xf32>
    "tpu.trace_start"() <{level = 10 : i32, message = "bqd,bkd->bqk"}> : () -> ()
    %cst_658 = arith.constant dense<0.000000e+00> : vector<2x8x8xf32>
    %1156 = tpu.matmul %1153, %1154, %cst_658 {dimension_numbers = #tpu.dot_dimension_numbers<[2], [2], [1], [1], [0, 0, 0, 1, 1, 1], [0], [0]>} : vector<2x8x8xf32>, vector<2x8x8xf32>, vector<2x8x8xf32> -> vector<2x8x8xf32>
    "tpu.trace_stop"() : () -> ()
    %cst_659 = arith.constant 0.353553385 : f32
    %1157 = vector.broadcast %cst_659 : f32 to vector<2x8x8xf32>
    %1158 = arith.mulf %1156, %1157 : vector<2x8x8xf32>
    %cst_660 = arith.constant dense<0xFF800000> : vector<2x8xf32>
    %1159 = vector.multi_reduction <maximumf>, %1158, %cst_660 [2] : vector<2x8x8xf32> to vector<2x8xf32>
    %1160 = vector.shape_cast %1159 : vector<2x8xf32> to vector<2x8x1xf32>
    %1161 = vector.broadcast %1160 : vector<2x8x1xf32> to vector<2x8x8xf32>
    %1162 = arith.subf %1158, %1161 : vector<2x8x8xf32>
    %1163 = math.exp %1162 : vector<2x8x8xf32>
    %cst_661 = arith.constant dense<0.000000e+00> : vector<2x8xf32>
    %1164 = vector.multi_reduction <add>, %1163, %cst_661 [2] : vector<2x8x8xf32> to vector<2x8xf32>
    %1165 = vector.shape_cast %1164 : vector<2x8xf32> to vector<2x8x1xf32>
    %1166 = vector.broadcast %1165 : vector<2x8x1xf32> to vector<2x8x8xf32>
    %1167 = arith.divf %1163, %1166 : vector<2x8x8xf32>
    "tpu.trace_start"() <{level = 10 : i32, message = "bqk,bkd->bqd"}> : () -> ()
    %cst_662 = arith.constant dense<0.000000e+00> : vector<2x8x8xf32>
    %1168 = tpu.matmul %1167, %1155, %cst_662 {dimension_numbers = #tpu.dot_dimension_numbers<[2], [1], [1], [2], [0, 0, 0, 1, 1, 2], [0], [0]>} : vector<2x8x8xf32>, vector<2x8x8xf32>, vector<2x8x8xf32> -> vector<2x8x8xf32>
    "tpu.trace_stop"() : () -> ()
    %1169 = vector.shape_cast %1168 : vector<2x8x8xf32> to vector<16x8xf32>
    %c1_663 = arith.constant 1 : index
    %c1_664 = arith.constant 1 : index
    %c0_665 = arith.constant 0 : index
    %c0_666 = arith.constant 0 : index
    %1170 = vector.load %arg17[%c1_663, %c1_664, %c0_665, %c0_666] : memref<2x4x8x32xf32, #tpu.memory_space<vmem>>, vector<1x1x8x32xf32>
    %1171 = vector.shape_cast %1170 : vector<1x1x8x32xf32> to vector<8x32xf32>
    %cst_667 = arith.constant dense<0.000000e+00> : vector<16x32xf32>
    %1172 = tpu.matmul %1169, %1171, %cst_667 {dimension_numbers = #tpu.dot_dimension_numbers<[1], [0], [0], [1], [0, 0, 1, 1], [], []>} : vector<16x8xf32>, vector<8x32xf32>, vector<16x32xf32> -> vector<16x32xf32>
    %1173 = arith.addf %1134, %1172 : vector<16x32xf32>
    %c1_668 = arith.constant 1 : index
    %c2_669 = arith.constant 2 : index
    %c0_670 = arith.constant 0 : index
    %c0_671 = arith.constant 0 : index
    %1174 = vector.load %arg15[%c1_668, %c2_669, %c0_670, %c0_671] : memref<2x12x32x8xf32, #tpu.memory_space<vmem>>, vector<1x1x32x8xf32>
    %1175 = vector.shape_cast %1174 : vector<1x1x32x8xf32> to vector<32x8xf32>
    %cst_672 = arith.constant dense<0.000000e+00> : vector<16x8xf32>
    %1176 = tpu.matmul %1089, %1175, %cst_672 {dimension_numbers = #tpu.dot_dimension_numbers<[1], [0], [0], [1], [0, 0, 1, 1], [], []>} : vector<16x32xf32>, vector<32x8xf32>, vector<16x8xf32> -> vector<16x8xf32>
    %1177 = vector.extract_strided_slice %1092 {offsets = [2, 0], sizes = [1, 8], strides = [1, 1]} : vector<12x8xf32> to vector<1x8xf32>
    %1178 = vector.broadcast %1177 : vector<1x8xf32> to vector<16x8xf32>
    %1179 = arith.addf %1176, %1178 : vector<16x8xf32>
    %c1_673 = arith.constant 1 : index
    %c6_674 = arith.constant 6 : index
    %c0_675 = arith.constant 0 : index
    %c0_676 = arith.constant 0 : index
    %1180 = vector.load %arg15[%c1_673, %c6_674, %c0_675, %c0_676] : memref<2x12x32x8xf32, #tpu.memory_space<vmem>>, vector<1x1x32x8xf32>
    %1181 = vector.shape_cast %1180 : vector<1x1x32x8xf32> to vector<32x8xf32>
    %cst_677 = arith.constant dense<0.000000e+00> : vector<16x8xf32>
    %1182 = tpu.matmul %482, %1181, %cst_677 {dimension_numbers = #tpu.dot_dimension_numbers<[1], [0], [0], [1], [0, 0, 1, 1], [], []>} : vector<16x32xf32>, vector<32x8xf32>, vector<16x8xf32> -> vector<16x8xf32>
    %1183 = vector.extract_strided_slice %1092 {offsets = [6, 0], sizes = [1, 8], strides = [1, 1]} : vector<12x8xf32> to vector<1x8xf32>
    %1184 = vector.broadcast %1183 : vector<1x8xf32> to vector<16x8xf32>
    %1185 = arith.addf %1182, %1184 : vector<16x8xf32>
    %c1_678 = arith.constant 1 : index
    %c10_679 = arith.constant 10 : index
    %c0_680 = arith.constant 0 : index
    %c0_681 = arith.constant 0 : index
    %1186 = vector.load %arg15[%c1_678, %c10_679, %c0_680, %c0_681] : memref<2x12x32x8xf32, #tpu.memory_space<vmem>>, vector<1x1x32x8xf32>
    %1187 = vector.shape_cast %1186 : vector<1x1x32x8xf32> to vector<32x8xf32>
    %cst_682 = arith.constant dense<0.000000e+00> : vector<16x8xf32>
    %1188 = tpu.matmul %482, %1187, %cst_682 {dimension_numbers = #tpu.dot_dimension_numbers<[1], [0], [0], [1], [0, 0, 1, 1], [], []>} : vector<16x32xf32>, vector<32x8xf32>, vector<16x8xf32> -> vector<16x8xf32>
    %1189 = vector.extract_strided_slice %1092 {offsets = [10, 0], sizes = [1, 8], strides = [1, 1]} : vector<12x8xf32> to vector<1x8xf32>
    %1190 = vector.broadcast %1189 : vector<1x8xf32> to vector<16x8xf32>
    %1191 = arith.addf %1188, %1190 : vector<16x8xf32>
    %1192 = vector.shape_cast %1179 : vector<16x8xf32> to vector<2x8x8xf32>
    %1193 = vector.shape_cast %1185 : vector<16x8xf32> to vector<2x8x8xf32>
    %1194 = vector.shape_cast %1191 : vector<16x8xf32> to vector<2x8x8xf32>
    "tpu.trace_start"() <{level = 10 : i32, message = "bqd,bkd->bqk"}> : () -> ()
    %cst_683 = arith.constant dense<0.000000e+00> : vector<2x8x8xf32>
    %1195 = tpu.matmul %1192, %1193, %cst_683 {dimension_numbers = #tpu.dot_dimension_numbers<[2], [2], [1], [1], [0, 0, 0, 1, 1, 1], [0], [0]>} : vector<2x8x8xf32>, vector<2x8x8xf32>, vector<2x8x8xf32> -> vector<2x8x8xf32>
    "tpu.trace_stop"() : () -> ()
    %cst_684 = arith.constant 0.353553385 : f32
    %1196 = vector.broadcast %cst_684 : f32 to vector<2x8x8xf32>
    %1197 = arith.mulf %1195, %1196 : vector<2x8x8xf32>
    %cst_685 = arith.constant dense<0xFF800000> : vector<2x8xf32>
    %1198 = vector.multi_reduction <maximumf>, %1197, %cst_685 [2] : vector<2x8x8xf32> to vector<2x8xf32>
    %1199 = vector.shape_cast %1198 : vector<2x8xf32> to vector<2x8x1xf32>
    %1200 = vector.broadcast %1199 : vector<2x8x1xf32> to vector<2x8x8xf32>
    %1201 = arith.subf %1197, %1200 : vector<2x8x8xf32>
    %1202 = math.exp %1201 : vector<2x8x8xf32>
    %cst_686 = arith.constant dense<0.000000e+00> : vector<2x8xf32>
    %1203 = vector.multi_reduction <add>, %1202, %cst_686 [2] : vector<2x8x8xf32> to vector<2x8xf32>
    %1204 = vector.shape_cast %1203 : vector<2x8xf32> to vector<2x8x1xf32>
    %1205 = vector.broadcast %1204 : vector<2x8x1xf32> to vector<2x8x8xf32>
    %1206 = arith.divf %1202, %1205 : vector<2x8x8xf32>
    "tpu.trace_start"() <{level = 10 : i32, message = "bqk,bkd->bqd"}> : () -> ()
    %cst_687 = arith.constant dense<0.000000e+00> : vector<2x8x8xf32>
    %1207 = tpu.matmul %1206, %1194, %cst_687 {dimension_numbers = #tpu.dot_dimension_numbers<[2], [1], [1], [2], [0, 0, 0, 1, 1, 2], [0], [0]>} : vector<2x8x8xf32>, vector<2x8x8xf32>, vector<2x8x8xf32> -> vector<2x8x8xf32>
    "tpu.trace_stop"() : () -> ()
    %1208 = vector.shape_cast %1207 : vector<2x8x8xf32> to vector<16x8xf32>
    %c1_688 = arith.constant 1 : index
    %c2_689 = arith.constant 2 : index
    %c0_690 = arith.constant 0 : index
    %c0_691 = arith.constant 0 : index
    %1209 = vector.load %arg17[%c1_688, %c2_689, %c0_690, %c0_691] : memref<2x4x8x32xf32, #tpu.memory_space<vmem>>, vector<1x1x8x32xf32>
    %1210 = vector.shape_cast %1209 : vector<1x1x8x32xf32> to vector<8x32xf32>
    %cst_692 = arith.constant dense<0.000000e+00> : vector<16x32xf32>
    %1211 = tpu.matmul %1208, %1210, %cst_692 {dimension_numbers = #tpu.dot_dimension_numbers<[1], [0], [0], [1], [0, 0, 1, 1], [], []>} : vector<16x8xf32>, vector<8x32xf32>, vector<16x32xf32> -> vector<16x32xf32>
    %1212 = arith.addf %1173, %1211 : vector<16x32xf32>
    %c1_693 = arith.constant 1 : index
    %c3_694 = arith.constant 3 : index
    %c0_695 = arith.constant 0 : index
    %c0_696 = arith.constant 0 : index
    %1213 = vector.load %arg15[%c1_693, %c3_694, %c0_695, %c0_696] : memref<2x12x32x8xf32, #tpu.memory_space<vmem>>, vector<1x1x32x8xf32>
    %1214 = vector.shape_cast %1213 : vector<1x1x32x8xf32> to vector<32x8xf32>
    %cst_697 = arith.constant dense<0.000000e+00> : vector<16x8xf32>
    %1215 = tpu.matmul %1089, %1214, %cst_697 {dimension_numbers = #tpu.dot_dimension_numbers<[1], [0], [0], [1], [0, 0, 1, 1], [], []>} : vector<16x32xf32>, vector<32x8xf32>, vector<16x8xf32> -> vector<16x8xf32>
    %1216 = vector.extract_strided_slice %1092 {offsets = [3, 0], sizes = [1, 8], strides = [1, 1]} : vector<12x8xf32> to vector<1x8xf32>
    %1217 = vector.broadcast %1216 : vector<1x8xf32> to vector<16x8xf32>
    %1218 = arith.addf %1215, %1217 : vector<16x8xf32>
    %c1_698 = arith.constant 1 : index
    %c7_699 = arith.constant 7 : index
    %c0_700 = arith.constant 0 : index
    %c0_701 = arith.constant 0 : index
    %1219 = vector.load %arg15[%c1_698, %c7_699, %c0_700, %c0_701] : memref<2x12x32x8xf32, #tpu.memory_space<vmem>>, vector<1x1x32x8xf32>
    %1220 = vector.shape_cast %1219 : vector<1x1x32x8xf32> to vector<32x8xf32>
    %cst_702 = arith.constant dense<0.000000e+00> : vector<16x8xf32>
    %1221 = tpu.matmul %482, %1220, %cst_702 {dimension_numbers = #tpu.dot_dimension_numbers<[1], [0], [0], [1], [0, 0, 1, 1], [], []>} : vector<16x32xf32>, vector<32x8xf32>, vector<16x8xf32> -> vector<16x8xf32>
    %1222 = vector.extract_strided_slice %1092 {offsets = [7, 0], sizes = [1, 8], strides = [1, 1]} : vector<12x8xf32> to vector<1x8xf32>
    %1223 = vector.broadcast %1222 : vector<1x8xf32> to vector<16x8xf32>
    %1224 = arith.addf %1221, %1223 : vector<16x8xf32>
    %c1_703 = arith.constant 1 : index
    %c11_704 = arith.constant 11 : index
    %c0_705 = arith.constant 0 : index
    %c0_706 = arith.constant 0 : index
    %1225 = vector.load %arg15[%c1_703, %c11_704, %c0_705, %c0_706] : memref<2x12x32x8xf32, #tpu.memory_space<vmem>>, vector<1x1x32x8xf32>
    %1226 = vector.shape_cast %1225 : vector<1x1x32x8xf32> to vector<32x8xf32>
    %cst_707 = arith.constant dense<0.000000e+00> : vector<16x8xf32>
    %1227 = tpu.matmul %482, %1226, %cst_707 {dimension_numbers = #tpu.dot_dimension_numbers<[1], [0], [0], [1], [0, 0, 1, 1], [], []>} : vector<16x32xf32>, vector<32x8xf32>, vector<16x8xf32> -> vector<16x8xf32>
    %1228 = vector.extract_strided_slice %1092 {offsets = [11, 0], sizes = [1, 8], strides = [1, 1]} : vector<12x8xf32> to vector<1x8xf32>
    %1229 = vector.broadcast %1228 : vector<1x8xf32> to vector<16x8xf32>
    %1230 = arith.addf %1227, %1229 : vector<16x8xf32>
    %1231 = vector.shape_cast %1218 : vector<16x8xf32> to vector<2x8x8xf32>
    %1232 = vector.shape_cast %1224 : vector<16x8xf32> to vector<2x8x8xf32>
    %1233 = vector.shape_cast %1230 : vector<16x8xf32> to vector<2x8x8xf32>
    "tpu.trace_start"() <{level = 10 : i32, message = "bqd,bkd->bqk"}> : () -> ()
    %cst_708 = arith.constant dense<0.000000e+00> : vector<2x8x8xf32>
    %1234 = tpu.matmul %1231, %1232, %cst_708 {dimension_numbers = #tpu.dot_dimension_numbers<[2], [2], [1], [1], [0, 0, 0, 1, 1, 1], [0], [0]>} : vector<2x8x8xf32>, vector<2x8x8xf32>, vector<2x8x8xf32> -> vector<2x8x8xf32>
    "tpu.trace_stop"() : () -> ()
    %cst_709 = arith.constant 0.353553385 : f32
    %1235 = vector.broadcast %cst_709 : f32 to vector<2x8x8xf32>
    %1236 = arith.mulf %1234, %1235 : vector<2x8x8xf32>
    %cst_710 = arith.constant dense<0xFF800000> : vector<2x8xf32>
    %1237 = vector.multi_reduction <maximumf>, %1236, %cst_710 [2] : vector<2x8x8xf32> to vector<2x8xf32>
    %1238 = vector.shape_cast %1237 : vector<2x8xf32> to vector<2x8x1xf32>
    %1239 = vector.broadcast %1238 : vector<2x8x1xf32> to vector<2x8x8xf32>
    %1240 = arith.subf %1236, %1239 : vector<2x8x8xf32>
    %1241 = math.exp %1240 : vector<2x8x8xf32>
    %cst_711 = arith.constant dense<0.000000e+00> : vector<2x8xf32>
    %1242 = vector.multi_reduction <add>, %1241, %cst_711 [2] : vector<2x8x8xf32> to vector<2x8xf32>
    %1243 = vector.shape_cast %1242 : vector<2x8xf32> to vector<2x8x1xf32>
    %1244 = vector.broadcast %1243 : vector<2x8x1xf32> to vector<2x8x8xf32>
    %1245 = arith.divf %1241, %1244 : vector<2x8x8xf32>
    "tpu.trace_start"() <{level = 10 : i32, message = "bqk,bkd->bqd"}> : () -> ()
    %cst_712 = arith.constant dense<0.000000e+00> : vector<2x8x8xf32>
    %1246 = tpu.matmul %1245, %1233, %cst_712 {dimension_numbers = #tpu.dot_dimension_numbers<[2], [1], [1], [2], [0, 0, 0, 1, 1, 2], [0], [0]>} : vector<2x8x8xf32>, vector<2x8x8xf32>, vector<2x8x8xf32> -> vector<2x8x8xf32>
    "tpu.trace_stop"() : () -> ()
    %1247 = vector.shape_cast %1246 : vector<2x8x8xf32> to vector<16x8xf32>
    %c1_713 = arith.constant 1 : index
    %c3_714 = arith.constant 3 : index
    %c0_715 = arith.constant 0 : index
    %c0_716 = arith.constant 0 : index
    %1248 = vector.load %arg17[%c1_713, %c3_714, %c0_715, %c0_716] : memref<2x4x8x32xf32, #tpu.memory_space<vmem>>, vector<1x1x8x32xf32>
    %1249 = vector.shape_cast %1248 : vector<1x1x8x32xf32> to vector<8x32xf32>
    %cst_717 = arith.constant dense<0.000000e+00> : vector<16x32xf32>
    %1250 = tpu.matmul %1247, %1249, %cst_717 {dimension_numbers = #tpu.dot_dimension_numbers<[1], [0], [0], [1], [0, 0, 1, 1], [], []>} : vector<16x8xf32>, vector<8x32xf32>, vector<16x32xf32> -> vector<16x32xf32>
    %1251 = arith.addf %1212, %1250 : vector<16x32xf32>
    %1252 = arith.addf %1089, %1251 : vector<16x32xf32>
    %1253 = vector.extract_strided_slice %904 {offsets = [4, 0], sizes = [1, 32], strides = [1, 1]} : vector<9x32xf32> to vector<1x32xf32>
    %1254 = vector.extract_strided_slice %904 {offsets = [5, 0], sizes = [1, 32], strides = [1, 1]} : vector<9x32xf32> to vector<1x32xf32>
    %cst_718 = arith.constant dense<0.000000e+00> : vector<16xf32>
    %1255 = vector.multi_reduction <add>, %1252, %cst_718 [1] : vector<16x32xf32> to vector<16xf32>
    %1256 = vector.shape_cast %1255 : vector<16xf32> to vector<16x1xf32>
    %cst_719 = arith.constant 3.200000e+01 : f32
    %1257 = vector.broadcast %cst_719 : f32 to vector<16x1xf32>
    %1258 = arith.divf %1256, %1257 : vector<16x1xf32>
    %1259 = vector.broadcast %1258 : vector<16x1xf32> to vector<16x32xf32>
    %1260 = arith.subf %1252, %1259 : vector<16x32xf32>
    %1261 = arith.mulf %1260, %1260 : vector<16x32xf32>
    %cst_720 = arith.constant dense<0.000000e+00> : vector<16xf32>
    %1262 = vector.multi_reduction <add>, %1261, %cst_720 [1] : vector<16x32xf32> to vector<16xf32>
    %1263 = vector.shape_cast %1262 : vector<16xf32> to vector<16x1xf32>
    %cst_721 = arith.constant 3.200000e+01 : f32
    %1264 = vector.broadcast %cst_721 : f32 to vector<16x1xf32>
    %1265 = arith.divf %1263, %1264 : vector<16x1xf32>
    %cst_722 = arith.constant 9.99999974E-6 : f32
    %1266 = vector.broadcast %cst_722 : f32 to vector<16x1xf32>
    %1267 = arith.addf %1265, %1266 : vector<16x1xf32>
    %1268 = math.rsqrt %1267 : vector<16x1xf32>
    %1269 = vector.broadcast %1268 : vector<16x1xf32> to vector<16x32xf32>
    %1270 = arith.mulf %1260, %1269 : vector<16x32xf32>
    %1271 = vector.broadcast %1253 : vector<1x32xf32> to vector<16x32xf32>
    %1272 = arith.mulf %1270, %1271 : vector<16x32xf32>
    %1273 = vector.broadcast %1254 : vector<1x32xf32> to vector<16x32xf32>
    %1274 = arith.addf %1272, %1273 : vector<16x32xf32>
    %1275 = vector.extract_strided_slice %904 {offsets = [8, 0], sizes = [1, 32], strides = [1, 1]} : vector<9x32xf32> to vector<1x32xf32>
    %c1_723 = arith.constant 1 : index
    %c0_724 = arith.constant 0 : index
    %c0_725 = arith.constant 0 : index
    %1276 = vector.load %arg19[%c1_723, %c0_724, %c0_725] : memref<2x32x64xf32, #tpu.memory_space<vmem>>, vector<1x32x64xf32>
    %1277 = vector.shape_cast %1276 : vector<1x32x64xf32> to vector<32x64xf32>
    %cst_726 = arith.constant dense<0.000000e+00> : vector<16x64xf32>
    %1278 = tpu.matmul %1274, %1277, %cst_726 {dimension_numbers = #tpu.dot_dimension_numbers<[1], [0], [0], [1], [0, 0, 1, 1], [], []>} : vector<16x32xf32>, vector<32x64xf32>, vector<16x64xf32> -> vector<16x64xf32>
    %c1_727 = arith.constant 1 : index
    %c0_728 = arith.constant 0 : index
    %c0_729 = arith.constant 0 : index
    %1279 = vector.load %arg20[%c1_727, %c0_728, %c0_729] : memref<2x1x64xf32, #tpu.memory_space<vmem>>, vector<1x1x64xf32>
    %1280 = vector.shape_cast %1279 : vector<1x1x64xf32> to vector<1x64xf32>
    %1281 = vector.broadcast %1280 : vector<1x64xf32> to vector<16x64xf32>
    %1282 = arith.addf %1278, %1281 : vector<16x64xf32>
    %cst_730 = arith.constant 0.000000e+00 : f32
    %1283 = vector.broadcast %cst_730 : f32 to vector<16x64xf32>
    %1284 = arith.maximumf %1282, %1283 : vector<16x64xf32>
    %c1_731 = arith.constant 1 : index
    %c0_732 = arith.constant 0 : index
    %c0_733 = arith.constant 0 : index
    %1285 = vector.load %arg21[%c1_731, %c0_732, %c0_733] : memref<2x64x32xf32, #tpu.memory_space<vmem>>, vector<1x64x32xf32>
    %1286 = vector.shape_cast %1285 : vector<1x64x32xf32> to vector<64x32xf32>
    %cst_734 = arith.constant dense<0.000000e+00> : vector<16x32xf32>
    %1287 = tpu.matmul %1284, %1286, %cst_734 {dimension_numbers = #tpu.dot_dimension_numbers<[1], [0], [0], [1], [0, 0, 1, 1], [], []>} : vector<16x64xf32>, vector<64x32xf32>, vector<16x32xf32> -> vector<16x32xf32>
    %1288 = vector.broadcast %1275 : vector<1x32xf32> to vector<16x32xf32>
    %1289 = arith.addf %1287, %1288 : vector<16x32xf32>
    %1290 = arith.addf %1274, %1289 : vector<16x32xf32>
    %1291 = vector.extract_strided_slice %904 {offsets = [6, 0], sizes = [1, 32], strides = [1, 1]} : vector<9x32xf32> to vector<1x32xf32>
    %1292 = vector.extract_strided_slice %904 {offsets = [7, 0], sizes = [1, 32], strides = [1, 1]} : vector<9x32xf32> to vector<1x32xf32>
    %cst_735 = arith.constant dense<0.000000e+00> : vector<16xf32>
    %1293 = vector.multi_reduction <add>, %1290, %cst_735 [1] : vector<16x32xf32> to vector<16xf32>
    %1294 = vector.shape_cast %1293 : vector<16xf32> to vector<16x1xf32>
    %cst_736 = arith.constant 3.200000e+01 : f32
    %1295 = vector.broadcast %cst_736 : f32 to vector<16x1xf32>
    %1296 = arith.divf %1294, %1295 : vector<16x1xf32>
    %1297 = vector.broadcast %1296 : vector<16x1xf32> to vector<16x32xf32>
    %1298 = arith.subf %1290, %1297 : vector<16x32xf32>
    %1299 = arith.mulf %1298, %1298 : vector<16x32xf32>
    %cst_737 = arith.constant dense<0.000000e+00> : vector<16xf32>
    %1300 = vector.multi_reduction <add>, %1299, %cst_737 [1] : vector<16x32xf32> to vector<16xf32>
    %1301 = vector.shape_cast %1300 : vector<16xf32> to vector<16x1xf32>
    %cst_738 = arith.constant 3.200000e+01 : f32
    %1302 = vector.broadcast %cst_738 : f32 to vector<16x1xf32>
    %1303 = arith.divf %1301, %1302 : vector<16x1xf32>
    %cst_739 = arith.constant 9.99999974E-6 : f32
    %1304 = vector.broadcast %cst_739 : f32 to vector<16x1xf32>
    %1305 = arith.addf %1303, %1304 : vector<16x1xf32>
    %1306 = math.rsqrt %1305 : vector<16x1xf32>
    %1307 = vector.broadcast %1306 : vector<16x1xf32> to vector<16x32xf32>
    %1308 = arith.mulf %1298, %1307 : vector<16x32xf32>
    %1309 = vector.broadcast %1291 : vector<1x32xf32> to vector<16x32xf32>
    %1310 = arith.mulf %1308, %1309 : vector<16x32xf32>
    %1311 = vector.broadcast %1292 : vector<1x32xf32> to vector<16x32xf32>
    %1312 = arith.addf %1310, %1311 : vector<16x32xf32>
    %c0_740 = arith.constant 0 : index
    %c0_741 = arith.constant 0 : index
    %1313 = vector.load %arg22[%c0_740, %c0_741] : memref<2x32xf32, #tpu.memory_space<vmem>>, vector<2x32xf32>
    %1314 = vector.extract_strided_slice %1313 {offsets = [0, 0], sizes = [1, 32], strides = [1, 1]} : vector<2x32xf32> to vector<1x32xf32>
    %1315 = vector.extract_strided_slice %1313 {offsets = [1, 0], sizes = [1, 32], strides = [1, 1]} : vector<2x32xf32> to vector<1x32xf32>
    %cst_742 = arith.constant dense<0.000000e+00> : vector<16xf32>
    %1316 = vector.multi_reduction <add>, %1312, %cst_742 [1] : vector<16x32xf32> to vector<16xf32>
    %1317 = vector.shape_cast %1316 : vector<16xf32> to vector<16x1xf32>
    %cst_743 = arith.constant 3.200000e+01 : f32
    %1318 = vector.broadcast %cst_743 : f32 to vector<16x1xf32>
    %1319 = arith.divf %1317, %1318 : vector<16x1xf32>
    %1320 = vector.broadcast %1319 : vector<16x1xf32> to vector<16x32xf32>
    %1321 = arith.subf %1312, %1320 : vector<16x32xf32>
    %1322 = arith.mulf %1321, %1321 : vector<16x32xf32>
    %cst_744 = arith.constant dense<0.000000e+00> : vector<16xf32>
    %1323 = vector.multi_reduction <add>, %1322, %cst_744 [1] : vector<16x32xf32> to vector<16xf32>
    %1324 = vector.shape_cast %1323 : vector<16xf32> to vector<16x1xf32>
    %cst_745 = arith.constant 3.200000e+01 : f32
    %1325 = vector.broadcast %cst_745 : f32 to vector<16x1xf32>
    %1326 = arith.divf %1324, %1325 : vector<16x1xf32>
    %cst_746 = arith.constant 9.99999974E-6 : f32
    %1327 = vector.broadcast %cst_746 : f32 to vector<16x1xf32>
    %1328 = arith.addf %1326, %1327 : vector<16x1xf32>
    %1329 = math.rsqrt %1328 : vector<16x1xf32>
    %1330 = vector.broadcast %1329 : vector<16x1xf32> to vector<16x32xf32>
    %1331 = arith.mulf %1321, %1330 : vector<16x32xf32>
    %1332 = vector.broadcast %1314 : vector<1x32xf32> to vector<16x32xf32>
    %1333 = arith.mulf %1331, %1332 : vector<16x32xf32>
    %1334 = vector.broadcast %1315 : vector<1x32xf32> to vector<16x32xf32>
    %1335 = arith.addf %1333, %1334 : vector<16x32xf32>
    %c0_747 = arith.constant 0 : index
    %c0_748 = arith.constant 0 : index
    %1336 = vector.load %arg23[%c0_747, %c0_748] : memref<32x128xf32, #tpu.memory_space<vmem>>, vector<32x128xf32>
    %cst_749 = arith.constant dense<0.000000e+00> : vector<16x128xf32>
    %1337 = tpu.matmul %1335, %1336, %cst_749 {dimension_numbers = #tpu.dot_dimension_numbers<[1], [0], [0], [1], [0, 0, 1, 1], [], []>} : vector<16x32xf32>, vector<32x128xf32>, vector<16x128xf32> -> vector<16x128xf32>
    %c0_750 = arith.constant 0 : index
    %c0_751 = arith.constant 0 : index
    %1338 = vector.load %arg24[%c0_750, %c0_751] : memref<1x128xf32, #tpu.memory_space<vmem>>, vector<1x128xf32>
    %1339 = vector.broadcast %1338 : vector<1x128xf32> to vector<16x128xf32>
    %1340 = arith.addf %1337, %1339 : vector<16x128xf32>
    %c0_752 = arith.constant 0 : index
    %c0_753 = arith.constant 0 : index
    %1341 = vector.load %arg25[%c0_752, %c0_753] : memref<16x128xf32, #tpu.memory_space<vmem>>, vector<16x128xf32>
    tpu.vector_store %arg25[%c0_752, %c0_753], %1340 {strides = array<i32>} : memref<16x128xf32, #tpu.memory_space<vmem>>, vector<16x128xf32>,
    return
  }
}

</mosaic_0001>

<bundles_post_ra>
// kernel: tiny_transformer_forward.1
= control target key start
LH: loop header
LB: loop body
LE: loop exit
PB: predicated region body
PF: predicated region fallthrough
CT: control target
= control target key end

     0   :  { %v21561_v0 = vmov 0   ;;  %v82_v19 = vlaneseq  ;;  %vm103_vm0 = vcmask 457728   ;;  %v21562_v22 = vmov 0.0   ;;  %s24175_s0 = inlined_call_operand.vmem [shape: s32[16,1], index: 0, kind: input, shape index: {}]   ;;  %s24176_s2 = inlined_call_operand.vmem [shape: f32[56,32], index: 2, kind: input, shape index: {}]   ;;  %s24177_s4 = inlined_call_operand.vmem [shape: f32[2,12,32,8], index: 4, kind: input, shape index: {}]   ;;  %s24178_s5 = inlined_call_operand.vmem [shape: f32[2,12,8], index: 5, kind: input, shape index: {}]   ;;  %s24179_s6 = inlined_call_operand.vmem [shape: f32[2,4,8,32], index: 6, kind: input, shape index: {}]   ;;  %s24180_s7 = inlined_call_operand.vmem [shape: f32[2,6,32], index: 7, kind: input, shape index: {}]   ;;  %s24181_s8 = inlined_call_operand.vmem [shape: f32[2,32,64], index: 8, kind: input, shape index: {}]   ;;  %s24182_s10 = inlined_call_operand.vmem [shape: f32[2,64,32], index: 10, kind: input, shape index: {}]   ;;  %s24183_s9 = inlined_call_operand.vmem [shape: f32[2,1,64], index: 9, kind: input, shape index: {}]   ;;  %s24184_s1 = inlined_call_operand.vmem [shape: s32[16,1], index: 1, kind: input, shape index: {}]   ;;  %s24185_s3 = inlined_call_operand.vmem [shape: f32[40,32], index: 3, kind: input, shape index: {}]   ;;  %s24186_s12 = inlined_call_operand.vmem [shape: f32[2,12,32,8], index: 12, kind: input, shape index: {}]   ;;  %s24187_s13 = inlined_call_operand.vmem [shape: f32[2,12,8], index: 13, kind: input, shape index: {}]   ;;  %s24188_s14 = inlined_call_operand.vmem [shape: f32[2,4,8,32], index: 14, kind: input, shape index: {}]   ;;  %s24189_s18 = inlined_call_operand.vmem [shape: f32[2,9,32], index: 18, kind: input, shape index: {}]   ;;  %s24190_s15 = inlined_call_operand.vmem [shape: f32[2,12,32,8], index: 15, kind: input, shape index: {}]   ;;  %s24191_s11 = inlined_call_operand.vmem [shape: f32[2,32], index: 11, kind: input, shape index: {}]   ;;  %s24192_s16 = inlined_call_operand.vmem [shape: f32[2,12,8], index: 16, kind: input, shape index: {}]   ;;  %s24193_s17 = inlined_call_operand.vmem [shape: f32[2,4,8,32], index: 17, kind: input, shape index: {}]   ;;  %s24194_s19 = inlined_call_operand.vmem [shape: f32[2,32,64], index: 19, kind: input, shape index: {}]   ;;  %s24195_s21 = inlined_call_operand.vmem [shape: f32[2,64,32], index: 21, kind: input, shape index: {}]   ;;  %s24196_s20 = inlined_call_operand.vmem [shape: f32[2,1,64], index: 20, kind: input, shape index: {}]   ;;  %s24197_s23 = inlined_call_operand.vmem [shape: f32[32,128], index: 23, kind: input, shape index: {}]   ;;  %s24198_s22 = inlined_call_operand.vmem [shape: f32[2,32], index: 22, kind: input, shape index: {}]   ;;  %s24199_s24 = inlined_call_operand.vmem [shape: f32[1,128], index: 24, kind: input, shape index: {}]   ;;  %s24200_s25 = inlined_call_operand.vmem [shape: f32[16,128], index: 25, kind: output, shape index: {}]  }
   0x1   :  { %24212 = sst [smem:[#allocation2_spill]] %s24175_s0  ;;  %21316 = vset.pattern.permute.xlu0 %v21561_v0  ;;  %21317 = vset.pattern.permute.xlu1 %v21561_v0  ;;  %vm203_vm3 = vcmask 261120   ;;  %vm21563_vm4 = vmmov 0   ;;  %vm453_vm5 = vcmask 64512   ;;  %vm2984_vm6 = vcmask 523264  }
   0x2   :  { %24213 = sst [smem:[#allocation3_spill]] %s24176_s2  ;;  %v21733_v20 = vand.u32 127, %v82_v19  ;;  %v21785_v42 = vshrl.u32 %v82_v19, 7  ;;  %vm6086_vm8 = vcmask 326656  }
   0x3   :  { %24214 = sst [smem:[#allocation4_spill]] %s24177_s4 }
   0x4   :  { %24215 = sst [smem:[#allocation5_spill]] %s24178_s5  ;;  %s24224_s5 = sld [smem:[#allocation3_spill]]  ;;  %v21788_v43 = vsub.s32 0, %v21785_v42  ;;  %v21798_v50 = vsub.s32 4, %v21785_v42 }
   0x5   :  { %24216 = sst [smem:[#allocation6_spill]] %s24179_s6  ;;  %s24225_s2 = sld [smem:[#allocation4_spill]] }
   0x6   :  { %24217 = sst [smem:[#allocation7_spill]] %s24180_s7  ;;  %s24227_s7 = sld [smem:[#allocation6_spill]] }
   0x7   :  { %24218 = sst [smem:[#allocation8_spill]] %s24181_s8  ;;  %s24223_s8 = sld [smem:[#allocation2_spill]] }
   0x8   :  { %24219 = sst [smem:[#allocation9_spill]] %s24182_s10  ;;  %s24226_s10 = sld [smem:[#allocation5_spill]] }
   0x9   :  { %24220 = sst [smem:[#allocation10_spill]] %s24183_s9  ;;  %s24228_s30 = sld [smem:[#allocation7_spill]] }
   0xa   :  { %24221 = sst [smem:[#allocation11_spill]] %s24184_s1  ;;  %v96_v2 = vld [vmem:[%s24224_s5] sm:$0xff]  ;;  %v97_v3 = vld [vmem:[%s24224_s5 + $0x8] sm:$0xff]  ;;  %v98_v4 = vld [vmem:[%s24224_s5 + $0x10] sm:$0xff]  ;;  %s24229_s9 = sld [smem:[#allocation8_spill]] }
   0xb   :  { %24222 = sst [smem:[#allocation12_spill]] %s24200_s25  ;;  %v99_v5 = vld [vmem:[%s24224_s5 + $0x18] sm:$0xff]  ;;  %v20565_v7 = vpack.c.bf16 %v97_v3, %v96_v2  ;;  %v100_v9 = vld [vmem:[%s24224_s5 + $0x20] sm:$0xff]  ;;  %v101_v10 = vld [vmem:[%s24224_s5 + $0x28] sm:$0xff]  ;;  %s24230_s26 = sld [smem:[#allocation9_spill]] }
   0xc   :  { %v20569_v8 = vpack.c.bf16 %v99_v5, %v98_v4  ;;  %v20573_v11 = vpack.c.bf16 %v101_v10, %v100_v9  ;;  %v195_v12 = vld [vmem:[%s24225_s2] sm:$0xff]  ;;  %v196_v13 = vld [vmem:[%s24225_s2 + $0x8] sm:$0xff]  ;;  %v102_v15 = vld [vmem:[%s24224_s5 + $0x30] sm:$0xff]  ;;  %s24231_s0 = sld [smem:[#allocation10_spill]]  ;;  %s24232_s4 = sld [smem:[#allocation11_spill]] }
   0xd   :  { %v80_v1 = vld [vmem:[%s24223_s8] sm:$0xff]  ;;  %v81_v6 = vld [vmem:[%s24223_s8 + $0x8] sm:$0xff]  ;;  %20566 = vmatprep.subr.bf16.mxu0 %v20565_v7  ;;  %v20577_v14 = vpack.c.bf16 %v196_v13, %v195_v12  ;;  %v197_v26 = vld [vmem:[%s24225_s2 + $0x10] sm:$0xff]  ;;  %s24233_s25 = sld [smem:[#allocation12_spill]] }
   0xe   :  { %85 = vperm.xlu0 %21316, %v80_v1   ;;  %20568 = vmatpush3.bf16.msra.mxu0 %v20565_v7  ;;  %v17541_v16 = vld [vmem:[%s24225_s2 + $0x100] sm:$0xff]  ;;  %v17542_v17 = vld [vmem:[%s24225_s2 + $0x108] sm:$0xff]  ;;  %v198_v27 = vld [vmem:[%s24225_s2 + $0x18] sm:$0xff] }
   0xf   :  { %20570 = vmatprep.subr.bf16.mxu0 %v20569_v8  ;;  %20578 = vmatprep.subr.bf16.mxu1 %v20577_v14  ;;  %v20593_v18 = vpack.c.bf16 %v17542_v17, %v17541_v16  ;;  %v20581_v28 = vpack.c.bf16 %v198_v27, %v197_v26  ;;  %v17543_v29 = vld [vmem:[%s24225_s2 + $0x110] sm:$0xff]  ;;  %v17544_v30 = vld [vmem:[%s24225_s2 + $0x118] sm:$0xff]  ;;  %v17535_v32 = vld [vmem:[%s24225_s2 + $0x80] sm:$0xff] }
  0x10   :  { %20580 = vmatpush3.bf16.msra.mxu1 %v20577_v14  ;;  %v20597_v31 = vpack.c.bf16 %v17544_v30, %v17543_v29  ;;  %v17536_v33 = vld [vmem:[%s24225_s2 + $0x88] sm:$0xff]  ;;  %v17537_v36 = vld [vmem:[%s24225_s2 + $0x90] sm:$0xff]  ;;  %v17538_v37 = vld [vmem:[%s24225_s2 + $0x98] sm:$0xff] }
  0x11   :  { %20582 = vmatprep.subr.bf16.mxu1 %v20581_v28  ;;  %v20585_v34 = vpack.c.bf16 %v17536_v33, %v17535_v32  ;;  %v20589_v41 = vpack.c.bf16 %v17538_v37, %v17537_v36  ;;  %v21793_v44 = vld [vmem:[%s24226_s10 + $0x8] sm:$0xf]  ;;  %v21803_v52 = vld [vmem:[%s24226_s10] sm:$0xff]  ;;  %v17558_v26 = vld [vmem:[%s24225_s2 + $0x38] sm:$0xff] }
  0x12   :  { %88 = vperm.xlu0 %21316, %v81_v6   ;;  %20572 = vmatpush3.bf16.msra.mxu0 %v20569_v8  ;;  %v377_v45 = vrot.slane %v21793_v44, %v21788_v43  ;;  %v293_v53 = vrot.slane %v21803_v52, %v21798_v50  ;;  %v202_v55 = vrot.slane %v21803_v52, %v21788_v43  ;;  %v17555_v16 = vld [vmem:[%s24225_s2 + $0x20] sm:$0xff]  ;;  %v17556_v17 = vld [vmem:[%s24225_s2 + $0x28] sm:$0xff]  ;;  %v17569_v33 = vld [vmem:[%s24225_s2 + $0x130] sm:$0xff] }
  0x13   :  { %20574 = vmatprep.subr.bf16.mxu0 %v20573_v11  ;;  %v17567_v30 = vld [vmem:[%s24225_s2 + $0x120] sm:$0xff] }
  0x14   :  { %20584 = vmatpush3.bf16.msra.mxu1 %v20581_v28  ;;  %v776_v36 = vld [vmem:[%s24227_s7] sm:$0xff] }
  0x15   :  { %20586 = vmatprep.subr.bf16.mxu1 %v20585_v34  ;;  %v17561_v37 = vld [vmem:[%s24225_s2 + $0xa0] sm:$0xff] }
  0x16   :  { %20576 = vmatpush3.bf16.msra.mxu0 %v20573_v11 }
  0x17   :  { %19024 = vmatprep.subr.mxu0 %v102_v15 }
  0x1a   :  { %19025 = vmatpush3.msra.mxu0 %v102_v15 }
  0x1b   :  { %20594 = vmatprep.subr.bf16.mxu0 %v20593_v18 }
  0x8d   :  { %v86_v21 = vpop.permute.xlu0 %85 }
  0x8e   :  { %vm90_vm1 = vcmp.eq.s32.totalorder %v21733_v20, %v86_v21 }
  0x8f   :  { %v17529_v23 = vsel %vm90_vm1, 1.0, %v21562_v22 }
  0x90   :  { %19026 = vmatprep.mubr.msk.f32.mxu0 %vm103_vm0, %v17529_v23 }
  0x91   :  { %v89_v24 = vpop.permute.xlu0 %88 }
  0x92   :  { %vm91_vm2 = vcmp.eq.s32.totalorder %v21733_v20, %v89_v24 }
  0x93   :  { %v17530_v25 = vsel %vm91_vm2, 1.0, %v21562_v22 }
  0x94   :  { %19027 = vmatmul.mubr.msk.f32.vlgmr.msra.gmra.mrb[0].mxu0 %vm103_vm0, %v17530_v25  ;;  %v17557_v25 = vld [vmem:[%s24225_s2 + $0x30] sm:$0xff] }
  0x95   :  { %20596 = vmatpush3.bf16.msra.mxu0 %v20593_v18  ;;  %v20601_v18 = vpack.c.bf16 %v17556_v17, %v17555_v16  ;;  %v20605_v29 = vpack.c.bf16 %v17558_v26, %v17557_v25 }
  0x96   :  { %20598 = vmatprep.subr.bf16.mxu0 %v20597_v31 }
  0x99   :  { %20600 = vmatpush3.bf16.msra.mxu0 %v20597_v31  ;;  %v17568_v31 = vld [vmem:[%s24225_s2 + $0x128] sm:$0xff] }
  0x9a   :  { %19072 = vmatprep.subr.mxu0 %v21562_v22  ;;  %v20617_v32 = vpack.c.bf16 %v17568_v31, %v17567_v30 }
 0x167   :  { %v19028_v35 = vpop.f32.mrb[0].mxu0 }
 0x168   :  { %v176_v38 = vpop.f32.mrb[1].mxu0  ;;  %v21766_v40 = vmul.f32 5.656854, %v19028_v35 }
 0x169   :  { %v21764_v39 = vmul.f32 5.656854, %v176_v38  ;;  %v17562_v38 = vld [vmem:[%s24225_s2 + $0xa8] sm:$0xff] }
 0x16b   :  { %19037 = vmatprep.mubr.msk.f32.mxu1 %vm203_vm3, %v21764_v39  ;;  %19059 = vmatprep.mubr.msk.f32.mxu0 %vm203_vm3, %v21764_v39 }
 0x16c   :  { %19038 = vmatmul.mubr.msk.f32.vlgmr.msra.gmra.mrb[0].mxu1 %vm203_vm3, %v21766_v40  ;;  %19060 = vmatmul.mubr.msk.f32.vlgmr.msra.gmra.mrb[2].mxu0 %vm203_vm3, %v21766_v40 }
 0x16d   :  { %20588 = vmatpush3.bf16.msra.mxu1 %v20585_v34  ;;  %19048 = vmatprep.mubr.msk.f32.mxu1 %vm203_vm3, %v21764_v39  ;;  %v17570_v34 = vld [vmem:[%s24225_s2 + $0x138] sm:$0xff] }
 0x16e   :  { %20590 = vmatprep.subr.bf16.mxu1 %v20589_v41  ;;  %19074 = vmatprep.mubr.msk.f32.mxu0 %vm21563_vm4, %v21562_v22  ;;  %v20621_v35 = vpack.c.bf16 %v17570_v34, %v17569_v33  ;;  %v17585_v33 = vld [vmem:[%s24225_s2 + $0x58] sm:$0xff] }
 0x171   :  { %20592 = vmatpush3.bf16.msra.mxu1 %v20589_v41  ;;  %v20609_v41 = vpack.c.bf16 %v17562_v38, %v17561_v37  ;;  %v17594_v37 = vld [vmem:[%s24225_s2 + $0x140] sm:$0xff]  ;;  %v17595_v38 = vld [vmem:[%s24225_s2 + $0x148] sm:$0xff] }
 0x172   :  { %19062 = vmatprep.subr.mxu1 %v21562_v22 }
 0x174   :  { %19049 = vmatmul.mubr.msk.f32.vlgmr.msra.gmra.mrb[2].mxu1 %vm203_vm3, %v21766_v40 }
 0x175   :  { %19064 = vmatprep.mubr.msk.f32.mxu1 %vm21563_vm4, %v21562_v22 }
 0x23f   :  { %v19039_v46 = vpop.f32.mrb[0].mxu1  ;;  %v19061_v47 = vpop.f32.mrb[2].mxu0 }
 0x240   :  { %v276_v48 = vpop.f32.mrb[1].mxu1  ;;  %v444_v49 = vpop.f32.mrb[3].mxu0  ;;  %v282_v60 = vadd.f32 %v19039_v46, %v202_v55  ;;  %v450_v61 = vadd.f32 %v19061_v47, %v377_v45  ;;  %v17563_v46 = vld [vmem:[%s24225_s2 + $0xb0] sm:$0xff]  ;;  %v17564_v47 = vld [vmem:[%s24225_s2 + $0xb8] sm:$0xff] }
 0x241   :  { %v445_v51 = vadd.f32 %v444_v49, %v377_v45  ;;  %v277_v58 = vadd.f32 %v276_v48, %v202_v55  ;;  %v20613_v49 = vpack.c.bf16 %v17564_v47, %v17563_v46  ;;  %v20641_v46 = vpack.c.bf16 %v17595_v38, %v17594_v37  ;;  %v17596_v47 = vld [vmem:[%s24225_s2 + $0x150] sm:$0xff]  ;;  %v17609_v38 = vld [vmem:[%s24225_s2 + $0x60] sm:$0xff] }
 0x243   :  { %19073 = vmatpush3.msra.mxu0 %v445_v51 }
 0x244   :  { %19082 = vmatprep.subr.mxu0 %v776_v36 }
 0x247   :  { %v19050_v54 = vpop.f32.mrb[2].mxu1 }
 0x248   :  { %v360_v56 = vpop.f32.mrb[3].mxu1  ;;  %v366_v59 = vadd.f32 %v19050_v54, %v293_v53 }
 0x249   :  { %v361_v57 = vadd.f32 %v360_v56, %v293_v53  ;;  %v21885_v56 = vsub.s32 1, %v21785_v42 }
 0x24b   :  { %19063 = vmatpush3.xpose.msk.msra.mxu1 %vm453_vm5, %v361_v57  ;;  %v1036_v57 = vrot.slane %v21793_v44, %v21885_v56 }
 0x24c   :  { %19067 = vmatprep.subr.mxu1 %v21562_v22 }
 0x24e   :  { %19065 = vmatmul.mubr.msk.f32.vlgmr.msra.gmra.mrb[4].mxu1 %vm453_vm5, %v277_v58 }
 0x24f   :  { %19068 = vmatpush3.xpose.msk.msra.mxu1 %vm453_vm5, %v366_v59  ;;  %19069 = vmatprep.mubr.msk.f32.mxu1 %vm21563_vm4, %v21562_v22 }
 0x250   :  { %19077 = vmatprep.subr.mxu1 %v21562_v22 }
 0x252   :  { %19070 = vmatmul.mubr.msk.f32.vlgmr.msra.gmra.mrb[6].mxu1 %vm453_vm5, %v282_v60 }
 0x253   :  { %19078 = vmatpush3.msra.mxu1 %v450_v61  ;;  %19079 = vmatprep.mubr.msk.f32.mxu1 %vm21563_vm4, %v21562_v22 }
 0x254   :  { %20602 = vmatprep.subr.bf16.mxu1 %v20601_v18 }
 0x321   :  { %v526_v62 = vpop.f32.mrb[4].mxu1 }
 0x322   :  { %v606_v63 = vmul.f32 0.35355338, %v526_v62  ;;  %v19066_v0 = vpop.f32.mrb[5].mxu1  ;;  %v21890_v62 = vsub.s32 5, %v21785_v42 }
 0x324   :  { %v608_v1 = vsel %vm453_vm5, %v606_v63, -inf }
 0x325   :  { %609 = vmax.xlane.f32.xlu1 %v608_v1  ;;  %v602_v2 = vpop.f32.mrb[6].mxu1  ;;  %v868_v1 = vrot.slane %v21803_v52, %v21885_v56 }
 0x326   :  { %v607_v3 = vmul.f32 0.35355338, %v602_v2  ;;  %v19071_v4 = vpop.f32.mrb[7].mxu1 }
 0x328   :  { %v611_v5 = vsel %vm453_vm5, %v607_v3, -inf }
 0x329   :  { %612 = vmax.xlane.f32.xlu1 %v611_v5 }
 0x3b2   :  { %v610_v6 = vpop.xlane.xlu1 %609 }
 0x3b3   :  { %v614_v7 = vsub.f32 %v606_v63, %v610_v6  ;;  %v952_v63 = vrot.slane %v21803_v52, %v21890_v62 }
 0x3b5   :  { %v616_v8 = vmul.f32 1.442695, %v614_v7 }
 0x3b6   :  { %v613_v9 = vpop.xlane.xlu1 %612 }
 0x3b7   :  { %21318 = vpow2.f32 %v616_v8  ;;  %v615_v10 = vsub.f32 %v607_v3, %v613_v9 }
 0x3b9   :  { %v618_v11 = vmul.f32 1.442695, %v615_v10 }
 0x3bb   :  { %21320 = vpow2.f32 %v618_v11 }
 0x3c1   :  { %v21319_v12 = vpop.eup %21318 }
 0x3c2   :  { %v620_v13 = vsel %vm453_vm5, %v21319_v12, 0.0 }
 0x3c3   :  { %621 = vadd.xlane.f32.xlu0 %v620_v13 }
 0x3c5   :  { %v21321_v14 = vpop.eup %21320 }
 0x3c6   :  { %v623_v15 = vsel %vm453_vm5, %v21321_v14, 0.0 }
 0x3c7   :  { %624 = vadd.xlane.f32.xlu1 %v623_v15 }
 0x450   :  { %v622_v19 = vpop.xlane.xlu0 %621 }
 0x451   :  { %21322 = vrcp.f32 %v622_v19 }
 0x454   :  { %v625_v21 = vpop.xlane.xlu1 %624 }
 0x455   :  { %21324 = vrcp.f32 %v625_v21 }
 0x45b   :  { %v21323_v23 = vpop.eup %21322 }
 0x45c   :  { %v627_v24 = vmul.f32 %v21323_v23, %v21319_v12 }
 0x45e   :  { %19075 = vmatmul.mubr.msk.f32.vlgmr.msra.gmra.mrb[4].mxu0 %vm453_vm5, %v627_v24 }
 0x45f   :  { %v21325_v27 = vpop.eup %21324  ;;  %19083 = vmatpush3.msra.mxu0 %v776_v36 }
 0x460   :  { %v629_v28 = vmul.f32 %v21325_v27, %v21321_v14  ;;  %20610 = vmatprep.subr.bf16.mxu0 %v20609_v41  ;;  %v17582_v27 = vld [vmem:[%s24225_s2 + $0x40] sm:$0xff] }
 0x462   :  { %19080 = vmatmul.mubr.msk.f32.vlgmr.msra.gmra.mrb[8].mxu1 %vm453_vm5, %v629_v28  ;;  %v17583_v28 = vld [vmem:[%s24225_s2 + $0x48] sm:$0xff] }
 0x463   :  { %20604 = vmatpush3.bf16.msra.mxu1 %v20601_v18  ;;  %19095 = vmatprep.mubr.msk.f32.mxu1 %vm203_vm3, %v21764_v39 }
 0x464   :  { %20606 = vmatprep.subr.bf16.mxu1 %v20605_v29 }
 0x467   :  { %20608 = vmatpush3.bf16.msra.mxu1 %v20605_v29  ;;  %v20625_v29 = vpack.c.bf16 %v17583_v28, %v17582_v27 }
 0x468   :  { %20618 = vmatprep.subr.bf16.mxu1 %v20617_v32 }
 0x46a   :  { %19096 = vmatmul.mubr.msk.f32.vlgmr.msra.gmra.mrb[10].mxu1 %vm203_vm3, %v21766_v40 }
 0x46b   :  { %20620 = vmatpush3.bf16.msra.mxu1 %v20617_v32  ;;  %19117 = vmatprep.mubr.msk.f32.mxu1 %vm203_vm3, %v21764_v39  ;;  %v17584_v32 = vld [vmem:[%s24225_s2 + $0x50] sm:$0xff] }
 0x46c   :  { %20622 = vmatprep.subr.bf16.mxu1 %v20621_v35  ;;  %v20629_v36 = vpack.c.bf16 %v17585_v33, %v17584_v32 }
 0x46f   :  { %20624 = vmatpush3.bf16.msra.mxu1 %v20621_v35 }
 0x470   :  { %19130 = vmatprep.subr.mxu1 %v21562_v22 }
 0x472   :  { %19118 = vmatmul.mubr.msk.f32.vlgmr.msra.gmra.mrb[12].mxu1 %vm203_vm3, %v21766_v40 }
 0x473   :  { %19132 = vmatprep.mubr.msk.f32.mxu1 %vm21563_vm4, %v21562_v22 }
 0x531   :  { %v699_v45 = vpop.f32.mrb[4].mxu0 }
 0x532   :  { %v19076_v48 = vpop.f32.mrb[5].mxu0  ;;  %19084 = vmatprep.mubr.msk.f32.mxu0 %vm453_vm5, %v699_v45 }
 0x533   :  { %v17597_v48 = vld [vmem:[%s24225_s2 + $0x158] sm:$0xff] }
 0x535   :  { %v772_v51 = vpop.f32.mrb[8].mxu1 }
 0x536   :  { %v19081_v53 = vpop.f32.mrb[9].mxu1  ;;  %19085 = vmatmul.mubr.msk.f32.vlgmr.msra.gmra.mrb[6].mxu0 %vm453_vm5, %v772_v51  ;;  %v17579_v51 = vld [vmem:[%s24227_s7 + $0x8] sm:$0xff] }
 0x537   :  { %20612 = vmatpush3.bf16.msra.mxu0 %v20609_v41  ;;  %19106 = vmatprep.mubr.msk.f32.mxu0 %vm203_vm3, %v21764_v39  ;;  %v17588_v53 = vld [vmem:[%s24225_s2 + $0xc0] sm:$0xff] }
 0x538   :  { %20614 = vmatprep.subr.bf16.mxu0 %v20613_v49 }
 0x53b   :  { %20616 = vmatpush3.bf16.msra.mxu0 %v20613_v49  ;;  %v20645_v49 = vpack.c.bf16 %v17597_v48, %v17596_v47 }
 0x53c   :  { %19120 = vmatprep.subr.mxu0 %v21562_v22 }
 0x53d   :  { %v19097_v54 = vpop.f32.mrb[10].mxu1 }
 0x53e   :  { %v935_v55 = vpop.f32.mrb[11].mxu1  ;;  %19107 = vmatmul.mubr.msk.f32.vlgmr.msra.gmra.mrb[8].mxu0 %vm203_vm3, %v21766_v40  ;;  %v941_v6 = vadd.f32 %v19097_v54, %v868_v1  ;;  %v17589_v54 = vld [vmem:[%s24225_s2 + $0xc8] sm:$0xff] }
 0x53f   :  { %19122 = vmatprep.mubr.msk.f32.mxu0 %vm21563_vm4, %v21562_v22  ;;  %v936_v4 = vadd.f32 %v935_v55, %v868_v1  ;;  %v20633_v55 = vpack.c.bf16 %v17589_v54, %v17588_v53  ;;  %v17612_v53 = vld [vmem:[%s24225_s2 + $0x78] sm:$0xff] }
 0x545   :  { %v19119_v58 = vpop.f32.mrb[12].mxu1 }
 0x546   :  { %v1109_v59 = vadd.f32 %v19119_v58, %v1036_v57  ;;  %v1103_v60 = vpop.f32.mrb[13].mxu1  ;;  %v17590_v58 = vld [vmem:[%s24225_s2 + $0xd0] sm:$0xff] }
 0x547   :  { %v1104_v61 = vadd.f32 %v1103_v60, %v1036_v57 }
 0x549   :  { %19131 = vmatpush3.msra.mxu1 %v1104_v61 }
 0x54a   :  { %20626 = vmatprep.subr.bf16.mxu1 %v20625_v29 }
 0x611   :  { %v19108_v0 = vpop.f32.mrb[8].mxu0 }
 0x612   :  { %v1019_v2 = vpop.f32.mrb[9].mxu0  ;;  %v1025_v5 = vadd.f32 %v19108_v0, %v952_v63 }
 0x613   :  { %v1020_v3 = vadd.f32 %v1019_v2, %v952_v63 }
 0x615   :  { %19121 = vmatpush3.xpose.msk.msra.mxu0 %vm453_vm5, %v1020_v3 }
 0x616   :  { %19125 = vmatprep.subr.mxu0 %v21562_v22 }
 0x618   :  { %19123 = vmatmul.mubr.msk.f32.vlgmr.msra.gmra.mrb[10].mxu0 %vm453_vm5, %v936_v4 }
 0x619   :  { %19126 = vmatpush3.xpose.msk.msra.mxu0 %vm453_vm5, %v1025_v5  ;;  %19127 = vmatprep.mubr.msk.f32.mxu0 %vm21563_vm4, %v21562_v22  ;;  %v21972_v5 = vsub.s32 6, %v21785_v42 }
 0x61a   :  { %19135 = vmatprep.subr.mxu0 %v21562_v22 }
 0x61c   :  { %19128 = vmatmul.mubr.msk.f32.vlgmr.msra.gmra.mrb[12].mxu0 %vm453_vm5, %v941_v6  ;;  %v21975_v6 = vsub.s32 2, %v21785_v42 }
 0x61d   :  { %19136 = vmatpush3.msra.mxu0 %v1109_v59  ;;  %19137 = vmatprep.mubr.msk.f32.mxu0 %vm21563_vm4, %v21562_v22  ;;  %v17591_v59 = vld [vmem:[%s24225_s2 + $0xd8] sm:$0xff] }
 0x61e   :  { %19140 = vmatprep.subr.mxu0 %v17579_v51  ;;  %v20637_v61 = vpack.c.bf16 %v17591_v59, %v17590_v58  ;;  %v17621_v58 = vld [vmem:[%s24225_s2 + $0x160] sm:$0xff]  ;;  %v17622_v59 = vld [vmem:[%s24225_s2 + $0x168] sm:$0xff] }
 0x6eb   :  { %v1184_v7 = vpop.f32.mrb[10].mxu0 }
 0x6ec   :  { %v1264_v8 = vmul.f32 0.35355338, %v1184_v7  ;;  %v19124_v9 = vpop.f32.mrb[11].mxu0  ;;  %v1611_v7 = vrot.slane %v21803_v52, %v21972_v5 }
 0x6ee   :  { %v1266_v10 = vsel %vm453_vm5, %v1264_v8, -inf }
 0x6ef   :  { %1267 = vmax.xlane.f32.xlu1 %v1266_v10  ;;  %v1260_v11 = vpop.f32.mrb[12].mxu0  ;;  %v1695_v10 = vrot.slane %v21793_v44, %v21975_v6 }
 0x6f0   :  { %v1265_v12 = vmul.f32 0.35355338, %v1260_v11  ;;  %v19129_v13 = vpop.f32.mrb[13].mxu0 }
 0x6f2   :  { %v1269_v14 = vsel %vm453_vm5, %v1265_v12, -inf }
 0x6f3   :  { %1270 = vmax.xlane.f32.xlu1 %v1269_v14 }
 0x77c   :  { %v1268_v15 = vpop.xlane.xlu1 %1267 }
 0x77d   :  { %v1272_v16 = vsub.f32 %v1264_v8, %v1268_v15  ;;  %v1527_v8 = vrot.slane %v21803_v52, %v21975_v6 }
 0x77f   :  { %v1274_v17 = vmul.f32 1.442695, %v1272_v16 }
 0x780   :  { %v1271_v18 = vpop.xlane.xlu1 %1270 }
 0x781   :  { %21326 = vpow2.f32 %v1274_v17  ;;  %v1273_v19 = vsub.f32 %v1265_v12, %v1271_v18 }
 0x783   :  { %v1276_v21 = vmul.f32 1.442695, %v1273_v19 }
 0x785   :  { %21328 = vpow2.f32 %v1276_v21 }
 0x78b   :  { %v21327_v23 = vpop.eup %21326 }
 0x78c   :  { %v1278_v24 = vsel %vm453_vm5, %v21327_v23, 0.0 }
 0x78d   :  { %1279 = vadd.xlane.f32.xlu1 %v1278_v24 }
 0x78f   :  { %v21329_v25 = vpop.eup %21328 }
 0x790   :  { %v1281_v26 = vsel %vm453_vm5, %v21329_v25, 0.0 }
 0x791   :  { %1282 = vadd.xlane.f32.xlu1 %v1281_v26 }
 0x81a   :  { %v1280_v30 = vpop.xlane.xlu1 %1279 }
 0x81b   :  { %21330 = vrcp.f32 %v1280_v30 }
 0x81e   :  { %v1283_v31 = vpop.xlane.xlu1 %1282 }
 0x81f   :  { %21332 = vrcp.f32 %v1283_v31 }
 0x825   :  { %v21331_v34 = vpop.eup %21330 }
 0x826   :  { %v1285_v35 = vmul.f32 %v21331_v34, %v21327_v23 }
 0x828   :  { %19133 = vmatmul.mubr.msk.f32.vlgmr.msra.gmra.mrb[14].mxu1 %vm453_vm5, %v1285_v35 }
 0x829   :  { %v21333_v41 = vpop.eup %21332  ;;  %20628 = vmatpush3.bf16.msra.mxu1 %v20625_v29  ;;  %19153 = vmatprep.mubr.msk.f32.mxu1 %vm203_vm3, %v21764_v39 }
 0x82a   :  { %20630 = vmatprep.subr.bf16.mxu1 %v20629_v36  ;;  %v1287_v45 = vmul.f32 %v21333_v41, %v21329_v25  ;;  %v17610_v41 = vld [vmem:[%s24225_s2 + $0x68] sm:$0xff] }
 0x82c   :  { %19138 = vmatmul.mubr.msk.f32.vlgmr.msra.gmra.mrb[14].mxu0 %vm453_vm5, %v1287_v45  ;;  %v20649_v45 = vpack.c.bf16 %v17610_v41, %v17609_v38 }
 0x82d   :  { %20632 = vmatpush3.bf16.msra.mxu1 %v20629_v36  ;;  %19141 = vmatpush3.msra.mxu0 %v17579_v51  ;;  %v17611_v51 = vld [vmem:[%s24225_s2 + $0x70] sm:$0xff] }
 0x82e   :  { %20642 = vmatprep.subr.bf16.mxu1 %v20641_v46  ;;  %20634 = vmatprep.subr.bf16.mxu0 %v20633_v55 }
 0x830   :  { %19154 = vmatmul.mubr.msk.f32.vlgmr.msra.gmra.mrb[16].mxu1 %vm203_vm3, %v21766_v40 }
 0x831   :  { %20644 = vmatpush3.bf16.msra.mxu1 %v20641_v46  ;;  %19175 = vmatprep.mubr.msk.f32.mxu1 %vm203_vm3, %v21764_v39 }
 0x832   :  { %20646 = vmatprep.subr.bf16.mxu1 %v20645_v49 }
 0x835   :  { %20648 = vmatpush3.bf16.msra.mxu1 %v20645_v49 }
 0x836   :  { %19183 = vmatprep.subr.mxu1 %v21562_v22 }
 0x838   :  { %19176 = vmatmul.mubr.msk.f32.vlgmr.msra.gmra.mrb[18].mxu1 %vm203_vm3, %v21766_v40 }
 0x839   :  { %19185 = vmatprep.mubr.msk.f32.mxu1 %vm21563_vm4, %v21562_v22 }
 0x8fb   :  { %v1357_v57 = vpop.f32.mrb[14].mxu1 }
 0x8fc   :  { %v19134_v60 = vpop.f32.mrb[15].mxu1  ;;  %19142 = vmatprep.mubr.msk.f32.mxu0 %vm453_vm5, %v1357_v57  ;;  %v20653_v57 = vpack.c.bf16 %v17612_v53, %v17611_v51 }
 0x8fd   :  { %v20665_v60 = vpack.c.bf16 %v17622_v59, %v17621_v58 }
 0x8ff   :  { %v1430_v63 = vpop.f32.mrb[14].mxu0 }
 0x900   :  { %v19139_v0 = vpop.f32.mrb[15].mxu0  ;;  %19143 = vmatmul.mubr.msk.f32.vlgmr.msra.gmra.mrb[6].mxu0 %vm453_vm5, %v1430_v63  ;;  %v17624_v63 = vld [vmem:[%s24225_s2 + $0x178] sm:$0xff] }
 0x901   :  { %20636 = vmatpush3.bf16.msra.mxu0 %v20633_v55  ;;  %19164 = vmatprep.mubr.msk.f32.mxu0 %vm203_vm3, %v21764_v39 }
 0x902   :  { %20638 = vmatprep.subr.bf16.mxu0 %v20637_v61 }
 0x903   :  { %v19155_v1 = vpop.f32.mrb[16].mxu1 }
 0x904   :  { %v1594_v2 = vpop.f32.mrb[17].mxu1  ;;  %v1600_v14 = vadd.f32 %v19155_v1, %v1527_v8  ;;  %v17606_v1 = vld [vmem:[%s24227_s7 + $0x10] sm:$0xff] }
 0x905   :  { %20640 = vmatpush3.bf16.msra.mxu0 %v20637_v61  ;;  %v1595_v15 = vadd.f32 %v1594_v2, %v1527_v8  ;;  %v17623_v61 = vld [vmem:[%s24225_s2 + $0x170] sm:$0xff]  ;;  %v17615_v2 = vld [vmem:[%s24225_s2 + $0xe0] sm:$0xff] }
 0x906   :  { %19178 = vmatprep.subr.mxu0 %v21562_v22  ;;  %v20669_v0 = vpack.c.bf16 %v17624_v63, %v17623_v61  ;;  %v17617_v8 = vld [vmem:[%s24225_s2 + $0xf0] sm:$0xff]  ;;  %v17633_v63 = vld [vmem:[%s24227_s7 + $0x18] sm:$0xff] }
 0x908   :  { %19165 = vmatmul.mubr.msk.f32.vlgmr.msra.gmra.mrb[16].mxu0 %vm203_vm3, %v21766_v40 }
 0x909   :  { %19180 = vmatprep.mubr.msk.f32.mxu0 %vm21563_vm4, %v21562_v22 }
 0x90b   :  { %v19177_v3 = vpop.f32.mrb[18].mxu1 }
 0x90c   :  { %v1762_v4 = vpop.f32.mrb[19].mxu1  ;;  %v1768_v16 = vadd.f32 %v19177_v3, %v1695_v10  ;;  %v17616_v3 = vld [vmem:[%s24225_s2 + $0xe8] sm:$0xff] }
 0x90d   :  { %v1763_v17 = vadd.f32 %v1762_v4, %v1695_v10  ;;  %v20657_v4 = vpack.c.bf16 %v17616_v3, %v17615_v2 }
 0x9db   :  { %v19166_v9 = vpop.f32.mrb[16].mxu0 }
 0x9dc   :  { %v1684_v11 = vadd.f32 %v19166_v9, %v1611_v7  ;;  %v1678_v12 = vpop.f32.mrb[17].mxu0  ;;  %v17618_v9 = vld [vmem:[%s24225_s2 + $0xf8] sm:$0xff] }
 0x9dd   :  { %v1679_v13 = vadd.f32 %v1678_v12, %v1611_v7 }
 0x9de   :  { %19184 = vmatpush3.xpose.msk.msra.mxu1 %vm453_vm5, %v1684_v11  ;;  %v20661_v11 = vpack.c.bf16 %v17618_v9, %v17617_v8 }
 0x9df   :  { %19179 = vmatpush3.xpose.msk.msra.mxu0 %vm453_vm5, %v1679_v13  ;;  %19193 = vmatprep.subr.mxu1 %v21562_v22 }
 0x9e0   :  { %19188 = vmatprep.subr.mxu0 %v21562_v22 }
 0x9e1   :  { %19186 = vmatmul.mubr.msk.f32.vlgmr.msra.gmra.mrb[20].mxu1 %vm453_vm5, %v1600_v14 }
 0x9e2   :  { %19181 = vmatmul.mubr.msk.f32.vlgmr.msra.gmra.mrb[18].mxu0 %vm453_vm5, %v1595_v15  ;;  %19194 = vmatpush3.msra.mxu1 %v1768_v16  ;;  %v22059_v16 = vsub.s32 3, %v21785_v42 }
 0x9e3   :  { %19189 = vmatpush3.msra.mxu0 %v1763_v17  ;;  %19190 = vmatprep.mubr.msk.f32.mxu0 %vm21563_vm4, %v21562_v22 }
 0x9e4   :  { %19195 = vmatprep.mubr.msk.f32.mxu1 %vm21563_vm4, %v21562_v22  ;;  %20650 = vmatprep.subr.bf16.mxu1 %v20649_v45  ;;  %v2354_v17 = vrot.slane %v21793_v44, %v22059_v16 }
 0x9e5   :  { %19198 = vmatprep.subr.mxu0 %v17606_v1 }
 0xab4   :  { %v1919_v18 = vpop.f32.mrb[20].mxu1 }
 0xab5   :  { %v1843_v19 = vpop.f32.mrb[18].mxu0  ;;  %v19187_v21 = vpop.f32.mrb[21].mxu1  ;;  %v1924_v25 = vmul.f32 0.35355338, %v1919_v18 }
 0xab6   :  { %v1923_v23 = vmul.f32 0.35355338, %v1843_v19  ;;  %v19182_v24 = vpop.f32.mrb[19].mxu0 }
 0xab7   :  { %v1928_v27 = vsel %vm453_vm5, %v1924_v25, -inf  ;;  %v22064_v24 = vsub.s32 7, %v21785_v42 }
 0xab8   :  { %v1925_v26 = vsel %vm453_vm5, %v1923_v23, -inf }
 0xab9   :  { %1926 = vmax.xlane.f32.xlu1 %v1925_v26 }
 0xabd   :  { %1929 = vmax.xlane.f32.xlu1 %v1928_v27  ;;  %v2186_v27 = vrot.slane %v21803_v52, %v22059_v16 }
 0xb46   :  { %v1927_v28 = vpop.xlane.xlu1 %1926 }
 0xb47   :  { %v1931_v29 = vsub.f32 %v1923_v23, %v1927_v28 }
 0xb49   :  { %v1933_v30 = vmul.f32 1.442695, %v1931_v29 }
 0xb4a   :  { %v1930_v31 = vpop.xlane.xlu1 %1929 }
 0xb4b   :  { %21334 = vpow2.f32 %v1933_v30  ;;  %v1932_v32 = vsub.f32 %v1924_v25, %v1930_v31  ;;  %v2270_v25 = vrot.slane %v21803_v52, %v22064_v24 }
 0xb4d   :  { %v1935_v33 = vmul.f32 1.442695, %v1932_v32 }
 0xb4f   :  { %21336 = vpow2.f32 %v1935_v33 }
 0xb55   :  { %v21335_v34 = vpop.eup %21334 }
 0xb56   :  { %v1937_v35 = vsel %vm453_vm5, %v21335_v34, 0.0 }
 0xb57   :  { %1938 = vadd.xlane.f32.xlu1 %v1937_v35 }
 0xb59   :  { %v21337_v36 = vpop.eup %21336 }
 0xb5a   :  { %v1940_v37 = vsel %vm453_vm5, %v21337_v36, 0.0 }
 0xb5b   :  { %1941 = vadd.xlane.f32.xlu0 %v1940_v37 }
 0xbe4   :  { %v1939_v46 = vpop.xlane.xlu1 %1938 }
 0xbe5   :  { %21338 = vrcp.f32 %v1939_v46 }
 0xbe8   :  { %v1942_v47 = vpop.xlane.xlu0 %1941 }
 0xbe9   :  { %21340 = vrcp.f32 %v1942_v47 }
 0xbef   :  { %v21339_v48 = vpop.eup %21338 }
 0xbf0   :  { %v1944_v49 = vmul.f32 %v21339_v48, %v21335_v34 }
 0xbf2   :  { %19191 = vmatmul.mubr.msk.f32.vlgmr.msra.gmra.mrb[20].mxu0 %vm453_vm5, %v1944_v49 }
 0xbf3   :  { %v21341_v54 = vpop.eup %21340  ;;  %19199 = vmatpush3.msra.mxu0 %v17606_v1 }
 0xbf4   :  { %v1946_v55 = vmul.f32 %v21341_v54, %v21337_v36  ;;  %20658 = vmatprep.subr.bf16.mxu0 %v20657_v4 }
 0xbf6   :  { %19196 = vmatmul.mubr.msk.f32.vlgmr.msra.gmra.mrb[22].mxu1 %vm453_vm5, %v1946_v55 }
 0xbf7   :  { %20652 = vmatpush3.bf16.msra.mxu1 %v20649_v45  ;;  %19211 = vmatprep.mubr.msk.f32.mxu1 %vm203_vm3, %v21764_v39 }
 0xbf8   :  { %20654 = vmatprep.subr.bf16.mxu1 %v20653_v57 }
 0xbfb   :  { %20656 = vmatpush3.bf16.msra.mxu1 %v20653_v57 }
 0xbfc   :  { %20666 = vmatprep.subr.bf16.mxu1 %v20665_v60 }
 0xbfe   :  { %19212 = vmatmul.mubr.msk.f32.vlgmr.msra.gmra.mrb[24].mxu1 %vm203_vm3, %v21766_v40 }
 0xbff   :  { %20668 = vmatpush3.bf16.msra.mxu1 %v20665_v60  ;;  %19233 = vmatprep.mubr.msk.f32.mxu1 %vm203_vm3, %v21764_v39 }
 0xc00   :  { %20670 = vmatprep.subr.bf16.mxu1 %v20669_v0 }
 0xc03   :  { %20672 = vmatpush3.bf16.msra.mxu1 %v20669_v0 }
 0xc04   :  { %19246 = vmatprep.subr.mxu1 %v21562_v22 }
 0xc06   :  { %19234 = vmatmul.mubr.msk.f32.vlgmr.msra.gmra.mrb[26].mxu1 %vm203_vm3, %v21766_v40 }
 0xc07   :  { %19248 = vmatprep.mubr.msk.f32.mxu1 %vm21563_vm4, %v21562_v22 }
 0xcc5   :  { %v2016_v7 = vpop.f32.mrb[20].mxu0 }
 0xcc6   :  { %v19192_v10 = vpop.f32.mrb[21].mxu0  ;;  %19200 = vmatprep.mubr.msk.f32.mxu0 %vm453_vm5, %v2016_v7 }
 0xcc9   :  { %v2089_v12 = vpop.f32.mrb[22].mxu1 }
 0xcca   :  { %v19197_v13 = vpop.f32.mrb[23].mxu1  ;;  %19201 = vmatmul.mubr.msk.f32.vlgmr.msra.gmra.mrb[6].mxu0 %vm453_vm5, %v2089_v12 }
 0xccb   :  { %20660 = vmatpush3.bf16.msra.mxu0 %v20657_v4  ;;  %19222 = vmatprep.mubr.msk.f32.mxu0 %vm203_vm3, %v21764_v39  ;;  %v22094_v4 = vld [vmem:[%s24228_s30] sm:$0x3f] }
 0xccc   :  { %20662 = vmatprep.subr.bf16.mxu0 %v20661_v11  ;;  %v193_v7 = vrot.slane %v22094_v4, %v21788_v43 }
 0xccf   :  { %20664 = vmatpush3.bf16.msra.mxu0 %v20661_v11 }
 0xcd0   :  { %19236 = vmatprep.subr.mxu0 %v21562_v22 }
 0xcd1   :  { %v19213_v14 = vpop.f32.mrb[24].mxu1 }
 0xcd2   :  { %v2253_v15 = vpop.f32.mrb[25].mxu1  ;;  %19223 = vmatmul.mubr.msk.f32.vlgmr.msra.gmra.mrb[22].mxu0 %vm203_vm3, %v21766_v40  ;;  %v2259_v42 = vadd.f32 %v19213_v14, %v2186_v27 }
 0xcd3   :  { %19238 = vmatprep.mubr.msk.f32.mxu0 %vm21563_vm4, %v21562_v22  ;;  %v2254_v44 = vadd.f32 %v2253_v15, %v2186_v27 }
 0xcd9   :  { %v19235_v18 = vpop.f32.mrb[26].mxu1 }
 0xcda   :  { %v2427_v19 = vadd.f32 %v19235_v18, %v2354_v17  ;;  %v2421_v21 = vpop.f32.mrb[27].mxu1 }
 0xcdb   :  { %v2422_v23 = vadd.f32 %v2421_v21, %v2354_v17 }
 0xcdd   :  { %19247 = vmatpush3.msra.mxu1 %v2422_v23 }
 0xda5   :  { %v19224_v26 = vpop.f32.mrb[22].mxu0 }
 0xda6   :  { %v2337_v28 = vpop.f32.mrb[23].mxu0  ;;  %v2343_v30 = vadd.f32 %v19224_v26, %v2270_v25 }
 0xda7   :  { %v2338_v29 = vadd.f32 %v2337_v28, %v2270_v25 }
 0xda9   :  { %19237 = vmatpush3.xpose.msk.msra.mxu0 %vm453_vm5, %v2338_v29  ;;  %v2879_v29 = vld [vmem:[%s24229_s9 + $0x8] sm:$0xff] }
 0xdaa   :  { %19241 = vmatprep.subr.mxu0 %v21562_v22 }
 0xdac   :  { %19239 = vmatmul.mubr.msk.f32.vlgmr.msra.gmra.mrb[24].mxu0 %vm453_vm5, %v2254_v44 }
 0xdad   :  { %19242 = vmatpush3.xpose.msk.msra.mxu0 %vm453_vm5, %v2343_v30  ;;  %19243 = vmatprep.mubr.msk.f32.mxu0 %vm21563_vm4, %v21562_v22  ;;  %v2880_v30 = vld [vmem:[%s24229_s9 + $0x10] sm:$0xff] }
 0xdae   :  { %19251 = vmatprep.subr.mxu0 %v21562_v22 }
 0xdb0   :  { %19244 = vmatmul.mubr.msk.f32.vlgmr.msra.gmra.mrb[26].mxu0 %vm453_vm5, %v2259_v42  ;;  %v2881_v42 = vld [vmem:[%s24229_s9 + $0x18] sm:$0xff] }
 0xdb1   :  { %19252 = vmatpush3.msra.mxu0 %v2427_v19  ;;  %19253 = vmatprep.mubr.msk.f32.mxu0 %vm21563_vm4, %v21562_v22 }
 0xdb2   :  { %19256 = vmatprep.subr.mxu0 %v17633_v63 }
 0xe7f   :  { %v2502_v52 = vpop.f32.mrb[24].mxu0 }
 0xe80   :  { %v2582_v31 = vmul.f32 0.35355338, %v2502_v52  ;;  %v19240_v32 = vpop.f32.mrb[25].mxu0  ;;  %v20677_v52 = vpack.c.bf16 %v2881_v42, %v2880_v30 }
 0xe81   :  { %v2973_v32 = vld [vmem:[%s24230_s26 + $0x8] sm:$0xff] }
 0xe82   :  { %v2584_v33 = vsel %vm453_vm5, %v2582_v31, -inf }
 0xe83   :  { %2585 = vmax.xlane.f32.xlu1 %v2584_v33  ;;  %v2578_v34 = vpop.f32.mrb[26].mxu0  ;;  %v2974_v33 = vld [vmem:[%s24230_s26 + $0x10] sm:$0xff] }
 0xe84   :  { %v2583_v35 = vmul.f32 0.35355338, %v2578_v34  ;;  %v19245_v36 = vpop.f32.mrb[27].mxu0 }
 0xe86   :  { %v2587_v37 = vsel %vm453_vm5, %v2583_v35, -inf }
 0xe87   :  { %2588 = vmax.xlane.f32.xlu0 %v2587_v37  ;;  %v2976_v37 = vld [vmem:[%s24230_s26 + $0x20] sm:$0xff] }
 0xf10   :  { %v2586_v38 = vpop.xlane.xlu1 %2585 }
 0xf11   :  { %v2590_v41 = vsub.f32 %v2582_v31, %v2586_v38  ;;  %v2972_v31 = vld [vmem:[%s24230_s26] sm:$0xff]  ;;  %v2977_v38 = vld [vmem:[%s24230_s26 + $0x28] sm:$0xff] }
 0xf12   :  { %v20681_v34 = vpack.c.bf16 %v2973_v32, %v2972_v31  ;;  %v17644_v32 = vld [vmem:[%s24225_s2 + $0x180] sm:$0xff] }
 0xf13   :  { %v2592_v45 = vmul.f32 1.442695, %v2590_v41  ;;  %v20689_v41 = vpack.c.bf16 %v2977_v38, %v2976_v37  ;;  %v17646_v38 = vld [vmem:[%s24225_s2 + $0x190] sm:$0xff] }
 0xf14   :  { %v2589_v46 = vpop.xlane.xlu0 %2588 }
 0xf15   :  { %21342 = vpow2.f32 %v2592_v45  ;;  %v2591_v47 = vsub.f32 %v2583_v35, %v2589_v46  ;;  %v2975_v35 = vld [vmem:[%s24230_s26 + $0x18] sm:$0xff] }
 0xf16   :  { %v20685_v36 = vpack.c.bf16 %v2975_v35, %v2974_v33  ;;  %v17645_v33 = vld [vmem:[%s24225_s2 + $0x188] sm:$0xff]  ;;  %v17656_v35 = vld [vmem:[%s24225_s2 + $0x280] sm:$0xff] }
 0xf17   :  { %v2594_v48 = vmul.f32 1.442695, %v2591_v47 }
 0xf19   :  { %21344 = vpow2.f32 %v2594_v48 }
 0xf1f   :  { %v21343_v49 = vpop.eup %21342 }
 0xf20   :  { %v2596_v51 = vsel %vm453_vm5, %v21343_v49, 0.0 }
 0xf21   :  { %2597 = vadd.xlane.f32.xlu1 %v2596_v51 }
 0xf23   :  { %v21345_v53 = vpop.eup %21344 }
 0xf24   :  { %v2599_v54 = vsel %vm453_vm5, %v21345_v53, 0.0 }
 0xf25   :  { %2600 = vadd.xlane.f32.xlu0 %v2599_v54 }
 0xfae   :  { %v2598_v55 = vpop.xlane.xlu1 %2597 }
 0xfaf   :  { %21346 = vrcp.f32 %v2598_v55 }
 0xfb2   :  { %v2601_v57 = vpop.xlane.xlu0 %2600 }
 0xfb3   :  { %21348 = vrcp.f32 %v2601_v57 }
 0xfb9   :  { %v21347_v58 = vpop.eup %21346 }
 0xfba   :  { %v2603_v59 = vmul.f32 %v21347_v58, %v21343_v49 }
 0xfbc   :  { %19249 = vmatmul.mubr.msk.f32.vlgmr.msra.gmra.mrb[28].mxu1 %vm453_vm5, %v2603_v59  ;;  %v2875_v59 = vrot.slane %v22094_v4, %v21975_v6 }
 0xfbd   :  { %v21349_v60 = vpop.eup %21348 }
 0xfbe   :  { %v2605_v61 = vmul.f32 %v21349_v60, %v21345_v53  ;;  %v2869_v53 = vrot.slane %v22094_v4, %v21885_v56 }
 0xfc0   :  { %19254 = vmatmul.mubr.msk.f32.vlgmr.msra.gmra.mrb[28].mxu0 %vm453_vm5, %v2605_v61 }
 0xfc1   :  { %19257 = vmatpush3.msra.mxu0 %v17633_v63 }
 0xfc2   :  { %20682 = vmatprep.subr.bf16.mxu0 %v20681_v34 }
0x108f   :  { %v2675_v0 = vpop.f32.mrb[28].mxu1 }
0x1090   :  { %v19250_v1 = vpop.f32.mrb[29].mxu1  ;;  %19258 = vmatprep.mubr.msk.f32.mxu0 %vm453_vm5, %v2675_v0 }
0x1091   :  { %v2978_v1 = vld [vmem:[%s24230_s26 + $0x30] sm:$0xff] }
0x1093   :  { %v2748_v2 = vpop.f32.mrb[28].mxu0 }
0x1094   :  { %v19255_v3 = vpop.f32.mrb[29].mxu0  ;;  %19259 = vmatmul.mubr.msk.f32.vlgmr.msra.gmra.mrb[6].mxu0 %vm453_vm5, %v2748_v2  ;;  %v2979_v2 = vld [vmem:[%s24230_s26 + $0x38] sm:$0xff] }
0x1095   :  { %20684 = vmatpush3.bf16.msra.mxu0 %v20681_v34  ;;  %v20693_v3 = vpack.c.bf16 %v2979_v2, %v2978_v1  ;;  %v20697_v34 = vpack.c.bf16 %v17645_v33, %v17644_v32  ;;  %v3103_v2 = vrot.slane %v22094_v4, %v21798_v50 }
0x1096   :  { %20686 = vmatprep.subr.bf16.mxu0 %v20685_v36 }
0x1099   :  { %20688 = vmatpush3.bf16.msra.mxu0 %v20685_v36  ;;  %v17657_v36 = vld [vmem:[%s24225_s2 + $0x288] sm:$0xff] }
0x109a   :  { %20690 = vmatprep.subr.bf16.mxu0 %v20689_v41  ;;  %v20713_v37 = vpack.c.bf16 %v17657_v36, %v17656_v35 }
0x109d   :  { %20692 = vmatpush3.bf16.msra.mxu0 %v20689_v41  ;;  %v17647_v41 = vld [vmem:[%s24225_s2 + $0x198] sm:$0xff] }
0x109e   :  { %20694 = vmatprep.subr.bf16.mxu0 %v20693_v3 }
0x10a1   :  { %20696 = vmatpush3.bf16.msra.mxu0 %v20693_v3 }
0x10a2   :  { %20714 = vmatprep.subr.bf16.mxu0 %v20713_v37 }
0x1167   :  { %v19260_v8 = vpop.f32.mrb[6].mxu0 }
0x1168   :  { %v21265_v9 = vadd.f32 %v19260_v8, %v193_v7  ;;  %v2826_v10 = vpop.f32.mrb[7].mxu0 }
0x1169   :  { %v21266_v11 = vadd.f32 %v2826_v10, %v193_v7  ;;  %v17636_v7 = vld [vmem:[%s24231_s0] ss:$0 sm:$0xff] }
0x116a   :  { %v2838_v12 = vadd.f32 %v21265_v9, %v21766_v40 }
0x116b   :  { %v2837_v13 = vadd.f32 %v21266_v11, %v21764_v39  ;;  %v2878_v39 = vld [vmem:[%s24229_s9] sm:$0xff] }
0x116c   :  { %v2842_v14 = vsel %vm203_vm3, %v2838_v12, 0.0  ;;  %v20673_v44 = vpack.c.bf16 %v2879_v29, %v2878_v39 }
0x116d   :  { %2843 = vadd.xlane.f32.xlu0 %v2842_v14  ;;  %v2839_v15 = vsel %vm203_vm3, %v2837_v13, 0.0  ;;  %v2983_v14 = vrot.slane %v22094_v4, %v21890_v62 }
0x116e   :  { %2840 = vadd.xlane.f32.xlu1 %v2839_v15  ;;  %20674 = vmatprep.subr.bf16.mxu1 %v20673_v44 }
0x116f   :  { %20676 = vmatpush3.bf16.msra.mxu1 %v20673_v44 }
0x1170   :  { %20678 = vmatprep.subr.bf16.mxu1 %v20677_v52 }
0x1173   :  { %20680 = vmatpush3.bf16.msra.mxu1 %v20677_v52 }
0x1174   :  { %20698 = vmatprep.subr.bf16.mxu1 %v20697_v34 }
0x11fa   :  { %v2844_v17 = vpop.xlane.xlu0 %2843 }
0x11fb   :  { %v2847_v18 = vmul.f32 0.03125, %v2844_v17  ;;  %v2841_v19 = vpop.xlane.xlu1 %2840 }
0x11fc   :  { %v2846_v21 = vmul.f32 0.03125, %v2841_v19 }
0x11fd   :  { %v2849_v23 = vsub.f32 %v2838_v12, %v2847_v18 }
0x11fe   :  { %v2848_v25 = vsub.f32 %v2837_v13, %v2846_v21 }
0x11ff   :  { %v2851_v26 = vmul.f32 %v2849_v23, %v2849_v23 }
0x1200   :  { %v2850_v27 = vmul.f32 %v2848_v25, %v2848_v25 }
0x1201   :  { %v2855_v28 = vsel %vm203_vm3, %v2851_v26, 0.0 }
0x1202   :  { %2856 = vadd.xlane.f32.xlu0 %v2855_v28  ;;  %v2852_v40 = vsel %vm203_vm3, %v2850_v27, 0.0 }
0x1203   :  { %2853 = vadd.xlane.f32.xlu1 %v2852_v40 }
0x128f   :  { %v2857_v45 = vpop.xlane.xlu0 %2856 }
0x1290   :  { %v2859_v46 = vmul.f32 0.03125, %v2857_v45  ;;  %v2854_v47 = vpop.xlane.xlu1 %2853  ;;  %v20701_v45 = vpack.c.bf16 %v17647_v41, %v17646_v38 }
0x1291   :  { %v2858_v48 = vmul.f32 0.03125, %v2854_v47  ;;  %v17659_v47 = vld [vmem:[%s24225_s2 + $0x298] sm:$0xff] }
0x1292   :  { %v2861_v49 = vadd.f32 1e-05, %v2859_v46  ;;  %v17658_v46 = vld [vmem:[%s24225_s2 + $0x290] sm:$0xff] }
0x1293   :  { %v2860_v51 = vadd.f32 1e-05, %v2858_v48  ;;  %v20717_v48 = vpack.c.bf16 %v17659_v47, %v17658_v46 }
0x1294   :  { %21350 = vrsqrt.f32 %v2861_v49  ;;  %v17650_v49 = vld [vmem:[%s24225_s2 + $0x200] sm:$0xff] }
0x1295   :  { %21352 = vrsqrt.f32 %v2860_v51  ;;  %v17651_v51 = vld [vmem:[%s24225_s2 + $0x208] sm:$0xff] }
0x129e   :  { %v21351_v54 = vpop.eup %21350 }
0x129f   :  { %v21353_v55 = vpop.eup %21352  ;;  %v2865_v57 = vmul.f32 %v21351_v54, %v2849_v23 }
0x12a0   :  { %v2864_v58 = vmul.f32 %v21353_v55, %v2848_v25 }
0x12a1   :  { %v2871_v60 = vmul.f32 %v2869_v53, %v2865_v57 }
0x12a2   :  { %v2870_v61 = vmul.f32 %v2869_v53, %v2864_v58  ;;  %v20705_v53 = vpack.c.bf16 %v17651_v51, %v17650_v49 }
0x12a3   :  { %v2877_v0 = vadd.f32 %v2875_v59, %v2871_v60 }
0x12a4   :  { %v2876_v63 = vadd.f32 %v2875_v59, %v2870_v61  ;;  %v3097_v61 = vrot.slane %v22094_v4, %v22059_v16  ;;  %v22222_v4 = vld [vmem:[%s24226_s10 + $0x18] sm:$0xf] }
0x12a6   :  { %19269 = vmatprep.mubr.msk.f32.mxu1 %vm203_vm3, %v2876_v63 }
0x12a7   :  { %19270 = vmatmul.mubr.msk.f32.vlgmr.msra.gmra.mrb[30].mxu1 %vm203_vm3, %v2877_v0 }
0x12a8   :  { %20700 = vmatpush3.bf16.msra.mxu1 %v20697_v34 }
0x12a9   :  { %20702 = vmatprep.subr.bf16.mxu1 %v20701_v45 }
0x12ac   :  { %20704 = vmatpush3.bf16.msra.mxu1 %v20701_v45 }
0x12ad   :  { %20706 = vmatprep.subr.bf16.mxu1 %v20705_v53 }
0x137a   :  { %v19271_v8 = vpop.f32.mrb[30].mxu1 }
0x137b   :  { %v2967_v9 = vadd.f32 %v19271_v8, %v17636_v7  ;;  %v2961_v10 = vpop.f32.mrb[31].mxu1 }
0x137c   :  { %v2962_v11 = vadd.f32 %v17636_v7, %v2961_v10  ;;  %v17653_v10 = vld [vmem:[%s24225_s2 + $0x218] sm:$0xff] }
0x137d   :  { %v2971_v13 = vmax.f32 %v2967_v9, 0.0  ;;  %v17652_v9 = vld [vmem:[%s24225_s2 + $0x210] sm:$0xff] }
0x137e   :  { %v2970_v12 = vmax.f32 %v2962_v11, 0.0 }
0x1380   :  { %19288 = vmatprep.mubr.msk.f32.mxu0 %vm2984_vm6, %v2970_v12 }
0x1381   :  { %19289 = vmatmul.mubr.msk.f32.vlgmr.msra.gmra.mrb[30].mxu0 %vm2984_vm6, %v2971_v13  ;;  %v20709_v13 = vpack.c.bf16 %v17653_v10, %v17652_v9  ;;  %v17685_v10 = vld [vmem:[%s24225_s2 + $0x2b0] sm:$0xff] }
0x1382   :  { %20716 = vmatpush3.bf16.msra.mxu0 %v20713_v37 }
0x1383   :  { %20718 = vmatprep.subr.bf16.mxu0 %v20717_v48 }
0x1386   :  { %20720 = vmatpush3.bf16.msra.mxu0 %v20717_v48 }
0x1387   :  { %19334 = vmatprep.subr.mxu0 %v21562_v22 }
0x1454   :  { %v19290_v15 = vpop.f32.mrb[30].mxu0 }
0x1455   :  { %v3063_v17 = vadd.f32 %v19290_v15, %v2983_v14  ;;  %v3057_v18 = vpop.f32.mrb[31].mxu0 }
0x1456   :  { %v3058_v19 = vadd.f32 %v3057_v18, %v2983_v14  ;;  %v3298_v14 = vrot.slane %v22222_v4, %v21788_v43 }
0x1457   :  { %v3067_v21 = vadd.f32 %v3063_v17, %v2877_v0 }
0x1458   :  { %v3066_v23 = vadd.f32 %v3058_v19, %v2876_v63 }
0x1459   :  { %v3071_v25 = vsel %vm203_vm3, %v3067_v21, 0.0 }
0x145a   :  { %3072 = vadd.xlane.f32.xlu0 %v3071_v25  ;;  %v3068_v26 = vsel %vm203_vm3, %v3066_v23, 0.0 }
0x145b   :  { %3069 = vadd.xlane.f32.xlu1 %v3068_v26 }
0x14e7   :  { %v3073_v27 = vpop.xlane.xlu0 %3072 }
0x14e8   :  { %v3075_v28 = vmul.f32 0.03125, %v3073_v27  ;;  %v3070_v40 = vpop.xlane.xlu1 %3069 }
0x14e9   :  { %v3074_v39 = vmul.f32 0.03125, %v3070_v40 }
0x14ea   :  { %v3077_v29 = vsub.f32 %v3067_v21, %v3075_v28 }
0x14eb   :  { %v3076_v44 = vsub.f32 %v3066_v23, %v3074_v39  ;;  %v22229_v23 = vld [vmem:[%s24226_s10 + $0x10] sm:$0xff] }
0x14ec   :  { %v3079_v30 = vmul.f32 %v3077_v29, %v3077_v29  ;;  %v3214_v25 = vrot.slane %v22229_v23, %v21798_v50  ;;  %v3124_v27 = vrot.slane %v22229_v23, %v21788_v43 }
0x14ed   :  { %v3078_v42 = vmul.f32 %v3076_v44, %v3076_v44 }
0x14ee   :  { %v3083_v52 = vsel %vm203_vm3, %v3079_v30, 0.0 }
0x14ef   :  { %3084 = vadd.xlane.f32.xlu0 %v3083_v52  ;;  %v3080_v31 = vsel %vm203_vm3, %v3078_v42, 0.0 }
0x14f0   :  { %3081 = vadd.xlane.f32.xlu1 %v3080_v31 }
0x157c   :  { %v3085_v54 = vpop.xlane.xlu0 %3084 }
0x157d   :  { %v3087_v55 = vmul.f32 0.03125, %v3085_v54  ;;  %v3082_v57 = vpop.xlane.xlu1 %3081  ;;  %v17671_v54 = vld [vmem:[%s24225_s2 + $0x1a0] sm:$0xff] }
0x157e   :  { %v3086_v58 = vmul.f32 0.03125, %v3082_v57 }
0x157f   :  { %v3089_v59 = vadd.f32 1e-05, %v3087_v55  ;;  %v17672_v55 = vld [vmem:[%s24225_s2 + $0x1a8] sm:$0xff] }
0x1580   :  { %v3088_v60 = vadd.f32 1e-05, %v3086_v58  ;;  %v20721_v57 = vpack.c.bf16 %v17672_v55, %v17671_v54 }
0x1581   :  { %21354 = vrsqrt.f32 %v3089_v59 }
0x1582   :  { %21356 = vrsqrt.f32 %v3088_v60 }
0x158b   :  { %v21355_v63 = vpop.eup %21354 }
0x158c   :  { %v21357_v0 = vpop.eup %21356  ;;  %v3093_v1 = vmul.f32 %v21355_v63, %v3077_v29  ;;  %v17673_v63 = vld [vmem:[%s24225_s2 + $0x1b0] sm:$0xff] }
0x158d   :  { %v3092_v3 = vmul.f32 %v21357_v0, %v3076_v44  ;;  %v17674_v0 = vld [vmem:[%s24225_s2 + $0x1b8] sm:$0xff] }
0x158e   :  { %v3099_v7 = vmul.f32 %v3097_v61, %v3093_v1 }
0x158f   :  { %v3098_v8 = vmul.f32 %v3097_v61, %v3092_v3  ;;  %v20725_v3 = vpack.c.bf16 %v17674_v0, %v17673_v63 }
0x1590   :  { %v22200_v12 = vadd.f32 %v3103_v2, %v3099_v7  ;;  %v17683_v7 = vld [vmem:[%s24225_s2 + $0x2a0] sm:$0xff] }
0x1591   :  { %v22198_v11 = vadd.f32 %v3103_v2, %v3098_v8  ;;  %v17684_v8 = vld [vmem:[%s24225_s2 + $0x2a8] sm:$0xff] }
0x1592   :  { %v20737_v9 = vpack.c.bf16 %v17684_v8, %v17683_v7  ;;  %v17698_v7 = vld [vmem:[%s24225_s2 + $0x1c0] sm:$0xff]  ;;  %v17699_v8 = vld [vmem:[%s24225_s2 + $0x1c8] sm:$0xff] }
0x1593   :  { %19299 = vmatprep.mubr.msk.f32.mxu1 %vm203_vm3, %v22198_v11  ;;  %19321 = vmatprep.mubr.msk.f32.mxu0 %vm203_vm3, %v22198_v11 }
0x1594   :  { %19300 = vmatmul.mubr.msk.f32.vlgmr.msra.gmra.mrb[32].mxu1 %vm203_vm3, %v22200_v12  ;;  %19322 = vmatmul.mubr.msk.f32.vlgmr.msra.gmra.mrb[32].mxu0 %vm203_vm3, %v22200_v12 }
0x1595   :  { %20708 = vmatpush3.bf16.msra.mxu1 %v20705_v53  ;;  %19310 = vmatprep.mubr.msk.f32.mxu1 %vm203_vm3, %v22198_v11 }
0x1596   :  { %20710 = vmatprep.subr.bf16.mxu1 %v20709_v13  ;;  %19336 = vmatprep.mubr.msk.f32.mxu0 %vm21563_vm4, %v21562_v22 }
0x1599   :  { %20712 = vmatpush3.bf16.msra.mxu1 %v20709_v13  ;;  %v17686_v13 = vld [vmem:[%s24225_s2 + $0x2b8] sm:$0xff] }
0x159a   :  { %19324 = vmatprep.subr.mxu1 %v21562_v22 }
0x159c   :  { %19311 = vmatmul.mubr.msk.f32.vlgmr.msra.gmra.mrb[34].mxu1 %vm203_vm3, %v22200_v12 }
0x159d   :  { %19326 = vmatprep.mubr.msk.f32.mxu1 %vm21563_vm4, %v21562_v22 }
0x1667   :  { %v19301_v15 = vpop.f32.mrb[32].mxu1  ;;  %v19323_v17 = vpop.f32.mrb[32].mxu0 }
0x1668   :  { %v3197_v18 = vpop.f32.mrb[33].mxu1  ;;  %v3365_v19 = vpop.f32.mrb[33].mxu0  ;;  %v3203_v44 = vadd.f32 %v19301_v15, %v3124_v27  ;;  %v3371_v30 = vadd.f32 %v19323_v17, %v3298_v14  ;;  %v17668_v15 = vld [vmem:[%s24227_s7 + $0x20] sm:$0xff] }
0x1669   :  { %v3366_v21 = vadd.f32 %v3365_v19, %v3298_v14  ;;  %v3198_v39 = vadd.f32 %v3197_v18, %v3124_v27  ;;  %v20741_v14 = vpack.c.bf16 %v17686_v13, %v17685_v10  ;;  %v17677_v17 = vld [vmem:[%s24225_s2 + $0x220] sm:$0xff]  ;;  %v17678_v18 = vld [vmem:[%s24225_s2 + $0x228] sm:$0xff] }
0x166a   :  { %v20729_v19 = vpack.c.bf16 %v17678_v18, %v17677_v17 }
0x166b   :  { %19335 = vmatpush3.msra.mxu0 %v3366_v21 }
0x166c   :  { %19344 = vmatprep.subr.mxu0 %v17668_v15 }
0x166f   :  { %v19312_v26 = vpop.f32.mrb[34].mxu1 }
0x1670   :  { %v3281_v28 = vpop.f32.mrb[35].mxu1  ;;  %v3287_v29 = vadd.f32 %v19312_v26, %v3214_v25  ;;  %v17680_v26 = vld [vmem:[%s24225_s2 + $0x238] sm:$0xff] }
0x1671   :  { %v3282_v40 = vadd.f32 %v3281_v28, %v3214_v25  ;;  %v17679_v25 = vld [vmem:[%s24225_s2 + $0x230] sm:$0xff] }
0x1672   :  { %v20733_v28 = vpack.c.bf16 %v17680_v26, %v17679_v25  ;;  %v17711_v25 = vld [vmem:[%s24225_s2 + $0x2c8] sm:$0xff] }
0x1673   :  { %19325 = vmatpush3.xpose.msk.msra.mxu1 %vm453_vm5, %v3282_v40 }
0x1674   :  { %19329 = vmatprep.subr.mxu1 %v21562_v22 }
0x1676   :  { %19327 = vmatmul.mubr.msk.f32.vlgmr.msra.gmra.mrb[36].mxu1 %vm453_vm5, %v3198_v39 }
0x1677   :  { %19330 = vmatpush3.xpose.msk.msra.mxu1 %vm453_vm5, %v3287_v29  ;;  %19331 = vmatprep.mubr.msk.f32.mxu1 %vm21563_vm4, %v21562_v22 }
0x1678   :  { %19339 = vmatprep.subr.mxu1 %v21562_v22 }
0x167a   :  { %19332 = vmatmul.mubr.msk.f32.vlgmr.msra.gmra.mrb[38].mxu1 %vm453_vm5, %v3203_v44 }
0x167b   :  { %19340 = vmatpush3.msra.mxu1 %v3371_v30  ;;  %19341 = vmatprep.mubr.msk.f32.mxu1 %vm21563_vm4, %v21562_v22  ;;  %v3957_v30 = vrot.slane %v22222_v4, %v21885_v56 }
0x167c   :  { %20722 = vmatprep.subr.bf16.mxu1 %v20721_v57 }
0x1749   :  { %v3446_v42 = vpop.f32.mrb[36].mxu1 }
0x174a   :  { %v3526_v52 = vmul.f32 0.35355338, %v3446_v42  ;;  %v19328_v31 = vpop.f32.mrb[37].mxu1 }
0x174c   :  { %v3528_v32 = vsel %vm453_vm5, %v3526_v52, -inf }
0x174d   :  { %3529 = vmax.xlane.f32.xlu1 %v3528_v32  ;;  %v3522_v33 = vpop.f32.mrb[38].mxu1 }
0x174e   :  { %v3527_v34 = vmul.f32 0.35355338, %v3522_v33  ;;  %v19333_v35 = vpop.f32.mrb[39].mxu1  ;;  %v3873_v33 = vrot.slane %v22229_v23, %v21890_v62 }
0x174f   :  { %v3789_v35 = vrot.slane %v22229_v23, %v21885_v56 }
0x1750   :  { %v3531_v36 = vsel %vm453_vm5, %v3527_v34, -inf }
0x1751   :  { %3532 = vmax.xlane.f32.xlu0 %v3531_v36 }
0x17da   :  { %v3530_v37 = vpop.xlane.xlu1 %3529 }
0x17db   :  { %v3534_v38 = vsub.f32 %v3526_v52, %v3530_v37 }
0x17dd   :  { %v3536_v41 = vmul.f32 1.442695, %v3534_v38 }
0x17de   :  { %v3533_v45 = vpop.xlane.xlu0 %3532 }
0x17df   :  { %21358 = vpow2.f32 %v3536_v41  ;;  %v3535_v46 = vsub.f32 %v3527_v34, %v3533_v45 }
0x17e1   :  { %v3538_v47 = vmul.f32 1.442695, %v3535_v46 }
0x17e3   :  { %21360 = vpow2.f32 %v3538_v47 }
0x17e9   :  { %v21359_v48 = vpop.eup %21358 }
0x17ea   :  { %v3540_v49 = vsel %vm453_vm5, %v21359_v48, 0.0 }
0x17eb   :  { %3541 = vadd.xlane.f32.xlu1 %v3540_v49 }
0x17ed   :  { %v21361_v51 = vpop.eup %21360 }
0x17ee   :  { %v3543_v53 = vsel %vm453_vm5, %v21361_v51, 0.0 }
0x17ef   :  { %3544 = vadd.xlane.f32.xlu0 %v3543_v53 }
0x1878   :  { %v3542_v58 = vpop.xlane.xlu1 %3541 }
0x1879   :  { %21362 = vrcp.f32 %v3542_v58 }
0x187c   :  { %v3545_v59 = vpop.xlane.xlu0 %3544 }
0x187d   :  { %21364 = vrcp.f32 %v3545_v59 }
0x1883   :  { %v21363_v60 = vpop.eup %21362 }
0x1884   :  { %v3547_v61 = vmul.f32 %v21363_v60, %v21359_v48 }
0x1886   :  { %19337 = vmatmul.mubr.msk.f32.vlgmr.msra.gmra.mrb[34].mxu0 %vm453_vm5, %v3547_v61 }
0x1887   :  { %v21365_v1 = vpop.eup %21364  ;;  %19345 = vmatpush3.msra.mxu0 %v17668_v15  ;;  %v17701_v15 = vld [vmem:[%s24225_s2 + $0x1d8] sm:$0xff] }
0x1888   :  { %v3549_v2 = vmul.f32 %v21365_v1, %v21361_v51  ;;  %20730 = vmatprep.subr.bf16.mxu0 %v20729_v19 }
0x188a   :  { %19342 = vmatmul.mubr.msk.f32.vlgmr.msra.gmra.mrb[40].mxu1 %vm453_vm5, %v3549_v2 }
0x188b   :  { %20724 = vmatpush3.bf16.msra.mxu1 %v20721_v57  ;;  %19357 = vmatprep.mubr.msk.f32.mxu1 %vm203_vm3, %v22198_v11 }
0x188c   :  { %20726 = vmatprep.subr.bf16.mxu1 %v20725_v3 }
0x188f   :  { %20728 = vmatpush3.bf16.msra.mxu1 %v20725_v3 }
0x1890   :  { %20738 = vmatprep.subr.bf16.mxu1 %v20737_v9 }
0x1892   :  { %19358 = vmatmul.mubr.msk.f32.vlgmr.msra.gmra.mrb[42].mxu1 %vm203_vm3, %v22200_v12 }
0x1893   :  { %20740 = vmatpush3.bf16.msra.mxu1 %v20737_v9  ;;  %19379 = vmatprep.mubr.msk.f32.mxu1 %vm203_vm3, %v22198_v11  ;;  %v20745_v9 = vpack.c.bf16 %v17699_v8, %v17698_v7 }
0x1894   :  { %20742 = vmatprep.subr.bf16.mxu1 %v20741_v14 }
0x1897   :  { %20744 = vmatpush3.bf16.msra.mxu1 %v20741_v14  ;;  %v17700_v14 = vld [vmem:[%s24225_s2 + $0x1d0] sm:$0xff] }
0x1898   :  { %19392 = vmatprep.subr.mxu1 %v21562_v22 }
0x189a   :  { %19380 = vmatmul.mubr.msk.f32.vlgmr.msra.gmra.mrb[44].mxu1 %vm203_vm3, %v22200_v12 }
0x189b   :  { %19394 = vmatprep.mubr.msk.f32.mxu1 %vm21563_vm4, %v21562_v22 }
0x1959   :  { %v3619_v21 = vpop.f32.mrb[34].mxu0 }
0x195a   :  { %v19338_v27 = vpop.f32.mrb[35].mxu0  ;;  %19346 = vmatprep.mubr.msk.f32.mxu0 %vm453_vm5, %v3619_v21  ;;  %v17710_v21 = vld [vmem:[%s24225_s2 + $0x2c0] sm:$0xff] }
0x195d   :  { %v3692_v40 = vpop.f32.mrb[40].mxu1 }
0x195e   :  { %v19343_v39 = vpop.f32.mrb[41].mxu1  ;;  %19347 = vmatmul.mubr.msk.f32.vlgmr.msra.gmra.mrb[36].mxu0 %vm453_vm5, %v3692_v40  ;;  %v17712_v40 = vld [vmem:[%s24225_s2 + $0x2d0] sm:$0xff] }
0x195f   :  { %20732 = vmatpush3.bf16.msra.mxu0 %v20729_v19  ;;  %19368 = vmatprep.mubr.msk.f32.mxu0 %vm203_vm3, %v22198_v11  ;;  %v20749_v19 = vpack.c.bf16 %v17701_v15, %v17700_v14  ;;  %v17713_v39 = vld [vmem:[%s24225_s2 + $0x2d8] sm:$0xff] }
0x1960   :  { %20734 = vmatprep.subr.bf16.mxu0 %v20733_v28 }
0x1963   :  { %20736 = vmatpush3.bf16.msra.mxu0 %v20733_v28  ;;  %v20761_v28 = vpack.c.bf16 %v17711_v25, %v17710_v21 }
0x1964   :  { %19382 = vmatprep.subr.mxu0 %v21562_v22 }
0x1965   :  { %v19359_v29 = vpop.f32.mrb[42].mxu1 }
0x1966   :  { %v3856_v44 = vpop.f32.mrb[43].mxu1  ;;  %19369 = vmatmul.mubr.msk.f32.vlgmr.msra.gmra.mrb[38].mxu0 %vm203_vm3, %v22200_v12  ;;  %v3862_v45 = vadd.f32 %v19359_v29, %v3789_v35  ;;  %v20765_v29 = vpack.c.bf16 %v17713_v39, %v17712_v40  ;;  %v17722_v40 = vld [vmem:[%s24227_s7 + $0x30] sm:$0xff] }
0x1967   :  { %19384 = vmatprep.mubr.msk.f32.mxu0 %vm21563_vm4, %v21562_v22  ;;  %v3857_v38 = vadd.f32 %v3856_v44, %v3789_v35  ;;  %v17695_v44 = vld [vmem:[%s24227_s7 + $0x28] sm:$0xff] }
0x196d   :  { %v19381_v42 = vpop.f32.mrb[44].mxu1 }
0x196e   :  { %v4030_v52 = vadd.f32 %v19381_v42, %v3957_v30  ;;  %v4024_v31 = vpop.f32.mrb[45].mxu1  ;;  %v17705_v42 = vld [vmem:[%s24225_s2 + $0x248] sm:$0xff] }
0x196f   :  { %v4025_v32 = vadd.f32 %v4024_v31, %v3957_v30  ;;  %v17704_v30 = vld [vmem:[%s24225_s2 + $0x240] sm:$0xff] }
0x1971   :  { %19393 = vmatpush3.msra.mxu1 %v4025_v32  ;;  %v17706_v32 = vld [vmem:[%s24225_s2 + $0x250] sm:$0xff] }
0x1972   :  { %20746 = vmatprep.subr.bf16.mxu1 %v20745_v9 }
0x1a39   :  { %v19370_v34 = vpop.f32.mrb[38].mxu0 }
0x1a3a   :  { %v3940_v36 = vpop.f32.mrb[39].mxu0  ;;  %v3946_v41 = vadd.f32 %v19370_v34, %v3873_v33 }
0x1a3b   :  { %v3941_v37 = vadd.f32 %v3940_v36, %v3873_v33  ;;  %v17707_v33 = vld [vmem:[%s24225_s2 + $0x258] sm:$0xff] }
0x1a3c   :  { %v20757_v35 = vpack.c.bf16 %v17707_v33, %v17706_v32 }
0x1a3d   :  { %19383 = vmatpush3.xpose.msk.msra.mxu0 %vm453_vm5, %v3941_v37 }
0x1a3e   :  { %19387 = vmatprep.subr.mxu0 %v21562_v22 }
0x1a40   :  { %19385 = vmatmul.mubr.msk.f32.vlgmr.msra.gmra.mrb[40].mxu0 %vm453_vm5, %v3857_v38 }
0x1a41   :  { %19388 = vmatpush3.xpose.msk.msra.mxu0 %vm453_vm5, %v3946_v41  ;;  %19389 = vmatprep.mubr.msk.f32.mxu0 %vm21563_vm4, %v21562_v22 }
0x1a42   :  { %19397 = vmatprep.subr.mxu0 %v21562_v22 }
0x1a44   :  { %19390 = vmatmul.mubr.msk.f32.vlgmr.msra.gmra.mrb[42].mxu0 %vm453_vm5, %v3862_v45 }
0x1a45   :  { %19398 = vmatpush3.msra.mxu0 %v4030_v52  ;;  %19399 = vmatprep.mubr.msk.f32.mxu0 %vm21563_vm4, %v21562_v22  ;;  %v20753_v52 = vpack.c.bf16 %v17705_v42, %v17704_v30  ;;  %v17728_v30 = vld [vmem:[%s24225_s2 + $0x1f8] sm:$0xff] }
0x1a46   :  { %19402 = vmatprep.subr.mxu0 %v17695_v44 }
0x1b13   :  { %v4105_v46 = vpop.f32.mrb[40].mxu0 }
0x1b14   :  { %v4185_v47 = vmul.f32 0.35355338, %v4105_v46  ;;  %v19386_v48 = vpop.f32.mrb[41].mxu0 }
0x1b15   :  { %v4448_v48 = vrot.slane %v22229_v23, %v21975_v6 }
0x1b16   :  { %v4187_v49 = vsel %vm453_vm5, %v4185_v47, -inf }
0x1b17   :  { %4188 = vmax.xlane.f32.xlu1 %v4187_v49  ;;  %v4181_v51 = vpop.f32.mrb[42].mxu0 }
0x1b18   :  { %v4186_v53 = vmul.f32 0.35355338, %v4181_v51  ;;  %v19391_v54 = vpop.f32.mrb[43].mxu0  ;;  %v4616_v51 = vrot.slane %v22222_v4, %v21975_v6 }
0x1b1a   :  { %v4190_v55 = vsel %vm453_vm5, %v4186_v53, -inf }
0x1b1b   :  { %4191 = vmax.xlane.f32.xlu0 %v4190_v55 }
0x1ba4   :  { %v4189_v57 = vpop.xlane.xlu1 %4188 }
0x1ba5   :  { %v4193_v58 = vsub.f32 %v4185_v47, %v4189_v57  ;;  %v4532_v47 = vrot.slane %v22229_v23, %v21972_v5 }
0x1ba7   :  { %v4195_v59 = vmul.f32 1.442695, %v4193_v58 }
0x1ba8   :  { %v4192_v60 = vpop.xlane.xlu0 %4191 }
0x1ba9   :  { %21366 = vpow2.f32 %v4195_v59  ;;  %v4194_v61 = vsub.f32 %v4186_v53, %v4192_v60 }
0x1bab   :  { %v4197_v63 = vmul.f32 1.442695, %v4194_v61 }
0x1bad   :  { %21368 = vpow2.f32 %v4197_v63 }
0x1bb3   :  { %v21367_v0 = vpop.eup %21366 }
0x1bb4   :  { %v4199_v1 = vsel %vm453_vm5, %v21367_v0, 0.0 }
0x1bb5   :  { %4200 = vadd.xlane.f32.xlu1 %v4199_v1 }
0x1bb7   :  { %v21369_v2 = vpop.eup %21368 }
0x1bb8   :  { %v4202_v3 = vsel %vm453_vm5, %v21369_v2, 0.0 }
0x1bb9   :  { %4203 = vadd.xlane.f32.xlu0 %v4202_v3 }
0x1c42   :  { %v4201_v10 = vpop.xlane.xlu1 %4200 }
0x1c43   :  { %21370 = vrcp.f32 %v4201_v10 }
0x1c46   :  { %v4204_v13 = vpop.xlane.xlu0 %4203 }
0x1c47   :  { %21372 = vrcp.f32 %v4204_v13 }
0x1c4d   :  { %v21371_v17 = vpop.eup %21370 }
0x1c4e   :  { %v4206_v18 = vmul.f32 %v21371_v17, %v21367_v0 }
0x1c50   :  { %19395 = vmatmul.mubr.msk.f32.vlgmr.msra.gmra.mrb[46].mxu1 %vm453_vm5, %v4206_v18 }
0x1c51   :  { %v21373_v26 = vpop.eup %21372  ;;  %20748 = vmatpush3.bf16.msra.mxu1 %v20745_v9  ;;  %19415 = vmatprep.mubr.msk.f32.mxu1 %vm203_vm3, %v22198_v11 }
0x1c52   :  { %20750 = vmatprep.subr.bf16.mxu1 %v20749_v19  ;;  %v4208_v27 = vmul.f32 %v21373_v26, %v21369_v2  ;;  %v17725_v26 = vld [vmem:[%s24225_s2 + $0x1e0] sm:$0xff] }
0x1c54   :  { %19400 = vmatmul.mubr.msk.f32.vlgmr.msra.gmra.mrb[44].mxu0 %vm453_vm5, %v4208_v27  ;;  %v17726_v27 = vld [vmem:[%s24225_s2 + $0x1e8] sm:$0xff] }
0x1c55   :  { %20752 = vmatpush3.bf16.msra.mxu1 %v20749_v19  ;;  %19403 = vmatpush3.msra.mxu0 %v17695_v44  ;;  %v17727_v44 = vld [vmem:[%s24225_s2 + $0x1f0] sm:$0xff] }
0x1c56   :  { %20762 = vmatprep.subr.bf16.mxu1 %v20761_v28  ;;  %20754 = vmatprep.subr.bf16.mxu0 %v20753_v52  ;;  %v20773_v32 = vpack.c.bf16 %v17728_v30, %v17727_v44 }
0x1c58   :  { %19416 = vmatmul.mubr.msk.f32.vlgmr.msra.gmra.mrb[48].mxu1 %vm203_vm3, %v22200_v12 }
0x1c59   :  { %20764 = vmatpush3.bf16.msra.mxu1 %v20761_v28  ;;  %19437 = vmatprep.mubr.msk.f32.mxu1 %vm203_vm3, %v22198_v11  ;;  %v20769_v28 = vpack.c.bf16 %v17726_v27, %v17725_v26 }
0x1c5a   :  { %20766 = vmatprep.subr.bf16.mxu1 %v20765_v29 }
0x1c5d   :  { %20768 = vmatpush3.bf16.msra.mxu1 %v20765_v29 }
0x1c5e   :  { %19445 = vmatprep.subr.mxu1 %v21562_v22 }
0x1c60   :  { %19438 = vmatmul.mubr.msk.f32.vlgmr.msra.gmra.mrb[50].mxu1 %vm203_vm3, %v22200_v12 }
0x1c61   :  { %19447 = vmatprep.mubr.msk.f32.mxu1 %vm21563_vm4, %v21562_v22 }
0x1d23   :  { %v4278_v31 = vpop.f32.mrb[46].mxu1 }
0x1d24   :  { %v19396_v34 = vpop.f32.mrb[47].mxu1  ;;  %19404 = vmatprep.mubr.msk.f32.mxu0 %vm453_vm5, %v4278_v31 }
0x1d25   :  { %v17737_v34 = vld [vmem:[%s24225_s2 + $0x2e0] sm:$0xff] }
0x1d27   :  { %v4351_v36 = vpop.f32.mrb[44].mxu0 }
0x1d28   :  { %v19401_v37 = vpop.f32.mrb[45].mxu0  ;;  %19405 = vmatmul.mubr.msk.f32.vlgmr.msra.gmra.mrb[36].mxu0 %vm453_vm5, %v4351_v36 }
0x1d29   :  { %20756 = vmatpush3.bf16.msra.mxu0 %v20753_v52  ;;  %19426 = vmatprep.mubr.msk.f32.mxu0 %vm203_vm3, %v22198_v11  ;;  %v17739_v37 = vld [vmem:[%s24225_s2 + $0x2f0] sm:$0xff] }
0x1d2a   :  { %20758 = vmatprep.subr.bf16.mxu0 %v20757_v35 }
0x1d2b   :  { %v19417_v38 = vpop.f32.mrb[48].mxu1 }
0x1d2c   :  { %v4515_v41 = vpop.f32.mrb[49].mxu1  ;;  %v4521_v57 = vadd.f32 %v19417_v38, %v4448_v48  ;;  %v17740_v38 = vld [vmem:[%s24225_s2 + $0x2f8] sm:$0xff] }
0x1d2d   :  { %20760 = vmatpush3.bf16.msra.mxu0 %v20757_v35  ;;  %v4516_v58 = vadd.f32 %v4515_v41, %v4448_v48  ;;  %v17738_v35 = vld [vmem:[%s24225_s2 + $0x2e8] sm:$0xff]  ;;  %v20789_v41 = vpack.c.bf16 %v17740_v38, %v17739_v37  ;;  %v17733_v48 = vld [vmem:[%s24225_s2 + $0x270] sm:$0xff]  ;;  %v17749_v37 = vld [vmem:[%s24227_s7 + $0x38] sm:$0xff] }
0x1d2e   :  { %19440 = vmatprep.subr.mxu0 %v21562_v22  ;;  %v20785_v36 = vpack.c.bf16 %v17738_v35, %v17737_v34 }
0x1d30   :  { %19427 = vmatmul.mubr.msk.f32.vlgmr.msra.gmra.mrb[46].mxu0 %vm203_vm3, %v22200_v12 }
0x1d31   :  { %19442 = vmatprep.mubr.msk.f32.mxu0 %vm21563_vm4, %v21562_v22 }
0x1d33   :  { %v19439_v45 = vpop.f32.mrb[50].mxu1 }
0x1d34   :  { %v4683_v46 = vpop.f32.mrb[51].mxu1  ;;  %v4689_v59 = vadd.f32 %v19439_v45, %v4616_v51  ;;  %v17731_v45 = vld [vmem:[%s24225_s2 + $0x260] sm:$0xff] }
0x1d35   :  { %v4684_v60 = vadd.f32 %v4683_v46, %v4616_v51  ;;  %v17732_v46 = vld [vmem:[%s24225_s2 + $0x268] sm:$0xff] }
0x1e03   :  { %v19428_v49 = vpop.f32.mrb[46].mxu0 }
0x1e04   :  { %v4605_v53 = vadd.f32 %v19428_v49, %v4532_v47  ;;  %v4599_v54 = vpop.f32.mrb[47].mxu0  ;;  %v17734_v49 = vld [vmem:[%s24225_s2 + $0x278] sm:$0xff] }
0x1e05   :  { %v4600_v55 = vadd.f32 %v4599_v54, %v4532_v47  ;;  %v20777_v47 = vpack.c.bf16 %v17732_v46, %v17731_v45 }
0x1e06   :  { %19446 = vmatpush3.xpose.msk.msra.mxu1 %vm453_vm5, %v4605_v53 }
0x1e07   :  { %19441 = vmatpush3.xpose.msk.msra.mxu0 %vm453_vm5, %v4600_v55  ;;  %19455 = vmatprep.subr.mxu1 %v21562_v22  ;;  %v20781_v55 = vpack.c.bf16 %v17734_v49, %v17733_v48 }
0x1e08   :  { %19450 = vmatprep.subr.mxu0 %v21562_v22 }
0x1e09   :  { %19448 = vmatmul.mubr.msk.f32.vlgmr.msra.gmra.mrb[52].mxu1 %vm453_vm5, %v4521_v57 }
0x1e0a   :  { %19443 = vmatmul.mubr.msk.f32.vlgmr.msra.gmra.mrb[48].mxu0 %vm453_vm5, %v4516_v58  ;;  %19456 = vmatpush3.msra.mxu1 %v4689_v59 }
0x1e0b   :  { %19451 = vmatpush3.msra.mxu0 %v4684_v60  ;;  %19457 = vmatprep.mubr.msk.f32.mxu1 %vm21563_vm4, %v21562_v22  ;;  %v5275_v60 = vrot.slane %v22222_v4, %v22059_v16 }
0x1e0c   :  { %19452 = vmatprep.mubr.msk.f32.mxu0 %vm21563_vm4, %v21562_v22  ;;  %20770 = vmatprep.subr.bf16.mxu1 %v20769_v28 }
0x1e0d   :  { %19460 = vmatprep.subr.mxu0 %v17722_v40 }
0x1edc   :  { %v4840_v61 = vpop.f32.mrb[52].mxu1 }
0x1edd   :  { %v4845_v63 = vmul.f32 0.35355338, %v4840_v61  ;;  %v4764_v0 = vpop.f32.mrb[48].mxu0  ;;  %v19449_v1 = vpop.f32.mrb[53].mxu1 }
0x1ede   :  { %v4844_v2 = vmul.f32 0.35355338, %v4764_v0  ;;  %v19444_v3 = vpop.f32.mrb[49].mxu0 }
0x1edf   :  { %v4849_v7 = vsel %vm453_vm5, %v4845_v63, -inf }
0x1ee0   :  { %4850 = vmax.xlane.f32.xlu0 %v4849_v7  ;;  %v4846_v8 = vsel %vm453_vm5, %v4844_v2, -inf  ;;  %v5107_v7 = vrot.slane %v22229_v23, %v22059_v16 }
0x1ee1   :  { %4847 = vmax.xlane.f32.xlu1 %v4846_v8 }
0x1f6d   :  { %v4851_v9 = vpop.xlane.xlu0 %4850 }
0x1f6e   :  { %v4853_v10 = vsub.f32 %v4845_v63, %v4851_v9  ;;  %v4848_v13 = vpop.xlane.xlu1 %4847 }
0x1f6f   :  { %v4852_v14 = vsub.f32 %v4844_v2, %v4848_v13  ;;  %v5191_v2 = vrot.slane %v22229_v23, %v22064_v24 }
0x1f70   :  { %v4856_v15 = vmul.f32 1.442695, %v4853_v10 }
0x1f71   :  { %v4854_v17 = vmul.f32 1.442695, %v4852_v14 }
0x1f72   :  { %21374 = vpow2.f32 %v4856_v15 }
0x1f73   :  { %21376 = vpow2.f32 %v4854_v17 }
0x1f7c   :  { %v21375_v18 = vpop.eup %21374 }
0x1f7d   :  { %v21377_v19 = vpop.eup %21376  ;;  %v4861_v21 = vsel %vm453_vm5, %v21375_v18, 0.0 }
0x1f7e   :  { %4862 = vadd.xlane.f32.xlu0 %v4861_v21  ;;  %v4858_v25 = vsel %vm453_vm5, %v21377_v19, 0.0 }
0x1f7f   :  { %4859 = vadd.xlane.f32.xlu1 %v4858_v25 }
0x200b   :  { %v4863_v39 = vpop.xlane.xlu0 %4862 }
0x200c   :  { %21378 = vrcp.f32 %v4863_v39  ;;  %v4860_v29 = vpop.xlane.xlu1 %4859 }
0x200d   :  { %21380 = vrcp.f32 %v4860_v29 }
0x2016   :  { %v21379_v42 = vpop.eup %21378 }
0x2017   :  { %v21381_v52 = vpop.eup %21380  ;;  %v4867_v31 = vmul.f32 %v21379_v42, %v21375_v18 }
0x2018   :  { %v4865_v33 = vmul.f32 %v21381_v52, %v21377_v19 }
0x2019   :  { %19458 = vmatmul.mubr.msk.f32.vlgmr.msra.gmra.mrb[54].mxu1 %vm453_vm5, %v4867_v31 }
0x201a   :  { %20772 = vmatpush3.bf16.msra.mxu1 %v20769_v28  ;;  %19453 = vmatmul.mubr.msk.f32.vlgmr.msra.gmra.mrb[50].mxu0 %vm453_vm5, %v4865_v33 }
0x201b   :  { %19473 = vmatprep.mubr.msk.f32.mxu1 %vm203_vm3, %v22198_v11  ;;  %20774 = vmatprep.subr.bf16.mxu1 %v20773_v32 }
0x201c   :  { %19461 = vmatpush3.msra.mxu0 %v17722_v40 }
0x201d   :  { %20778 = vmatprep.subr.bf16.mxu0 %v20777_v47 }
0x201e   :  { %20776 = vmatpush3.bf16.msra.mxu1 %v20773_v32 }
0x201f   :  { %20786 = vmatprep.subr.bf16.mxu1 %v20785_v36 }
0x2021   :  { %19474 = vmatmul.mubr.msk.f32.vlgmr.msra.gmra.mrb[56].mxu1 %vm203_vm3, %v22200_v12 }
0x2022   :  { %20788 = vmatpush3.bf16.msra.mxu1 %v20785_v36  ;;  %19495 = vmatprep.mubr.msk.f32.mxu1 %vm203_vm3, %v22198_v11 }
0x2023   :  { %20790 = vmatprep.subr.bf16.mxu1 %v20789_v41 }
0x2026   :  { %20792 = vmatpush3.bf16.msra.mxu1 %v20789_v41 }
0x2027   :  { %19508 = vmatprep.subr.mxu1 %v21562_v22 }
0x2029   :  { %19496 = vmatmul.mubr.msk.f32.vlgmr.msra.gmra.mrb[58].mxu1 %vm203_vm3, %v22200_v12 }
0x202a   :  { %19510 = vmatprep.mubr.msk.f32.mxu1 %vm21563_vm4, %v21562_v22 }
0x20ec   :  { %v5010_v51 = vpop.f32.mrb[54].mxu1 }
0x20ed   :  { %v4937_v53 = vpop.f32.mrb[50].mxu0  ;;  %v19459_v54 = vpop.f32.mrb[55].mxu1 }
0x20ee   :  { %v19454_v57 = vpop.f32.mrb[51].mxu0  ;;  %19462 = vmatprep.mubr.msk.f32.mxu0 %vm453_vm5, %v4937_v53 }
0x20ef   :  { %19463 = vmatmul.mubr.msk.f32.vlgmr.msra.gmra.mrb[36].mxu0 %vm453_vm5, %v5010_v51 }
0x20f0   :  { %20780 = vmatpush3.bf16.msra.mxu0 %v20777_v47  ;;  %19484 = vmatprep.mubr.msk.f32.mxu0 %vm203_vm3, %v22198_v11  ;;  %v22502_v47 = vld [vmem:[%s24228_s30 + $0x8] sm:$0x3f] }
0x20f1   :  { %20782 = vmatprep.subr.bf16.mxu0 %v20781_v55  ;;  %v3114_v48 = vrot.slane %v22502_v47, %v21788_v43 }
0x20f4   :  { %v19475_v58 = vpop.f32.mrb[56].mxu1  ;;  %20784 = vmatpush3.bf16.msra.mxu0 %v20781_v55 }
0x20f5   :  { %v5174_v59 = vpop.f32.mrb[57].mxu1  ;;  %19498 = vmatprep.subr.mxu0 %v21562_v22  ;;  %v5180_v13 = vadd.f32 %v19475_v58, %v5107_v7 }
0x20f6   :  { %v5175_v10 = vadd.f32 %v5174_v59, %v5107_v7 }
0x20f7   :  { %19485 = vmatmul.mubr.msk.f32.vlgmr.msra.gmra.mrb[52].mxu0 %vm203_vm3, %v22200_v12 }
0x20f8   :  { %19500 = vmatprep.mubr.msk.f32.mxu0 %vm21563_vm4, %v21562_v22 }
0x20fc   :  { %v19497_v61 = vpop.f32.mrb[58].mxu1 }
0x20fd   :  { %v5348_v63 = vadd.f32 %v19497_v61, %v5275_v60  ;;  %v5342_v0 = vpop.f32.mrb[59].mxu1 }
0x20fe   :  { %v5343_v1 = vadd.f32 %v5342_v0, %v5275_v60 }
0x2100   :  { %19509 = vmatpush3.msra.mxu1 %v5343_v1 }
0x21ca   :  { %v19486_v3 = vpop.f32.mrb[52].mxu0 }
0x21cb   :  { %v5258_v8 = vpop.f32.mrb[53].mxu0  ;;  %v5264_v4 = vadd.f32 %v19486_v3, %v5191_v2 }
0x21cc   :  { %v5259_v9 = vadd.f32 %v5258_v8, %v5191_v2 }
0x21ce   :  { %19499 = vmatpush3.xpose.msk.msra.mxu0 %vm453_vm5, %v5259_v9  ;;  %v6068_v9 = vld [vmem:[%s24232_s4 + $0x8] sm:$0xff] }
0x21cf   :  { %19503 = vmatprep.subr.mxu0 %v21562_v22 }
0x21d1   :  { %19501 = vmatmul.mubr.msk.f32.vlgmr.msra.gmra.mrb[54].mxu0 %vm453_vm5, %v5175_v10  ;;  %v17752_v10 = vld [vmem:[%s24229_s9 + $0x20] sm:$0xff] }
0x21d2   :  { %19504 = vmatpush3.xpose.msk.msra.mxu0 %vm453_vm5, %v5264_v4  ;;  %19505 = vmatprep.mubr.msk.f32.mxu0 %vm21563_vm4, %v21562_v22  ;;  %v17753_v4 = vld [vmem:[%s24229_s9 + $0x28] sm:$0xff] }
0x21d3   :  { %19513 = vmatprep.subr.mxu0 %v21562_v22 }
0x21d5   :  { %19506 = vmatmul.mubr.msk.f32.vlgmr.msra.gmra.mrb[56].mxu0 %vm453_vm5, %v5180_v13  ;;  %v20793_v13 = vpack.c.bf16 %v17753_v4, %v17752_v10  ;;  %v17783_v10 = vld [vmem:[%s24186_s12 + $0x108] sm:$0xff] }
0x21d6   :  { %19514 = vmatpush3.msra.mxu0 %v5348_v63  ;;  %19515 = vmatprep.mubr.msk.f32.mxu0 %vm21563_vm4, %v21562_v22 }
0x21d7   :  { %19518 = vmatprep.subr.mxu0 %v17749_v37  ;;  %20794 = vmatprep.subr.bf16.mxu1 %v20793_v13 }
0x22a4   :  { %v5423_v23 = vpop.f32.mrb[54].mxu0 }
0x22a5   :  { %v5503_v14 = vmul.f32 0.35355338, %v5423_v23  ;;  %v19502_v15 = vpop.f32.mrb[55].mxu0  ;;  %v17754_v23 = vld [vmem:[%s24229_s9 + $0x30] sm:$0xff] }
0x22a7   :  { %v5505_v17 = vsel %vm453_vm5, %v5503_v14, -inf }
0x22a8   :  { %5506 = vmax.xlane.f32.xlu1 %v5505_v17  ;;  %v5499_v18 = vpop.f32.mrb[56].mxu0  ;;  %v6081_v17 = vld [vmem:[%s24185_s3] sm:$0xff] }
0x22a9   :  { %v5504_v19 = vmul.f32 0.35355338, %v5499_v18  ;;  %v19507_v21 = vpop.f32.mrb[57].mxu0  ;;  %v6082_v18 = vld [vmem:[%s24185_s3 + $0x8] sm:$0xff] }
0x22aa   :  { %v17760_v21 = vld [vmem:[%s24230_s26 + $0x40] sm:$0xff] }
0x22ab   :  { %v5508_v25 = vsel %vm453_vm5, %v5504_v19, -inf }
0x22ac   :  { %5509 = vmax.xlane.f32.xlu0 %v5508_v25  ;;  %v17761_v25 = vld [vmem:[%s24230_s26 + $0x48] sm:$0xff] }
0x2335   :  { %v5507_v26 = vpop.xlane.xlu1 %5506 }
0x2336   :  { %v5511_v27 = vsub.f32 %v5503_v14, %v5507_v26  ;;  %v17755_v14 = vld [vmem:[%s24229_s9 + $0x38] sm:$0xff]  ;;  %v17762_v26 = vld [vmem:[%s24230_s26 + $0x50] sm:$0xff] }
0x2337   :  { %v20797_v15 = vpack.c.bf16 %v17755_v14, %v17754_v23 }
0x2338   :  { %v5513_v28 = vmul.f32 1.442695, %v5511_v27  ;;  %v20801_v27 = vpack.c.bf16 %v17761_v25, %v17760_v21 }
0x2339   :  { %v5510_v40 = vpop.xlane.xlu0 %5509 }
0x233a   :  { %21382 = vpow2.f32 %v5513_v28  ;;  %v5512_v39 = vsub.f32 %v5504_v19, %v5510_v40  ;;  %v20817_v19 = vpack.c.bf16 %v6082_v18, %v6081_v17  ;;  %v17763_v28 = vld [vmem:[%s24230_s26 + $0x58] sm:$0xff]  ;;  %v17778_v18 = vld [vmem:[%s24186_s12 + $0x90] sm:$0xff] }
0x233b   :  { %v20805_v40 = vpack.c.bf16 %v17763_v28, %v17762_v26  ;;  %v17784_v28 = vld [vmem:[%s24186_s12 + $0x110] sm:$0xff] }
0x233c   :  { %v5515_v29 = vmul.f32 1.442695, %v5512_v39  ;;  %v17764_v39 = vld [vmem:[%s24230_s26 + $0x60] sm:$0xff] }
0x233e   :  { %21384 = vpow2.f32 %v5515_v29  ;;  %v17765_v29 = vld [vmem:[%s24230_s26 + $0x68] sm:$0xff] }
0x2344   :  { %v21383_v44 = vpop.eup %21382 }
0x2345   :  { %v5517_v30 = vsel %vm453_vm5, %v21383_v44, 0.0 }
0x2346   :  { %5518 = vadd.xlane.f32.xlu1 %v5517_v30 }
0x2348   :  { %v21385_v42 = vpop.eup %21384 }
0x2349   :  { %v5520_v52 = vsel %vm453_vm5, %v21385_v42, 0.0 }
0x234a   :  { %5521 = vadd.xlane.f32.xlu0 %v5520_v52 }
0x23d3   :  { %v5519_v31 = vpop.xlane.xlu1 %5518 }
0x23d4   :  { %21386 = vrcp.f32 %v5519_v31 }
0x23d7   :  { %v5522_v32 = vpop.xlane.xlu0 %5521 }
0x23d8   :  { %21388 = vrcp.f32 %v5522_v32 }
0x23de   :  { %v21387_v33 = vpop.eup %21386 }
0x23df   :  { %v5524_v34 = vmul.f32 %v21387_v33, %v21383_v44  ;;  %v20809_v44 = vpack.c.bf16 %v17765_v29, %v17764_v39 }
0x23e1   :  { %19511 = vmatmul.mubr.msk.f32.vlgmr.msra.gmra.mrb[60].mxu1 %vm453_vm5, %v5524_v34  ;;  %v5789_v34 = vrot.slane %v22502_v47, %v21885_v56 }
0x23e2   :  { %v21389_v35 = vpop.eup %21388  ;;  %20796 = vmatpush3.bf16.msra.mxu1 %v20793_v13  ;;  %v17757_v13 = vld [vmem:[%s24231_s0 + $0x1] ss:$0 sm:$0xff] }
0x23e3   :  { %v5526_v36 = vmul.f32 %v21389_v35, %v21385_v42  ;;  %20798 = vmatprep.subr.bf16.mxu1 %v20797_v15 }
0x23e5   :  { %19516 = vmatmul.mubr.msk.f32.vlgmr.msra.gmra.mrb[58].mxu0 %vm453_vm5, %v5526_v36 }
0x23e6   :  { %19519 = vmatpush3.msra.mxu0 %v17749_v37  ;;  %20800 = vmatpush3.bf16.msra.mxu1 %v20797_v15 }
0x23e7   :  { %20818 = vmatprep.subr.bf16.mxu1 %v20817_v19  ;;  %20802 = vmatprep.subr.bf16.mxu0 %v20801_v27 }
0x24b4   :  { %v5596_v38 = vpop.f32.mrb[60].mxu1 }
0x24b5   :  { %v19512_v41 = vpop.f32.mrb[61].mxu1  ;;  %19520 = vmatprep.mubr.msk.f32.mxu0 %vm453_vm5, %v5596_v38 }
0x24b8   :  { %v5669_v45 = vpop.f32.mrb[58].mxu0 }
0x24b9   :  { %v19517_v46 = vpop.f32.mrb[59].mxu0  ;;  %19521 = vmatmul.mubr.msk.f32.vlgmr.msra.gmra.mrb[36].mxu0 %vm453_vm5, %v5669_v45  ;;  %v5795_v45 = vrot.slane %v22502_v47, %v21975_v6 }
0x24ba   :  { %20804 = vmatpush3.bf16.msra.mxu0 %v20801_v27 }
0x24bb   :  { %20806 = vmatprep.subr.bf16.mxu0 %v20805_v40 }
0x24be   :  { %20808 = vmatpush3.bf16.msra.mxu0 %v20805_v40  ;;  %v17785_v40 = vld [vmem:[%s24186_s12 + $0x118] sm:$0xff] }
0x24bf   :  { %20810 = vmatprep.subr.bf16.mxu0 %v20809_v44 }
0x24c2   :  { %20812 = vmatpush3.bf16.msra.mxu0 %v20809_v44 }
0x258c   :  { %v19522_v49 = vpop.f32.mrb[36].mxu0 }
0x258d   :  { %v21267_v51 = vadd.f32 %v19522_v49, %v3114_v48  ;;  %v5747_v53 = vpop.f32.mrb[37].mxu0  ;;  %v6083_v49 = vld [vmem:[%s24185_s3 + $0x10] sm:$0xff] }
0x258e   :  { %v21268_v54 = vadd.f32 %v5747_v53, %v3114_v48 }
0x258f   :  { %v5759_v55 = vadd.f32 %v21267_v51, %v22200_v12  ;;  %v6084_v51 = vld [vmem:[%s24185_s3 + $0x18] sm:$0xff] }
0x2590   :  { %v5758_v57 = vadd.f32 %v21268_v54, %v22198_v11  ;;  %v6067_v11 = vld [vmem:[%s24232_s4] sm:$0xff] }
0x2591   :  { %v5763_v58 = vsel %vm203_vm3, %v5759_v55, 0.0 }
0x2592   :  { %5764 = vadd.xlane.f32.xlu0 %v5763_v58  ;;  %v5760_v59 = vsel %vm203_vm3, %v5758_v57, 0.0  ;;  %v6085_v58 = vld [vmem:[%s24185_s3 + $0x20] sm:$0xff] }
0x2593   :  { %5761 = vadd.xlane.f32.xlu1 %v5760_v59 }
0x261f   :  { %v5765_v60 = vpop.xlane.xlu0 %5764 }
0x2620   :  { %v5767_v61 = vmul.f32 0.03125, %v5765_v60  ;;  %v5762_v63 = vpop.xlane.xlu1 %5761  ;;  %v17766_v60 = vld [vmem:[%s24230_s26 + $0x70] sm:$0xff] }
0x2621   :  { %v5766_v0 = vmul.f32 0.03125, %v5762_v63 }
0x2622   :  { %v5769_v1 = vsub.f32 %v5759_v55, %v5767_v61  ;;  %v20821_v55 = vpack.c.bf16 %v6084_v51, %v6083_v49  ;;  %v17767_v61 = vld [vmem:[%s24230_s26 + $0x78] sm:$0xff] }
0x2623   :  { %v5768_v2 = vsub.f32 %v5758_v57, %v5766_v0  ;;  %v20813_v63 = vpack.c.bf16 %v17767_v61, %v17766_v60  ;;  %v6179_v0 = vld [vmem:[%s24186_s12] sm:$0xff] }
0x2624   :  { %v5771_v3 = vmul.f32 %v5769_v1, %v5769_v1 }
0x2625   :  { %v5770_v7 = vmul.f32 %v5768_v2, %v5768_v2  ;;  %20814 = vmatprep.subr.bf16.mxu0 %v20813_v63 }
0x2626   :  { %v5775_v8 = vsel %vm203_vm3, %v5771_v3, 0.0  ;;  %20816 = vmatpush3.bf16.msra.mxu0 %v20813_v63  ;;  %v17777_v3 = vld [vmem:[%s24186_s12 + $0x88] sm:$0xff] }
0x2627   :  { %5776 = vadd.xlane.f32.xlu0 %v5775_v8  ;;  %v5772_v12 = vsel %vm203_vm3, %v5770_v7, 0.0  ;;  %v6181_v8 = vld [vmem:[%s24186_s12 + $0x10] sm:$0xff] }
0x2628   :  { %5773 = vadd.xlane.f32.xlu1 %v5772_v12  ;;  %v6182_v12 = vld [vmem:[%s24186_s12 + $0x18] sm:$0xff] }
0x2639   :  { %6070 = vperm.xlu1 %21317, %v6067_v11   ;;  %v20829_v11 = vpack.c.bf16 %v6182_v12, %v6181_v8 }
0x263d   :  { %6073 = vperm.xlu0 %21316, %v6068_v9   ;;  %v17782_v9 = vld [vmem:[%s24186_s12 + $0x100] sm:$0xff] }
0x263e   :  { %v20841_v4 = vpack.c.bf16 %v17783_v10, %v17782_v9 }
0x26b4   :  { %v5777_v30 = vpop.xlane.xlu0 %5776 }
0x26b5   :  { %v5779_v42 = vmul.f32 0.03125, %v5777_v30  ;;  %v5774_v52 = vpop.xlane.xlu1 %5773  ;;  %v20845_v30 = vpack.c.bf16 %v17785_v40, %v17784_v28 }
0x26b6   :  { %v5778_v31 = vmul.f32 0.03125, %v5774_v52 }
0x26b7   :  { %v5781_v32 = vadd.f32 1e-05, %v5779_v42 }
0x26b8   :  { %v5780_v33 = vadd.f32 1e-05, %v5778_v31  ;;  %v22655_v31 = vld [vmem:[%s24187_s13] sm:$0xff] }
0x26b9   :  { %21390 = vrsqrt.f32 %v5781_v32  ;;  %v6071_v38 = vpop.permute.xlu1 %6070  ;;  %v6276_v32 = vrot.slane %v22655_v31, %v21798_v50 }
0x26ba   :  { %21392 = vrsqrt.f32 %v5780_v33  ;;  %vm6075_vm7 = vcmp.eq.s32.totalorder %v21733_v20, %v6071_v38 }
0x26bb   :  { %v17770_v57 = vsel %vm6075_vm7, 1.0, %v21562_v22 }
0x26bc   :  { %v6074_v47 = vpop.permute.xlu0 %6073 }
0x26bd   :  { %vm6076_vm9 = vcmp.eq.s32.totalorder %v21733_v20, %v6074_v47  ;;  %v6180_v20 = vld [vmem:[%s24186_s12 + $0x8] sm:$0xff] }
0x26be   :  { %v17771_v59 = vsel %vm6076_vm9, 1.0, %v21562_v22 }
0x26c3   :  { %v21391_v35 = vpop.eup %21390 }
0x26c4   :  { %v21393_v36 = vpop.eup %21392  ;;  %v5785_v37 = vmul.f32 %v21391_v35, %v5769_v1  ;;  %v20825_v1 = vpack.c.bf16 %v6180_v20, %v6179_v0  ;;  %v6186_v35 = vrot.slane %v22655_v31, %v21788_v43 }
0x26c5   :  { %v5784_v41 = vmul.f32 %v21393_v36, %v5768_v2  ;;  %v17776_v2 = vld [vmem:[%s24186_s12 + $0x80] sm:$0xff] }
0x26c6   :  { %v5791_v46 = vmul.f32 %v5789_v34, %v5785_v37  ;;  %v20833_v7 = vpack.c.bf16 %v17777_v3, %v17776_v2 }
0x26c7   :  { %v5790_v48 = vmul.f32 %v5789_v34, %v5784_v41  ;;  %v22664_v41 = vld [vmem:[%s24187_s13 + $0x8] sm:$0xf] }
0x26c8   :  { %v22567_v54 = vadd.f32 %v5795_v45, %v5791_v46  ;;  %20834 = vmatprep.subr.bf16.mxu0 %v20833_v7 }
0x26c9   :  { %v22565_v53 = vadd.f32 %v5795_v45, %v5790_v48  ;;  %v6360_v48 = vrot.slane %v22664_v41, %v21788_v43 }
0x26cb   :  { %19531 = vmatprep.mubr.msk.f32.mxu1 %vm203_vm3, %v22565_v53 }
0x26cc   :  { %19532 = vmatmul.mubr.msk.f32.vlgmr.msra.gmra.mrb[62].mxu1 %vm203_vm3, %v22567_v54 }
0x26cd   :  { %20820 = vmatpush3.bf16.msra.mxu1 %v20817_v19  ;;  %19563 = vmatprep.mubr.msk.f32.mxu1 %vm6086_vm8, %v17770_v57  ;;  %v17779_v19 = vld [vmem:[%s24186_s12 + $0x98] sm:$0xff] }
0x26ce   :  { %20822 = vmatprep.subr.bf16.mxu1 %v20821_v55  ;;  %v20837_v26 = vpack.c.bf16 %v17779_v19, %v17778_v18 }
0x26d1   :  { %20824 = vmatpush3.bf16.msra.mxu1 %v20821_v55 }
0x26d2   :  { %19561 = vmatprep.subr.mxu1 %v6085_v58 }
0x26d5   :  { %19562 = vmatpush3.msra.mxu1 %v6085_v58 }
0x26d6   :  { %19564 = vmatmul.mubr.msk.f32.vlgmr.msra.gmra.mrb[64].mxu1 %vm6086_vm8, %v17771_v59  ;;  %20826 = vmatprep.subr.bf16.mxu1 %v20825_v1 }
0x26d7   :  { %20828 = vmatpush3.bf16.msra.mxu1 %v20825_v1 }
0x26d8   :  { %20830 = vmatprep.subr.bf16.mxu1 %v20829_v11 }
0x26db   :  { %20832 = vmatpush3.bf16.msra.mxu1 %v20829_v11 }
0x26dc   :  { %20842 = vmatprep.subr.bf16.mxu1 %v20841_v4 }
0x279f   :  { %v19533_v23 = vpop.f32.mrb[62].mxu1 }
0x27a0   :  { %v5889_v14 = vadd.f32 %v19533_v23, %v17757_v13  ;;  %v5883_v15 = vpop.f32.mrb[63].mxu1  ;;  %v17796_v23 = vld [vmem:[%s24186_s12 + $0x20] sm:$0xff] }
0x27a1   :  { %v5884_v17 = vadd.f32 %v17757_v13, %v5883_v15 }
0x27a2   :  { %v5893_v25 = vmax.f32 %v5889_v14, 0.0  ;;  %v17797_v14 = vld [vmem:[%s24186_s12 + $0x28] sm:$0xff] }
0x27a3   :  { %v5892_v21 = vmax.f32 %v5884_v17, 0.0  ;;  %v20849_v15 = vpack.c.bf16 %v17797_v14, %v17796_v23 }
0x27a5   :  { %19550 = vmatprep.mubr.msk.f32.mxu0 %vm2984_vm6, %v5892_v21 }
0x27a6   :  { %19551 = vmatmul.mubr.msk.f32.vlgmr.msra.gmra.mrb[60].mxu0 %vm2984_vm6, %v5893_v25  ;;  %v17798_v25 = vld [vmem:[%s24186_s12 + $0x30] sm:$0xff] }
0x27a7   :  { %20836 = vmatpush3.bf16.msra.mxu0 %v20833_v7 }
0x27a8   :  { %20838 = vmatprep.subr.bf16.mxu0 %v20837_v26 }
0x27a9   :  { %v19565_v27 = vpop.f32.mrb[64].mxu1 }
0x27aa   :  { %v6159_v39 = vpop.f32.mrb[65].mxu1  ;;  %v22628_v44 = vmul.f32 5.656854, %v19565_v27 }
0x27ab   :  { %v22626_v29 = vmul.f32 5.656854, %v6159_v39  ;;  %20840 = vmatpush3.bf16.msra.mxu0 %v20837_v26  ;;  %v17799_v26 = vld [vmem:[%s24186_s12 + $0x38] sm:$0xff]  ;;  %v17808_v39 = vld [vmem:[%s24186_s12 + $0x120] sm:$0xff] }
0x27ac   :  { %19599 = vmatprep.subr.mxu0 %v21562_v22  ;;  %v20853_v40 = vpack.c.bf16 %v17799_v26, %v17798_v25 }
0x27ad   :  { %19574 = vmatprep.mubr.msk.f32.mxu1 %vm203_vm3, %v22626_v29  ;;  %19585 = vmatprep.mubr.msk.f32.mxu0 %vm203_vm3, %v22626_v29 }
0x27ae   :  { %19575 = vmatmul.mubr.msk.f32.vlgmr.msra.gmra.mrb[66].mxu1 %vm203_vm3, %v22628_v44  ;;  %19586 = vmatmul.mubr.msk.f32.vlgmr.msra.gmra.mrb[62].mxu0 %vm203_vm3, %v22628_v44 }
0x27af   :  { %20844 = vmatpush3.bf16.msra.mxu1 %v20841_v4  ;;  %19596 = vmatprep.mubr.msk.f32.mxu1 %vm203_vm3, %v22626_v29 }
0x27b0   :  { %20846 = vmatprep.subr.bf16.mxu1 %v20845_v30  ;;  %19601 = vmatprep.mubr.msk.f32.mxu0 %vm21563_vm4, %v21562_v22 }
0x27b3   :  { %20848 = vmatpush3.bf16.msra.mxu1 %v20845_v30  ;;  %v17809_v30 = vld [vmem:[%s24186_s12 + $0x128] sm:$0xff] }
0x27b4   :  { %19609 = vmatprep.subr.mxu1 %v21562_v22 }
0x27b6   :  { %19597 = vmatmul.mubr.msk.f32.vlgmr.msra.gmra.mrb[68].mxu1 %vm203_vm3, %v22628_v44 }
0x27b7   :  { %19611 = vmatprep.mubr.msk.f32.mxu1 %vm21563_vm4, %v21562_v22 }
0x2879   :  { %v22648_v42 = vpop.f32.mrb[60].mxu0 }
0x287a   :  { %v22650_v52 = vpop.f32.mrb[61].mxu0 }
0x2881   :  { %v19576_v33 = vpop.f32.mrb[66].mxu1  ;;  %v19587_v34 = vpop.f32.mrb[62].mxu0 }
0x2882   :  { %v6259_v36 = vpop.f32.mrb[67].mxu1  ;;  %v6343_v37 = vpop.f32.mrb[63].mxu0  ;;  %v6349_v46 = vadd.f32 %v19587_v34, %v6276_v32  ;;  %v6265_v51 = vadd.f32 %v19576_v33, %v6186_v35  ;;  %v17810_v33 = vld [vmem:[%s24186_s12 + $0x130] sm:$0xff]  ;;  %v17811_v34 = vld [vmem:[%s24186_s12 + $0x138] sm:$0xff] }
0x2883   :  { %v6344_v38 = vadd.f32 %v6343_v37, %v6276_v32  ;;  %v6260_v45 = vadd.f32 %v6259_v36, %v6186_v35  ;;  %v20865_v32 = vpack.c.bf16 %v17809_v30, %v17808_v39  ;;  %v20869_v35 = vpack.c.bf16 %v17811_v34, %v17810_v33  ;;  %v6758_v36 = vld [vmem:[%s24188_s14] sm:$0xff]  ;;  %v17824_v34 = vld [vmem:[%s24186_s12 + $0x48] sm:$0xff] }
0x2884   :  { %v17802_v37 = vld [vmem:[%s24186_s12 + $0xa0] sm:$0xff] }
0x2885   :  { %19600 = vmatpush3.xpose.msk.msra.mxu0 %vm453_vm5, %v6344_v38  ;;  %v17803_v38 = vld [vmem:[%s24186_s12 + $0xa8] sm:$0xff]  ;;  %v17823_v33 = vld [vmem:[%s24186_s12 + $0x40] sm:$0xff] }
0x2886   :  { %19604 = vmatprep.subr.mxu0 %v21562_v22 }
0x2888   :  { %19602 = vmatmul.mubr.msk.f32.vlgmr.msra.gmra.mrb[64].mxu0 %vm453_vm5, %v6260_v45  ;;  %v20857_v45 = vpack.c.bf16 %v17803_v38, %v17802_v37  ;;  %v17825_v38 = vld [vmem:[%s24186_s12 + $0x50] sm:$0xff] }
0x2889   :  { %v19598_v49 = vpop.f32.mrb[68].mxu1  ;;  %19605 = vmatpush3.xpose.msk.msra.mxu0 %vm453_vm5, %v6349_v46  ;;  %19606 = vmatprep.mubr.msk.f32.mxu0 %vm21563_vm4, %v21562_v22 }
0x288a   :  { %v6427_v55 = vpop.f32.mrb[69].mxu1  ;;  %19614 = vmatprep.subr.mxu0 %v21562_v22  ;;  %v6433_v57 = vadd.f32 %v19598_v49, %v6360_v48  ;;  %v17805_v49 = vld [vmem:[%s24186_s12 + $0xb8] sm:$0xff] }
0x288b   :  { %v6428_v47 = vadd.f32 %v6427_v55, %v6360_v48  ;;  %v17804_v48 = vld [vmem:[%s24186_s12 + $0xb0] sm:$0xff] }
0x288c   :  { %19607 = vmatmul.mubr.msk.f32.vlgmr.msra.gmra.mrb[66].mxu0 %vm453_vm5, %v6265_v51  ;;  %v20861_v55 = vpack.c.bf16 %v17805_v49, %v17804_v48 }
0x288d   :  { %19610 = vmatpush3.msra.mxu1 %v6428_v47  ;;  %19615 = vmatpush3.msra.mxu0 %v6433_v57 }
0x288e   :  { %19616 = vmatprep.mubr.msk.f32.mxu0 %vm21563_vm4, %v21562_v22  ;;  %20850 = vmatprep.subr.bf16.mxu0 %v20849_v15 }
0x288f   :  { %19619 = vmatprep.subr.mxu1 %v6758_v36 }
0x295b   :  { %v6508_v58 = vpop.f32.mrb[64].mxu0 }
0x295c   :  { %v6588_v59 = vmul.f32 0.35355338, %v6508_v58  ;;  %v19603_v60 = vpop.f32.mrb[65].mxu0 }
0x295d   :  { %v7018_v60 = vrot.slane %v22664_v41, %v21885_v56 }
0x295e   :  { %v6590_v61 = vsel %vm453_vm5, %v6588_v59, -inf }
0x295f   :  { %6591 = vmax.xlane.f32.xlu1 %v6590_v61  ;;  %v6584_v63 = vpop.f32.mrb[66].mxu0 }
0x2960   :  { %v6589_v0 = vmul.f32 0.35355338, %v6584_v63  ;;  %v19608_v20 = vpop.f32.mrb[67].mxu0 }
0x2962   :  { %v6593_v1 = vsel %vm453_vm5, %v6589_v0, -inf }
0x2963   :  { %6594 = vmax.xlane.f32.xlu0 %v6593_v1  ;;  %v6934_v1 = vrot.slane %v22655_v31, %v21890_v62 }
0x29ec   :  { %v6592_v2 = vpop.xlane.xlu1 %6591 }
0x29ed   :  { %v6596_v3 = vsub.f32 %v6588_v59, %v6592_v2 }
0x29ef   :  { %v6598_v7 = vmul.f32 1.442695, %v6596_v3  ;;  %v6850_v3 = vrot.slane %v22655_v31, %v21885_v56 }
0x29f0   :  { %v6595_v8 = vpop.xlane.xlu0 %6594 }
0x29f1   :  { %21394 = vpow2.f32 %v6598_v7  ;;  %v6597_v12 = vsub.f32 %v6589_v0, %v6595_v8 }
0x29f3   :  { %v6600_v11 = vmul.f32 1.442695, %v6597_v12 }
0x29f5   :  { %21396 = vpow2.f32 %v6600_v11 }
0x29fb   :  { %v21395_v9 = vpop.eup %21394 }
0x29fc   :  { %v6602_v10 = vsel %vm453_vm5, %v21395_v9, 0.0 }
0x29fd   :  { %6603 = vadd.xlane.f32.xlu1 %v6602_v10 }
0x29ff   :  { %v21397_v4 = vpop.eup %21396 }
0x2a00   :  { %v6605_v13 = vsel %vm453_vm5, %v21397_v4, 0.0 }
0x2a01   :  { %6606 = vadd.xlane.f32.xlu0 %v6605_v13 }
0x2a8a   :  { %v6604_v17 = vpop.xlane.xlu1 %6603 }
0x2a8b   :  { %21398 = vrcp.f32 %v6604_v17 }
0x2a8e   :  { %v6607_v18 = vpop.xlane.xlu0 %6606 }
0x2a8f   :  { %21400 = vrcp.f32 %v6607_v18 }
0x2a95   :  { %v21399_v19 = vpop.eup %21398 }
0x2a96   :  { %v6609_v21 = vmul.f32 %v21399_v19, %v21395_v9 }
0x2a98   :  { %19612 = vmatmul.mubr.msk.f32.vlgmr.msra.gmra.mrb[70].mxu1 %vm453_vm5, %v6609_v21 }
0x2a99   :  { %v21401_v27 = vpop.eup %21400  ;;  %19620 = vmatpush3.msra.mxu1 %v6758_v36 }
0x2a9a   :  { %v6611_v28 = vmul.f32 %v21401_v27, %v21397_v4  ;;  %20858 = vmatprep.subr.bf16.mxu1 %v20857_v45 }
0x2a9c   :  { %19617 = vmatmul.mubr.msk.f32.vlgmr.msra.gmra.mrb[68].mxu0 %vm453_vm5, %v6611_v28 }
0x2a9d   :  { %20852 = vmatpush3.bf16.msra.mxu0 %v20849_v15  ;;  %19632 = vmatprep.mubr.msk.f32.mxu0 %vm203_vm3, %v22626_v29 }
0x2a9e   :  { %20854 = vmatprep.subr.bf16.mxu0 %v20853_v40 }
0x2aa1   :  { %20856 = vmatpush3.bf16.msra.mxu0 %v20853_v40 }
0x2aa2   :  { %20866 = vmatprep.subr.bf16.mxu0 %v20865_v32 }
0x2aa4   :  { %19633 = vmatmul.mubr.msk.f32.vlgmr.msra.gmra.mrb[70].mxu0 %vm203_vm3, %v22628_v44 }
0x2aa5   :  { %20868 = vmatpush3.bf16.msra.mxu0 %v20865_v32  ;;  %19654 = vmatprep.mubr.msk.f32.mxu0 %vm203_vm3, %v22626_v29 }
0x2aa6   :  { %20870 = vmatprep.subr.bf16.mxu0 %v20869_v35 }
0x2aa9   :  { %20872 = vmatpush3.bf16.msra.mxu0 %v20869_v35  ;;  %v20873_v35 = vpack.c.bf16 %v17824_v34, %v17823_v33 }
0x2aaa   :  { %19667 = vmatprep.subr.mxu0 %v21562_v22 }
0x2aac   :  { %19655 = vmatmul.mubr.msk.f32.vlgmr.msra.gmra.mrb[72].mxu0 %vm203_vm3, %v22628_v44 }
0x2aad   :  { %19669 = vmatprep.mubr.msk.f32.mxu0 %vm21563_vm4, %v21562_v22 }
0x2b6b   :  { %v6681_v46 = vpop.f32.mrb[70].mxu1 }
0x2b6c   :  { %v19613_v51 = vpop.f32.mrb[71].mxu1  ;;  %19621 = vmatprep.mubr.msk.f32.mxu1 %vm453_vm5, %v6681_v46 }
0x2b6d   :  { %v17835_v51 = vld [vmem:[%s24186_s12 + $0x140] sm:$0xff] }
0x2b6f   :  { %v6754_v57 = vpop.f32.mrb[68].mxu0 }
0x2b70   :  { %v19618_v47 = vpop.f32.mrb[69].mxu0  ;;  %19622 = vmatmul.mubr.msk.f32.vlgmr.msra.gmra.mrb[72].mxu1 %vm453_vm5, %v6754_v57 }
0x2b71   :  { %20860 = vmatpush3.bf16.msra.mxu1 %v20857_v45  ;;  %19643 = vmatprep.mubr.msk.f32.mxu1 %vm203_vm3, %v22626_v29  ;;  %v17826_v45 = vld [vmem:[%s24186_s12 + $0x58] sm:$0xff] }
0x2b72   :  { %20862 = vmatprep.subr.bf16.mxu1 %v20861_v55  ;;  %v20877_v49 = vpack.c.bf16 %v17826_v45, %v17825_v38 }
0x2b75   :  { %20864 = vmatpush3.bf16.msra.mxu1 %v20861_v55  ;;  %v17836_v55 = vld [vmem:[%s24186_s12 + $0x148] sm:$0xff] }
0x2b76   :  { %19657 = vmatprep.subr.mxu1 %v21562_v22 }
0x2b77   :  { %v19634_v58 = vpop.f32.mrb[70].mxu0 }
0x2b78   :  { %v6917_v59 = vpop.f32.mrb[71].mxu0  ;;  %19644 = vmatmul.mubr.msk.f32.vlgmr.msra.gmra.mrb[74].mxu1 %vm203_vm3, %v22628_v44  ;;  %v6923_v9 = vadd.f32 %v19634_v58, %v6850_v3  ;;  %v20889_v58 = vpack.c.bf16 %v17836_v55, %v17835_v51 }
0x2b79   :  { %19659 = vmatprep.mubr.msk.f32.mxu1 %vm21563_vm4, %v21562_v22  ;;  %v6918_v12 = vadd.f32 %v6917_v59, %v6850_v3  ;;  %v17837_v59 = vld [vmem:[%s24186_s12 + $0x150] sm:$0xff] }
0x2b7a   :  { %v17831_v3 = vld [vmem:[%s24186_s12 + $0xd0] sm:$0xff] }
0x2b7f   :  { %v19656_v61 = vpop.f32.mrb[72].mxu0 }
0x2b80   :  { %v7091_v63 = vadd.f32 %v19656_v61, %v7018_v60  ;;  %v7085_v0 = vpop.f32.mrb[73].mxu0 }
0x2b81   :  { %v7086_v20 = vadd.f32 %v7085_v0, %v7018_v60  ;;  %v17838_v60 = vld [vmem:[%s24186_s12 + $0x158] sm:$0xff]  ;;  %v17829_v0 = vld [vmem:[%s24186_s12 + $0xc0] sm:$0xff] }
0x2b82   :  { %v20893_v61 = vpack.c.bf16 %v17838_v60, %v17837_v59  ;;  %v17850_v59 = vld [vmem:[%s24186_s12 + $0x60] sm:$0xff]  ;;  %v17851_v60 = vld [vmem:[%s24186_s12 + $0x68] sm:$0xff] }
0x2b83   :  { %19668 = vmatpush3.msra.mxu0 %v7086_v20  ;;  %v17830_v20 = vld [vmem:[%s24186_s12 + $0xc8] sm:$0xff] }
0x2b84   :  { %20874 = vmatprep.subr.bf16.mxu0 %v20873_v35 }
0x2c4b   :  { %v19645_v2 = vpop.f32.mrb[74].mxu1 }
0x2c4c   :  { %v7001_v7 = vpop.f32.mrb[75].mxu1  ;;  %v7007_v11 = vadd.f32 %v19645_v2, %v6934_v1 }
0x2c4d   :  { %v7002_v8 = vadd.f32 %v7001_v7, %v6934_v1  ;;  %v20881_v1 = vpack.c.bf16 %v17830_v20, %v17829_v0  ;;  %v17832_v7 = vld [vmem:[%s24186_s12 + $0xd8] sm:$0xff] }
0x2c4f   :  { %19658 = vmatpush3.xpose.msk.msra.mxu1 %vm453_vm5, %v7002_v8 }
0x2c50   :  { %19662 = vmatprep.subr.mxu1 %v21562_v22 }
0x2c52   :  { %19660 = vmatmul.mubr.msk.f32.vlgmr.msra.gmra.mrb[76].mxu1 %vm453_vm5, %v6918_v12  ;;  %v20885_v12 = vpack.c.bf16 %v17832_v7, %v17831_v3 }
0x2c53   :  { %19663 = vmatpush3.xpose.msk.msra.mxu1 %vm453_vm5, %v7007_v11  ;;  %19664 = vmatprep.mubr.msk.f32.mxu1 %vm21563_vm4, %v21562_v22 }
0x2c54   :  { %19672 = vmatprep.subr.mxu1 %v21562_v22 }
0x2c56   :  { %19665 = vmatmul.mubr.msk.f32.vlgmr.msra.gmra.mrb[78].mxu1 %vm453_vm5, %v6923_v9 }
0x2c57   :  { %19673 = vmatpush3.msra.mxu1 %v7091_v63  ;;  %19674 = vmatprep.mubr.msk.f32.mxu1 %vm21563_vm4, %v21562_v22  ;;  %v17820_v63 = vld [vmem:[%s24188_s14 + $0x8] sm:$0xff] }
0x2c58   :  { %19677 = vmatprep.subr.mxu1 %v17820_v63 }
0x2d25   :  { %v7166_v10 = vpop.f32.mrb[76].mxu1 }
0x2d26   :  { %v7246_v4 = vmul.f32 0.35355338, %v7166_v10  ;;  %v19661_v13 = vpop.f32.mrb[77].mxu1 }
0x2d28   :  { %v7248_v23 = vsel %vm453_vm5, %v7246_v4, -inf }
0x2d29   :  { %7249 = vmax.xlane.f32.xlu1 %v7248_v23  ;;  %v7242_v14 = vpop.f32.mrb[78].mxu1 }
0x2d2a   :  { %v7247_v15 = vmul.f32 0.35355338, %v7242_v14  ;;  %v19666_v17 = vpop.f32.mrb[79].mxu1  ;;  %v7593_v14 = vrot.slane %v22655_v31, %v21972_v5 }
0x2d2c   :  { %v7251_v18 = vsel %vm453_vm5, %v7247_v15, -inf }
0x2d2d   :  { %7252 = vmax.xlane.f32.xlu0 %v7251_v18  ;;  %v7677_v18 = vrot.slane %v22664_v41, %v21975_v6 }
0x2db6   :  { %v7250_v19 = vpop.xlane.xlu1 %7249 }
0x2db7   :  { %v7254_v21 = vsub.f32 %v7246_v4, %v7250_v19 }
0x2db9   :  { %v7256_v25 = vmul.f32 1.442695, %v7254_v21 }
0x2dba   :  { %v7253_v26 = vpop.xlane.xlu0 %7252 }
0x2dbb   :  { %21402 = vpow2.f32 %v7256_v25  ;;  %v7255_v27 = vsub.f32 %v7247_v15, %v7253_v26  ;;  %v7509_v15 = vrot.slane %v22655_v31, %v21975_v6 }
0x2dbd   :  { %v7258_v28 = vmul.f32 1.442695, %v7255_v27 }
0x2dbf   :  { %21404 = vpow2.f32 %v7258_v28 }
0x2dc5   :  { %v21403_v40 = vpop.eup %21402 }
0x2dc6   :  { %v7260_v39 = vsel %vm453_vm5, %v21403_v40, 0.0 }
0x2dc7   :  { %7261 = vadd.xlane.f32.xlu1 %v7260_v39 }
0x2dc9   :  { %v21405_v30 = vpop.eup %21404 }
0x2dca   :  { %v7263_v32 = vsel %vm453_vm5, %v21405_v30, 0.0 }
0x2dcb   :  { %7264 = vadd.xlane.f32.xlu0 %v7263_v32 }
0x2e54   :  { %v7262_v36 = vpop.xlane.xlu1 %7261 }
0x2e55   :  { %21406 = vrcp.f32 %v7262_v36 }
0x2e58   :  { %v7265_v37 = vpop.xlane.xlu0 %7264 }
0x2e59   :  { %21408 = vrcp.f32 %v7265_v37 }
0x2e5f   :  { %v21407_v46 = vpop.eup %21406 }
0x2e60   :  { %v7267_v48 = vmul.f32 %v21407_v46, %v21403_v40 }
0x2e62   :  { %19670 = vmatmul.mubr.msk.f32.vlgmr.msra.gmra.mrb[74].mxu0 %vm453_vm5, %v7267_v48 }
0x2e63   :  { %v21409_v57 = vpop.eup %21408  ;;  %20876 = vmatpush3.bf16.msra.mxu0 %v20873_v35  ;;  %19690 = vmatprep.mubr.msk.f32.mxu0 %vm203_vm3, %v22626_v29 }
0x2e64   :  { %v7269_v47 = vmul.f32 %v21409_v57, %v21405_v30  ;;  %20878 = vmatprep.subr.bf16.mxu0 %v20877_v49 }
0x2e66   :  { %19675 = vmatmul.mubr.msk.f32.vlgmr.msra.gmra.mrb[80].mxu1 %vm453_vm5, %v7269_v47 }
0x2e67   :  { %20880 = vmatpush3.bf16.msra.mxu0 %v20877_v49  ;;  %19678 = vmatpush3.msra.mxu1 %v17820_v63  ;;  %v17847_v63 = vld [vmem:[%s24188_s14 + $0x10] sm:$0xff] }
0x2e68   :  { %20890 = vmatprep.subr.bf16.mxu0 %v20889_v58  ;;  %20882 = vmatprep.subr.bf16.mxu1 %v20881_v1 }
0x2e6a   :  { %19691 = vmatmul.mubr.msk.f32.vlgmr.msra.gmra.mrb[76].mxu0 %vm203_vm3, %v22628_v44 }
0x2e6b   :  { %20892 = vmatpush3.bf16.msra.mxu0 %v20889_v58  ;;  %19712 = vmatprep.mubr.msk.f32.mxu0 %vm203_vm3, %v22626_v29 }
0x2e6c   :  { %20894 = vmatprep.subr.bf16.mxu0 %v20893_v61 }
0x2e6f   :  { %20896 = vmatpush3.bf16.msra.mxu0 %v20893_v61  ;;  %v20897_v61 = vpack.c.bf16 %v17851_v60, %v17850_v59 }
0x2e70   :  { %19720 = vmatprep.subr.mxu0 %v21562_v22 }
0x2e72   :  { %19713 = vmatmul.mubr.msk.f32.vlgmr.msra.gmra.mrb[78].mxu0 %vm203_vm3, %v22628_v44 }
0x2e73   :  { %19722 = vmatprep.mubr.msk.f32.mxu0 %vm21563_vm4, %v21562_v22 }
0x2f35   :  { %v7339_v2 = vpop.f32.mrb[74].mxu0 }
0x2f36   :  { %v19671_v8 = vpop.f32.mrb[75].mxu0  ;;  %19679 = vmatprep.mubr.msk.f32.mxu1 %vm453_vm5, %v7339_v2  ;;  %v17853_v2 = vld [vmem:[%s24186_s12 + $0x78] sm:$0xff] }
0x2f39   :  { %v7412_v11 = vpop.f32.mrb[80].mxu1 }
0x2f3a   :  { %v19676_v9 = vpop.f32.mrb[81].mxu1  ;;  %19680 = vmatmul.mubr.msk.f32.vlgmr.msra.gmra.mrb[72].mxu1 %vm453_vm5, %v7412_v11 }
0x2f3b   :  { %20884 = vmatpush3.bf16.msra.mxu1 %v20881_v1  ;;  %19701 = vmatprep.mubr.msk.f32.mxu1 %vm203_vm3, %v22626_v29  ;;  %v17852_v1 = vld [vmem:[%s24186_s12 + $0x70] sm:$0xff]  ;;  %v17862_v9 = vld [vmem:[%s24186_s12 + $0x160] sm:$0xff] }
0x2f3c   :  { %20886 = vmatprep.subr.bf16.mxu1 %v20885_v12 }
0x2f3d   :  { %v19692_v10 = vpop.f32.mrb[76].mxu0 }
0x2f3e   :  { %v7576_v4 = vpop.f32.mrb[77].mxu0  ;;  %v7582_v26 = vadd.f32 %v19692_v10, %v7509_v15  ;;  %v17863_v10 = vld [vmem:[%s24186_s12 + $0x168] sm:$0xff] }
0x2f3f   :  { %20888 = vmatpush3.bf16.msra.mxu1 %v20885_v12  ;;  %v7577_v27 = vadd.f32 %v7576_v4, %v7509_v15  ;;  %v20901_v12 = vpack.c.bf16 %v17853_v2, %v17852_v1  ;;  %v20913_v4 = vpack.c.bf16 %v17863_v10, %v17862_v9  ;;  %v17856_v15 = vld [vmem:[%s24186_s12 + $0xe0] sm:$0xff] }
0x2f40   :  { %19715 = vmatprep.subr.mxu1 %v21562_v22 }
0x2f42   :  { %19702 = vmatmul.mubr.msk.f32.vlgmr.msra.gmra.mrb[82].mxu1 %vm203_vm3, %v22628_v44 }
0x2f43   :  { %19717 = vmatprep.mubr.msk.f32.mxu1 %vm21563_vm4, %v21562_v22 }
0x2f45   :  { %v19714_v13 = vpop.f32.mrb[78].mxu0 }
0x2f46   :  { %v7744_v23 = vpop.f32.mrb[79].mxu0  ;;  %v7750_v28 = vadd.f32 %v19714_v13, %v7677_v18  ;;  %v17864_v13 = vld [vmem:[%s24186_s12 + $0x170] sm:$0xff] }
0x2f47   :  { %v7745_v40 = vadd.f32 %v7744_v23, %v7677_v18  ;;  %v17865_v23 = vld [vmem:[%s24186_s12 + $0x178] sm:$0xff] }
0x3015   :  { %v19703_v17 = vpop.f32.mrb[82].mxu1 }
0x3016   :  { %v7666_v19 = vadd.f32 %v19703_v17, %v7593_v14  ;;  %v7660_v21 = vpop.f32.mrb[83].mxu1  ;;  %v17857_v17 = vld [vmem:[%s24186_s12 + $0xe8] sm:$0xff] }
0x3017   :  { %v7661_v25 = vadd.f32 %v7660_v21, %v7593_v14  ;;  %v20917_v14 = vpack.c.bf16 %v17865_v23, %v17864_v13  ;;  %v20905_v18 = vpack.c.bf16 %v17857_v17, %v17856_v15  ;;  %v17859_v21 = vld [vmem:[%s24186_s12 + $0xf8] sm:$0xff] }
0x3018   :  { %19721 = vmatpush3.xpose.msk.msra.mxu0 %vm453_vm5, %v7666_v19  ;;  %v17858_v19 = vld [vmem:[%s24186_s12 + $0xf0] sm:$0xff] }
0x3019   :  { %19716 = vmatpush3.xpose.msk.msra.mxu1 %vm453_vm5, %v7661_v25  ;;  %19730 = vmatprep.subr.mxu0 %v21562_v22 }
0x301a   :  { %19725 = vmatprep.subr.mxu1 %v21562_v22 }
0x301b   :  { %19723 = vmatmul.mubr.msk.f32.vlgmr.msra.gmra.mrb[80].mxu0 %vm453_vm5, %v7582_v26 }
0x301c   :  { %19718 = vmatmul.mubr.msk.f32.vlgmr.msra.gmra.mrb[84].mxu1 %vm453_vm5, %v7577_v27  ;;  %19731 = vmatpush3.msra.mxu0 %v7750_v28  ;;  %v20909_v28 = vpack.c.bf16 %v17859_v21, %v17858_v19 }
0x301d   :  { %19726 = vmatpush3.msra.mxu1 %v7745_v40  ;;  %19732 = vmatprep.mubr.msk.f32.mxu0 %vm21563_vm4, %v21562_v22 }
0x301e   :  { %19727 = vmatprep.mubr.msk.f32.mxu1 %vm21563_vm4, %v21562_v22  ;;  %20898 = vmatprep.subr.bf16.mxu0 %v20897_v61 }
0x301f   :  { %19735 = vmatprep.subr.mxu1 %v17847_v63 }
0x30ee   :  { %v7901_v39 = vpop.f32.mrb[80].mxu0 }
0x30ef   :  { %v7906_v30 = vmul.f32 0.35355338, %v7901_v39  ;;  %v7825_v32 = vpop.f32.mrb[84].mxu1  ;;  %v19724_v33 = vpop.f32.mrb[81].mxu0 }
0x30f0   :  { %v7905_v34 = vmul.f32 0.35355338, %v7825_v32  ;;  %v19719_v35 = vpop.f32.mrb[85].mxu1  ;;  %v8336_v32 = vrot.slane %v22664_v41, %v22059_v16 }
0x30f1   :  { %v7910_v36 = vsel %vm453_vm5, %v7906_v30, -inf }
0x30f2   :  { %7911 = vmax.xlane.f32.xlu0 %v7910_v36  ;;  %v7907_v37 = vsel %vm453_vm5, %v7905_v34, -inf }
0x30f3   :  { %7908 = vmax.xlane.f32.xlu1 %v7907_v37  ;;  %v8252_v37 = vrot.slane %v22655_v31, %v22064_v24 }
0x317f   :  { %v7912_v38 = vpop.xlane.xlu0 %7911 }
0x3180   :  { %v7914_v45 = vsub.f32 %v7906_v30, %v7912_v38  ;;  %v7909_v46 = vpop.xlane.xlu1 %7908 }
0x3181   :  { %v7913_v48 = vsub.f32 %v7905_v34, %v7909_v46 }
0x3182   :  { %v7917_v49 = vmul.f32 1.442695, %v7914_v45  ;;  %v8168_v45 = vrot.slane %v22655_v31, %v22059_v16 }
0x3183   :  { %v7915_v51 = vmul.f32 1.442695, %v7913_v48 }
0x3184   :  { %21410 = vpow2.f32 %v7917_v49 }
0x3185   :  { %21412 = vpow2.f32 %v7915_v51 }
0x318e   :  { %v21411_v55 = vpop.eup %21410 }
0x318f   :  { %v21413_v57 = vpop.eup %21412  ;;  %v7922_v47 = vsel %vm453_vm5, %v21411_v55, 0.0 }
0x3190   :  { %7923 = vadd.xlane.f32.xlu0 %v7922_v47  ;;  %v7919_v58 = vsel %vm453_vm5, %v21413_v57, 0.0 }
0x3191   :  { %7920 = vadd.xlane.f32.xlu1 %v7919_v58 }
0x321d   :  { %v7924_v0 = vpop.xlane.xlu0 %7923 }
0x321e   :  { %21414 = vrcp.f32 %v7924_v0  ;;  %v7921_v20 = vpop.xlane.xlu1 %7920 }
0x321f   :  { %21416 = vrcp.f32 %v7921_v20 }
0x3228   :  { %v21415_v3 = vpop.eup %21414 }
0x3229   :  { %v21417_v7 = vpop.eup %21416  ;;  %v7928_v8 = vmul.f32 %v21415_v3, %v21411_v55 }
0x322a   :  { %v7926_v11 = vmul.f32 %v21417_v7, %v21413_v57  ;;  %v21558_v7 = vld [vmem:[%s24228_s30 + $0x8] sm:$0x3f] }
0x322b   :  { %19733 = vmatmul.mubr.msk.f32.vlgmr.msra.gmra.mrb[82].mxu0 %vm453_vm5, %v7928_v8  ;;  %v5906_v8 = vrot.slane %v21558_v7, %v21890_v62 }
0x322c   :  { %20900 = vmatpush3.bf16.msra.mxu0 %v20897_v61  ;;  %19728 = vmatmul.mubr.msk.f32.vlgmr.msra.gmra.mrb[86].mxu1 %vm453_vm5, %v7926_v11 }
0x322d   :  { %19748 = vmatprep.mubr.msk.f32.mxu0 %vm203_vm3, %v22626_v29  ;;  %20902 = vmatprep.subr.bf16.mxu0 %v20901_v12  ;;  %v5985_v9 = vadd.f32 %v22648_v42, %v5906_v8 }
0x322e   :  { %19736 = vmatpush3.msra.mxu1 %v17847_v63 }
0x322f   :  { %20906 = vmatprep.subr.bf16.mxu1 %v20905_v18  ;;  %v5989_v15 = vadd.f32 %v5985_v9, %v22567_v54 }
0x3230   :  { %20904 = vmatpush3.bf16.msra.mxu0 %v20901_v12  ;;  %v5980_v12 = vadd.f32 %v22650_v52, %v5906_v8 }
0x3231   :  { %20914 = vmatprep.subr.bf16.mxu0 %v20913_v4  ;;  %v5993_v17 = vsel %vm203_vm3, %v5989_v15, 0.0 }
0x3233   :  { %19749 = vmatmul.mubr.msk.f32.vlgmr.msra.gmra.mrb[84].mxu0 %vm203_vm3, %v22628_v44 }
0x3234   :  { %20916 = vmatpush3.bf16.msra.mxu0 %v20913_v4  ;;  %19770 = vmatprep.mubr.msk.f32.mxu0 %vm203_vm3, %v22626_v29  ;;  %v5988_v4 = vadd.f32 %v5980_v12, %v22565_v53 }
0x3235   :  { %20918 = vmatprep.subr.bf16.mxu0 %v20917_v14 }
0x3236   :  { %v5990_v23 = vsel %vm203_vm3, %v5988_v4, 0.0 }
0x3238   :  { %20920 = vmatpush3.bf16.msra.mxu0 %v20917_v14 }
0x3239   :  { %19783 = vmatprep.subr.mxu0 %v21562_v22 }
0x323b   :  { %19771 = vmatmul.mubr.msk.f32.vlgmr.msra.gmra.mrb[86].mxu0 %vm203_vm3, %v22628_v44 }
0x323c   :  { %19785 = vmatprep.mubr.msk.f32.mxu0 %vm21563_vm4, %v21562_v22 }
0x32fe   :  { %v8071_v25 = vpop.f32.mrb[82].mxu0 }
0x32ff   :  { %v7998_v26 = vpop.f32.mrb[86].mxu1  ;;  %v19734_v27 = vpop.f32.mrb[83].mxu0 }
0x3300   :  { %v19729_v40 = vpop.f32.mrb[87].mxu1  ;;  %19737 = vmatprep.mubr.msk.f32.mxu1 %vm453_vm5, %v7998_v26 }
0x3301   :  { %19738 = vmatmul.mubr.msk.f32.vlgmr.msra.gmra.mrb[72].mxu1 %vm453_vm5, %v8071_v25 }
0x3302   :  { %20908 = vmatpush3.bf16.msra.mxu1 %v20905_v18  ;;  %19759 = vmatprep.mubr.msk.f32.mxu1 %vm203_vm3, %v22626_v29 }
0x3303   :  { %20910 = vmatprep.subr.bf16.mxu1 %v20909_v28 }
0x3306   :  { %v19750_v39 = vpop.f32.mrb[84].mxu0  ;;  %20912 = vmatpush3.bf16.msra.mxu1 %v20909_v28 }
0x3307   :  { %v8235_v30 = vpop.f32.mrb[85].mxu0  ;;  %19773 = vmatprep.subr.mxu1 %v21562_v22  ;;  %v8241_v51 = vadd.f32 %v19750_v39, %v8168_v45 }
0x3308   :  { %v8236_v49 = vadd.f32 %v8235_v30, %v8168_v45 }
0x3309   :  { %19760 = vmatmul.mubr.msk.f32.vlgmr.msra.gmra.mrb[88].mxu1 %vm203_vm3, %v22628_v44 }
0x330a   :  { %19775 = vmatprep.mubr.msk.f32.mxu1 %vm21563_vm4, %v21562_v22 }
0x330e   :  { %v19772_v33 = vpop.f32.mrb[86].mxu0 }
0x330f   :  { %v8409_v34 = vadd.f32 %v19772_v33, %v8336_v32  ;;  %v8403_v35 = vpop.f32.mrb[87].mxu0 }
0x3310   :  { %v8404_v36 = vadd.f32 %v8403_v35, %v8336_v32 }
0x3312   :  { %19784 = vmatpush3.msra.mxu0 %v8404_v36 }
0x33dc   :  { %v19761_v38 = vpop.f32.mrb[88].mxu1 }
0x33dd   :  { %v8319_v46 = vpop.f32.mrb[89].mxu1  ;;  %v8325_v41 = vadd.f32 %v19761_v38, %v8252_v37 }
0x33de   :  { %v8320_v48 = vadd.f32 %v8319_v46, %v8252_v37 }
0x33e0   :  { %19774 = vmatpush3.xpose.msk.msra.mxu1 %vm453_vm5, %v8320_v48  ;;  %v6019_v48 = vrot.slane %v21558_v7, %v22059_v16 }
0x33e1   :  { %19778 = vmatprep.subr.mxu1 %v21562_v22 }
0x33e3   :  { %19776 = vmatmul.mubr.msk.f32.vlgmr.msra.gmra.mrb[90].mxu1 %vm453_vm5, %v8236_v49 }
0x33e4   :  { %19779 = vmatpush3.xpose.msk.msra.mxu1 %vm453_vm5, %v8325_v41  ;;  %19780 = vmatprep.mubr.msk.f32.mxu1 %vm21563_vm4, %v21562_v22 }
0x33e5   :  { %19788 = vmatprep.subr.mxu1 %v21562_v22 }
0x33e7   :  { %19781 = vmatmul.mubr.msk.f32.vlgmr.msra.gmra.mrb[92].mxu1 %vm453_vm5, %v8241_v51  ;;  %v6025_v51 = vrot.slane %v21558_v7, %v21798_v50 }
0x33e8   :  { %19789 = vmatpush3.msra.mxu1 %v8409_v34  ;;  %19790 = vmatprep.mubr.msk.f32.mxu1 %vm21563_vm4, %v21562_v22  ;;  %v17874_v34 = vld [vmem:[%s24188_s14 + $0x18] sm:$0xff] }
0x33e9   :  { %19793 = vmatprep.subr.mxu1 %v17874_v34 }
0x34b6   :  { %v8484_v31 = vpop.f32.mrb[90].mxu1 }
0x34b7   :  { %v8564_v55 = vmul.f32 0.35355338, %v8484_v31  ;;  %v19777_v57 = vpop.f32.mrb[91].mxu1 }
0x34b9   :  { %v8566_v47 = vsel %vm453_vm5, %v8564_v55, -inf }
0x34ba   :  { %8567 = vmax.xlane.f32.xlu1 %v8566_v47  ;;  %v8560_v58 = vpop.f32.mrb[92].mxu1 }
0x34bb   :  { %v8565_v59 = vmul.f32 0.35355338, %v8560_v58  ;;  %v19782_v60 = vpop.f32.mrb[93].mxu1 }
0x34bd   :  { %v8569_v61 = vsel %vm453_vm5, %v8565_v59, -inf }
0x34be   :  { %8570 = vmax.xlane.f32.xlu0 %v8569_v61 }
0x3547   :  { %v8568_v63 = vpop.xlane.xlu1 %8567 }
0x3548   :  { %v8572_v0 = vsub.f32 %v8564_v55, %v8568_v63 }
0x354a   :  { %v8574_v20 = vmul.f32 1.442695, %v8572_v0 }
0x354b   :  { %v8571_v1 = vpop.xlane.xlu0 %8570 }
0x354c   :  { %21418 = vpow2.f32 %v8574_v20  ;;  %v8573_v2 = vsub.f32 %v8565_v59, %v8571_v1 }
0x354e   :  { %v8576_v3 = vmul.f32 1.442695, %v8573_v2 }
0x3550   :  { %21420 = vpow2.f32 %v8576_v3  ;;  %v22951_v3 = vld [vmem:[%s24189_s18] sm:$0xff] }
0x3551   :  { %v6177_v12 = vrot.slane %v22951_v3, %v21788_v43 }
0x3556   :  { %v21419_v11 = vpop.eup %21418 }
0x3557   :  { %v8578_v10 = vsel %vm453_vm5, %v21419_v11, 0.0 }
0x3558   :  { %8579 = vadd.xlane.f32.xlu1 %v8578_v10 }
0x355a   :  { %v21421_v13 = vpop.eup %21420 }
0x355b   :  { %v8581_v14 = vsel %vm453_vm5, %v21421_v13, 0.0 }
0x355c   :  { %5991 = vadd.xlane.f32.xlu1 %v5990_v23  ;;  %8582 = vadd.xlane.f32.xlu0 %v8581_v14 }
0x3560   :  { %5994 = vadd.xlane.f32.xlu0 %v5993_v17 }
0x35e5   :  { %v8580_v52 = vpop.xlane.xlu1 %8579 }
0x35e6   :  { %21422 = vrcp.f32 %v8580_v52 }
0x35e9   :  { %v5992_v42 = vpop.xlane.xlu1 %5991  ;;  %v8583_v18 = vpop.xlane.xlu0 %8582 }
0x35ea   :  { %v5996_v19 = vmul.f32 0.03125, %v5992_v42  ;;  %21424 = vrcp.f32 %v8583_v18 }
0x35ec   :  { %v5998_v53 = vsub.f32 %v5988_v4, %v5996_v19 }
0x35ed   :  { %v5995_v21 = vpop.xlane.xlu0 %5994 }
0x35ee   :  { %v5997_v25 = vmul.f32 0.03125, %v5995_v21  ;;  %v6000_v26 = vmul.f32 %v5998_v53, %v5998_v53 }
0x35f0   :  { %v21423_v27 = vpop.eup %21422  ;;  %v5999_v28 = vsub.f32 %v5989_v15, %v5997_v25  ;;  %v6002_v40 = vsel %vm203_vm3, %v6000_v26, 0.0  ;;  %v17881_v26 = vld [vmem:[%s24190_s15 + $0x90] sm:$0xff] }
0x35f1   :  { %v8585_v54 = vmul.f32 %v21423_v27, %v21419_v11  ;;  %6003 = vadd.xlane.f32.xlu1 %v6002_v40  ;;  %v17882_v27 = vld [vmem:[%s24190_s15 + $0x98] sm:$0xff] }
0x35f2   :  { %v6001_v39 = vmul.f32 %v5999_v28, %v5999_v28 }
0x35f3   :  { %19786 = vmatmul.mubr.msk.f32.vlgmr.msra.gmra.mrb[88].mxu0 %vm453_vm5, %v8585_v54 }
0x35f4   :  { %v21425_v30 = vpop.eup %21424  ;;  %v6005_v32 = vsel %vm203_vm3, %v6001_v39, 0.0 }
0x35f5   :  { %v8587_v33 = vmul.f32 %v21425_v30, %v21421_v13  ;;  %6006 = vadd.xlane.f32.xlu0 %v6005_v32 }
0x35f7   :  { %19791 = vmatmul.mubr.msk.f32.vlgmr.msra.gmra.mrb[94].mxu1 %vm453_vm5, %v8587_v33 }
0x35f8   :  { %19794 = vmatpush3.msra.mxu1 %v17874_v34 }
0x367e   :  { %v6004_v35 = vpop.xlane.xlu1 %6003 }
0x367f   :  { %v6008_v36 = vmul.f32 0.03125, %v6004_v35 }
0x3681   :  { %v6010_v37 = vadd.f32 1e-05, %v6008_v36 }
0x3682   :  { %v6007_v38 = vpop.xlane.xlu0 %6006 }
0x3683   :  { %21426 = vrsqrt.f32 %v6010_v37  ;;  %v6009_v45 = vmul.f32 0.03125, %v6007_v38 }
0x3685   :  { %v6011_v46 = vadd.f32 1e-05, %v6009_v45 }
0x3687   :  { %21428 = vrsqrt.f32 %v6011_v46 }
0x368d   :  { %v21427_v49 = vpop.eup %21426 }
0x368e   :  { %v6014_v41 = vmul.f32 %v21427_v49, %v5998_v53 }
0x3690   :  { %v6020_v31 = vmul.f32 %v6019_v48, %v6014_v41 }
0x3691   :  { %v21429_v55 = vpop.eup %21428 }
0x3692   :  { %v6026_v57 = vadd.f32 %v6025_v51, %v6020_v31  ;;  %v6015_v47 = vmul.f32 %v21429_v55, %v5999_v28  ;;  %v20933_v28 = vpack.c.bf16 %v17882_v27, %v17881_v26  ;;  %v17888_v26 = vld [vmem:[%s24190_s15 + $0x118] sm:$0xff] }
0x3694   :  { %v6029_v58 = vsel %vm203_vm3, %v6026_v57, 0.0  ;;  %v6021_v59 = vmul.f32 %v6019_v48, %v6015_v47 }
0x3695   :  { %6030 = vadd.xlane.f32.xlu1 %v6029_v58 }
0x3696   :  { %v6027_v60 = vadd.f32 %v6025_v51, %v6021_v59  ;;  %v6028_v51 = vld [vmem:[%s24191_s11] sm:$0x3] }
0x3697   :  { %v6058_v31 = vrot.slane %v6028_v51, %v21788_v43  ;;  %v6064_v58 = vrot.slane %v6028_v51, %v21885_v56 }
0x3698   :  { %v6032_v61 = vsel %vm203_vm3, %v6027_v60, 0.0 }
0x3699   :  { %6033 = vadd.xlane.f32.xlu0 %v6032_v61 }
0x36c6   :  { %v8657_v63 = vpop.f32.mrb[88].mxu0 }
0x36c7   :  { %v19787_v0 = vpop.f32.mrb[89].mxu0  ;;  %19795 = vmatprep.mubr.msk.f32.mxu1 %vm453_vm5, %v8657_v63 }
0x36ca   :  { %v8730_v20 = vpop.f32.mrb[94].mxu1 }
0x36cb   :  { %v19792_v1 = vpop.f32.mrb[95].mxu1  ;;  %19796 = vmatmul.mubr.msk.f32.vlgmr.msra.gmra.mrb[72].mxu1 %vm453_vm5, %v8730_v20  ;;  %v8866_v20 = vld [vmem:[%s24190_s15] sm:$0xff] }
0x36cc   :  { %v8867_v1 = vld [vmem:[%s24190_s15 + $0x8] sm:$0xff] }
0x3722   :  { %v6031_v7 = vpop.xlane.xlu1 %6030 }
0x3723   :  { %v6035_v11 = vmul.f32 0.03125, %v6031_v7  ;;  %v8868_v7 = vld [vmem:[%s24190_s15 + $0x10] sm:$0xff] }
0x3725   :  { %v6037_v23 = vsub.f32 %v6026_v57, %v6035_v11  ;;  %v17885_v11 = vld [vmem:[%s24190_s15 + $0x100] sm:$0xff] }
0x3726   :  { %v6034_v2 = vpop.xlane.xlu0 %6033 }
0x3727   :  { %v6036_v8 = vmul.f32 0.03125, %v6034_v2  ;;  %v6039_v19 = vmul.f32 %v6037_v23, %v6037_v23  ;;  %v20921_v2 = vpack.c.bf16 %v8867_v1, %v8866_v20 }
0x3729   :  { %v6038_v10 = vsub.f32 %v6027_v60, %v6036_v8  ;;  %v6041_v21 = vsel %vm203_vm3, %v6039_v19, 0.0  ;;  %20922 = vmatprep.subr.bf16.mxu0 %v20921_v2  ;;  %v8869_v8 = vld [vmem:[%s24190_s15 + $0x18] sm:$0xff] }
0x372a   :  { %20924 = vmatpush3.bf16.msra.mxu0 %v20921_v2 }
0x372b   :  { %v6040_v42 = vmul.f32 %v6038_v10, %v6038_v10 }
0x372d   :  { %v6044_v53 = vsel %vm203_vm3, %v6040_v42, 0.0 }
0x379e   :  { %v19797_v9 = vpop.f32.mrb[72].mxu1 }
0x379f   :  { %v21269_v4 = vadd.f32 %v19797_v9, %v6177_v12  ;;  %v8808_v13 = vpop.f32.mrb[73].mxu1  ;;  %v17886_v9 = vld [vmem:[%s24190_s15 + $0x108] sm:$0xff] }
0x37a0   :  { %v21270_v14 = vadd.f32 %v8808_v13, %v6177_v12  ;;  %v20925_v12 = vpack.c.bf16 %v8869_v8, %v8868_v7 }
0x37a1   :  { %v8820_v15 = vadd.f32 %v21269_v4, %v22628_v44  ;;  %v17879_v44 = vld [vmem:[%s24190_s15 + $0x80] sm:$0xff] }
0x37a2   :  { %v8819_v17 = vadd.f32 %v21270_v14, %v22626_v29  ;;  %v17880_v29 = vld [vmem:[%s24190_s15 + $0x88] sm:$0xff]  ;;  %20926 = vmatprep.subr.bf16.mxu0 %v20925_v12 }
0x37a3   :  { %v8824_v52 = vsel %vm203_vm3, %v8820_v15, 0.0  ;;  %v20929_v25 = vpack.c.bf16 %v17880_v29, %v17879_v44  ;;  %20928 = vmatpush3.bf16.msra.mxu0 %v20925_v12 }
0x37a4   :  { %8825 = vadd.xlane.f32.xlu0 %v8824_v52  ;;  %v8821_v18 = vsel %vm203_vm3, %v8819_v17, 0.0  ;;  %v8850_v52 = vrot.slane %v22951_v3, %v21975_v6 }
0x37a5   :  { %8822 = vadd.xlane.f32.xlu1 %v8821_v18  ;;  %20930 = vmatprep.subr.bf16.mxu1 %v20929_v25 }
0x37a6   :  { %20932 = vmatpush3.bf16.msra.mxu1 %v20929_v25  ;;  %v17887_v25 = vld [vmem:[%s24190_s15 + $0x110] sm:$0xff] }
0x37a7   :  { %20934 = vmatprep.subr.bf16.mxu1 %v20933_v28 }
0x37a8   :  { %6045 = vadd.xlane.f32.xlu0 %v6044_v53 }
0x37a9   :  { %6042 = vadd.xlane.f32.xlu1 %v6041_v21  ;;  %v8856_v21 = vrot.slane %v22951_v3, %v22059_v16 }
0x37aa   :  { %20936 = vmatpush3.bf16.msra.mxu1 %v20933_v28 }
0x37ab   :  { %19831 = vmatprep.subr.mxu1 %v21562_v22 }
0x3831   :  { %v8826_v40 = vpop.xlane.xlu0 %8825 }
0x3832   :  { %v8828_v54 = vmul.f32 0.03125, %v8826_v40  ;;  %v8823_v39 = vpop.xlane.xlu1 %8822  ;;  %v20941_v40 = vpack.c.bf16 %v17888_v26, %v17887_v25  ;;  %v17911_v26 = vld [vmem:[%s24190_s15 + $0x120] sm:$0xff] }
0x3833   :  { %v8827_v30 = vmul.f32 0.03125, %v8823_v39 }
0x3834   :  { %v8830_v32 = vsub.f32 %v8820_v15, %v8828_v54  ;;  %v23037_v54 = vld [vmem:[%s24192_s16] sm:$0xff] }
0x3835   :  { %v8829_v33 = vsub.f32 %v8819_v17, %v8827_v30  ;;  %v6046_v34 = vpop.xlane.xlu0 %6045  ;;  %v8963_v39 = vrot.slane %v23037_v54, %v21798_v50 }
0x3836   :  { %v6048_v35 = vmul.f32 0.03125, %v6046_v34  ;;  %v6043_v36 = vpop.xlane.xlu1 %6042  ;;  %v8832_v37 = vmul.f32 %v8830_v32, %v8830_v32 }
0x3837   :  { %v6047_v38 = vmul.f32 0.03125, %v6043_v36  ;;  %v8831_v45 = vmul.f32 %v8829_v33, %v8829_v33 }
0x3838   :  { %v6050_v46 = vadd.f32 1e-05, %v6048_v35  ;;  %v8836_v48 = vsel %vm203_vm3, %v8832_v37, 0.0  ;;  %v8873_v35 = vrot.slane %v23037_v54, %v21788_v43 }
0x3839   :  { %v6049_v49 = vadd.f32 1e-05, %v6047_v38  ;;  %8837 = vadd.xlane.f32.xlu0 %v8836_v48  ;;  %v8833_v41 = vsel %vm203_vm3, %v8831_v45, 0.0 }
0x383a   :  { %21430 = vrsqrt.f32 %v6050_v46  ;;  %8834 = vadd.xlane.f32.xlu1 %v8833_v41  ;;  %v23050_v46 = vld [vmem:[%s24192_s16 + $0x8] sm:$0xf] }
0x383b   :  { %21432 = vrsqrt.f32 %v6049_v49  ;;  %v9053_v48 = vrot.slane %v23050_v46, %v21788_v43 }
0x3844   :  { %v21431_v55 = vpop.eup %21430 }
0x3845   :  { %v21433_v57 = vpop.eup %21432  ;;  %v6054_v47 = vmul.f32 %v21431_v55, %v6038_v10  ;;  %v20937_v10 = vpack.c.bf16 %v17886_v9, %v17885_v11 }
0x3846   :  { %v6053_v59 = vmul.f32 %v21433_v57, %v6037_v23 }
0x3847   :  { %v6060_v60 = vmul.f32 %v6058_v31, %v6054_v47  ;;  %20938 = vmatprep.subr.bf16.mxu0 %v20937_v10 }
0x3848   :  { %v6059_v61 = vmul.f32 %v6058_v31, %v6053_v59 }
0x3849   :  { %v22983_v0 = vadd.f32 %v6064_v58, %v6060_v60 }
0x384a   :  { %v22981_v63 = vadd.f32 %v6064_v58, %v6059_v61 }
0x384c   :  { %19817 = vmatprep.mubr.msk.f32.mxu1 %vm203_vm3, %v22981_v63 }
0x384d   :  { %19818 = vmatmul.mubr.msk.f32.vlgmr.msra.gmra.mrb[96].mxu1 %vm203_vm3, %v22983_v0 }
0x384e   :  { %19833 = vmatprep.mubr.msk.f32.mxu1 %vm21563_vm4, %v21562_v22 }
0x38c6   :  { %v8838_v4 = vpop.xlane.xlu0 %8837 }
0x38c7   :  { %v8840_v13 = vmul.f32 0.03125, %v8838_v4  ;;  %v8835_v23 = vpop.xlane.xlu1 %8834 }
0x38c8   :  { %v8839_v14 = vmul.f32 0.03125, %v8835_v23  ;;  %v17899_v23 = vld [vmem:[%s24190_s15 + $0x20] sm:$0xff] }
0x38c9   :  { %v8842_v15 = vadd.f32 1e-05, %v8840_v13 }
0x38ca   :  { %v8841_v17 = vadd.f32 1e-05, %v8839_v14  ;;  %v17900_v14 = vld [vmem:[%s24190_s15 + $0x28] sm:$0xff] }
0x38cb   :  { %21434 = vrsqrt.f32 %v8842_v15  ;;  %v20945_v15 = vpack.c.bf16 %v17900_v14, %v17899_v23 }
0x38cc   :  { %21436 = vrsqrt.f32 %v8841_v17  ;;  %v9451_v17 = vld [vmem:[%s24193_s17] sm:$0xff] }
0x38d5   :  { %v21435_v42 = vpop.eup %21434 }
0x38d6   :  { %v21437_v18 = vpop.eup %21436  ;;  %v8846_v19 = vmul.f32 %v21435_v42, %v8830_v32 }
0x38d7   :  { %v8845_v53 = vmul.f32 %v21437_v18, %v8829_v33  ;;  %v17901_v18 = vld [vmem:[%s24190_s15 + $0x30] sm:$0xff] }
0x38d8   :  { %v8852_v44 = vmul.f32 %v8850_v52, %v8846_v19  ;;  %v17902_v19 = vld [vmem:[%s24190_s15 + $0x38] sm:$0xff] }
0x38d9   :  { %v8851_v29 = vmul.f32 %v8850_v52, %v8845_v53 }
0x38da   :  { %v23021_v28 = vadd.f32 %v8856_v21, %v8852_v44 }
0x38db   :  { %v23019_v27 = vadd.f32 %v8856_v21, %v8851_v29  ;;  %v20949_v29 = vpack.c.bf16 %v17902_v19, %v17901_v18 }
0x38dd   :  { %19806 = vmatprep.mubr.msk.f32.mxu0 %vm203_vm3, %v23019_v27 }
0x38de   :  { %19807 = vmatmul.mubr.msk.f32.vlgmr.msra.gmra.mrb[90].mxu0 %vm203_vm3, %v23021_v28 }
0x38df   :  { %20940 = vmatpush3.bf16.msra.mxu0 %v20937_v10  ;;  %19828 = vmatprep.mubr.msk.f32.mxu0 %vm203_vm3, %v22981_v63 }
0x38e0   :  { %20942 = vmatprep.subr.bf16.mxu0 %v20941_v40 }
0x38e3   :  { %20944 = vmatpush3.bf16.msra.mxu0 %v20941_v40  ;;  %v17912_v40 = vld [vmem:[%s24190_s15 + $0x128] sm:$0xff] }
0x38e4   :  { %19836 = vmatprep.subr.mxu0 %v21562_v22 }
0x38e6   :  { %19829 = vmatmul.mubr.msk.f32.vlgmr.msra.gmra.mrb[92].mxu0 %vm203_vm3, %v22983_v0 }
0x38e7   :  { %19838 = vmatprep.mubr.msk.f32.mxu0 %vm21563_vm4, %v21562_v22 }
0x3920   :  { %v19819_v30 = vpop.f32.mrb[96].mxu1 }
0x3921   :  { %v9042_v32 = vadd.f32 %v19819_v30, %v8963_v39  ;;  %v9036_v33 = vpop.f32.mrb[97].mxu1  ;;  %v17913_v30 = vld [vmem:[%s24190_s15 + $0x130] sm:$0xff] }
0x3922   :  { %v9037_v34 = vadd.f32 %v9036_v33, %v8963_v39  ;;  %v20961_v39 = vpack.c.bf16 %v17912_v40, %v17911_v26  ;;  %v17926_v40 = vld [vmem:[%s24190_s15 + $0x40] sm:$0xff] }
0x3923   :  { %19837 = vmatpush3.xpose.msk.msra.mxu0 %vm453_vm5, %v9042_v32  ;;  %v17914_v32 = vld [vmem:[%s24190_s15 + $0x138] sm:$0xff] }
0x3924   :  { %19832 = vmatpush3.xpose.msk.msra.mxu1 %vm453_vm5, %v9037_v34  ;;  %19846 = vmatprep.subr.mxu0 %v21562_v22  ;;  %v20965_v33 = vpack.c.bf16 %v17914_v32, %v17913_v30  ;;  %v17905_v34 = vld [vmem:[%s24190_s15 + $0xa0] sm:$0xff] }
0x3925   :  { %19841 = vmatprep.subr.mxu1 %v21562_v22 }
0x39b1   :  { %v19808_v36 = vpop.f32.mrb[90].mxu0 }
0x39b2   :  { %v8952_v37 = vadd.f32 %v19808_v36, %v8873_v35  ;;  %v8946_v38 = vpop.f32.mrb[91].mxu0 }
0x39b3   :  { %v8947_v45 = vadd.f32 %v8946_v38, %v8873_v35  ;;  %v17906_v35 = vld [vmem:[%s24190_s15 + $0xa8] sm:$0xff]  ;;  %v17908_v38 = vld [vmem:[%s24190_s15 + $0xb8] sm:$0xff] }
0x39b4   :  { %19839 = vmatmul.mubr.msk.f32.vlgmr.msra.gmra.mrb[94].mxu0 %vm453_vm5, %v8952_v37  ;;  %v20953_v36 = vpack.c.bf16 %v17906_v35, %v17905_v34  ;;  %v17907_v37 = vld [vmem:[%s24190_s15 + $0xb0] sm:$0xff]  ;;  %v17929_v35 = vld [vmem:[%s24190_s15 + $0x58] sm:$0xff] }
0x39b5   :  { %19834 = vmatmul.mubr.msk.f32.vlgmr.msra.gmra.mrb[98].mxu1 %vm453_vm5, %v8947_v45  ;;  %19848 = vmatprep.mubr.msk.f32.mxu0 %vm21563_vm4, %v21562_v22  ;;  %v17928_v34 = vld [vmem:[%s24190_s15 + $0x50] sm:$0xff] }
0x39b6   :  { %19843 = vmatprep.mubr.msk.f32.mxu1 %vm21563_vm4, %v21562_v22 }
0x39b9   :  { %v19830_v49 = vpop.f32.mrb[92].mxu0 }
0x39ba   :  { %v9126_v41 = vadd.f32 %v19830_v49, %v9053_v48  ;;  %v9120_v51 = vpop.f32.mrb[93].mxu0 }
0x39bb   :  { %v9121_v31 = vadd.f32 %v9120_v51, %v9053_v48 }
0x39bc   :  { %19847 = vmatpush3.msra.mxu0 %v9126_v41  ;;  %v20957_v41 = vpack.c.bf16 %v17908_v38, %v17907_v37  ;;  %v20973_v38 = vpack.c.bf16 %v17929_v35, %v17928_v34 }
0x39bd   :  { %19842 = vmatpush3.msra.mxu1 %v9121_v31  ;;  %20946 = vmatprep.subr.bf16.mxu0 %v20945_v15 }
0x39be   :  { %19851 = vmatprep.subr.mxu1 %v9451_v17 }
0x3a87   :  { %v9277_v55 = vpop.f32.mrb[94].mxu0 }
0x3a88   :  { %v9282_v57 = vmul.f32 0.35355338, %v9277_v55  ;;  %v9201_v47 = vpop.f32.mrb[98].mxu1  ;;  %v19840_v58 = vpop.f32.mrb[95].mxu0 }
0x3a89   :  { %v9281_v59 = vmul.f32 0.35355338, %v9201_v47  ;;  %v19835_v60 = vpop.f32.mrb[99].mxu1 }
0x3a8a   :  { %v9286_v61 = vsel %vm453_vm5, %v9282_v57, -inf }
0x3a8b   :  { %9287 = vmax.xlane.f32.xlu0 %v9286_v61  ;;  %v9283_v20 = vsel %vm453_vm5, %v9281_v59, -inf  ;;  %v9627_v61 = vrot.slane %v23037_v54, %v21890_v62 }
0x3a8c   :  { %9284 = vmax.xlane.f32.xlu1 %v9283_v20 }
0x3b18   :  { %v9288_v1 = vpop.xlane.xlu0 %9287 }
0x3b19   :  { %v9290_v2 = vsub.f32 %v9282_v57, %v9288_v1  ;;  %v9285_v7 = vpop.xlane.xlu1 %9284  ;;  %v9711_v57 = vrot.slane %v23050_v46, %v21885_v56  ;;  %v9543_v1 = vrot.slane %v23037_v54, %v21885_v56 }
0x3b1a   :  { %v9289_v8 = vsub.f32 %v9281_v59, %v9285_v7 }
0x3b1b   :  { %v9293_v12 = vmul.f32 1.442695, %v9290_v2 }
0x3b1c   :  { %v9291_v11 = vmul.f32 1.442695, %v9289_v8 }
0x3b1d   :  { %21438 = vpow2.f32 %v9293_v12 }
0x3b1e   :  { %21440 = vpow2.f32 %v9291_v11 }
0x3b27   :  { %v21439_v9 = vpop.eup %21438 }
0x3b28   :  { %v21441_v10 = vpop.eup %21440  ;;  %v9298_v4 = vsel %vm453_vm5, %v21439_v9, 0.0 }
0x3b29   :  { %9299 = vadd.xlane.f32.xlu0 %v9298_v4  ;;  %v9295_v13 = vsel %vm453_vm5, %v21441_v10, 0.0 }
0x3b2a   :  { %9296 = vadd.xlane.f32.xlu1 %v9295_v13 }
0x3bb6   :  { %v9300_v52 = vpop.xlane.xlu0 %9299 }
0x3bb7   :  { %21442 = vrcp.f32 %v9300_v52  ;;  %v9297_v42 = vpop.xlane.xlu1 %9296 }
0x3bb8   :  { %21444 = vrcp.f32 %v9297_v42 }
0x3bc1   :  { %v21443_v53 = vpop.eup %21442 }
0x3bc2   :  { %v21445_v21 = vpop.eup %21444  ;;  %v9304_v44 = vmul.f32 %v21443_v53, %v21439_v9 }
0x3bc3   :  { %v9302_v25 = vmul.f32 %v21445_v21, %v21441_v10 }
0x3bc4   :  { %19849 = vmatmul.mubr.msk.f32.vlgmr.msra.gmra.mrb[96].mxu0 %vm453_vm5, %v9304_v44 }
0x3bc5   :  { %20948 = vmatpush3.bf16.msra.mxu0 %v20945_v15  ;;  %19844 = vmatmul.mubr.msk.f32.vlgmr.msra.gmra.mrb[100].mxu1 %vm453_vm5, %v9302_v25 }
0x3bc6   :  { %19864 = vmatprep.mubr.msk.f32.mxu0 %vm203_vm3, %v23019_v27  ;;  %20950 = vmatprep.subr.bf16.mxu0 %v20949_v29 }
0x3bc7   :  { %19852 = vmatpush3.msra.mxu1 %v9451_v17 }
0x3bc8   :  { %20954 = vmatprep.subr.bf16.mxu1 %v20953_v36 }
0x3bc9   :  { %20952 = vmatpush3.bf16.msra.mxu0 %v20949_v29 }
0x3bca   :  { %20962 = vmatprep.subr.bf16.mxu0 %v20961_v39 }
0x3bcc   :  { %19865 = vmatmul.mubr.msk.f32.vlgmr.msra.gmra.mrb[98].mxu0 %vm203_vm3, %v23021_v28 }
0x3bcd   :  { %20964 = vmatpush3.bf16.msra.mxu0 %v20961_v39  ;;  %19886 = vmatprep.mubr.msk.f32.mxu0 %vm203_vm3, %v22981_v63  ;;  %v17927_v39 = vld [vmem:[%s24190_s15 + $0x48] sm:$0xff] }
0x3bce   :  { %20966 = vmatprep.subr.bf16.mxu0 %v20965_v33  ;;  %v20969_v30 = vpack.c.bf16 %v17927_v39, %v17926_v40 }
0x3bd1   :  { %20968 = vmatpush3.bf16.msra.mxu0 %v20965_v33 }
0x3bd2   :  { %19899 = vmatprep.subr.mxu0 %v21562_v22 }
0x3bd4   :  { %19887 = vmatmul.mubr.msk.f32.vlgmr.msra.gmra.mrb[100].mxu0 %vm203_vm3, %v22983_v0 }
0x3bd5   :  { %19901 = vmatprep.mubr.msk.f32.mxu0 %vm21563_vm4, %v21562_v22 }
0x3c97   :  { %v9447_v45 = vpop.f32.mrb[96].mxu0 }
0x3c98   :  { %v9374_v48 = vpop.f32.mrb[100].mxu1  ;;  %v19850_v49 = vpop.f32.mrb[97].mxu0 }
0x3c99   :  { %v19845_v51 = vpop.f32.mrb[101].mxu1  ;;  %19853 = vmatprep.mubr.msk.f32.mxu1 %vm453_vm5, %v9374_v48  ;;  %v17939_v48 = vld [vmem:[%s24190_s15 + $0x148] sm:$0xff] }
0x3c9a   :  { %19854 = vmatmul.mubr.msk.f32.vlgmr.msra.gmra.mrb[102].mxu1 %vm453_vm5, %v9447_v45  ;;  %v17938_v45 = vld [vmem:[%s24190_s15 + $0x140] sm:$0xff] }
0x3c9b   :  { %20956 = vmatpush3.bf16.msra.mxu1 %v20953_v36  ;;  %19875 = vmatprep.mubr.msk.f32.mxu1 %vm203_vm3, %v22981_v63  ;;  %v20985_v51 = vpack.c.bf16 %v17939_v48, %v17938_v45 }
0x3c9c   :  { %20958 = vmatprep.subr.bf16.mxu1 %v20957_v41 }
0x3c9f   :  { %v19866_v31 = vpop.f32.mrb[98].mxu0  ;;  %20960 = vmatpush3.bf16.msra.mxu1 %v20957_v41 }
0x3ca0   :  { %v9610_v55 = vpop.f32.mrb[99].mxu0  ;;  %19889 = vmatprep.subr.mxu1 %v21562_v22  ;;  %v9616_v11 = vadd.f32 %v19866_v31, %v9543_v1  ;;  %v17940_v31 = vld [vmem:[%s24190_s15 + $0x150] sm:$0xff] }
0x3ca1   :  { %v9611_v8 = vadd.f32 %v9610_v55, %v9543_v1  ;;  %v17941_v55 = vld [vmem:[%s24190_s15 + $0x158] sm:$0xff] }
0x3ca2   :  { %19876 = vmatmul.mubr.msk.f32.vlgmr.msra.gmra.mrb[104].mxu1 %vm203_vm3, %v22983_v0  ;;  %v17935_v1 = vld [vmem:[%s24190_s15 + $0xd8] sm:$0xff] }
0x3ca3   :  { %19891 = vmatprep.mubr.msk.f32.mxu1 %vm21563_vm4, %v21562_v22 }
0x3ca7   :  { %v19888_v47 = vpop.f32.mrb[100].mxu0 }
0x3ca8   :  { %v9784_v58 = vadd.f32 %v19888_v47, %v9711_v57  ;;  %v9778_v59 = vpop.f32.mrb[101].mxu0  ;;  %v17923_v47 = vld [vmem:[%s24193_s17 + $0x8] sm:$0xff] }
0x3ca9   :  { %v9779_v60 = vadd.f32 %v9778_v59, %v9711_v57  ;;  %v20989_v57 = vpack.c.bf16 %v17941_v55, %v17940_v31  ;;  %v17933_v59 = vld [vmem:[%s24190_s15 + $0xc8] sm:$0xff] }
0x3caa   :  { %v17954_v31 = vld [vmem:[%s24190_s15 + $0x68] sm:$0xff] }
0x3cab   :  { %19900 = vmatpush3.msra.mxu0 %v9779_v60 }
0x3cac   :  { %20970 = vmatprep.subr.bf16.mxu0 %v20969_v30 }
0x3d75   :  { %v19877_v20 = vpop.f32.mrb[104].mxu1 }
0x3d76   :  { %v9694_v2 = vpop.f32.mrb[105].mxu1  ;;  %v9700_v12 = vadd.f32 %v19877_v20, %v9627_v61  ;;  %v17934_v20 = vld [vmem:[%s24190_s15 + $0xd0] sm:$0xff] }
0x3d77   :  { %v9695_v7 = vadd.f32 %v9694_v2, %v9627_v61 }
0x3d79   :  { %19890 = vmatpush3.xpose.msk.msra.mxu1 %vm453_vm5, %v9695_v7  ;;  %v20981_v7 = vpack.c.bf16 %v17935_v1, %v17934_v20 }
0x3d7a   :  { %19894 = vmatprep.subr.mxu1 %v21562_v22 }
0x3d7c   :  { %19892 = vmatmul.mubr.msk.f32.vlgmr.msra.gmra.mrb[106].mxu1 %vm453_vm5, %v9611_v8 }
0x3d7d   :  { %19895 = vmatpush3.xpose.msk.msra.mxu1 %vm453_vm5, %v9700_v12  ;;  %19896 = vmatprep.mubr.msk.f32.mxu1 %vm21563_vm4, %v21562_v22 }
0x3d7e   :  { %19904 = vmatprep.subr.mxu1 %v21562_v22 }
0x3d80   :  { %19897 = vmatmul.mubr.msk.f32.vlgmr.msra.gmra.mrb[108].mxu1 %vm453_vm5, %v9616_v11 }
0x3d81   :  { %19905 = vmatpush3.msra.mxu1 %v9784_v58  ;;  %19906 = vmatprep.mubr.msk.f32.mxu1 %vm21563_vm4, %v21562_v22  ;;  %v17932_v58 = vld [vmem:[%s24190_s15 + $0xc0] sm:$0xff] }
0x3d82   :  { %19909 = vmatprep.subr.mxu1 %v17923_v47  ;;  %v20977_v60 = vpack.c.bf16 %v17933_v59, %v17932_v58  ;;  %v17955_v59 = vld [vmem:[%s24190_s15 + $0x70] sm:$0xff] }
0x3e4f   :  { %v9859_v9 = vpop.f32.mrb[106].mxu1 }
0x3e50   :  { %v9939_v10 = vmul.f32 0.35355338, %v9859_v9  ;;  %v19893_v4 = vpop.f32.mrb[107].mxu1 }
0x3e52   :  { %v9941_v13 = vsel %vm453_vm5, %v9939_v10, -inf }
0x3e53   :  { %9942 = vmax.xlane.f32.xlu1 %v9941_v13  ;;  %v9935_v23 = vpop.f32.mrb[108].mxu1  ;;  %v10286_v13 = vrot.slane %v23037_v54, %v21972_v5 }
0x3e54   :  { %v9940_v14 = vmul.f32 0.35355338, %v9935_v23  ;;  %v19898_v15 = vpop.f32.mrb[109].mxu1  ;;  %v10202_v23 = vrot.slane %v23037_v54, %v21975_v6 }
0x3e55   :  { %v10370_v15 = vrot.slane %v23050_v46, %v21975_v6 }
0x3e56   :  { %v9944_v17 = vsel %vm453_vm5, %v9940_v14, -inf }
0x3e57   :  { %9945 = vmax.xlane.f32.xlu0 %v9944_v17 }
0x3ee0   :  { %v9943_v52 = vpop.xlane.xlu1 %9942 }
0x3ee1   :  { %v9947_v42 = vsub.f32 %v9939_v10, %v9943_v52 }
0x3ee3   :  { %v9949_v18 = vmul.f32 1.442695, %v9947_v42 }
0x3ee4   :  { %v9946_v19 = vpop.xlane.xlu0 %9945 }
0x3ee5   :  { %21446 = vpow2.f32 %v9949_v18  ;;  %v9948_v53 = vsub.f32 %v9940_v14, %v9946_v19 }
0x3ee7   :  { %v9951_v21 = vmul.f32 1.442695, %v9948_v53 }
0x3ee9   :  { %21448 = vpow2.f32 %v9951_v21 }
0x3eef   :  { %v21447_v44 = vpop.eup %21446 }
0x3ef0   :  { %v9953_v29 = vsel %vm453_vm5, %v21447_v44, 0.0 }
0x3ef1   :  { %9954 = vadd.xlane.f32.xlu1 %v9953_v29 }
0x3ef3   :  { %v21449_v25 = vpop.eup %21448 }
0x3ef4   :  { %v9956_v26 = vsel %vm453_vm5, %v21449_v25, 0.0 }
0x3ef5   :  { %9957 = vadd.xlane.f32.xlu0 %v9956_v26 }
0x3f7e   :  { %v9955_v32 = vpop.xlane.xlu1 %9954 }
0x3f7f   :  { %21450 = vrcp.f32 %v9955_v32 }
0x3f82   :  { %v9958_v33 = vpop.xlane.xlu0 %9957 }
0x3f83   :  { %21452 = vrcp.f32 %v9958_v33 }
0x3f89   :  { %v21451_v36 = vpop.eup %21450 }
0x3f8a   :  { %v9960_v37 = vmul.f32 %v21451_v36, %v21447_v44 }
0x3f8c   :  { %19902 = vmatmul.mubr.msk.f32.vlgmr.msra.gmra.mrb[102].mxu0 %vm453_vm5, %v9960_v37 }
0x3f8d   :  { %v21453_v49 = vpop.eup %21452  ;;  %20972 = vmatpush3.bf16.msra.mxu0 %v20969_v30  ;;  %19922 = vmatprep.mubr.msk.f32.mxu0 %vm203_vm3, %v23019_v27 }
0x3f8e   :  { %v9962_v41 = vmul.f32 %v21453_v49, %v21449_v25  ;;  %20974 = vmatprep.subr.bf16.mxu0 %v20973_v38 }
0x3f90   :  { %19907 = vmatmul.mubr.msk.f32.vlgmr.msra.gmra.mrb[110].mxu1 %vm453_vm5, %v9962_v41 }
0x3f91   :  { %20976 = vmatpush3.bf16.msra.mxu0 %v20973_v38  ;;  %19910 = vmatpush3.msra.mxu1 %v17923_v47 }
0x3f92   :  { %20986 = vmatprep.subr.bf16.mxu0 %v20985_v51  ;;  %20978 = vmatprep.subr.bf16.mxu1 %v20977_v60 }
0x3f94   :  { %19923 = vmatmul.mubr.msk.f32.vlgmr.msra.gmra.mrb[104].mxu0 %vm203_vm3, %v23021_v28 }
0x3f95   :  { %20988 = vmatpush3.bf16.msra.mxu0 %v20985_v51  ;;  %19944 = vmatprep.mubr.msk.f32.mxu0 %vm203_vm3, %v22981_v63  ;;  %v17953_v51 = vld [vmem:[%s24190_s15 + $0x60] sm:$0xff] }
0x3f96   :  { %20990 = vmatprep.subr.bf16.mxu0 %v20989_v57  ;;  %v20993_v55 = vpack.c.bf16 %v17954_v31, %v17953_v51 }
0x3f99   :  { %20992 = vmatpush3.bf16.msra.mxu0 %v20989_v57  ;;  %v17950_v57 = vld [vmem:[%s24193_s17 + $0x10] sm:$0xff] }
0x3f9a   :  { %19952 = vmatprep.subr.mxu0 %v21562_v22 }
0x3f9c   :  { %19945 = vmatmul.mubr.msk.f32.vlgmr.msra.gmra.mrb[106].mxu0 %vm203_vm3, %v22983_v0 }
0x3f9d   :  { %19954 = vmatprep.mubr.msk.f32.mxu0 %vm21563_vm4, %v21562_v22 }
0x405f   :  { %v10032_v61 = vpop.f32.mrb[102].mxu0 }
0x4060   :  { %v19903_v2 = vpop.f32.mrb[103].mxu0  ;;  %19911 = vmatprep.mubr.msk.f32.mxu1 %vm453_vm5, %v10032_v61 }
0x4063   :  { %v10105_v8 = vpop.f32.mrb[110].mxu1 }
0x4064   :  { %v19908_v12 = vpop.f32.mrb[111].mxu1  ;;  %19912 = vmatmul.mubr.msk.f32.vlgmr.msra.gmra.mrb[102].mxu1 %vm453_vm5, %v10105_v8  ;;  %v17965_v8 = vld [vmem:[%s24190_s15 + $0x160] sm:$0xff] }
0x4065   :  { %20980 = vmatpush3.bf16.msra.mxu1 %v20977_v60  ;;  %19933 = vmatprep.mubr.msk.f32.mxu1 %vm203_vm3, %v22981_v63  ;;  %v17956_v60 = vld [vmem:[%s24190_s15 + $0x78] sm:$0xff]  ;;  %v17966_v12 = vld [vmem:[%s24190_s15 + $0x168] sm:$0xff] }
0x4066   :  { %20982 = vmatprep.subr.bf16.mxu1 %v20981_v7  ;;  %v20997_v2 = vpack.c.bf16 %v17956_v60, %v17955_v59 }
0x4067   :  { %v19924_v11 = vpop.f32.mrb[104].mxu0 }
0x4068   :  { %v10269_v9 = vpop.f32.mrb[105].mxu0  ;;  %v10275_v18 = vadd.f32 %v19924_v11, %v10202_v23  ;;  %v21009_v11 = vpack.c.bf16 %v17966_v12, %v17965_v8 }
0x4069   :  { %20984 = vmatpush3.bf16.msra.mxu1 %v20981_v7  ;;  %v10270_v19 = vadd.f32 %v10269_v9, %v10202_v23  ;;  %v17967_v9 = vld [vmem:[%s24190_s15 + $0x170] sm:$0xff]  ;;  %v17960_v23 = vld [vmem:[%s24190_s15 + $0xe8] sm:$0xff] }
0x406a   :  { %19947 = vmatprep.subr.mxu1 %v21562_v22 }
0x406c   :  { %19934 = vmatmul.mubr.msk.f32.vlgmr.msra.gmra.mrb[112].mxu1 %vm203_vm3, %v22983_v0 }
0x406d   :  { %19949 = vmatprep.mubr.msk.f32.mxu1 %vm21563_vm4, %v21562_v22 }
0x406f   :  { %v19946_v10 = vpop.f32.mrb[106].mxu0 }
0x4070   :  { %v10437_v4 = vpop.f32.mrb[107].mxu0  ;;  %v10443_v53 = vadd.f32 %v19946_v10, %v10370_v15  ;;  %v17968_v10 = vld [vmem:[%s24190_s15 + $0x178] sm:$0xff] }
0x4071   :  { %v10438_v21 = vadd.f32 %v10437_v4, %v10370_v15  ;;  %v21013_v4 = vpack.c.bf16 %v17968_v10, %v17967_v9  ;;  %v17961_v15 = vld [vmem:[%s24190_s15 + $0xf0] sm:$0xff] }
0x413f   :  { %v19935_v14 = vpop.f32.mrb[112].mxu1 }
0x4140   :  { %v10359_v17 = vadd.f32 %v19935_v14, %v10286_v13  ;;  %v10353_v52 = vpop.f32.mrb[113].mxu1 }
0x4141   :  { %v10354_v42 = vadd.f32 %v10353_v52, %v10286_v13  ;;  %v17959_v13 = vld [vmem:[%s24190_s15 + $0xe0] sm:$0xff] }
0x4142   :  { %19953 = vmatpush3.xpose.msk.msra.mxu0 %vm453_vm5, %v10359_v17  ;;  %v21001_v14 = vpack.c.bf16 %v17960_v23, %v17959_v13  ;;  %v17962_v17 = vld [vmem:[%s24190_s15 + $0xf8] sm:$0xff] }
0x4143   :  { %19948 = vmatpush3.xpose.msk.msra.mxu1 %vm453_vm5, %v10354_v42  ;;  %19962 = vmatprep.subr.mxu0 %v21562_v22 }
0x4144   :  { %19957 = vmatprep.subr.mxu1 %v21562_v22 }
0x4145   :  { %19955 = vmatmul.mubr.msk.f32.vlgmr.msra.gmra.mrb[108].mxu0 %vm453_vm5, %v10275_v18 }
0x4146   :  { %19950 = vmatmul.mubr.msk.f32.vlgmr.msra.gmra.mrb[114].mxu1 %vm453_vm5, %v10270_v19  ;;  %19963 = vmatpush3.msra.mxu0 %v10443_v53  ;;  %v21005_v19 = vpack.c.bf16 %v17962_v17, %v17961_v15  ;;  %v8864_v17 = vrot.slane %v22951_v3, %v21885_v56 }
0x4147   :  { %19958 = vmatpush3.msra.mxu1 %v10438_v21  ;;  %19964 = vmatprep.mubr.msk.f32.mxu0 %vm21563_vm4, %v21562_v22 }
0x4148   :  { %19959 = vmatprep.mubr.msk.f32.mxu1 %vm21563_vm4, %v21562_v22  ;;  %20994 = vmatprep.subr.bf16.mxu0 %v20993_v55 }
0x4149   :  { %19967 = vmatprep.subr.mxu1 %v17950_v57 }
0x4218   :  { %v10594_v44 = vpop.f32.mrb[108].mxu0 }
0x4219   :  { %v10599_v29 = vmul.f32 0.35355338, %v10594_v44  ;;  %v10518_v25 = vpop.f32.mrb[114].mxu1  ;;  %v19956_v26 = vpop.f32.mrb[109].mxu0 }
0x421a   :  { %v10598_v40 = vmul.f32 0.35355338, %v10518_v25  ;;  %v19951_v39 = vpop.f32.mrb[115].mxu1 }
0x421b   :  { %v10603_v30 = vsel %vm453_vm5, %v10599_v29, -inf }
0x421c   :  { %10604 = vmax.xlane.f32.xlu0 %v10603_v30  ;;  %v10600_v32 = vsel %vm453_vm5, %v10598_v40, -inf  ;;  %v10945_v30 = vrot.slane %v23037_v54, %v22064_v24 }
0x421d   :  { %10601 = vmax.xlane.f32.xlu1 %v10600_v32 }
0x42a9   :  { %v10605_v33 = vpop.xlane.xlu0 %10604 }
0x42aa   :  { %v10607_v34 = vsub.f32 %v10599_v29, %v10605_v33  ;;  %v10602_v35 = vpop.xlane.xlu1 %10601  ;;  %v11029_v29 = vrot.slane %v23050_v46, %v22059_v16  ;;  %v10861_v33 = vrot.slane %v23037_v54, %v22059_v16 }
0x42ab   :  { %v10606_v36 = vsub.f32 %v10598_v40, %v10602_v35 }
0x42ac   :  { %v10610_v37 = vmul.f32 1.442695, %v10607_v34 }
0x42ad   :  { %v10608_v38 = vmul.f32 1.442695, %v10606_v36 }
0x42ae   :  { %21454 = vpow2.f32 %v10610_v37 }
0x42af   :  { %21456 = vpow2.f32 %v10608_v38 }
0x42b8   :  { %v21455_v45 = vpop.eup %21454 }
0x42b9   :  { %v21457_v48 = vpop.eup %21456  ;;  %v10615_v49 = vsel %vm453_vm5, %v21455_v45, 0.0 }
0x42ba   :  { %10616 = vadd.xlane.f32.xlu0 %v10615_v49  ;;  %v10612_v41 = vsel %vm453_vm5, %v21457_v48, 0.0 }
0x42bb   :  { %10613 = vadd.xlane.f32.xlu1 %v10612_v41 }
0x4347   :  { %v10617_v47 = vpop.xlane.xlu0 %10616 }
0x4348   :  { %21458 = vrcp.f32 %v10617_v47  ;;  %v10614_v58 = vpop.xlane.xlu1 %10613 }
0x4349   :  { %21460 = vrcp.f32 %v10614_v58 }
0x4352   :  { %v21459_v61 = vpop.eup %21458 }
0x4353   :  { %v21461_v20 = vpop.eup %21460  ;;  %v10621_v1 = vmul.f32 %v21459_v61, %v21455_v45 }
0x4354   :  { %v10619_v7 = vmul.f32 %v21461_v20, %v21457_v48 }
0x4355   :  { %19965 = vmatmul.mubr.msk.f32.vlgmr.msra.gmra.mrb[110].mxu0 %vm453_vm5, %v10621_v1 }
0x4356   :  { %20996 = vmatpush3.bf16.msra.mxu0 %v20993_v55  ;;  %19960 = vmatmul.mubr.msk.f32.vlgmr.msra.gmra.mrb[116].mxu1 %vm453_vm5, %v10619_v7 }
0x4357   :  { %19980 = vmatprep.mubr.msk.f32.mxu0 %vm203_vm3, %v23019_v27  ;;  %20998 = vmatprep.subr.bf16.mxu0 %v20997_v2 }
0x4358   :  { %19968 = vmatpush3.msra.mxu1 %v17950_v57 }
0x4359   :  { %21002 = vmatprep.subr.bf16.mxu1 %v21001_v14 }
0x435a   :  { %21000 = vmatpush3.bf16.msra.mxu0 %v20997_v2 }
0x435b   :  { %21010 = vmatprep.subr.bf16.mxu0 %v21009_v11 }
0x435d   :  { %19981 = vmatmul.mubr.msk.f32.vlgmr.msra.gmra.mrb[112].mxu0 %vm203_vm3, %v23021_v28 }
0x435e   :  { %21012 = vmatpush3.bf16.msra.mxu0 %v21009_v11  ;;  %20002 = vmatprep.mubr.msk.f32.mxu0 %vm203_vm3, %v22981_v63 }
0x435f   :  { %21014 = vmatprep.subr.bf16.mxu0 %v21013_v4 }
0x4362   :  { %21016 = vmatpush3.bf16.msra.mxu0 %v21013_v4  ;;  %v17977_v4 = vld [vmem:[%s24193_s17 + $0x18] sm:$0xff] }
0x4363   :  { %20015 = vmatprep.subr.mxu0 %v21562_v22 }
0x4365   :  { %20003 = vmatmul.mubr.msk.f32.vlgmr.msra.gmra.mrb[114].mxu0 %vm203_vm3, %v22983_v0 }
0x4366   :  { %20017 = vmatprep.mubr.msk.f32.mxu0 %vm21563_vm4, %v21562_v22 }
0x4428   :  { %v10764_v52 = vpop.f32.mrb[110].mxu0 }
0x4429   :  { %v10691_v42 = vpop.f32.mrb[116].mxu1  ;;  %v19966_v18 = vpop.f32.mrb[111].mxu0 }
0x442a   :  { %v19961_v53 = vpop.f32.mrb[117].mxu1  ;;  %19969 = vmatprep.mubr.msk.f32.mxu1 %vm453_vm5, %v10691_v42 }
0x442b   :  { %19970 = vmatmul.mubr.msk.f32.vlgmr.msra.gmra.mrb[102].mxu1 %vm453_vm5, %v10764_v52 }
0x442c   :  { %21004 = vmatpush3.bf16.msra.mxu1 %v21001_v14  ;;  %19991 = vmatprep.mubr.msk.f32.mxu1 %vm203_vm3, %v22981_v63 }
0x442d   :  { %21006 = vmatprep.subr.bf16.mxu1 %v21005_v19 }
0x4430   :  { %v19982_v21 = vpop.f32.mrb[112].mxu0  ;;  %21008 = vmatpush3.bf16.msra.mxu1 %v21005_v19 }
0x4431   :  { %v10928_v44 = vpop.f32.mrb[113].mxu0  ;;  %20005 = vmatprep.subr.mxu1 %v21562_v22  ;;  %v10934_v37 = vadd.f32 %v19982_v21, %v10861_v33 }
0x4432   :  { %v10929_v36 = vadd.f32 %v10928_v44, %v10861_v33 }
0x4433   :  { %19992 = vmatmul.mubr.msk.f32.vlgmr.msra.gmra.mrb[118].mxu1 %vm203_vm3, %v22983_v0 }
0x4434   :  { %20007 = vmatprep.mubr.msk.f32.mxu1 %vm21563_vm4, %v21562_v22 }
0x4438   :  { %v20004_v25 = vpop.f32.mrb[114].mxu0 }
0x4439   :  { %v11102_v26 = vadd.f32 %v20004_v25, %v11029_v29  ;;  %v11096_v40 = vpop.f32.mrb[115].mxu0 }
0x443a   :  { %v11097_v39 = vadd.f32 %v11096_v40, %v11029_v29 }
0x443c   :  { %20016 = vmatpush3.msra.mxu0 %v11097_v39 }
0x4506   :  { %v19993_v32 = vpop.f32.mrb[118].mxu1 }
0x4507   :  { %v11012_v34 = vpop.f32.mrb[119].mxu1  ;;  %v11018_v46 = vadd.f32 %v19993_v32, %v10945_v30 }
0x4508   :  { %v11013_v35 = vadd.f32 %v11012_v34, %v10945_v30 }
0x450a   :  { %20006 = vmatpush3.xpose.msk.msra.mxu1 %vm453_vm5, %v11013_v35  ;;  %v11553_v35 = vld [vmem:[%s24194_s19 + $0x8] sm:$0xff] }
0x450b   :  { %20010 = vmatprep.subr.mxu1 %v21562_v22 }
0x450d   :  { %20008 = vmatmul.mubr.msk.f32.vlgmr.msra.gmra.mrb[120].mxu1 %vm453_vm5, %v10929_v36 }
0x450e   :  { %20011 = vmatpush3.xpose.msk.msra.mxu1 %vm453_vm5, %v11018_v46  ;;  %20012 = vmatprep.mubr.msk.f32.mxu1 %vm21563_vm4, %v21562_v22  ;;  %v11554_v46 = vld [vmem:[%s24194_s19 + $0x10] sm:$0xff] }
0x450f   :  { %20020 = vmatprep.subr.mxu1 %v21562_v22 }
0x4511   :  { %20013 = vmatmul.mubr.msk.f32.vlgmr.msra.gmra.mrb[122].mxu1 %vm453_vm5, %v10934_v37  ;;  %v11555_v37 = vld [vmem:[%s24194_s19 + $0x18] sm:$0xff] }
0x4512   :  { %20021 = vmatpush3.msra.mxu1 %v11102_v26  ;;  %20022 = vmatprep.mubr.msk.f32.mxu1 %vm21563_vm4, %v21562_v22 }
0x4513   :  { %20025 = vmatprep.subr.mxu1 %v17977_v4 }
0x45e0   :  { %v11177_v54 = vpop.f32.mrb[120].mxu1 }
0x45e1   :  { %v11257_v38 = vmul.f32 0.35355338, %v11177_v54  ;;  %v20009_v45 = vpop.f32.mrb[121].mxu1  ;;  %v21021_v54 = vpack.c.bf16 %v11555_v37, %v11554_v46 }
0x45e2   :  { %v11647_v45 = vld [vmem:[%s24195_s21 + $0x8] sm:$0xff] }
0x45e3   :  { %v11259_v48 = vsel %vm453_vm5, %v11257_v38, -inf }
0x45e4   :  { %11260 = vmax.xlane.f32.xlu1 %v11259_v48  ;;  %v11253_v49 = vpop.f32.mrb[122].mxu1  ;;  %v11648_v48 = vld [vmem:[%s24195_s21 + $0x10] sm:$0xff] }
0x45e5   :  { %v11258_v41 = vmul.f32 0.35355338, %v11253_v49  ;;  %v20014_v51 = vpop.f32.mrb[123].mxu1 }
0x45e7   :  { %v11262_v31 = vsel %vm453_vm5, %v11258_v41, -inf }
0x45e8   :  { %11263 = vmax.xlane.f32.xlu0 %v11262_v31  ;;  %v11650_v31 = vld [vmem:[%s24195_s21 + $0x20] sm:$0xff] }
0x4671   :  { %v11261_v55 = vpop.xlane.xlu1 %11260 }
0x4672   :  { %v11265_v57 = vsub.f32 %v11257_v38, %v11261_v55  ;;  %v11646_v38 = vld [vmem:[%s24195_s21] sm:$0xff]  ;;  %v11651_v55 = vld [vmem:[%s24195_s21 + $0x28] sm:$0xff] }
0x4673   :  { %v21025_v49 = vpack.c.bf16 %v11647_v45, %v11646_v38 }
0x4674   :  { %v11267_v47 = vmul.f32 1.442695, %v11265_v57  ;;  %v21033_v57 = vpack.c.bf16 %v11651_v55, %v11650_v31  ;;  %v18003_v31 = vld [vmem:[%s24186_s12 + $0x288] sm:$0xff] }
0x4675   :  { %v11264_v58 = vpop.xlane.xlu0 %11263 }
0x4676   :  { %21462 = vpow2.f32 %v11267_v47  ;;  %v11266_v59 = vsub.f32 %v11258_v41, %v11264_v58  ;;  %v11649_v41 = vld [vmem:[%s24195_s21 + $0x18] sm:$0xff] }
0x4677   :  { %v21029_v51 = vpack.c.bf16 %v11649_v41, %v11648_v48  ;;  %v17990_v48 = vld [vmem:[%s24186_s12 + $0x180] sm:$0xff] }
0x4678   :  { %v11269_v60 = vmul.f32 1.442695, %v11266_v59 }
0x467a   :  { %21464 = vpow2.f32 %v11269_v60 }
0x4680   :  { %v21463_v61 = vpop.eup %21462 }
0x4681   :  { %v11271_v20 = vsel %vm453_vm5, %v21463_v61, 0.0 }
0x4682   :  { %11272 = vadd.xlane.f32.xlu1 %v11271_v20 }
0x4684   :  { %v21465_v1 = vpop.eup %21464 }
0x4685   :  { %v11274_v2 = vsel %vm453_vm5, %v21465_v1, 0.0 }
0x4686   :  { %11275 = vadd.xlane.f32.xlu0 %v11274_v2 }
0x470f   :  { %v11273_v7 = vpop.xlane.xlu1 %11272 }
0x4710   :  { %21466 = vrcp.f32 %v11273_v7 }
0x4713   :  { %v11276_v8 = vpop.xlane.xlu0 %11275 }
0x4714   :  { %21468 = vrcp.f32 %v11276_v8 }
0x471a   :  { %v21467_v12 = vpop.eup %21466 }
0x471b   :  { %v11278_v11 = vmul.f32 %v21467_v12, %v21463_v61 }
0x471d   :  { %20018 = vmatmul.mubr.msk.f32.vlgmr.msra.gmra.mrb[116].mxu0 %vm453_vm5, %v11278_v11 }
0x471e   :  { %v21469_v9 = vpop.eup %21468 }
0x471f   :  { %v11280_v10 = vmul.f32 %v21469_v9, %v21465_v1  ;;  %v23355_v1 = vld [vmem:[%s24189_s18] sm:$0xff] }
0x4720   :  { %v11543_v2 = vrot.slane %v23355_v1, %v21798_v50  ;;  %v11549_v9 = vrot.slane %v23355_v1, %v21890_v62 }
0x4721   :  { %20023 = vmatmul.mubr.msk.f32.vlgmr.msra.gmra.mrb[124].mxu1 %vm453_vm5, %v11280_v10 }
0x4722   :  { %20026 = vmatpush3.msra.mxu1 %v17977_v4 }
0x4723   :  { %21026 = vmatprep.subr.bf16.mxu1 %v21025_v49 }
0x47f0   :  { %v11350_v13 = vpop.f32.mrb[116].mxu0 }
0x47f1   :  { %v20019_v23 = vpop.f32.mrb[117].mxu0  ;;  %20027 = vmatprep.mubr.msk.f32.mxu1 %vm453_vm5, %v11350_v13 }
0x47f4   :  { %v11423_v14 = vpop.f32.mrb[124].mxu1 }
0x47f5   :  { %v20024_v15 = vpop.f32.mrb[125].mxu1  ;;  %20028 = vmatmul.mubr.msk.f32.vlgmr.msra.gmra.mrb[102].mxu1 %vm453_vm5, %v11423_v14  ;;  %v11652_v14 = vld [vmem:[%s24195_s21 + $0x30] sm:$0xff] }
0x47f6   :  { %21028 = vmatpush3.bf16.msra.mxu1 %v21025_v49  ;;  %v11653_v15 = vld [vmem:[%s24195_s21 + $0x38] sm:$0xff]  ;;  %v17991_v49 = vld [vmem:[%s24186_s12 + $0x188] sm:$0xff] }
0x47f7   :  { %21030 = vmatprep.subr.bf16.mxu1 %v21029_v51  ;;  %v21041_v41 = vpack.c.bf16 %v17991_v49, %v17990_v48 }
0x47fa   :  { %21032 = vmatpush3.bf16.msra.mxu1 %v21029_v51  ;;  %v18002_v51 = vld [vmem:[%s24186_s12 + $0x280] sm:$0xff] }
0x47fb   :  { %21034 = vmatprep.subr.bf16.mxu1 %v21033_v57  ;;  %v21057_v55 = vpack.c.bf16 %v18003_v31, %v18002_v51 }
0x47fe   :  { %21036 = vmatpush3.bf16.msra.mxu1 %v21033_v57  ;;  %v17992_v57 = vld [vmem:[%s24186_s12 + $0x190] sm:$0xff] }
0x48c8   :  { %v20029_v52 = vpop.f32.mrb[102].mxu1 }
0x48c9   :  { %v21271_v42 = vadd.f32 %v20029_v52, %v8864_v17  ;;  %v11501_v18 = vpop.f32.mrb[103].mxu1  ;;  %v17980_v52 = vld [vmem:[%s24196_s20] ss:$0 sm:$0xff] }
0x48ca   :  { %v21272_v19 = vadd.f32 %v11501_v18, %v8864_v17  ;;  %v21037_v17 = vpack.c.bf16 %v11653_v15, %v11652_v14 }
0x48cb   :  { %v11513_v53 = vadd.f32 %v21271_v42, %v23021_v28 }
0x48cc   :  { %v11512_v21 = vadd.f32 %v21272_v19, %v23019_v27  ;;  %v11552_v27 = vld [vmem:[%s24194_s19] sm:$0xff]  ;;  %21038 = vmatprep.subr.bf16.mxu1 %v21037_v17 }
0x48cd   :  { %v11517_v44 = vsel %vm203_vm3, %v11513_v53, 0.0  ;;  %v21017_v36 = vpack.c.bf16 %v11553_v35, %v11552_v27  ;;  %21040 = vmatpush3.bf16.msra.mxu1 %v21037_v17  ;;  %v11776_v17 = vrot.slane %v23355_v1, %v22064_v24 }
0x48ce   :  { %11518 = vadd.xlane.f32.xlu0 %v11517_v44  ;;  %v11514_v29 = vsel %vm203_vm3, %v11512_v21, 0.0  ;;  %21058 = vmatprep.subr.bf16.mxu1 %v21057_v55 }
0x48cf   :  { %11515 = vadd.xlane.f32.xlu1 %v11514_v29  ;;  %21018 = vmatprep.subr.bf16.mxu0 %v21017_v36  ;;  %v17983_v29 = vld [vmem:[%s24189_s18 + $0x8] ss:$0 sm:$0xff] }
0x48d0   :  { %21020 = vmatpush3.bf16.msra.mxu0 %v21017_v36 }
0x48d1   :  { %21022 = vmatprep.subr.bf16.mxu0 %v21021_v54 }
0x48d4   :  { %21024 = vmatpush3.bf16.msra.mxu0 %v21021_v54 }
0x48d5   :  { %21042 = vmatprep.subr.bf16.mxu0 %v21041_v41 }
0x495b   :  { %v11519_v25 = vpop.xlane.xlu0 %11518 }
0x495c   :  { %v11521_v26 = vmul.f32 0.03125, %v11519_v25  ;;  %v11516_v40 = vpop.xlane.xlu1 %11515 }
0x495d   :  { %v11520_v39 = vmul.f32 0.03125, %v11516_v40 }
0x495e   :  { %v11523_v30 = vsub.f32 %v11513_v53, %v11521_v26 }
0x495f   :  { %v11522_v3 = vsub.f32 %v11512_v21, %v11520_v39 }
0x4960   :  { %v11525_v32 = vmul.f32 %v11523_v30, %v11523_v30 }
0x4961   :  { %v11524_v33 = vmul.f32 %v11522_v3, %v11522_v3 }
0x4962   :  { %v11529_v34 = vsel %vm203_vm3, %v11525_v32, 0.0 }
0x4963   :  { %11530 = vadd.xlane.f32.xlu0 %v11529_v34  ;;  %v11526_v28 = vsel %vm203_vm3, %v11524_v33, 0.0 }
0x4964   :  { %11527 = vadd.xlane.f32.xlu1 %v11526_v28 }
0x49f0   :  { %v11531_v47 = vpop.xlane.xlu0 %11530 }
0x49f1   :  { %v11533_v58 = vmul.f32 0.03125, %v11531_v47  ;;  %v11528_v59 = vpop.xlane.xlu1 %11527  ;;  %v17993_v47 = vld [vmem:[%s24186_s12 + $0x198] sm:$0xff] }
0x49f2   :  { %v11532_v60 = vmul.f32 0.03125, %v11528_v59  ;;  %v18004_v59 = vld [vmem:[%s24186_s12 + $0x290] sm:$0xff] }
0x49f3   :  { %v11535_v61 = vadd.f32 1e-05, %v11533_v58  ;;  %v21045_v58 = vpack.c.bf16 %v17993_v47, %v17992_v57 }
0x49f4   :  { %v11534_v20 = vadd.f32 1e-05, %v11532_v60  ;;  %v18005_v60 = vld [vmem:[%s24186_s12 + $0x298] sm:$0xff] }
0x49f5   :  { %21470 = vrsqrt.f32 %v11535_v61  ;;  %v21061_v61 = vpack.c.bf16 %v18005_v60, %v18004_v59 }
0x49f6   :  { %21472 = vrsqrt.f32 %v11534_v20  ;;  %v17996_v20 = vld [vmem:[%s24186_s12 + $0x200] sm:$0xff] }
0x49ff   :  { %v21471_v7 = vpop.eup %21470 }
0x4a00   :  { %v21473_v8 = vpop.eup %21472  ;;  %v11539_v12 = vmul.f32 %v21471_v7, %v11523_v30 }
0x4a01   :  { %v11538_v11 = vmul.f32 %v21473_v8, %v11522_v3 }
0x4a02   :  { %v11545_v10 = vmul.f32 %v11543_v2, %v11539_v12 }
0x4a03   :  { %v11544_v4 = vmul.f32 %v11543_v2, %v11538_v11  ;;  %v17997_v2 = vld [vmem:[%s24186_s12 + $0x208] sm:$0xff] }
0x4a04   :  { %v11551_v23 = vadd.f32 %v11549_v9, %v11545_v10  ;;  %v21049_v7 = vpack.c.bf16 %v17997_v2, %v17996_v20 }
0x4a05   :  { %v11550_v13 = vadd.f32 %v11549_v9, %v11544_v4 }
0x4a07   :  { %20038 = vmatprep.mubr.msk.f32.mxu0 %vm203_vm3, %v11550_v13 }
0x4a08   :  { %20039 = vmatmul.mubr.msk.f32.vlgmr.msra.gmra.mrb[118].mxu0 %vm203_vm3, %v11551_v23 }
0x4a09   :  { %21044 = vmatpush3.bf16.msra.mxu0 %v21041_v41 }
0x4a0a   :  { %21046 = vmatprep.subr.bf16.mxu0 %v21045_v58 }
0x4a0d   :  { %21048 = vmatpush3.bf16.msra.mxu0 %v21045_v58 }
0x4a0e   :  { %21050 = vmatprep.subr.bf16.mxu0 %v21049_v7 }
0x4adb   :  { %v20040_v42 = vpop.f32.mrb[118].mxu0 }
0x4adc   :  { %v11641_v18 = vadd.f32 %v20040_v42, %v17980_v52  ;;  %v11635_v19 = vpop.f32.mrb[119].mxu0 }
0x4add   :  { %v11636_v53 = vadd.f32 %v17980_v52, %v11635_v19  ;;  %v17998_v19 = vld [vmem:[%s24186_s12 + $0x210] sm:$0xff] }
0x4ade   :  { %v11645_v44 = vmax.f32 %v11641_v18, 0.0 }
0x4adf   :  { %v11644_v21 = vmax.f32 %v11636_v53, 0.0  ;;  %v17999_v53 = vld [vmem:[%s24186_s12 + $0x218] sm:$0xff] }
0x4ae1   :  { %20057 = vmatprep.mubr.msk.f32.mxu1 %vm2984_vm6, %v11644_v21 }
0x4ae2   :  { %20058 = vmatmul.mubr.msk.f32.vlgmr.msra.gmra.mrb[126].mxu1 %vm2984_vm6, %v11645_v44 }
0x4ae3   :  { %21060 = vmatpush3.bf16.msra.mxu1 %v21057_v55 }
0x4ae4   :  { %21062 = vmatprep.subr.bf16.mxu1 %v21061_v61 }
0x4ae7   :  { %21064 = vmatpush3.bf16.msra.mxu1 %v21061_v61 }
0x4ae8   :  { %20103 = vmatprep.subr.mxu1 %v21562_v22 }
0x4bb5   :  { %v20059_v25 = vpop.f32.mrb[126].mxu1 }
0x4bb6   :  { %v11736_v26 = vadd.f32 %v20059_v25, %v17983_v29  ;;  %v11730_v40 = vpop.f32.mrb[127].mxu1 }
0x4bb7   :  { %v11731_v39 = vadd.f32 %v17983_v29, %v11730_v40  ;;  %v21053_v29 = vpack.c.bf16 %v17999_v53, %v17998_v19  ;;  %v18030_v19 = vld [vmem:[%s24186_s12 + $0x2a8] sm:$0xff] }
0x4bb8   :  { %v11740_v30 = vadd.f32 %v11736_v26, %v11551_v23 }
0x4bb9   :  { %v11739_v3 = vadd.f32 %v11731_v39, %v11550_v13  ;;  %v11770_v13 = vrot.slane %v23355_v1, %v21972_v5  ;;  %v23446_v1 = vld [vmem:[%s24187_s13 + $0x18] sm:$0xf] }
0x4bba   :  { %v11744_v32 = vsel %vm203_vm3, %v11740_v30, 0.0  ;;  %v11972_v25 = vrot.slane %v23446_v1, %v21788_v43 }
0x4bbb   :  { %11745 = vadd.xlane.f32.xlu0 %v11744_v32  ;;  %v11741_v33 = vsel %vm203_vm3, %v11739_v3, 0.0  ;;  %v23453_v32 = vld [vmem:[%s24187_s13 + $0x10] sm:$0xff] }
0x4bbc   :  { %11742 = vadd.xlane.f32.xlu1 %v11741_v33  ;;  %v11888_v33 = vrot.slane %v23453_v32, %v21798_v50 }
0x4c48   :  { %v11746_v34 = vpop.xlane.xlu0 %11745 }
0x4c49   :  { %v11748_v28 = vmul.f32 0.03125, %v11746_v34  ;;  %v11743_v27 = vpop.xlane.xlu1 %11742 }
0x4c4a   :  { %v11747_v35 = vmul.f32 0.03125, %v11743_v27 }
0x4c4b   :  { %v11750_v36 = vsub.f32 %v11740_v30, %v11748_v28  ;;  %v11798_v28 = vrot.slane %v23453_v32, %v21788_v43 }
0x4c4c   :  { %v11749_v46 = vsub.f32 %v11739_v3, %v11747_v35 }
0x4c4d   :  { %v11752_v37 = vmul.f32 %v11750_v36, %v11750_v36 }
0x4c4e   :  { %v11751_v54 = vmul.f32 %v11749_v46, %v11749_v46 }
0x4c4f   :  { %v11756_v38 = vsel %vm203_vm3, %v11752_v37, 0.0 }
0x4c50   :  { %11757 = vadd.xlane.f32.xlu0 %v11756_v38  ;;  %v11753_v45 = vsel %vm203_vm3, %v11751_v54, 0.0 }
0x4c51   :  { %11754 = vadd.xlane.f32.xlu1 %v11753_v45 }
0x4cdd   :  { %v11758_v8 = vpop.xlane.xlu0 %11757 }
0x4cde   :  { %v11760_v12 = vmul.f32 0.03125, %v11758_v8  ;;  %v11755_v11 = vpop.xlane.xlu1 %11754 }
0x4cdf   :  { %v11759_v9 = vmul.f32 0.03125, %v11755_v11  ;;  %v18018_v11 = vld [vmem:[%s24186_s12 + $0x1a8] sm:$0xff] }
0x4ce0   :  { %v11762_v10 = vadd.f32 1e-05, %v11760_v12  ;;  %v18017_v12 = vld [vmem:[%s24186_s12 + $0x1a0] sm:$0xff] }
0x4ce1   :  { %v11761_v4 = vadd.f32 1e-05, %v11759_v9  ;;  %v21065_v9 = vpack.c.bf16 %v18018_v11, %v18017_v12 }
0x4ce2   :  { %21474 = vrsqrt.f32 %v11762_v10 }
0x4ce3   :  { %21476 = vrsqrt.f32 %v11761_v4 }
0x4cec   :  { %v21475_v23 = vpop.eup %21474 }
0x4ced   :  { %v21477_v14 = vpop.eup %21476  ;;  %v11766_v15 = vmul.f32 %v21475_v23, %v11750_v36 }
0x4cee   :  { %v11765_v52 = vmul.f32 %v21477_v14, %v11749_v46  ;;  %v18019_v14 = vld [vmem:[%s24186_s12 + $0x1b0] sm:$0xff] }
0x4cef   :  { %v11772_v42 = vmul.f32 %v11770_v13, %v11766_v15  ;;  %v18020_v15 = vld [vmem:[%s24186_s12 + $0x1b8] sm:$0xff] }
0x4cf0   :  { %v11771_v18 = vmul.f32 %v11770_v13, %v11765_v52 }
0x4cf1   :  { %v23424_v44 = vadd.f32 %v11776_v17, %v11772_v42  ;;  %v21069_v42 = vpack.c.bf16 %v18020_v15, %v18019_v14 }
0x4cf2   :  { %v23422_v21 = vadd.f32 %v11776_v17, %v11771_v18  ;;  %v18029_v18 = vld [vmem:[%s24186_s12 + $0x2a0] sm:$0xff] }
0x4cf3   :  { %v21081_v53 = vpack.c.bf16 %v18030_v19, %v18029_v18  ;;  %v18044_v19 = vld [vmem:[%s24186_s12 + $0x1c0] sm:$0xff] }
0x4cf4   :  { %20068 = vmatprep.mubr.msk.f32.mxu0 %vm203_vm3, %v23422_v21  ;;  %20090 = vmatprep.mubr.msk.f32.mxu1 %vm203_vm3, %v23422_v21 }
0x4cf5   :  { %20069 = vmatmul.mubr.msk.f32.vlgmr.msra.gmra.mrb[120].mxu0 %vm203_vm3, %v23424_v44  ;;  %20091 = vmatmul.mubr.msk.f32.vlgmr.msra.gmra.mrb[128].mxu1 %vm203_vm3, %v23424_v44 }
0x4cf6   :  { %21052 = vmatpush3.bf16.msra.mxu0 %v21049_v7  ;;  %20079 = vmatprep.mubr.msk.f32.mxu0 %vm203_vm3, %v23422_v21 }
0x4cf7   :  { %21054 = vmatprep.subr.bf16.mxu0 %v21053_v29  ;;  %20105 = vmatprep.mubr.msk.f32.mxu1 %vm21563_vm4, %v21562_v22 }
0x4cfa   :  { %21056 = vmatpush3.bf16.msra.mxu0 %v21053_v29  ;;  %v18031_v29 = vld [vmem:[%s24186_s12 + $0x2b0] sm:$0xff] }
0x4cfb   :  { %20093 = vmatprep.subr.mxu0 %v21562_v22 }
0x4cfd   :  { %20080 = vmatmul.mubr.msk.f32.vlgmr.msra.gmra.mrb[122].mxu0 %vm203_vm3, %v23424_v44 }
0x4cfe   :  { %20095 = vmatprep.mubr.msk.f32.mxu0 %vm21563_vm4, %v21562_v22 }
0x4dc8   :  { %v20070_v26 = vpop.f32.mrb[120].mxu0  ;;  %v20092_v40 = vpop.f32.mrb[128].mxu1 }
0x4dc9   :  { %v11871_v39 = vpop.f32.mrb[121].mxu0  ;;  %v12039_v30 = vpop.f32.mrb[129].mxu1  ;;  %v11877_v37 = vadd.f32 %v20070_v26, %v11798_v28  ;;  %v12045_v54 = vadd.f32 %v20092_v40, %v11972_v25  ;;  %v18014_v40 = vld [vmem:[%s24188_s14 + $0x20] sm:$0xff] }
0x4dca   :  { %v12040_v3 = vadd.f32 %v12039_v30, %v11972_v25  ;;  %v11872_v36 = vadd.f32 %v11871_v39, %v11798_v28  ;;  %v18032_v25 = vld [vmem:[%s24186_s12 + $0x2b8] sm:$0xff]  ;;  %v18023_v39 = vld [vmem:[%s24186_s12 + $0x220] sm:$0xff]  ;;  %v18024_v30 = vld [vmem:[%s24186_s12 + $0x228] sm:$0xff] }
0x4dcb   :  { %v21085_v26 = vpack.c.bf16 %v18032_v25, %v18031_v29  ;;  %v18026_v28 = vld [vmem:[%s24186_s12 + $0x238] sm:$0xff] }
0x4dcc   :  { %20104 = vmatpush3.msra.mxu1 %v12040_v3  ;;  %v21073_v3 = vpack.c.bf16 %v18024_v30, %v18023_v39  ;;  %v18047_v39 = vld [vmem:[%s24186_s12 + $0x1d8] sm:$0xff] }
0x4dcd   :  { %20113 = vmatprep.subr.mxu1 %v18014_v40 }
0x4dd0   :  { %v20081_v34 = vpop.f32.mrb[122].mxu0 }
0x4dd1   :  { %v11955_v27 = vpop.f32.mrb[123].mxu0  ;;  %v11961_v46 = vadd.f32 %v20081_v34, %v11888_v33  ;;  %v18025_v34 = vld [vmem:[%s24186_s12 + $0x230] sm:$0xff] }
0x4dd2   :  { %v11956_v35 = vadd.f32 %v11955_v27, %v11888_v33 }
0x4dd4   :  { %20094 = vmatpush3.xpose.msk.msra.mxu0 %vm453_vm5, %v11956_v35  ;;  %v21077_v35 = vpack.c.bf16 %v18026_v28, %v18025_v34  ;;  %v18056_v34 = vld [vmem:[%s24186_s12 + $0x2c0] sm:$0xff]  ;;  %v18057_v28 = vld [vmem:[%s24186_s12 + $0x2c8] sm:$0xff] }
0x4dd5   :  { %20098 = vmatprep.subr.mxu0 %v21562_v22 }
0x4dd7   :  { %20096 = vmatmul.mubr.msk.f32.vlgmr.msra.gmra.mrb[124].mxu0 %vm453_vm5, %v11872_v36 }
0x4dd8   :  { %20099 = vmatpush3.xpose.msk.msra.mxu0 %vm453_vm5, %v11961_v46  ;;  %20100 = vmatprep.mubr.msk.f32.mxu0 %vm21563_vm4, %v21562_v22 }
0x4dd9   :  { %20108 = vmatprep.subr.mxu0 %v21562_v22 }
0x4ddb   :  { %20101 = vmatmul.mubr.msk.f32.vlgmr.msra.gmra.mrb[126].mxu0 %vm453_vm5, %v11877_v37 }
0x4ddc   :  { %20109 = vmatpush3.msra.mxu0 %v12045_v54  ;;  %20110 = vmatprep.mubr.msk.f32.mxu0 %vm21563_vm4, %v21562_v22 }
0x4ddd   :  { %21066 = vmatprep.subr.bf16.mxu0 %v21065_v9 }
0x4eaa   :  { %v12120_v38 = vpop.f32.mrb[124].mxu0 }
0x4eab   :  { %v12200_v45 = vmul.f32 0.35355338, %v12120_v38  ;;  %v20097_v48 = vpop.f32.mrb[125].mxu0  ;;  %v12631_v38 = vrot.slane %v23446_v1, %v21885_v56 }
0x4ead   :  { %v12202_v49 = vsel %vm453_vm5, %v12200_v45, -inf }
0x4eae   :  { %12203 = vmax.xlane.f32.xlu1 %v12202_v49  ;;  %v12196_v41 = vpop.f32.mrb[126].mxu0 }
0x4eaf   :  { %v12201_v51 = vmul.f32 0.35355338, %v12196_v41  ;;  %v20102_v31 = vpop.f32.mrb[127].mxu0 }
0x4eb1   :  { %v12205_v55 = vsel %vm453_vm5, %v12201_v51, -inf }
0x4eb2   :  { %12206 = vmax.xlane.f32.xlu0 %v12205_v55  ;;  %v12463_v55 = vrot.slane %v23453_v32, %v21885_v56 }
0x4f3b   :  { %v12204_v57 = vpop.xlane.xlu1 %12203 }
0x4f3c   :  { %v12208_v47 = vsub.f32 %v12200_v45, %v12204_v57 }
0x4f3e   :  { %v12210_v58 = vmul.f32 1.442695, %v12208_v47 }
0x4f3f   :  { %v12207_v59 = vpop.xlane.xlu0 %12206 }
0x4f40   :  { %21478 = vpow2.f32 %v12210_v58  ;;  %v12209_v60 = vsub.f32 %v12201_v51, %v12207_v59  ;;  %v12547_v51 = vrot.slane %v23453_v32, %v21890_v62 }
0x4f42   :  { %v12212_v61 = vmul.f32 1.442695, %v12209_v60 }
0x4f44   :  { %21480 = vpow2.f32 %v12212_v61 }
0x4f4a   :  { %v21479_v20 = vpop.eup %21478 }
0x4f4b   :  { %v12214_v2 = vsel %vm453_vm5, %v21479_v20, 0.0 }
0x4f4c   :  { %12215 = vadd.xlane.f32.xlu1 %v12214_v2 }
0x4f4e   :  { %v21481_v7 = vpop.eup %21480 }
0x4f4f   :  { %v12217_v8 = vsel %vm453_vm5, %v21481_v7, 0.0 }
0x4f50   :  { %12218 = vadd.xlane.f32.xlu0 %v12217_v8 }
0x4fd9   :  { %v12216_v10 = vpop.xlane.xlu1 %12215 }
0x4fda   :  { %21482 = vrcp.f32 %v12216_v10 }
0x4fdd   :  { %v12219_v4 = vpop.xlane.xlu0 %12218 }
0x4fde   :  { %21484 = vrcp.f32 %v12219_v4 }
0x4fe4   :  { %v21483_v13 = vpop.eup %21482 }
0x4fe5   :  { %v12221_v23 = vmul.f32 %v21483_v13, %v21479_v20 }
0x4fe7   :  { %20106 = vmatmul.mubr.msk.f32.vlgmr.msra.gmra.mrb[130].mxu1 %vm453_vm5, %v12221_v23 }
0x4fe8   :  { %v21485_v17 = vpop.eup %21484  ;;  %20114 = vmatpush3.msra.mxu1 %v18014_v40  ;;  %v18046_v40 = vld [vmem:[%s24186_s12 + $0x1d0] sm:$0xff] }
0x4fe9   :  { %v12223_v52 = vmul.f32 %v21485_v17, %v21481_v7  ;;  %21074 = vmatprep.subr.bf16.mxu1 %v21073_v3 }
0x4feb   :  { %20111 = vmatmul.mubr.msk.f32.vlgmr.msra.gmra.mrb[128].mxu0 %vm453_vm5, %v12223_v52 }
0x4fec   :  { %21068 = vmatpush3.bf16.msra.mxu0 %v21065_v9  ;;  %20126 = vmatprep.mubr.msk.f32.mxu0 %vm203_vm3, %v23422_v21 }
0x4fed   :  { %21070 = vmatprep.subr.bf16.mxu0 %v21069_v42 }
0x4ff0   :  { %21072 = vmatpush3.bf16.msra.mxu0 %v21069_v42 }
0x4ff1   :  { %21082 = vmatprep.subr.bf16.mxu0 %v21081_v53 }
0x4ff3   :  { %20127 = vmatmul.mubr.msk.f32.vlgmr.msra.gmra.mrb[130].mxu0 %vm203_vm3, %v23424_v44 }
0x4ff4   :  { %21084 = vmatpush3.bf16.msra.mxu0 %v21081_v53  ;;  %20148 = vmatprep.mubr.msk.f32.mxu0 %vm203_vm3, %v23422_v21  ;;  %v18045_v53 = vld [vmem:[%s24186_s12 + $0x1c8] sm:$0xff] }
0x4ff5   :  { %21086 = vmatprep.subr.bf16.mxu0 %v21085_v26  ;;  %v21089_v29 = vpack.c.bf16 %v18045_v53, %v18044_v19 }
0x4ff8   :  { %21088 = vmatpush3.bf16.msra.mxu0 %v21085_v26 }
0x4ff9   :  { %20161 = vmatprep.subr.mxu0 %v21562_v22 }
0x4ffb   :  { %20149 = vmatmul.mubr.msk.f32.vlgmr.msra.gmra.mrb[132].mxu0 %vm203_vm3, %v23424_v44 }
0x4ffc   :  { %20163 = vmatprep.mubr.msk.f32.mxu0 %vm21563_vm4, %v21562_v22 }
0x50ba   :  { %v12293_v33 = vpop.f32.mrb[130].mxu1 }
0x50bb   :  { %v20107_v27 = vpop.f32.mrb[131].mxu1  ;;  %20115 = vmatprep.mubr.msk.f32.mxu1 %vm453_vm5, %v12293_v33  ;;  %v21093_v33 = vpack.c.bf16 %v18047_v39, %v18046_v40 }
0x50be   :  { %v12366_v36 = vpop.f32.mrb[128].mxu0 }
0x50bf   :  { %v20112_v46 = vpop.f32.mrb[129].mxu0  ;;  %20116 = vmatmul.mubr.msk.f32.vlgmr.msra.gmra.mrb[132].mxu1 %vm453_vm5, %v12366_v36  ;;  %v21105_v36 = vpack.c.bf16 %v18057_v28, %v18056_v34 }
0x50c0   :  { %21076 = vmatpush3.bf16.msra.mxu1 %v21073_v3  ;;  %20137 = vmatprep.mubr.msk.f32.mxu1 %vm203_vm3, %v23422_v21  ;;  %v18058_v46 = vld [vmem:[%s24186_s12 + $0x2d0] sm:$0xff] }
0x50c1   :  { %21078 = vmatprep.subr.bf16.mxu1 %v21077_v35 }
0x50c4   :  { %21080 = vmatpush3.bf16.msra.mxu1 %v21077_v35 }
0x50c5   :  { %20151 = vmatprep.subr.mxu1 %v21562_v22 }
0x50c6   :  { %v20128_v37 = vpop.f32.mrb[130].mxu0 }
0x50c7   :  { %v12530_v54 = vpop.f32.mrb[131].mxu0  ;;  %20138 = vmatmul.mubr.msk.f32.vlgmr.msra.gmra.mrb[134].mxu1 %vm203_vm3, %v23424_v44  ;;  %v12536_v60 = vadd.f32 %v20128_v37, %v12463_v55  ;;  %v18059_v37 = vld [vmem:[%s24186_s12 + $0x2d8] sm:$0xff] }
0x50c8   :  { %20153 = vmatprep.mubr.msk.f32.mxu1 %vm21563_vm4, %v21562_v22  ;;  %v12531_v58 = vadd.f32 %v12530_v54, %v12463_v55  ;;  %v21109_v54 = vpack.c.bf16 %v18059_v37, %v18058_v46  ;;  %v18068_v37 = vld [vmem:[%s24188_s14 + $0x30] sm:$0xff] }
0x50ce   :  { %v20150_v45 = vpop.f32.mrb[132].mxu0 }
0x50cf   :  { %v12704_v48 = vadd.f32 %v20150_v45, %v12631_v38  ;;  %v12698_v49 = vpop.f32.mrb[133].mxu0  ;;  %v18050_v45 = vld [vmem:[%s24186_s12 + $0x240] sm:$0xff] }
0x50d0   :  { %v12699_v41 = vadd.f32 %v12698_v49, %v12631_v38  ;;  %v18041_v38 = vld [vmem:[%s24188_s14 + $0x28] sm:$0xff] }
0x50d2   :  { %20162 = vmatpush3.msra.mxu0 %v12699_v41 }
0x50d3   :  { %21090 = vmatprep.subr.bf16.mxu0 %v21089_v29 }
0x519a   :  { %v20139_v31 = vpop.f32.mrb[134].mxu1 }
0x519b   :  { %v12614_v57 = vpop.f32.mrb[135].mxu1  ;;  %v12620_v59 = vadd.f32 %v20139_v31, %v12547_v51  ;;  %v18053_v31 = vld [vmem:[%s24186_s12 + $0x258] sm:$0xff] }
0x519c   :  { %v12615_v47 = vadd.f32 %v12614_v57, %v12547_v51  ;;  %v18052_v51 = vld [vmem:[%s24186_s12 + $0x250] sm:$0xff] }
0x519d   :  { %v21101_v57 = vpack.c.bf16 %v18053_v31, %v18052_v51 }
0x519e   :  { %20152 = vmatpush3.xpose.msk.msra.mxu1 %vm453_vm5, %v12615_v47 }
0x519f   :  { %20156 = vmatprep.subr.mxu1 %v21562_v22 }
0x51a1   :  { %20154 = vmatmul.mubr.msk.f32.vlgmr.msra.gmra.mrb[136].mxu1 %vm453_vm5, %v12531_v58 }
0x51a2   :  { %20157 = vmatpush3.xpose.msk.msra.mxu1 %vm453_vm5, %v12620_v59  ;;  %20158 = vmatprep.mubr.msk.f32.mxu1 %vm21563_vm4, %v21562_v22 }
0x51a3   :  { %20166 = vmatprep.subr.mxu1 %v21562_v22 }
0x51a5   :  { %20159 = vmatmul.mubr.msk.f32.vlgmr.msra.gmra.mrb[138].mxu1 %vm453_vm5, %v12536_v60 }
0x51a6   :  { %20167 = vmatpush3.msra.mxu1 %v12704_v48  ;;  %20168 = vmatprep.mubr.msk.f32.mxu1 %vm21563_vm4, %v21562_v22  ;;  %v18051_v48 = vld [vmem:[%s24186_s12 + $0x248] sm:$0xff] }
0x51a7   :  { %20171 = vmatprep.subr.mxu1 %v18041_v38  ;;  %v21097_v49 = vpack.c.bf16 %v18051_v48, %v18050_v45  ;;  %v18073_v45 = vld [vmem:[%s24186_s12 + $0x1f0] sm:$0xff]  ;;  %v18074_v48 = vld [vmem:[%s24186_s12 + $0x1f8] sm:$0xff] }
0x51a8   :  { %v21117_v31 = vpack.c.bf16 %v18074_v48, %v18073_v45 }
0x5274   :  { %v12779_v61 = vpop.f32.mrb[136].mxu1 }
0x5275   :  { %v12859_v20 = vmul.f32 0.35355338, %v12779_v61  ;;  %v20155_v2 = vpop.f32.mrb[137].mxu1 }
0x5276   :  { %v13206_v2 = vrot.slane %v23453_v32, %v21972_v5 }
0x5277   :  { %v12861_v7 = vsel %vm453_vm5, %v12859_v20, -inf }
0x5278   :  { %12862 = vmax.xlane.f32.xlu1 %v12861_v7  ;;  %v12855_v8 = vpop.f32.mrb[138].mxu1  ;;  %v13122_v7 = vrot.slane %v23453_v32, %v21975_v6 }
0x5279   :  { %v12860_v12 = vmul.f32 0.35355338, %v12855_v8  ;;  %v20160_v11 = vpop.f32.mrb[139].mxu1 }
0x527b   :  { %v12864_v9 = vsel %vm453_vm5, %v12860_v12, -inf }
0x527c   :  { %12865 = vmax.xlane.f32.xlu0 %v12864_v9 }
0x5305   :  { %v12863_v10 = vpop.xlane.xlu1 %12862 }
0x5306   :  { %v12867_v4 = vsub.f32 %v12859_v20, %v12863_v10 }
0x5308   :  { %v12869_v13 = vmul.f32 1.442695, %v12867_v4 }
0x5309   :  { %v12866_v23 = vpop.xlane.xlu0 %12865 }
0x530a   :  { %21486 = vpow2.f32 %v12869_v13  ;;  %v12868_v14 = vsub.f32 %v12860_v12, %v12866_v23  ;;  %v13290_v12 = vrot.slane %v23446_v1, %v21975_v6 }
0x530c   :  { %v12871_v15 = vmul.f32 1.442695, %v12868_v14 }
0x530e   :  { %21488 = vpow2.f32 %v12871_v15 }
0x5314   :  { %v21487_v17 = vpop.eup %21486 }
0x5315   :  { %v12873_v52 = vsel %vm453_vm5, %v21487_v17, 0.0 }
0x5316   :  { %12874 = vadd.xlane.f32.xlu1 %v12873_v52 }
0x5318   :  { %v21489_v42 = vpop.eup %21488 }
0x5319   :  { %v12876_v18 = vsel %vm453_vm5, %v21489_v42, 0.0 }
0x531a   :  { %12877 = vadd.xlane.f32.xlu0 %v12876_v18 }
0x53a3   :  { %v12875_v25 = vpop.xlane.xlu1 %12874 }
0x53a4   :  { %21490 = vrcp.f32 %v12875_v25 }
0x53a7   :  { %v12878_v26 = vpop.xlane.xlu0 %12877 }
0x53a8   :  { %21492 = vrcp.f32 %v12878_v26 }
0x53ae   :  { %v21491_v30 = vpop.eup %21490 }
0x53af   :  { %v12880_v3 = vmul.f32 %v21491_v30, %v21487_v17 }
0x53b1   :  { %20164 = vmatmul.mubr.msk.f32.vlgmr.msra.gmra.mrb[134].mxu0 %vm453_vm5, %v12880_v3 }
0x53b2   :  { %v21493_v27 = vpop.eup %21492  ;;  %21092 = vmatpush3.bf16.msra.mxu0 %v21089_v29  ;;  %20184 = vmatprep.mubr.msk.f32.mxu0 %vm203_vm3, %v23422_v21 }
0x53b3   :  { %v12882_v35 = vmul.f32 %v21493_v27, %v21489_v42  ;;  %21094 = vmatprep.subr.bf16.mxu0 %v21093_v33 }
0x53b5   :  { %20169 = vmatmul.mubr.msk.f32.vlgmr.msra.gmra.mrb[140].mxu1 %vm453_vm5, %v12882_v35  ;;  %v18071_v35 = vld [vmem:[%s24186_s12 + $0x1e0] sm:$0xff] }
0x53b6   :  { %21096 = vmatpush3.bf16.msra.mxu0 %v21093_v33  ;;  %20172 = vmatpush3.msra.mxu1 %v18041_v38 }
0x53b7   :  { %21106 = vmatprep.subr.bf16.mxu0 %v21105_v36  ;;  %21098 = vmatprep.subr.bf16.mxu1 %v21097_v49 }
0x53b9   :  { %20185 = vmatmul.mubr.msk.f32.vlgmr.msra.gmra.mrb[136].mxu0 %vm203_vm3, %v23424_v44 }
0x53ba   :  { %21108 = vmatpush3.bf16.msra.mxu0 %v21105_v36  ;;  %20206 = vmatprep.mubr.msk.f32.mxu0 %vm203_vm3, %v23422_v21  ;;  %v18072_v36 = vld [vmem:[%s24186_s12 + $0x1e8] sm:$0xff] }
0x53bb   :  { %21110 = vmatprep.subr.bf16.mxu0 %v21109_v54  ;;  %v21113_v46 = vpack.c.bf16 %v18072_v36, %v18071_v35 }
0x53be   :  { %21112 = vmatpush3.bf16.msra.mxu0 %v21109_v54 }
0x53bf   :  { %20214 = vmatprep.subr.mxu0 %v21562_v22 }
0x53c1   :  { %20207 = vmatmul.mubr.msk.f32.vlgmr.msra.gmra.mrb[138].mxu0 %vm203_vm3, %v23424_v44 }
0x53c2   :  { %20216 = vmatprep.mubr.msk.f32.mxu0 %vm21563_vm4, %v21562_v22 }
0x5484   :  { %v12952_v41 = vpop.f32.mrb[134].mxu0 }
0x5485   :  { %v20165_v55 = vpop.f32.mrb[135].mxu0  ;;  %20173 = vmatprep.mubr.msk.f32.mxu1 %vm453_vm5, %v12952_v41 }
0x5488   :  { %v13025_v47 = vpop.f32.mrb[140].mxu1 }
0x5489   :  { %v20170_v58 = vpop.f32.mrb[141].mxu1  ;;  %20174 = vmatmul.mubr.msk.f32.vlgmr.msra.gmra.mrb[132].mxu1 %vm453_vm5, %v13025_v47  ;;  %v18084_v47 = vld [vmem:[%s24186_s12 + $0x2e8] sm:$0xff] }
0x548a   :  { %21100 = vmatpush3.bf16.msra.mxu1 %v21097_v49  ;;  %20195 = vmatprep.mubr.msk.f32.mxu1 %vm203_vm3, %v23422_v21 }
0x548b   :  { %21102 = vmatprep.subr.bf16.mxu1 %v21101_v57 }
0x548c   :  { %v20186_v59 = vpop.f32.mrb[136].mxu0 }
0x548d   :  { %v13189_v60 = vpop.f32.mrb[137].mxu0  ;;  %v13195_v4 = vadd.f32 %v20186_v59, %v13122_v7  ;;  %v18085_v59 = vld [vmem:[%s24186_s12 + $0x2f0] sm:$0xff] }
0x548e   :  { %21104 = vmatpush3.bf16.msra.mxu1 %v21101_v57  ;;  %v13190_v13 = vadd.f32 %v13189_v60, %v13122_v7  ;;  %v18083_v57 = vld [vmem:[%s24186_s12 + $0x2e0] sm:$0xff]  ;;  %v18086_v60 = vld [vmem:[%s24186_s12 + $0x2f8] sm:$0xff] }
0x548f   :  { %20209 = vmatprep.subr.mxu1 %v21562_v22  ;;  %v21129_v58 = vpack.c.bf16 %v18084_v47, %v18083_v57 }
0x5491   :  { %20196 = vmatmul.mubr.msk.f32.vlgmr.msra.gmra.mrb[142].mxu1 %vm203_vm3, %v23424_v44 }
0x5492   :  { %20211 = vmatprep.mubr.msk.f32.mxu1 %vm21563_vm4, %v21562_v22 }
0x5494   :  { %v20208_v61 = vpop.f32.mrb[138].mxu0 }
0x5495   :  { %v13357_v20 = vpop.f32.mrb[139].mxu0  ;;  %v13363_v23 = vadd.f32 %v20208_v61, %v13290_v12  ;;  %v21133_v61 = vpack.c.bf16 %v18086_v60, %v18085_v59  ;;  %v18095_v60 = vld [vmem:[%s24188_s14 + $0x38] sm:$0xff] }
0x5496   :  { %v13358_v14 = vadd.f32 %v13357_v20, %v13290_v12  ;;  %v18077_v20 = vld [vmem:[%s24186_s12 + $0x260] sm:$0xff]  ;;  %v18080_v12 = vld [vmem:[%s24186_s12 + $0x278] sm:$0xff] }
0x5564   :  { %v20197_v8 = vpop.f32.mrb[142].mxu1 }
0x5565   :  { %v13279_v11 = vadd.f32 %v20197_v8, %v13206_v2  ;;  %v13273_v9 = vpop.f32.mrb[143].mxu1  ;;  %v18079_v8 = vld [vmem:[%s24186_s12 + $0x270] sm:$0xff] }
0x5566   :  { %v13274_v10 = vadd.f32 %v13273_v9, %v13206_v2  ;;  %v18078_v2 = vld [vmem:[%s24186_s12 + $0x268] sm:$0xff] }
0x5567   :  { %20215 = vmatpush3.xpose.msk.msra.mxu0 %vm453_vm5, %v13279_v11  ;;  %v21121_v7 = vpack.c.bf16 %v18078_v2, %v18077_v20  ;;  %v18107_v20 = vld [vmem:[%s24190_s15 + $0x208] sm:$0xff] }
0x5568   :  { %20210 = vmatpush3.xpose.msk.msra.mxu1 %vm453_vm5, %v13274_v10  ;;  %20224 = vmatprep.subr.mxu0 %v21562_v22 }
0x5569   :  { %20219 = vmatprep.subr.mxu1 %v21562_v22 }
0x556a   :  { %20217 = vmatmul.mubr.msk.f32.vlgmr.msra.gmra.mrb[140].mxu0 %vm453_vm5, %v13195_v4  ;;  %v21125_v4 = vpack.c.bf16 %v18080_v12, %v18079_v8  ;;  %v18108_v8 = vld [vmem:[%s24190_s15 + $0x210] sm:$0xff]  ;;  %v18109_v12 = vld [vmem:[%s24190_s15 + $0x218] sm:$0xff] }
0x556b   :  { %20212 = vmatmul.mubr.msk.f32.vlgmr.msra.gmra.mrb[144].mxu1 %vm453_vm5, %v13190_v13  ;;  %20225 = vmatpush3.msra.mxu0 %v13363_v23 }
0x556c   :  { %20220 = vmatpush3.msra.mxu1 %v13358_v14  ;;  %20226 = vmatprep.mubr.msk.f32.mxu0 %vm21563_vm4, %v21562_v22 }
0x556d   :  { %20221 = vmatprep.mubr.msk.f32.mxu1 %vm21563_vm4, %v21562_v22  ;;  %21114 = vmatprep.subr.bf16.mxu0 %v21113_v46 }
0x556e   :  { %20229 = vmatprep.subr.mxu1 %v18068_v37 }
0x563d   :  { %v13514_v15 = vpop.f32.mrb[140].mxu0 }
0x563e   :  { %v13519_v17 = vmul.f32 0.35355338, %v13514_v15  ;;  %v13438_v52 = vpop.f32.mrb[144].mxu1  ;;  %v20218_v42 = vpop.f32.mrb[141].mxu0  ;;  %v13949_v15 = vrot.slane %v23446_v1, %v22059_v16 }
0x563f   :  { %v13518_v18 = vmul.f32 0.35355338, %v13438_v52  ;;  %v20213_v19 = vpop.f32.mrb[145].mxu1 }
0x5640   :  { %v13523_v53 = vsel %vm453_vm5, %v13519_v17, -inf  ;;  %v13865_v19 = vrot.slane %v23453_v32, %v22064_v24 }
0x5641   :  { %13524 = vmax.xlane.f32.xlu0 %v13523_v53  ;;  %v13520_v29 = vsel %vm453_vm5, %v13518_v18, -inf }
0x5642   :  { %13521 = vmax.xlane.f32.xlu1 %v13520_v29  ;;  %v13781_v29 = vrot.slane %v23453_v32, %v22059_v16 }
0x56ce   :  { %v13525_v25 = vpop.xlane.xlu0 %13524 }
0x56cf   :  { %v13527_v26 = vsub.f32 %v13519_v17, %v13525_v25  ;;  %v13522_v40 = vpop.xlane.xlu1 %13521 }
0x56d0   :  { %v13526_v39 = vsub.f32 %v13518_v18, %v13522_v40 }
0x56d1   :  { %v13530_v30 = vmul.f32 1.442695, %v13527_v26 }
0x56d2   :  { %v13528_v3 = vmul.f32 1.442695, %v13526_v39 }
0x56d3   :  { %21494 = vpow2.f32 %v13530_v30 }
0x56d4   :  { %21496 = vpow2.f32 %v13528_v3 }
0x56dd   :  { %v21495_v33 = vpop.eup %21494 }
0x56de   :  { %v21497_v34 = vpop.eup %21496  ;;  %v13535_v28 = vsel %vm453_vm5, %v21495_v33, 0.0 }
0x56df   :  { %13536 = vadd.xlane.f32.xlu0 %v13535_v28  ;;  %v13532_v27 = vsel %vm453_vm5, %v21497_v34, 0.0 }
0x56e0   :  { %13533 = vadd.xlane.f32.xlu1 %v13532_v27 }
0x576c   :  { %v13537_v54 = vpop.xlane.xlu0 %13536 }
0x576d   :  { %21498 = vrcp.f32 %v13537_v54  ;;  %v13534_v38 = vpop.xlane.xlu1 %13533 }
0x576e   :  { %21500 = vrcp.f32 %v13534_v38 }
0x5777   :  { %v21499_v49 = vpop.eup %21498 }
0x5778   :  { %v21501_v41 = vpop.eup %21500  ;;  %v13541_v51 = vmul.f32 %v21499_v49, %v21495_v33 }
0x5779   :  { %v13539_v55 = vmul.f32 %v21501_v41, %v21497_v34 }
0x577a   :  { %20227 = vmatmul.mubr.msk.f32.vlgmr.msra.gmra.mrb[142].mxu0 %vm453_vm5, %v13541_v51 }
0x577b   :  { %21116 = vmatpush3.bf16.msra.mxu0 %v21113_v46  ;;  %20222 = vmatmul.mubr.msk.f32.vlgmr.msra.gmra.mrb[146].mxu1 %vm453_vm5, %v13539_v55 }
0x577c   :  { %20242 = vmatprep.mubr.msk.f32.mxu0 %vm203_vm3, %v23422_v21  ;;  %21118 = vmatprep.subr.bf16.mxu0 %v21117_v31 }
0x577d   :  { %20230 = vmatpush3.msra.mxu1 %v18068_v37 }
0x577e   :  { %21122 = vmatprep.subr.bf16.mxu1 %v21121_v7 }
0x577f   :  { %21120 = vmatpush3.bf16.msra.mxu0 %v21117_v31 }
0x5780   :  { %21130 = vmatprep.subr.bf16.mxu0 %v21129_v58 }
0x5782   :  { %20243 = vmatmul.mubr.msk.f32.vlgmr.msra.gmra.mrb[144].mxu0 %vm203_vm3, %v23424_v44 }
0x5783   :  { %21132 = vmatpush3.bf16.msra.mxu0 %v21129_v58  ;;  %20264 = vmatprep.mubr.msk.f32.mxu0 %vm203_vm3, %v23422_v21 }
0x5784   :  { %21134 = vmatprep.subr.bf16.mxu0 %v21133_v61 }
0x5787   :  { %21136 = vmatpush3.bf16.msra.mxu0 %v21133_v61  ;;  %v18106_v61 = vld [vmem:[%s24190_s15 + $0x200] sm:$0xff] }
0x5788   :  { %20277 = vmatprep.subr.mxu0 %v21562_v22  ;;  %v21145_v2 = vpack.c.bf16 %v18107_v20, %v18106_v61 }
0x578a   :  { %20265 = vmatmul.mubr.msk.f32.vlgmr.msra.gmra.mrb[146].mxu0 %vm203_vm3, %v23424_v44 }
0x578b   :  { %20279 = vmatprep.mubr.msk.f32.mxu0 %vm21563_vm4, %v21562_v22 }
0x584d   :  { %v13684_v11 = vpop.f32.mrb[142].mxu0 }
0x584e   :  { %v13611_v9 = vpop.f32.mrb[146].mxu1  ;;  %v20228_v10 = vpop.f32.mrb[143].mxu0 }
0x584f   :  { %v20223_v13 = vpop.f32.mrb[147].mxu1  ;;  %20231 = vmatprep.mubr.msk.f32.mxu1 %vm453_vm5, %v13611_v9  ;;  %v21149_v9 = vpack.c.bf16 %v18109_v12, %v18108_v8 }
0x5850   :  { %20232 = vmatmul.mubr.msk.f32.vlgmr.msra.gmra.mrb[132].mxu1 %vm453_vm5, %v13684_v11  ;;  %v23745_v13 = vld [vmem:[%s24189_s18 + $0x10] sm:$0xff] }
0x5851   :  { %21124 = vmatpush3.bf16.msra.mxu1 %v21121_v7  ;;  %20253 = vmatprep.mubr.msk.f32.mxu1 %vm203_vm3, %v23422_v21 }
0x5852   :  { %21126 = vmatprep.subr.bf16.mxu1 %v21125_v4 }
0x5855   :  { %v20244_v23 = vpop.f32.mrb[144].mxu0  ;;  %21128 = vmatpush3.bf16.msra.mxu1 %v21125_v4 }
0x5856   :  { %v13848_v14 = vpop.f32.mrb[145].mxu0  ;;  %20267 = vmatprep.subr.mxu1 %v21562_v22  ;;  %v13854_v39 = vadd.f32 %v20244_v23, %v13781_v29  ;;  %v11788_v23 = vrot.slane %v23745_v13, %v21788_v43 }
0x5857   :  { %v13849_v40 = vadd.f32 %v13848_v14, %v13781_v29 }
0x5858   :  { %20254 = vmatmul.mubr.msk.f32.vlgmr.msra.gmra.mrb[148].mxu1 %vm203_vm3, %v23424_v44 }
0x5859   :  { %20269 = vmatprep.mubr.msk.f32.mxu1 %vm21563_vm4, %v21562_v22 }
0x585d   :  { %v20266_v17 = vpop.f32.mrb[146].mxu0 }
0x585e   :  { %v14022_v52 = vadd.f32 %v20266_v17, %v13949_v15  ;;  %v14016_v42 = vpop.f32.mrb[147].mxu0 }
0x585f   :  { %v14017_v18 = vadd.f32 %v14016_v42, %v13949_v15  ;;  %v23752_v42 = vld [vmem:[%s24192_s16 + $0x10] sm:$0xff] }
0x5860   :  { %v14578_v29 = vrot.slane %v23752_v42, %v21798_v50 }
0x5861   :  { %20278 = vmatpush3.msra.mxu0 %v14017_v18 }
0x592b   :  { %v20255_v53 = vpop.f32.mrb[148].mxu1 }
0x592c   :  { %v13932_v25 = vpop.f32.mrb[149].mxu1  ;;  %v13938_v1 = vadd.f32 %v20255_v53, %v13865_v19 }
0x592d   :  { %v13933_v26 = vadd.f32 %v13932_v25, %v13865_v19 }
0x592f   :  { %20268 = vmatpush3.xpose.msk.msra.mxu1 %vm453_vm5, %v13933_v26 }
0x5930   :  { %20272 = vmatprep.subr.mxu1 %v21562_v22 }
0x5932   :  { %20270 = vmatmul.mubr.msk.f32.vlgmr.msra.gmra.mrb[150].mxu1 %vm453_vm5, %v13849_v40 }
0x5933   :  { %20273 = vmatpush3.xpose.msk.msra.mxu1 %vm453_vm5, %v13938_v1  ;;  %20274 = vmatprep.mubr.msk.f32.mxu1 %vm21563_vm4, %v21562_v22 }
0x5934   :  { %20282 = vmatprep.subr.mxu1 %v21562_v22 }
0x5936   :  { %20275 = vmatmul.mubr.msk.f32.vlgmr.msra.gmra.mrb[152].mxu1 %vm453_vm5, %v13854_v39 }
0x5937   :  { %20283 = vmatpush3.msra.mxu1 %v14022_v52  ;;  %20284 = vmatprep.mubr.msk.f32.mxu1 %vm21563_vm4, %v21562_v22 }
0x5938   :  { %20287 = vmatprep.subr.mxu1 %v18095_v60 }
0x5a05   :  { %v14097_v32 = vpop.f32.mrb[150].mxu1 }
0x5a06   :  { %v14177_v30 = vmul.f32 0.35355338, %v14097_v32  ;;  %v20271_v3 = vpop.f32.mrb[151].mxu1 }
0x5a08   :  { %v14179_v33 = vsel %vm453_vm5, %v14177_v30, -inf }
0x5a09   :  { %14180 = vmax.xlane.f32.xlu1 %v14179_v33  ;;  %v14173_v34 = vpop.f32.mrb[152].mxu1 }
0x5a0a   :  { %v14178_v28 = vmul.f32 0.35355338, %v14173_v34  ;;  %v20276_v27 = vpop.f32.mrb[153].mxu1 }
0x5a0c   :  { %v14182_v35 = vsel %vm453_vm5, %v14178_v28, -inf }
0x5a0d   :  { %14183 = vmax.xlane.f32.xlu0 %v14182_v35 }
0x5a96   :  { %v14181_v36 = vpop.xlane.xlu1 %14180 }
0x5a97   :  { %v14185_v46 = vsub.f32 %v14177_v30, %v14181_v36  ;;  %v18100_v36 = vld [vmem:[%s24190_s15 + $0x180] sm:$0xff] }
0x5a99   :  { %v14187_v37 = vmul.f32 1.442695, %v14185_v46  ;;  %v18101_v46 = vld [vmem:[%s24190_s15 + $0x188] sm:$0xff] }
0x5a9a   :  { %v14184_v54 = vpop.xlane.xlu0 %14183 }
0x5a9b   :  { %21502 = vpow2.f32 %v14187_v37  ;;  %v14186_v38 = vsub.f32 %v14178_v28, %v14184_v54  ;;  %v21137_v37 = vpack.c.bf16 %v18101_v46, %v18100_v36  ;;  %v18102_v54 = vld [vmem:[%s24190_s15 + $0x190] sm:$0xff] }
0x5a9d   :  { %v14189_v45 = vmul.f32 1.442695, %v14186_v38  ;;  %21138 = vmatprep.subr.bf16.mxu0 %v21137_v37  ;;  %v18103_v38 = vld [vmem:[%s24190_s15 + $0x198] sm:$0xff] }
0x5a9f   :  { %21504 = vpow2.f32 %v14189_v45  ;;  %v21141_v45 = vpack.c.bf16 %v18103_v38, %v18102_v54 }
0x5aa5   :  { %v21503_v48 = vpop.eup %21502 }
0x5aa6   :  { %v14191_v49 = vsel %vm453_vm5, %v21503_v48, 0.0 }
0x5aa7   :  { %14192 = vadd.xlane.f32.xlu1 %v14191_v49  ;;  %v18113_v49 = vld [vmem:[%s24190_s15 + $0x288] sm:$0xff] }
0x5aa9   :  { %v21505_v41 = vpop.eup %21504 }
0x5aaa   :  { %v14194_v51 = vsel %vm453_vm5, %v21505_v41, 0.0 }
0x5aab   :  { %14195 = vadd.xlane.f32.xlu0 %v14194_v51 }
0x5b34   :  { %v14193_v31 = vpop.xlane.xlu1 %14192 }
0x5b35   :  { %21506 = vrcp.f32 %v14193_v31 }
0x5b38   :  { %v14196_v55 = vpop.xlane.xlu0 %14195 }
0x5b39   :  { %21508 = vrcp.f32 %v14196_v55 }
0x5b3f   :  { %v21507_v57 = vpop.eup %21506 }
0x5b40   :  { %v14198_v47 = vmul.f32 %v21507_v57, %v21503_v48  ;;  %v18112_v48 = vld [vmem:[%s24190_s15 + $0x280] sm:$0xff] }
0x5b42   :  { %20280 = vmatmul.mubr.msk.f32.vlgmr.msra.gmra.mrb[148].mxu0 %vm453_vm5, %v14198_v47 }
0x5b43   :  { %v21509_v58 = vpop.eup %21508  ;;  %21140 = vmatpush3.bf16.msra.mxu0 %v21137_v37 }
0x5b44   :  { %v14200_v59 = vmul.f32 %v21509_v58, %v21505_v41  ;;  %21142 = vmatprep.subr.bf16.mxu0 %v21141_v45  ;;  %v21153_v41 = vpack.c.bf16 %v18113_v49, %v18112_v48  ;;  %v18127_v48 = vld [vmem:[%s24190_s15 + $0x1a0] sm:$0xff]  ;;  %v18128_v49 = vld [vmem:[%s24190_s15 + $0x1a8] sm:$0xff] }
0x5b46   :  { %20285 = vmatmul.mubr.msk.f32.vlgmr.msra.gmra.mrb[154].mxu1 %vm453_vm5, %v14200_v59  ;;  %v14463_v59 = vrot.slane %v23745_v13, %v21975_v6 }
0x5b47   :  { %20288 = vmatpush3.msra.mxu1 %v18095_v60  ;;  %21144 = vmatpush3.bf16.msra.mxu0 %v21141_v45 }
0x5b48   :  { %21146 = vmatprep.subr.bf16.mxu1 %v21145_v2  ;;  %21154 = vmatprep.subr.bf16.mxu0 %v21153_v41 }
0x5c15   :  { %v14270_v7 = vpop.f32.mrb[148].mxu0 }
0x5c16   :  { %v20281_v11 = vpop.f32.mrb[149].mxu0  ;;  %20289 = vmatprep.mubr.msk.f32.mxu1 %vm453_vm5, %v14270_v7  ;;  %v14469_v7 = vrot.slane %v23745_v13, %v22059_v16 }
0x5c17   :  { %v18114_v11 = vld [vmem:[%s24190_s15 + $0x290] sm:$0xff] }
0x5c19   :  { %v14343_v10 = vpop.f32.mrb[154].mxu1 }
0x5c1a   :  { %v20286_v4 = vpop.f32.mrb[155].mxu1  ;;  %20290 = vmatmul.mubr.msk.f32.vlgmr.msra.gmra.mrb[132].mxu1 %vm453_vm5, %v14343_v10 }
0x5c1b   :  { %21148 = vmatpush3.bf16.msra.mxu1 %v21145_v2  ;;  %20311 = vmatprep.mubr.msk.f32.mxu1 %vm203_vm3, %v22981_v63 }
0x5c1c   :  { %21150 = vmatprep.subr.bf16.mxu1 %v21149_v9 }
0x5c1f   :  { %21152 = vmatpush3.bf16.msra.mxu1 %v21149_v9  ;;  %v18115_v9 = vld [vmem:[%s24190_s15 + $0x298] sm:$0xff] }
0x5c20   :  { %20325 = vmatprep.subr.mxu1 %v21562_v22 }
0x5c22   :  { %20312 = vmatmul.mubr.msk.f32.vlgmr.msra.gmra.mrb[156].mxu1 %vm203_vm3, %v22983_v0 }
0x5c23   :  { %20327 = vmatprep.mubr.msk.f32.mxu1 %vm21563_vm4, %v21562_v22 }
0x5ced   :  { %v20291_v14 = vpop.f32.mrb[132].mxu1 }
0x5cee   :  { %v21273_v15 = vadd.f32 %v20291_v14, %v11788_v23  ;;  %v14421_v17 = vpop.f32.mrb[133].mxu1  ;;  %v14488_v14 = vrot.slane %v23752_v42, %v21788_v43 }
0x5cef   :  { %v21274_v52 = vadd.f32 %v14421_v17, %v11788_v23  ;;  %v21157_v23 = vpack.c.bf16 %v18115_v9, %v18114_v11  ;;  %v18142_v11 = vld [vmem:[%s24190_s15 + $0x2b8] sm:$0xff] }
0x5cf0   :  { %v14433_v18 = vadd.f32 %v21273_v15, %v23424_v44 }
0x5cf1   :  { %v14432_v19 = vadd.f32 %v21274_v52, %v23422_v21 }
0x5cf2   :  { %v14437_v53 = vsel %vm203_vm3, %v14433_v18, 0.0 }
0x5cf3   :  { %14438 = vadd.xlane.f32.xlu0 %v14437_v53  ;;  %v14434_v25 = vsel %vm203_vm3, %v14432_v19, 0.0 }
0x5cf4   :  { %14435 = vadd.xlane.f32.xlu1 %v14434_v25 }
0x5cf5   :  { %v20313_v26 = vpop.f32.mrb[156].mxu1 }
0x5cf6   :  { %v14651_v40 = vadd.f32 %v20313_v26, %v14578_v29  ;;  %v14645_v1 = vpop.f32.mrb[157].mxu1 }
0x5cf7   :  { %v14646_v39 = vadd.f32 %v14645_v1, %v14578_v29 }
0x5cf9   :  { %20326 = vmatpush3.xpose.msk.msra.mxu1 %vm453_vm5, %v14646_v39 }
0x5cfa   :  { %20335 = vmatprep.subr.mxu1 %v21562_v22 }
0x5d80   :  { %v14439_v44 = vpop.xlane.xlu0 %14438 }
0x5d81   :  { %v14441_v32 = vmul.f32 0.03125, %v14439_v44  ;;  %v14436_v21 = vpop.xlane.xlu1 %14435 }
0x5d82   :  { %v14440_v30 = vmul.f32 0.03125, %v14436_v21 }
0x5d83   :  { %v14443_v3 = vsub.f32 %v14433_v18, %v14441_v32 }
0x5d84   :  { %v14442_v33 = vsub.f32 %v14432_v19, %v14440_v30  ;;  %v23814_v19 = vld [vmem:[%s24192_s16 + $0x18] sm:$0xf] }
0x5d85   :  { %v14445_v34 = vmul.f32 %v14443_v3, %v14443_v3  ;;  %v14662_v53 = vrot.slane %v23814_v19, %v21788_v43 }
0x5d86   :  { %v14444_v28 = vmul.f32 %v14442_v33, %v14442_v33 }
0x5d87   :  { %v14449_v27 = vsel %vm203_vm3, %v14445_v34, 0.0 }
0x5d88   :  { %14450 = vadd.xlane.f32.xlu0 %v14449_v27  ;;  %v14446_v35 = vsel %vm203_vm3, %v14444_v28, 0.0 }
0x5d89   :  { %14447 = vadd.xlane.f32.xlu1 %v14446_v35 }
0x5e15   :  { %v14451_v51 = vpop.xlane.xlu0 %14450 }
0x5e16   :  { %v14453_v31 = vmul.f32 0.03125, %v14451_v51  ;;  %v14448_v55 = vpop.xlane.xlu1 %14447  ;;  %v18124_v51 = vld [vmem:[%s24193_s17 + $0x20] sm:$0xff] }
0x5e17   :  { %v14452_v57 = vmul.f32 0.03125, %v14448_v55 }
0x5e18   :  { %v14455_v47 = vadd.f32 1e-05, %v14453_v31 }
0x5e19   :  { %v14454_v58 = vadd.f32 1e-05, %v14452_v57  ;;  %v18129_v57 = vld [vmem:[%s24190_s15 + $0x1b0] sm:$0xff] }
0x5e1a   :  { %21510 = vrsqrt.f32 %v14455_v47  ;;  %v18130_v47 = vld [vmem:[%s24190_s15 + $0x1b8] sm:$0xff] }
0x5e1b   :  { %21512 = vrsqrt.f32 %v14454_v58 }
0x5e24   :  { %v21511_v60 = vpop.eup %21510 }
0x5e25   :  { %v21513_v61 = vpop.eup %21512  ;;  %v14459_v20 = vmul.f32 %v21511_v60, %v14443_v3 }
0x5e26   :  { %v14458_v2 = vmul.f32 %v21513_v61, %v14442_v33  ;;  %v21165_v61 = vpack.c.bf16 %v18130_v47, %v18129_v57 }
0x5e27   :  { %v14465_v8 = vmul.f32 %v14463_v59, %v14459_v20 }
0x5e28   :  { %v14464_v12 = vmul.f32 %v14463_v59, %v14458_v2  ;;  %v18139_v2 = vld [vmem:[%s24190_s15 + $0x2a0] sm:$0xff] }
0x5e29   :  { %v23794_v4 = vadd.f32 %v14469_v7, %v14465_v8 }
0x5e2a   :  { %v23792_v10 = vadd.f32 %v14469_v7, %v14464_v12  ;;  %v18140_v7 = vld [vmem:[%s24190_s15 + $0x2a8] sm:$0xff]  ;;  %v18141_v12 = vld [vmem:[%s24190_s15 + $0x2b0] sm:$0xff] }
0x5e2b   :  { %v21177_v8 = vpack.c.bf16 %v18140_v7, %v18139_v2  ;;  %v21181_v9 = vpack.c.bf16 %v18142_v11, %v18141_v12  ;;  %v18154_v7 = vld [vmem:[%s24190_s15 + $0x1c0] sm:$0xff] }
0x5e2c   :  { %20300 = vmatprep.mubr.msk.f32.mxu0 %vm203_vm3, %v23792_v10 }
0x5e2d   :  { %20301 = vmatmul.mubr.msk.f32.vlgmr.msra.gmra.mrb[150].mxu0 %vm203_vm3, %v23794_v4 }
0x5e2e   :  { %21156 = vmatpush3.bf16.msra.mxu0 %v21153_v41  ;;  %20322 = vmatprep.mubr.msk.f32.mxu0 %vm203_vm3, %v22981_v63  ;;  %v21161_v41 = vpack.c.bf16 %v18128_v49, %v18127_v48 }
0x5e2f   :  { %21158 = vmatprep.subr.bf16.mxu0 %v21157_v23 }
0x5e32   :  { %21160 = vmatpush3.bf16.msra.mxu0 %v21157_v23  ;;  %v18133_v23 = vld [vmem:[%s24190_s15 + $0x220] sm:$0xff] }
0x5e33   :  { %20330 = vmatprep.subr.mxu0 %v21562_v22 }
0x5e35   :  { %20323 = vmatmul.mubr.msk.f32.vlgmr.msra.gmra.mrb[152].mxu0 %vm203_vm3, %v22983_v0 }
0x5e36   :  { %20332 = vmatprep.mubr.msk.f32.mxu0 %vm21563_vm4, %v21562_v22 }
0x5e3b   :  { %20331 = vmatpush3.xpose.msk.msra.mxu0 %vm453_vm5, %v14651_v40 }
0x5e3c   :  { %20340 = vmatprep.subr.mxu0 %v21562_v22 }
0x5f00   :  { %v20302_v15 = vpop.f32.mrb[150].mxu0 }
0x5f01   :  { %v14567_v17 = vadd.f32 %v20302_v15, %v14488_v14  ;;  %v14561_v52 = vpop.f32.mrb[151].mxu0 }
0x5f02   :  { %v14562_v18 = vadd.f32 %v14561_v52, %v14488_v14  ;;  %v18134_v14 = vld [vmem:[%s24190_s15 + $0x228] sm:$0xff]  ;;  %v18136_v52 = vld [vmem:[%s24190_s15 + $0x238] sm:$0xff] }
0x5f03   :  { %20333 = vmatmul.mubr.msk.f32.vlgmr.msra.gmra.mrb[154].mxu0 %vm453_vm5, %v14567_v17  ;;  %v21169_v15 = vpack.c.bf16 %v18134_v14, %v18133_v23  ;;  %v18135_v17 = vld [vmem:[%s24190_s15 + $0x230] sm:$0xff]  ;;  %v18157_v14 = vld [vmem:[%s24190_s15 + $0x1d8] sm:$0xff] }
0x5f04   :  { %20328 = vmatmul.mubr.msk.f32.vlgmr.msra.gmra.mrb[158].mxu1 %vm453_vm5, %v14562_v18  ;;  %20342 = vmatprep.mubr.msk.f32.mxu0 %vm21563_vm4, %v21562_v22  ;;  %v18156_v23 = vld [vmem:[%s24190_s15 + $0x1d0] sm:$0xff] }
0x5f05   :  { %20337 = vmatprep.mubr.msk.f32.mxu1 %vm21563_vm4, %v21562_v22 }
0x5f08   :  { %v20324_v29 = vpop.f32.mrb[152].mxu0 }
0x5f09   :  { %v14735_v25 = vadd.f32 %v20324_v29, %v14662_v53  ;;  %v14729_v26 = vpop.f32.mrb[153].mxu0 }
0x5f0a   :  { %v14730_v40 = vadd.f32 %v14729_v26, %v14662_v53 }
0x5f0b   :  { %20341 = vmatpush3.msra.mxu0 %v14735_v25  ;;  %v21173_v25 = vpack.c.bf16 %v18136_v52, %v18135_v17  ;;  %v21189_v52 = vpack.c.bf16 %v18157_v14, %v18156_v23 }
0x5f0c   :  { %20336 = vmatpush3.msra.mxu1 %v14730_v40  ;;  %21162 = vmatprep.subr.bf16.mxu0 %v21161_v41 }
0x5f0d   :  { %20345 = vmatprep.subr.mxu1 %v18124_v51 }
0x5fd6   :  { %v14886_v1 = vpop.f32.mrb[154].mxu0 }
0x5fd7   :  { %v14891_v39 = vmul.f32 0.35355338, %v14886_v1  ;;  %v14810_v44 = vpop.f32.mrb[158].mxu1  ;;  %v20334_v32 = vpop.f32.mrb[155].mxu0 }
0x5fd8   :  { %v14890_v21 = vmul.f32 0.35355338, %v14810_v44  ;;  %v20329_v30 = vpop.f32.mrb[159].mxu1 }
0x5fd9   :  { %v14895_v3 = vsel %vm453_vm5, %v14891_v39, -inf }
0x5fda   :  { %14896 = vmax.xlane.f32.xlu0 %v14895_v3  ;;  %v14892_v33 = vsel %vm453_vm5, %v14890_v21, -inf  ;;  %v15237_v3 = vrot.slane %v23752_v42, %v21890_v62 }
0x5fdb   :  { %14893 = vmax.xlane.f32.xlu1 %v14892_v33 }
0x6067   :  { %v14897_v34 = vpop.xlane.xlu0 %14896 }
0x6068   :  { %v14899_v28 = vsub.f32 %v14891_v39, %v14897_v34  ;;  %v14894_v27 = vpop.xlane.xlu1 %14893  ;;  %v15321_v39 = vrot.slane %v23814_v19, %v21885_v56  ;;  %v15153_v34 = vrot.slane %v23752_v42, %v21885_v56 }
0x6069   :  { %v14898_v35 = vsub.f32 %v14890_v21, %v14894_v27 }
0x606a   :  { %v14902_v36 = vmul.f32 1.442695, %v14899_v28 }
0x606b   :  { %v14900_v46 = vmul.f32 1.442695, %v14898_v35 }
0x606c   :  { %21514 = vpow2.f32 %v14902_v36 }
0x606d   :  { %21516 = vpow2.f32 %v14900_v46 }
0x6076   :  { %v21515_v37 = vpop.eup %21514 }
0x6077   :  { %v21517_v54 = vpop.eup %21516  ;;  %v14907_v38 = vsel %vm453_vm5, %v21515_v37, 0.0 }
0x6078   :  { %14908 = vadd.xlane.f32.xlu0 %v14907_v38  ;;  %v14904_v45 = vsel %vm453_vm5, %v21517_v54, 0.0 }
0x6079   :  { %14905 = vadd.xlane.f32.xlu1 %v14904_v45 }
0x6105   :  { %v14909_v31 = vpop.xlane.xlu0 %14908 }
0x6106   :  { %21518 = vrcp.f32 %v14909_v31  ;;  %v14906_v55 = vpop.xlane.xlu1 %14905 }
0x6107   :  { %21520 = vrcp.f32 %v14906_v55 }
0x6110   :  { %v21519_v58 = vpop.eup %21518 }
0x6111   :  { %v21521_v59 = vpop.eup %21520  ;;  %v14913_v60 = vmul.f32 %v21519_v58, %v21515_v37 }
0x6112   :  { %v14911_v20 = vmul.f32 %v21521_v59, %v21517_v54 }
0x6113   :  { %20343 = vmatmul.mubr.msk.f32.vlgmr.msra.gmra.mrb[156].mxu0 %vm453_vm5, %v14913_v60 }
0x6114   :  { %21164 = vmatpush3.bf16.msra.mxu0 %v21161_v41  ;;  %20338 = vmatmul.mubr.msk.f32.vlgmr.msra.gmra.mrb[160].mxu1 %vm453_vm5, %v14911_v20 }
0x6115   :  { %20358 = vmatprep.mubr.msk.f32.mxu0 %vm203_vm3, %v23792_v10  ;;  %21166 = vmatprep.subr.bf16.mxu0 %v21165_v61 }
0x6116   :  { %20346 = vmatpush3.msra.mxu1 %v18124_v51 }
0x6117   :  { %21170 = vmatprep.subr.bf16.mxu1 %v21169_v15 }
0x6118   :  { %21168 = vmatpush3.bf16.msra.mxu0 %v21165_v61 }
0x6119   :  { %21178 = vmatprep.subr.bf16.mxu0 %v21177_v8 }
0x611b   :  { %20359 = vmatmul.mubr.msk.f32.vlgmr.msra.gmra.mrb[158].mxu0 %vm203_vm3, %v23794_v4 }
0x611c   :  { %21180 = vmatpush3.bf16.msra.mxu0 %v21177_v8  ;;  %20380 = vmatprep.mubr.msk.f32.mxu0 %vm203_vm3, %v22981_v63  ;;  %v18155_v8 = vld [vmem:[%s24190_s15 + $0x1c8] sm:$0xff] }
0x611d   :  { %21182 = vmatprep.subr.bf16.mxu0 %v21181_v9  ;;  %v21185_v12 = vpack.c.bf16 %v18155_v8, %v18154_v7 }
0x6120   :  { %21184 = vmatpush3.bf16.msra.mxu0 %v21181_v9 }
0x6121   :  { %20393 = vmatprep.subr.mxu0 %v21562_v22 }
0x6123   :  { %20381 = vmatmul.mubr.msk.f32.vlgmr.msra.gmra.mrb[160].mxu0 %vm203_vm3, %v22983_v0 }
0x6124   :  { %20395 = vmatprep.mubr.msk.f32.mxu0 %vm21563_vm4, %v21562_v22 }
0x61e6   :  { %v15056_v18 = vpop.f32.mrb[156].mxu0 }
0x61e7   :  { %v14983_v53 = vpop.f32.mrb[160].mxu1  ;;  %v20344_v29 = vpop.f32.mrb[157].mxu0 }
0x61e8   :  { %v20339_v26 = vpop.f32.mrb[161].mxu1  ;;  %20347 = vmatprep.mubr.msk.f32.mxu1 %vm453_vm5, %v14983_v53  ;;  %v18167_v53 = vld [vmem:[%s24190_s15 + $0x2c8] sm:$0xff] }
0x61e9   :  { %20348 = vmatmul.mubr.msk.f32.vlgmr.msra.gmra.mrb[162].mxu1 %vm453_vm5, %v15056_v18  ;;  %v18166_v18 = vld [vmem:[%s24190_s15 + $0x2c0] sm:$0xff] }
0x61ea   :  { %21172 = vmatpush3.bf16.msra.mxu1 %v21169_v15  ;;  %20369 = vmatprep.mubr.msk.f32.mxu1 %vm203_vm3, %v22981_v63  ;;  %v21201_v26 = vpack.c.bf16 %v18167_v53, %v18166_v18 }
0x61eb   :  { %21174 = vmatprep.subr.bf16.mxu1 %v21173_v25 }
0x61ee   :  { %v20360_v40 = vpop.f32.mrb[158].mxu0  ;;  %21176 = vmatpush3.bf16.msra.mxu1 %v21173_v25 }
0x61ef   :  { %v15220_v1 = vpop.f32.mrb[159].mxu0  ;;  %20383 = vmatprep.subr.mxu1 %v21562_v22  ;;  %v15226_v46 = vadd.f32 %v20360_v40, %v15153_v34  ;;  %v18168_v40 = vld [vmem:[%s24190_s15 + $0x2d0] sm:$0xff] }
0x61f0   :  { %v15221_v35 = vadd.f32 %v15220_v1, %v15153_v34  ;;  %v18169_v1 = vld [vmem:[%s24190_s15 + $0x2d8] sm:$0xff] }
0x61f1   :  { %20370 = vmatmul.mubr.msk.f32.vlgmr.msra.gmra.mrb[164].mxu1 %vm203_vm3, %v22983_v0  ;;  %v18163_v34 = vld [vmem:[%s24190_s15 + $0x258] sm:$0xff] }
0x61f2   :  { %20385 = vmatprep.mubr.msk.f32.mxu1 %vm21563_vm4, %v21562_v22 }
0x61f6   :  { %v20382_v44 = vpop.f32.mrb[160].mxu0 }
0x61f7   :  { %v15394_v32 = vadd.f32 %v20382_v44, %v15321_v39  ;;  %v15388_v21 = vpop.f32.mrb[161].mxu0  ;;  %v18151_v44 = vld [vmem:[%s24193_s17 + $0x28] sm:$0xff] }
0x61f8   :  { %v15389_v30 = vadd.f32 %v15388_v21, %v15321_v39  ;;  %v21205_v39 = vpack.c.bf16 %v18169_v1, %v18168_v40  ;;  %v18161_v21 = vld [vmem:[%s24190_s15 + $0x248] sm:$0xff]  ;;  %v18178_v1 = vld [vmem:[%s24193_s17 + $0x30] sm:$0xff] }
0x61fa   :  { %20394 = vmatpush3.msra.mxu0 %v15389_v30 }
0x61fb   :  { %21186 = vmatprep.subr.bf16.mxu0 %v21185_v12 }
0x62c4   :  { %v20371_v33 = vpop.f32.mrb[164].mxu1 }
0x62c5   :  { %v15304_v28 = vpop.f32.mrb[165].mxu1  ;;  %v15310_v36 = vadd.f32 %v20371_v33, %v15237_v3  ;;  %v18162_v33 = vld [vmem:[%s24190_s15 + $0x250] sm:$0xff] }
0x62c6   :  { %v15305_v27 = vadd.f32 %v15304_v28, %v15237_v3 }
0x62c8   :  { %20384 = vmatpush3.xpose.msk.msra.mxu1 %vm453_vm5, %v15305_v27  ;;  %v21197_v27 = vpack.c.bf16 %v18163_v34, %v18162_v33 }
0x62c9   :  { %20388 = vmatprep.subr.mxu1 %v21562_v22 }
0x62cb   :  { %20386 = vmatmul.mubr.msk.f32.vlgmr.msra.gmra.mrb[166].mxu1 %vm453_vm5, %v15221_v35 }
0x62cc   :  { %20389 = vmatpush3.xpose.msk.msra.mxu1 %vm453_vm5, %v15310_v36  ;;  %20390 = vmatprep.mubr.msk.f32.mxu1 %vm21563_vm4, %v21562_v22 }
0x62cd   :  { %20398 = vmatprep.subr.mxu1 %v21562_v22 }
0x62cf   :  { %20391 = vmatmul.mubr.msk.f32.vlgmr.msra.gmra.mrb[168].mxu1 %vm453_vm5, %v15226_v46 }
0x62d0   :  { %20399 = vmatpush3.msra.mxu1 %v15394_v32  ;;  %20400 = vmatprep.mubr.msk.f32.mxu1 %vm21563_vm4, %v21562_v22  ;;  %v18160_v32 = vld [vmem:[%s24190_s15 + $0x240] sm:$0xff] }
0x62d1   :  { %20403 = vmatprep.subr.mxu1 %v18151_v44  ;;  %v21193_v30 = vpack.c.bf16 %v18161_v21, %v18160_v32  ;;  %v18183_v32 = vld [vmem:[%s24190_s15 + $0x1f0] sm:$0xff]  ;;  %v18184_v21 = vld [vmem:[%s24190_s15 + $0x1f8] sm:$0xff] }
0x62d2   :  { %v21213_v34 = vpack.c.bf16 %v18184_v21, %v18183_v32 }
0x639e   :  { %v15469_v37 = vpop.f32.mrb[166].mxu1 }
0x639f   :  { %v15549_v54 = vmul.f32 0.35355338, %v15469_v37  ;;  %v20387_v38 = vpop.f32.mrb[167].mxu1 }
0x63a1   :  { %v15551_v45 = vsel %vm453_vm5, %v15549_v54, -inf }
0x63a2   :  { %15552 = vmax.xlane.f32.xlu1 %v15551_v45  ;;  %v15545_v48 = vpop.f32.mrb[168].mxu1  ;;  %v15896_v45 = vrot.slane %v23752_v42, %v21972_v5 }
0x63a3   :  { %v15550_v49 = vmul.f32 0.35355338, %v15545_v48  ;;  %v20392_v41 = vpop.f32.mrb[169].mxu1  ;;  %v15812_v48 = vrot.slane %v23752_v42, %v21975_v6 }
0x63a4   :  { %v15980_v41 = vrot.slane %v23814_v19, %v21975_v6 }
0x63a5   :  { %v15554_v51 = vsel %vm453_vm5, %v15550_v49, -inf }
0x63a6   :  { %15555 = vmax.xlane.f32.xlu0 %v15554_v51 }
0x642f   :  { %v15553_v31 = vpop.xlane.xlu1 %15552 }
0x6430   :  { %v15557_v55 = vsub.f32 %v15549_v54, %v15553_v31 }
0x6432   :  { %v15559_v57 = vmul.f32 1.442695, %v15557_v55 }
0x6433   :  { %v15556_v47 = vpop.xlane.xlu0 %15555 }
0x6434   :  { %21522 = vpow2.f32 %v15559_v57  ;;  %v15558_v58 = vsub.f32 %v15550_v49, %v15556_v47 }
0x6436   :  { %v15561_v59 = vmul.f32 1.442695, %v15558_v58 }
0x6438   :  { %21524 = vpow2.f32 %v15561_v59 }
0x643e   :  { %v21523_v60 = vpop.eup %21522 }
0x643f   :  { %v15563_v61 = vsel %vm453_vm5, %v21523_v60, 0.0 }
0x6440   :  { %15564 = vadd.xlane.f32.xlu1 %v15563_v61 }
0x6442   :  { %v21525_v20 = vpop.eup %21524 }
0x6443   :  { %v15566_v2 = vsel %vm453_vm5, %v21525_v20, 0.0 }
0x6444   :  { %15567 = vadd.xlane.f32.xlu0 %v15566_v2 }
0x64cd   :  { %v15565_v11 = vpop.xlane.xlu1 %15564 }
0x64ce   :  { %21526 = vrcp.f32 %v15565_v11 }
0x64d1   :  { %v15568_v9 = vpop.xlane.xlu0 %15567 }
0x64d2   :  { %21528 = vrcp.f32 %v15568_v9 }
0x64d8   :  { %v21527_v15 = vpop.eup %21526 }
0x64d9   :  { %v15570_v17 = vmul.f32 %v21527_v15, %v21523_v60 }
0x64db   :  { %20396 = vmatmul.mubr.msk.f32.vlgmr.msra.gmra.mrb[162].mxu0 %vm453_vm5, %v15570_v17 }
0x64dc   :  { %v21529_v29 = vpop.eup %21528  ;;  %21188 = vmatpush3.bf16.msra.mxu0 %v21185_v12  ;;  %20416 = vmatprep.mubr.msk.f32.mxu0 %vm203_vm3, %v23792_v10 }
0x64dd   :  { %v15572_v25 = vmul.f32 %v21529_v29, %v21525_v20  ;;  %21190 = vmatprep.subr.bf16.mxu0 %v21189_v52 }
0x64df   :  { %20401 = vmatmul.mubr.msk.f32.vlgmr.msra.gmra.mrb[170].mxu1 %vm453_vm5, %v15572_v25  ;;  %v18181_v25 = vld [vmem:[%s24190_s15 + $0x1e0] sm:$0xff] }
0x64e0   :  { %21192 = vmatpush3.bf16.msra.mxu0 %v21189_v52  ;;  %20404 = vmatpush3.msra.mxu1 %v18151_v44 }
0x64e1   :  { %21202 = vmatprep.subr.bf16.mxu0 %v21201_v26  ;;  %21194 = vmatprep.subr.bf16.mxu1 %v21193_v30 }
0x64e3   :  { %20417 = vmatmul.mubr.msk.f32.vlgmr.msra.gmra.mrb[164].mxu0 %vm203_vm3, %v23794_v4 }
0x64e4   :  { %21204 = vmatpush3.bf16.msra.mxu0 %v21201_v26  ;;  %20438 = vmatprep.mubr.msk.f32.mxu0 %vm203_vm3, %v22981_v63  ;;  %v18182_v26 = vld [vmem:[%s24190_s15 + $0x1e8] sm:$0xff] }
0x64e5   :  { %21206 = vmatprep.subr.bf16.mxu0 %v21205_v39  ;;  %v21209_v40 = vpack.c.bf16 %v18182_v26, %v18181_v25 }
0x64e8   :  { %21208 = vmatpush3.bf16.msra.mxu0 %v21205_v39 }
0x64e9   :  { %20446 = vmatprep.subr.mxu0 %v21562_v22 }
0x64eb   :  { %20439 = vmatmul.mubr.msk.f32.vlgmr.msra.gmra.mrb[166].mxu0 %vm203_vm3, %v22983_v0 }
0x64ec   :  { %20448 = vmatprep.mubr.msk.f32.mxu0 %vm21563_vm4, %v21562_v22 }
0x65ae   :  { %v15642_v3 = vpop.f32.mrb[162].mxu0 }
0x65af   :  { %v20397_v28 = vpop.f32.mrb[163].mxu0  ;;  %20405 = vmatprep.mubr.msk.f32.mxu1 %vm453_vm5, %v15642_v3 }
0x65b2   :  { %v15715_v35 = vpop.f32.mrb[170].mxu1 }
0x65b3   :  { %v20402_v36 = vpop.f32.mrb[171].mxu1  ;;  %20406 = vmatmul.mubr.msk.f32.vlgmr.msra.gmra.mrb[162].mxu1 %vm453_vm5, %v15715_v35  ;;  %v18194_v35 = vld [vmem:[%s24190_s15 + $0x2e8] sm:$0xff] }
0x65b4   :  { %21196 = vmatpush3.bf16.msra.mxu1 %v21193_v30  ;;  %20427 = vmatprep.mubr.msk.f32.mxu1 %vm203_vm3, %v22981_v63 }
0x65b5   :  { %21198 = vmatprep.subr.bf16.mxu1 %v21197_v27 }
0x65b6   :  { %v20418_v46 = vpop.f32.mrb[164].mxu0 }
0x65b7   :  { %v15879_v37 = vpop.f32.mrb[165].mxu0  ;;  %v15885_v57 = vadd.f32 %v20418_v46, %v15812_v48  ;;  %v18195_v46 = vld [vmem:[%s24190_s15 + $0x2f0] sm:$0xff] }
0x65b8   :  { %21200 = vmatpush3.bf16.msra.mxu1 %v21197_v27  ;;  %v15880_v47 = vadd.f32 %v15879_v37, %v15812_v48  ;;  %v18193_v27 = vld [vmem:[%s24190_s15 + $0x2e0] sm:$0xff]  ;;  %v18196_v37 = vld [vmem:[%s24190_s15 + $0x2f8] sm:$0xff] }
0x65b9   :  { %20441 = vmatprep.subr.mxu1 %v21562_v22  ;;  %v21225_v36 = vpack.c.bf16 %v18194_v35, %v18193_v27  ;;  %v18205_v27 = vld [vmem:[%s24193_s17 + $0x38] sm:$0xff] }
0x65bb   :  { %20428 = vmatmul.mubr.msk.f32.vlgmr.msra.gmra.mrb[172].mxu1 %vm203_vm3, %v22983_v0 }
0x65bc   :  { %20443 = vmatprep.mubr.msk.f32.mxu1 %vm21563_vm4, %v21562_v22 }
0x65be   :  { %v20440_v54 = vpop.f32.mrb[166].mxu0 }
0x65bf   :  { %v16047_v38 = vpop.f32.mrb[167].mxu0  ;;  %v16053_v58 = vadd.f32 %v20440_v54, %v15980_v41  ;;  %v21229_v54 = vpack.c.bf16 %v18196_v37, %v18195_v46 }
0x65c0   :  { %v16048_v59 = vadd.f32 %v16047_v38, %v15980_v41  ;;  %v18187_v38 = vld [vmem:[%s24190_s15 + $0x260] sm:$0xff]  ;;  %v18190_v41 = vld [vmem:[%s24190_s15 + $0x278] sm:$0xff] }
0x668e   :  { %v20429_v49 = vpop.f32.mrb[172].mxu1 }
0x668f   :  { %v15969_v51 = vadd.f32 %v20429_v49, %v15896_v45  ;;  %v15963_v31 = vpop.f32.mrb[173].mxu1  ;;  %v18189_v49 = vld [vmem:[%s24190_s15 + $0x270] sm:$0xff] }
0x6690   :  { %v15964_v55 = vadd.f32 %v15963_v31, %v15896_v45  ;;  %v18188_v45 = vld [vmem:[%s24190_s15 + $0x268] sm:$0xff] }
0x6691   :  { %20447 = vmatpush3.xpose.msk.msra.mxu0 %vm453_vm5, %v15969_v51  ;;  %v21217_v48 = vpack.c.bf16 %v18188_v45, %v18187_v38 }
0x6692   :  { %20442 = vmatpush3.xpose.msk.msra.mxu1 %vm453_vm5, %v15964_v55  ;;  %20456 = vmatprep.subr.mxu0 %v21562_v22 }
0x6693   :  { %20451 = vmatprep.subr.mxu1 %v21562_v22 }
0x6694   :  { %20449 = vmatmul.mubr.msk.f32.vlgmr.msra.gmra.mrb[168].mxu0 %vm453_vm5, %v15885_v57  ;;  %v21221_v57 = vpack.c.bf16 %v18190_v41, %v18189_v49 }
0x6695   :  { %20444 = vmatmul.mubr.msk.f32.vlgmr.msra.gmra.mrb[174].mxu1 %vm453_vm5, %v15880_v47  ;;  %20457 = vmatpush3.msra.mxu0 %v16053_v58 }
0x6696   :  { %20452 = vmatpush3.msra.mxu1 %v16048_v59  ;;  %20458 = vmatprep.mubr.msk.f32.mxu0 %vm21563_vm4, %v21562_v22 }
0x6697   :  { %20453 = vmatprep.mubr.msk.f32.mxu1 %vm21563_vm4, %v21562_v22  ;;  %21210 = vmatprep.subr.bf16.mxu0 %v21209_v40 }
0x6698   :  { %20461 = vmatprep.subr.mxu1 %v18178_v1 }
0x6767   :  { %v16204_v6 = vpop.f32.mrb[168].mxu0 }
0x6768   :  { %v16209_v60 = vmul.f32 0.35355338, %v16204_v6  ;;  %v16128_v61 = vpop.f32.mrb[174].mxu1  ;;  %v20450_v20 = vpop.f32.mrb[169].mxu0  ;;  %v16639_v6 = vrot.slane %v23814_v19, %v22059_v16 }
0x6769   :  { %v16208_v2 = vmul.f32 0.35355338, %v16128_v61  ;;  %v20445_v7 = vpop.f32.mrb[175].mxu1 }
0x676a   :  { %v16213_v8 = vsel %vm453_vm5, %v16209_v60, -inf }
0x676b   :  { %16214 = vmax.xlane.f32.xlu0 %v16213_v8  ;;  %v16210_v12 = vsel %vm453_vm5, %v16208_v2, -inf  ;;  %v16471_v8 = vrot.slane %v23752_v42, %v22059_v16 }
0x676c   :  { %16211 = vmax.xlane.f32.xlu1 %v16210_v12 }
0x67f8   :  { %v16215_v11 = vpop.xlane.xlu0 %16214 }
0x67f9   :  { %v16217_v9 = vsub.f32 %v16209_v60, %v16215_v11  ;;  %v16212_v23 = vpop.xlane.xlu1 %16211 }
0x67fa   :  { %v16216_v14 = vsub.f32 %v16208_v2, %v16212_v23 }
0x67fb   :  { %v16220_v15 = vmul.f32 1.442695, %v16217_v9 }
0x67fc   :  { %v16218_v17 = vmul.f32 1.442695, %v16216_v14 }
0x67fd   :  { %21530 = vpow2.f32 %v16220_v15 }
0x67fe   :  { %21532 = vpow2.f32 %v16218_v17 }
0x6807   :  { %v21531_v52 = vpop.eup %21530 }
0x6808   :  { %v21533_v18 = vpop.eup %21532  ;;  %v16225_v53 = vsel %vm453_vm5, %v21531_v52, 0.0 }
0x6809   :  { %16226 = vadd.xlane.f32.xlu0 %v16225_v53  ;;  %v16222_v29 = vsel %vm453_vm5, %v21533_v18, 0.0 }
0x680a   :  { %16223 = vadd.xlane.f32.xlu1 %v16222_v29 }
0x6896   :  { %v16227_v39 = vpop.xlane.xlu0 %16226 }
0x6897   :  { %21534 = vrcp.f32 %v16227_v39  ;;  %v16224_v44 = vpop.xlane.xlu1 %16223 }
0x6898   :  { %21536 = vrcp.f32 %v16224_v44 }
0x68a1   :  { %v21535_v30 = vpop.eup %21534 }
0x68a2   :  { %v21537_v3 = vpop.eup %21536  ;;  %v16231_v33 = vmul.f32 %v21535_v30, %v21531_v52 }
0x68a3   :  { %v16229_v28 = vmul.f32 %v21537_v3, %v21533_v18 }
0x68a4   :  { %20459 = vmatmul.mubr.msk.f32.vlgmr.msra.gmra.mrb[170].mxu0 %vm453_vm5, %v16231_v33 }
0x68a5   :  { %21212 = vmatpush3.bf16.msra.mxu0 %v21209_v40  ;;  %20454 = vmatmul.mubr.msk.f32.vlgmr.msra.gmra.mrb[176].mxu1 %vm453_vm5, %v16229_v28 }
0x68a6   :  { %20474 = vmatprep.mubr.msk.f32.mxu0 %vm203_vm3, %v23792_v10  ;;  %21214 = vmatprep.subr.bf16.mxu0 %v21213_v34 }
0x68a7   :  { %20462 = vmatpush3.msra.mxu1 %v18178_v1 }
0x68a8   :  { %21218 = vmatprep.subr.bf16.mxu1 %v21217_v48 }
0x68a9   :  { %21216 = vmatpush3.bf16.msra.mxu0 %v21213_v34 }
0x68aa   :  { %21226 = vmatprep.subr.bf16.mxu0 %v21225_v36 }
0x68ac   :  { %20475 = vmatmul.mubr.msk.f32.vlgmr.msra.gmra.mrb[172].mxu0 %vm203_vm3, %v23794_v4 }
0x68ad   :  { %21228 = vmatpush3.bf16.msra.mxu0 %v21225_v36  ;;  %20496 = vmatprep.mubr.msk.f32.mxu0 %vm203_vm3, %v22981_v63 }
0x68ae   :  { %21230 = vmatprep.subr.bf16.mxu0 %v21229_v54 }
0x68b1   :  { %21232 = vmatpush3.bf16.msra.mxu0 %v21229_v54  ;;  %v14478_v54 = vrot.slane %v23745_v13, %v21885_v56 }
0x68b2   :  { %20509 = vmatprep.subr.mxu0 %v21562_v22 }
0x68b4   :  { %20497 = vmatmul.mubr.msk.f32.vlgmr.msra.gmra.mrb[174].mxu0 %vm203_vm3, %v22983_v0 }
0x68b5   :  { %20511 = vmatprep.mubr.msk.f32.mxu0 %vm21563_vm4, %v21562_v22 }
0x6977   :  { %v16374_v51 = vpop.f32.mrb[170].mxu0 }
0x6978   :  { %v16301_v31 = vpop.f32.mrb[176].mxu1  ;;  %v20460_v55 = vpop.f32.mrb[171].mxu0 }
0x6979   :  { %v20455_v47 = vpop.f32.mrb[177].mxu1  ;;  %20463 = vmatprep.mubr.msk.f32.mxu1 %vm453_vm5, %v16301_v31 }
0x697a   :  { %20464 = vmatmul.mubr.msk.f32.vlgmr.msra.gmra.mrb[162].mxu1 %vm453_vm5, %v16374_v51 }
0x697b   :  { %21220 = vmatpush3.bf16.msra.mxu1 %v21217_v48  ;;  %20485 = vmatprep.mubr.msk.f32.mxu1 %vm203_vm3, %v22981_v63  ;;  %v16555_v63 = vrot.slane %v23752_v42, %v22064_v24 }
0x697c   :  { %21222 = vmatprep.subr.bf16.mxu1 %v21221_v57 }
0x697f   :  { %v20476_v58 = vpop.f32.mrb[172].mxu0  ;;  %21224 = vmatpush3.bf16.msra.mxu1 %v21221_v57 }
0x6980   :  { %v16538_v59 = vpop.f32.mrb[173].mxu0  ;;  %20499 = vmatprep.subr.mxu1 %v21562_v22  ;;  %v16544_v9 = vadd.f32 %v20476_v58, %v16471_v8 }
0x6981   :  { %v16539_v11 = vadd.f32 %v16538_v59, %v16471_v8  ;;  %v18211_v8 = vld [vmem:[%s24194_s19 + $0x38] sm:$0xff] }
0x6982   :  { %20486 = vmatmul.mubr.msk.f32.vlgmr.msra.gmra.mrb[178].mxu1 %vm203_vm3, %v22983_v0 }
0x6983   :  { %20501 = vmatprep.mubr.msk.f32.mxu1 %vm21563_vm4, %v21562_v22 }
0x6987   :  { %v20498_v60 = vpop.f32.mrb[174].mxu0 }
0x6988   :  { %v16712_v61 = vadd.f32 %v20498_v60, %v16639_v6  ;;  %v16706_v20 = vpop.f32.mrb[175].mxu0 }
0x6989   :  { %v16707_v2 = vadd.f32 %v16706_v20, %v16639_v6 }
0x698b   :  { %20510 = vmatpush3.msra.mxu0 %v16707_v2  ;;  %v18209_v2 = vld [vmem:[%s24194_s19 + $0x28] sm:$0xff] }
0x6a55   :  { %v20487_v7 = vpop.f32.mrb[178].mxu1 }
0x6a56   :  { %v16622_v12 = vpop.f32.mrb[179].mxu1  ;;  %v16628_v19 = vadd.f32 %v20487_v7, %v16555_v63  ;;  %v18210_v7 = vld [vmem:[%s24194_s19 + $0x30] sm:$0xff] }
0x6a57   :  { %v16623_v0 = vadd.f32 %v16622_v12, %v16555_v63  ;;  %v21237_v12 = vpack.c.bf16 %v18211_v8, %v18210_v7 }
0x6a59   :  { %20500 = vmatpush3.xpose.msk.msra.mxu1 %vm453_vm5, %v16623_v0  ;;  %v18216_v0 = vld [vmem:[%s24195_s21 + $0x40] sm:$0xff] }
0x6a5a   :  { %20504 = vmatprep.subr.mxu1 %v21562_v22 }
0x6a5c   :  { %20502 = vmatmul.mubr.msk.f32.vlgmr.msra.gmra.mrb[180].mxu1 %vm453_vm5, %v16539_v11  ;;  %v18217_v11 = vld [vmem:[%s24195_s21 + $0x48] sm:$0xff] }
0x6a5d   :  { %20505 = vmatpush3.xpose.msk.msra.mxu1 %vm453_vm5, %v16628_v19  ;;  %20506 = vmatprep.mubr.msk.f32.mxu1 %vm21563_vm4, %v21562_v22  ;;  %v18218_v19 = vld [vmem:[%s24195_s21 + $0x50] sm:$0xff] }
0x6a5e   :  { %20514 = vmatprep.subr.mxu1 %v21562_v22 }
0x6a60   :  { %20507 = vmatmul.mubr.msk.f32.vlgmr.msra.gmra.mrb[182].mxu1 %vm453_vm5, %v16544_v9  ;;  %v21241_v9 = vpack.c.bf16 %v18217_v11, %v18216_v0 }
0x6a61   :  { %20515 = vmatpush3.msra.mxu1 %v16712_v61  ;;  %20516 = vmatprep.mubr.msk.f32.mxu1 %vm21563_vm4, %v21562_v22 }
0x6a62   :  { %20519 = vmatprep.subr.mxu1 %v18205_v27 }
0x6b2f   :  { %v16787_v16 = vpop.f32.mrb[180].mxu1 }
0x6b30   :  { %v16867_v42 = vmul.f32 0.35355338, %v16787_v16  ;;  %v20503_v23 = vpop.f32.mrb[181].mxu1  ;;  %v18219_v16 = vld [vmem:[%s24195_s21 + $0x58] sm:$0xff] }
0x6b31   :  { %v18220_v23 = vld [vmem:[%s24195_s21 + $0x60] sm:$0xff] }
0x6b32   :  { %v16869_v14 = vsel %vm453_vm5, %v16867_v42, -inf }
0x6b33   :  { %16870 = vmax.xlane.f32.xlu1 %v16869_v14  ;;  %v16863_v15 = vpop.f32.mrb[182].mxu1  ;;  %v18221_v14 = vld [vmem:[%s24195_s21 + $0x68] sm:$0xff] }
0x6b34   :  { %v16868_v17 = vmul.f32 0.35355338, %v16863_v15  ;;  %v20508_v52 = vpop.f32.mrb[183].mxu1  ;;  %v21249_v15 = vpack.c.bf16 %v18221_v14, %v18220_v23 }
0x6b36   :  { %v16872_v18 = vsel %vm453_vm5, %v16868_v17, -inf }
0x6b37   :  { %16873 = vmax.xlane.f32.xlu0 %v16872_v18 }
0x6bc0   :  { %v16871_v53 = vpop.xlane.xlu1 %16870 }
0x6bc1   :  { %v16875_v29 = vsub.f32 %v16867_v42, %v16871_v53  ;;  %v21245_v42 = vpack.c.bf16 %v18219_v16, %v18218_v19 }
0x6bc3   :  { %v16877_v25 = vmul.f32 1.442695, %v16875_v29 }
0x6bc4   :  { %v16874_v26 = vpop.xlane.xlu0 %16873 }
0x6bc5   :  { %21538 = vpow2.f32 %v16877_v25  ;;  %v16876_v40 = vsub.f32 %v16868_v17, %v16874_v26  ;;  %v21560_v26 = vld [vmem:[%s24189_s18 + $0x10] sm:$0xff] }
0x6bc6   :  { %v17383_v11 = vrot.slane %v21560_v26, %v21972_v5 }
0x6bc7   :  { %v16879_v1 = vmul.f32 1.442695, %v16876_v40  ;;  %v17153_v40 = vrot.slane %v21560_v26, %v21798_v50  ;;  %v18223_v50 = vld [vmem:[%s24195_s21 + $0x78] sm:$0xff] }
0x6bc9   :  { %21540 = vpow2.f32 %v16879_v1 }
0x6bcf   :  { %v21539_v22 = vpop.eup %21538 }
0x6bd0   :  { %v16881_v39 = vsel %vm453_vm5, %v21539_v22, 0.0 }
0x6bd1   :  { %16882 = vadd.xlane.f32.xlu1 %v16881_v39 }
0x6bd3   :  { %v21541_v44 = vpop.eup %21540 }
0x6bd4   :  { %v16884_v32 = vsel %vm453_vm5, %v21541_v44, 0.0 }
0x6bd5   :  { %16885 = vadd.xlane.f32.xlu0 %v16884_v32  ;;  %v17159_v32 = vrot.slane %v21560_v26, %v21890_v62  ;;  %v18213_v62 = vld [vmem:[%s24196_s20 + $0x1] ss:$0 sm:$0xff] }
0x6c5e   :  { %v16883_v21 = vpop.xlane.xlu1 %16882 }
0x6c5f   :  { %21542 = vrcp.f32 %v16883_v21 }
0x6c62   :  { %v16886_v30 = vpop.xlane.xlu0 %16885 }
0x6c63   :  { %21544 = vrcp.f32 %v16886_v30 }
0x6c69   :  { %v21543_v3 = vpop.eup %21542 }
0x6c6a   :  { %v16888_v33 = vmul.f32 %v21543_v3, %v21539_v22 }
0x6c6c   :  { %20512 = vmatmul.mubr.msk.f32.vlgmr.msra.gmra.mrb[176].mxu0 %vm453_vm5, %v16888_v33 }
0x6c6d   :  { %v21545_v34 = vpop.eup %21544 }
0x6c6e   :  { %v16890_v28 = vmul.f32 %v21545_v34, %v21541_v44  ;;  %v18222_v34 = vld [vmem:[%s24195_s21 + $0x70] sm:$0xff] }
0x6c70   :  { %20517 = vmatmul.mubr.msk.f32.vlgmr.msra.gmra.mrb[184].mxu1 %vm453_vm5, %v16890_v28  ;;  %v21253_v28 = vpack.c.bf16 %v18223_v50, %v18222_v34 }
0x6c71   :  { %20520 = vmatpush3.msra.mxu1 %v18205_v27 }
0x6c72   :  { %21242 = vmatprep.subr.bf16.mxu1 %v21241_v9 }
0x6d3f   :  { %v16960_v35 = vpop.f32.mrb[176].mxu0 }
0x6d40   :  { %v20513_v36 = vpop.f32.mrb[177].mxu0  ;;  %20521 = vmatprep.mubr.msk.f32.mxu1 %vm453_vm5, %v16960_v35 }
0x6d43   :  { %v17033_v46 = vpop.f32.mrb[184].mxu1 }
0x6d44   :  { %v20518_v37 = vpop.f32.mrb[185].mxu1  ;;  %20522 = vmatmul.mubr.msk.f32.vlgmr.msra.gmra.mrb[162].mxu1 %vm453_vm5, %v17033_v46 }
0x6d45   :  { %21244 = vmatpush3.bf16.msra.mxu1 %v21241_v9 }
0x6d46   :  { %21246 = vmatprep.subr.bf16.mxu1 %v21245_v42 }
0x6d49   :  { %21248 = vmatpush3.bf16.msra.mxu1 %v21245_v42  ;;  %v17389_v42 = vrot.slane %v21560_v26, %v22064_v24 }
0x6d4a   :  { %21250 = vmatprep.subr.bf16.mxu1 %v21249_v15 }
0x6d4d   :  { %21252 = vmatpush3.bf16.msra.mxu1 %v21249_v15 }
0x6d4e   :  { %21254 = vmatprep.subr.bf16.mxu1 %v21253_v28 }
0x6d51   :  { %21256 = vmatpush3.bf16.msra.mxu1 %v21253_v28 }
0x6e17   :  { %v20523_v38 = vpop.f32.mrb[162].mxu1 }
0x6e18   :  { %v21275_v45 = vadd.f32 %v20523_v38, %v14478_v54  ;;  %v17111_v48 = vpop.f32.mrb[163].mxu1  ;;  %v18224_v38 = vld [vmem:[%s24189_s18 + $0x18] ss:$0 sm:$0xff] }
0x6e19   :  { %v21276_v49 = vadd.f32 %v17111_v48, %v14478_v54 }
0x6e1a   :  { %v17123_v41 = vadd.f32 %v21275_v45, %v23794_v4 }
0x6e1b   :  { %v17122_v51 = vadd.f32 %v21276_v49, %v23792_v10  ;;  %v18208_v10 = vld [vmem:[%s24194_s19 + $0x20] sm:$0xff] }
0x6e1c   :  { %v17127_v31 = vsel %vm203_vm3, %v17123_v41, 0.0  ;;  %v21233_v63 = vpack.c.bf16 %v18209_v2, %v18208_v10 }
0x6e1d   :  { %17128 = vadd.xlane.f32.xlu0 %v17127_v31  ;;  %v17124_v55 = vsel %vm203_vm3, %v17122_v51, 0.0 }
0x6e1e   :  { %17125 = vadd.xlane.f32.xlu1 %v17124_v55  ;;  %21234 = vmatprep.subr.bf16.mxu0 %v21233_v63 }
0x6e1f   :  { %21236 = vmatpush3.bf16.msra.mxu0 %v21233_v63 }
0x6e20   :  { %21238 = vmatprep.subr.bf16.mxu0 %v21237_v12 }
0x6e23   :  { %21240 = vmatpush3.bf16.msra.mxu0 %v21237_v12 }
0x6eaa   :  { %v17129_v57 = vpop.xlane.xlu0 %17128 }
0x6eab   :  { %v17131_v47 = vmul.f32 0.03125, %v17129_v57  ;;  %v17126_v58 = vpop.xlane.xlu1 %17125 }
0x6eac   :  { %v17130_v59 = vmul.f32 0.03125, %v17126_v58 }
0x6ead   :  { %v17133_v6 = vsub.f32 %v17123_v41, %v17131_v47 }
0x6eae   :  { %v17132_v13 = vsub.f32 %v17122_v51, %v17130_v59 }
0x6eaf   :  { %v17135_v60 = vmul.f32 %v17133_v6, %v17133_v6 }
0x6eb0   :  { %v17134_v61 = vmul.f32 %v17132_v13, %v17132_v13 }
0x6eb1   :  { %v17139_v20 = vsel %vm203_vm3, %v17135_v60, 0.0 }
0x6eb2   :  { %17140 = vadd.xlane.f32.xlu0 %v17139_v20  ;;  %v17136_v4 = vsel %vm203_vm3, %v17134_v61, 0.0 }
0x6eb3   :  { %17137 = vadd.xlane.f32.xlu1 %v17136_v4 }
0x6f3f   :  { %v17141_v17 = vpop.xlane.xlu0 %17140 }
0x6f40   :  { %v17143_v52 = vmul.f32 0.03125, %v17141_v17  ;;  %v17138_v18 = vpop.xlane.xlu1 %17137 }
0x6f41   :  { %v17142_v53 = vmul.f32 0.03125, %v17138_v18 }
0x6f42   :  { %v17145_v29 = vadd.f32 1e-05, %v17143_v52 }
0x6f43   :  { %v17144_v25 = vadd.f32 1e-05, %v17142_v53 }
0x6f44   :  { %21546 = vrsqrt.f32 %v17145_v29 }
0x6f45   :  { %21548 = vrsqrt.f32 %v17144_v25 }
0x6f4e   :  { %v21547_v1 = vpop.eup %21546 }
0x6f4f   :  { %v21549_v22 = vpop.eup %21548  ;;  %v17149_v39 = vmul.f32 %v21547_v1, %v17133_v6 }
0x6f50   :  { %v17148_v44 = vmul.f32 %v21549_v22, %v17132_v13 }
0x6f51   :  { %v17155_v21 = vmul.f32 %v17153_v40, %v17149_v39 }
0x6f52   :  { %v17154_v30 = vmul.f32 %v17153_v40, %v17148_v44 }
0x6f53   :  { %v17161_v33 = vadd.f32 %v17159_v32, %v17155_v21  ;;  %v17432_v21 = vld [vmem:[%s24197_s23 + $0x8] sm:$0xff] }
0x6f54   :  { %v17160_v3 = vadd.f32 %v17159_v32, %v17154_v30  ;;  %v17431_v32 = vld [vmem:[%s24197_s23] sm:$0xff] }
0x6f55   :  { %v21257_v30 = vpack.c.bf16 %v17432_v21, %v17431_v32 }
0x6f56   :  { %20532 = vmatprep.mubr.msk.f32.mxu0 %vm203_vm3, %v17160_v3 }
0x6f57   :  { %20533 = vmatmul.mubr.msk.f32.vlgmr.msra.gmra.mrb[178].mxu0 %vm203_vm3, %v17161_v33  ;;  %21258 = vmatprep.subr.bf16.mxu0 %v21257_v30 }
0x6f58   :  { %21260 = vmatpush3.bf16.msra.mxu0 %v21257_v30 }
0x702a   :  { %v20534_v27 = vpop.f32.mrb[178].mxu0 }
0x702b   :  { %v17253_v35 = vadd.f32 %v20534_v27, %v18213_v62  ;;  %v17247_v36 = vpop.f32.mrb[179].mxu0 }
0x702c   :  { %v17248_v46 = vadd.f32 %v18213_v62, %v17247_v36 }
0x702d   :  { %v17257_v54 = vmax.f32 %v17253_v35, 0.0 }
0x702e   :  { %v17256_v37 = vmax.f32 %v17248_v46, 0.0  ;;  %v17392_v46 = vld [vmem:[%s24198_s22] sm:$0x3] }
0x7030   :  { %20551 = vmatprep.mubr.msk.f32.mxu1 %vm2984_vm6, %v17256_v37  ;;  %v17422_v37 = vrot.slane %v17392_v46, %v21788_v43 }
0x7031   :  { %20552 = vmatmul.mubr.msk.f32.vlgmr.msra.gmra.mrb[186].mxu1 %vm2984_vm6, %v17257_v54 }
0x7104   :  { %v20553_v45 = vpop.f32.mrb[186].mxu1 }
0x7105   :  { %v17349_v48 = vadd.f32 %v20553_v45, %v18224_v38  ;;  %v17343_v49 = vpop.f32.mrb[187].mxu1 }
0x7106   :  { %v17344_v41 = vadd.f32 %v18224_v38, %v17343_v49  ;;  %v17428_v49 = vrot.slane %v17392_v46, %v21885_v56 }
0x7107   :  { %v17353_v51 = vadd.f32 %v17349_v48, %v17161_v33  ;;  %v17434_v33 = vld [vmem:[%s24197_s23 + $0x18] sm:$0xff] }
0x7108   :  { %v17352_v31 = vadd.f32 %v17344_v41, %v17160_v3  ;;  %v17433_v3 = vld [vmem:[%s24197_s23 + $0x10] sm:$0xff] }
0x7109   :  { %v17357_v55 = vsel %vm203_vm3, %v17353_v51, 0.0  ;;  %v21261_v34 = vpack.c.bf16 %v17434_v33, %v17433_v3 }
0x710a   :  { %17358 = vadd.xlane.f32.xlu0 %v17357_v55  ;;  %v17354_v57 = vsel %vm203_vm3, %v17352_v31, 0.0 }
0x710b   :  { %17355 = vadd.xlane.f32.xlu1 %v17354_v57  ;;  %21262 = vmatprep.subr.bf16.mxu0 %v21261_v34  ;;  %v18227_v57 = vld [vmem:[%s24199_s24] ss:$0 sm:$0xff] }
0x710c   :  { %21264 = vmatpush3.bf16.msra.mxu0 %v21261_v34 }
0x7197   :  { %v17359_v47 = vpop.xlane.xlu0 %17358 }
0x7198   :  { %v17361_v58 = vmul.f32 0.03125, %v17359_v47  ;;  %v17356_v59 = vpop.xlane.xlu1 %17355 }
0x7199   :  { %v17360_v6 = vmul.f32 0.03125, %v17356_v59 }
0x719a   :  { %v17363_v13 = vsub.f32 %v17353_v51, %v17361_v58 }
0x719b   :  { %v17362_v60 = vsub.f32 %v17352_v31, %v17360_v6 }
0x719c   :  { %v17365_v61 = vmul.f32 %v17363_v13, %v17363_v13 }
0x719d   :  { %v17364_v20 = vmul.f32 %v17362_v60, %v17362_v60 }
0x719e   :  { %v17369_v4 = vsel %vm203_vm3, %v17365_v61, 0.0 }
0x719f   :  { %17370 = vadd.xlane.f32.xlu0 %v17369_v4  ;;  %v17366_v10 = vsel %vm203_vm3, %v17364_v20, 0.0 }
0x71a0   :  { %17367 = vadd.xlane.f32.xlu1 %v17366_v10 }
0x722c   :  { %v17371_v2 = vpop.xlane.xlu0 %17370 }
0x722d   :  { %v17373_v63 = vmul.f32 0.03125, %v17371_v2  ;;  %v17368_v7 = vpop.xlane.xlu1 %17367 }
0x722e   :  { %v17372_v8 = vmul.f32 0.03125, %v17368_v7 }
0x722f   :  { %v17375_v12 = vadd.f32 1e-05, %v17373_v63 }
0x7230   :  { %v17374_v0 = vadd.f32 1e-05, %v17372_v8 }
0x7231   :  { %21550 = vrsqrt.f32 %v17375_v12 }
0x7232   :  { %21552 = vrsqrt.f32 %v17374_v0 }
0x723b   :  { %v21551_v19 = vpop.eup %21550 }
0x723c   :  { %v21553_v9 = vpop.eup %21552  ;;  %v17379_v16 = vmul.f32 %v21551_v19, %v17363_v13 }
0x723d   :  { %v17378_v23 = vmul.f32 %v21553_v9, %v17362_v60 }
0x723e   :  { %v17385_v14 = vmul.f32 %v17383_v11, %v17379_v16 }
0x723f   :  { %v17384_v15 = vmul.f32 %v17383_v11, %v17378_v23 }
0x7240   :  { %v17391_v17 = vadd.f32 %v17389_v42, %v17385_v14 }
0x7241   :  { %v17390_v52 = vadd.f32 %v17389_v42, %v17384_v15 }
0x7242   :  { %v17396_v18 = vsel %vm203_vm3, %v17391_v17, 0.0 }
0x7243   :  { %17397 = vadd.xlane.f32.xlu0 %v17396_v18  ;;  %v17393_v53 = vsel %vm203_vm3, %v17390_v52, 0.0 }
0x7244   :  { %17394 = vadd.xlane.f32.xlu1 %v17393_v53 }
0x72d0   :  { %v17398_v29 = vpop.xlane.xlu0 %17397 }
0x72d1   :  { %v17400_v25 = vmul.f32 0.03125, %v17398_v29  ;;  %v17395_v40 = vpop.xlane.xlu1 %17394 }
0x72d2   :  { %v17399_v5 = vmul.f32 0.03125, %v17395_v40 }
0x72d3   :  { %v17402_v1 = vsub.f32 %v17391_v17, %v17400_v25 }
0x72d4   :  { %v17401_v22 = vsub.f32 %v17390_v52, %v17399_v5 }
0x72d5   :  { %v17404_v39 = vmul.f32 %v17402_v1, %v17402_v1 }
0x72d6   :  { %v17403_v44 = vmul.f32 %v17401_v22, %v17401_v22 }
0x72d7   :  { %v17408_v24 = vsel %vm203_vm3, %v17404_v39, 0.0 }
0x72d8   :  { %17409 = vadd.xlane.f32.xlu0 %v17408_v24  ;;  %v17405_v26 = vsel %vm203_vm3, %v17403_v44, 0.0 }
0x72d9   :  { %17406 = vadd.xlane.f32.xlu1 %v17405_v26 }
0x7365   :  { %v17410_v50 = vpop.xlane.xlu0 %17409 }
0x7366   :  { %v17412_v28 = vmul.f32 0.03125, %v17410_v50  ;;  %v17407_v62 = vpop.xlane.xlu1 %17406 }
0x7367   :  { %v17411_v27 = vmul.f32 0.03125, %v17407_v62 }
0x7368   :  { %v17414_v35 = vadd.f32 1e-05, %v17412_v28 }
0x7369   :  { %v17413_v36 = vadd.f32 1e-05, %v17411_v27 }
0x736a   :  { %21554 = vrsqrt.f32 %v17414_v35 }
0x736b   :  { %21556 = vrsqrt.f32 %v17413_v36 }
0x7374   :  { %v21555_v54 = vpop.eup %21554 }
0x7375   :  { %v21557_v38 = vpop.eup %21556  ;;  %v17418_v45 = vmul.f32 %v21555_v54, %v17402_v1 }
0x7376   :  { %v17417_v48 = vmul.f32 %v21557_v38, %v17401_v22 }
0x7377   :  { %v17424_v41 = vmul.f32 %v17422_v37, %v17418_v45 }
0x7378   :  { %v17423_v51 = vmul.f32 %v17422_v37, %v17417_v48 }
0x7379   :  { %v17430_v55 = vadd.f32 %v17428_v49, %v17424_v41 }
0x737a   :  { %v17429_v31 = vadd.f32 %v17428_v49, %v17423_v51 }
0x737c   :  { %20562 = vmatprep.mubr.msk.f32.mxu0 %vm203_vm3, %v17429_v31 }
0x737d   :  { %20563 = vmatmul.mubr.msk.f32.vlgmr.msra.gmra.mrb[180].mxu0 %vm203_vm3, %v17430_v55 }
0x7450   :  { %v20564_v47 = vpop.f32.mrb[180].mxu0 }
0x7451   :  { %v17520_v43 = vadd.f32 %v20564_v47, %v18227_v57  ;;  %v17514_v58 = vpop.f32.mrb[181].mxu0 }
0x7452   :  { %v17515_v59 = vadd.f32 %v18227_v57, %v17514_v58 }
0x7453   :  { %17524 = vst [vmem:[%s24233_s25 + $0x8] sm:$0xff] %v17520_v43 }
0x7454   :  { %17523 = vst [vmem:[%s24233_s25] sm:$0xff] %v17515_v59 }

</bundles_post_ra>
